<compile_context>
chip_gen: v7x
topology: tpu7x:2x2x1
jax: 0.10.0
libtpu: 0.0.40
codegen_flags: <defaults>
</compile_context>

<pallas_src>
import jax
import jax.numpy as jnp
import numpy as np
from jax.experimental import pallas as pl
from jax.experimental.pallas import tpu as pltpu


# -----------------------------------------------------------------------------
# Primary kernel: row-tiled, taps folded into K = 4C, output written interleaved.
# -----------------------------------------------------------------------------
def _upsample_kernel(xa_ref, xb_ref, w_ref, b_ref, o_ref):
    # xa_ref: (1, Ht,   W+2, C)  rows [h*Ht, h*Ht+Ht) of the zero-padded NHWC input
    # xb_ref: (1, 2,    W+2, C)  2-row bottom halo: rows [h*Ht+Ht, h*Ht+Ht+2)
    # w_ref : (2, 2, 4C, C)      folded ConvTranspose2d weights per output parity (r, s)
    # b_ref : (1, C)             bias (f32)
    # o_ref : (1, 2Ht, 2W, C)    interleaved output rows for this tile
    _, Ht, Wp2, C = xa_ref.shape
    W = Wp2 - 2
    R = Ht * W

    # Working slab: tile rows + halo -> (Ht+2, W+2, C).
    xt = jnp.concatenate([xa_ref[0], xb_ref[0]], axis=0)

    # The 9 distinct shifted windows, flattened to (Ht*W, C); reused by all 16 taps.
    win = [[xt[v:v + Ht, u:u + W, :].reshape(R, C) for u in range(3)]
           for v in range(3)]

    bias = b_ref[...].astype(jnp.float32)                      # (1, C)

    z = []
    for r in range(2):                      # output row parity (static unroll)
        ys = []
        for s in range(2):                  # output col parity (static unroll)
            # Fold the 4 (dh, dw) taps into a single K = 4C contraction.
            x4 = jnp.concatenate(
                [win[r][s], win[r][s + 1], win[r + 1][s], win[r + 1][s + 1]],
                axis=-1)                                        # (R, 4C)
            acc = jnp.dot(x4, w_ref[r, s],
                          preferred_element_type=jnp.float32)   # (R, C) f32
            ys.append(acc + bias)
        # Column-parity interleave along W: lanes (s, c) -> rows (i, 2j+s).
        z.append(jnp.concatenate(ys, axis=-1).reshape(Ht, 2 * W, C))
    # Row-parity interleave along H: (Ht, 2, 2W, C) -> (2Ht, 2W, C).
    o = jnp.concatenate([z[0][:, None], z[1][:, None]], axis=1)
    o_ref[0] = o.reshape(2 * Ht, 2 * W, C).astype(o_ref.dtype)


def _call_tiled(xp, wf, b2, N, C, H, W, Ht, out_dtype):
    nH = H // Ht
    return pl.pallas_call(
        _upsample_kernel,
        out_shape=jax.ShapeDtypeStruct((N, 2 * H, 2 * W, C), out_dtype),
        grid=(N, nH),
        in_specs=[
            # main Ht rows of the padded input for this tile
            pl.BlockSpec((1, Ht, W + 2, C), lambda n, h: (n, h, 0, 0)),
            # 2-row bottom halo: rows [(h+1)*Ht, (h+1)*Ht + 2)   (Ht is even)
            pl.BlockSpec((1, 2, W + 2, C),
                         lambda n, h: (n, (h + 1) * (Ht // 2), 0, 0)),
            pl.BlockSpec((2, 2, 4 * C, C), lambda n, h: (0, 0, 0, 0)),
            pl.BlockSpec((1, C), lambda n, h: (0, 0)),
        ],
        out_specs=pl.BlockSpec((1, 2 * Ht, 2 * W, C), lambda n, h: (n, h, 0, 0)),
        compiler_params=pltpu.CompilerParams(
            dimension_semantics=("parallel", "parallel")),
    )(xp, xp, wf, b2)


# -----------------------------------------------------------------------------
# Conservative fallback: per-parity output planes, 16 small dots, no interleave.
# -----------------------------------------------------------------------------
def _upsample_kernel_fallback(xp_ref, w_ref, b_ref, o_ref):
    # xp_ref: (1, H+2, W+2, C);  o_ref: (2, 2, 1, H*W, C) parity planes.
    _, Hp2, Wp2, C = xp_ref.shape
    H, W = Hp2 - 2, Wp2 - 2
    bias = b_ref[...].astype(jnp.float32)
    for r in range(2):
        for s in range(2):
            acc = jnp.zeros((H * W, C), jnp.float32)
            for dh in range(2):
                for dw in range(2):
                    xm = xp_ref[0, r + dh:r + dh + H, s + dw:s + dw + W, :]
                    wk = w_ref[r, s, (dh * 2 + dw) * C:(dh * 2 + dw + 1) * C, :]
                    acc = acc + jnp.dot(xm.reshape(H * W, C), wk,
                                        preferred_element_type=jnp.float32)
            o_ref[r, s, 0] = (acc + bias).astype(o_ref.dtype)


def _call_fallback(xp, wf, b2, N, C, H, W, out_dtype):
    planes = pl.pallas_call(
        _upsample_kernel_fallback,
        out_shape=jax.ShapeDtypeStruct((2, 2, N, H * W, C), out_dtype),
        grid=(N,),
        in_specs=[
            pl.BlockSpec((1, H + 2, W + 2, C), lambda n: (n, 0, 0, 0)),
            pl.BlockSpec((2, 2, 4 * C, C), lambda n: (0, 0, 0, 0)),
            pl.BlockSpec((1, C), lambda n: (0, 0)),
        ],
        out_specs=pl.BlockSpec((2, 2, 1, H * W, C), lambda n: (0, 0, n, 0, 0)),
        compiler_params=pltpu.CompilerParams(dimension_semantics=("parallel",)),
    )(xp, wf, b2)
    # planes[r, s, n, i*W + j, c] = y[n, 2i+r, 2j+s, c]
    y = planes.reshape(2, 2, N, H, W, C)
    return jnp.transpose(y, (2, 3, 0, 4, 1, 5)).reshape(N, 2 * H, 2 * W, C)


# -----------------------------------------------------------------------------
# Wrapper (PyTorch NCHW interface).
# -----------------------------------------------------------------------------
def _fold_weights(weight, dtype):
    # wf[r, s, (dh*2 + dw)*C + ci, co] = weight[ci, co, 3 - r - 2*dh, 3 - s - 2*dw]
    wf = jnp.stack([
        jnp.stack([
            jnp.concatenate([weight[:, :, 3 - r - 2 * dh, 3 - s - 2 * dw]
                             for dh in (0, 1) for dw in (0, 1)], axis=0)
            for s in range(2)], axis=0)
        for r in range(2)], axis=0)                     # (2, 2, 4C, C)
    return wf.astype(dtype)


def _pick_h_tile(H, max_tile=8):
    # Even tile height dividing H (the 2-row-halo BlockSpec needs an even tile).
    for ht in range(min(max_tile, H), 1, -1):
        if ht % 2 == 0 and H % ht == 0:
            return ht
    return None


def upsample(x_nchw, weight, bias, *, compute_dtype=jnp.bfloat16, h_tile=None):
    """ConvTranspose2d(dim, dim, 4, stride=2, padding=1) forward (PyTorch semantics).

    x_nchw : (N, C, H, W)
    weight : (C, C, 4, 4)  PyTorch layout (in_channels, out_channels, kH, kW)
    bias   : (C,)
    returns: (N, C, 2H, 2W) in x_nchw.dtype
    """
    N, C, H, W = x_nchw.shape
    out_dtype = x_nchw.dtype

    # NHWC (channels on the lane axis), zero-pad 1 on each spatial side, cast for MXU/DMA.
    # TODO(synk): fuse the zero-pad into the kernel by masking edge tiles.
    x = jnp.transpose(x_nchw, (0, 2, 3, 1)).astype(compute_dtype)
    xp = jnp.pad(x, ((0, 0), (1, 1), (1, 1), (0, 0)))   # (N, H+2, W+2, C)

    wf = _fold_weights(weight, compute_dtype)           # (2, 2, 4C, C)
    b2 = bias.reshape(1, C).astype(jnp.float32)

    Ht = h_tile if h_tile is not None else _pick_h_tile(H)
    if Ht is None:
        y = _call_fallback(xp, wf, b2, N, C, H, W, out_dtype)
    else:
        try:
            y = _call_tiled(xp, wf, b2, N, C, H, W, Ht, out_dtype)
        except Exception:
            # If the fused layout/interleave ops are rejected by the compiler,
            # degrade gracefully to the conservative kernel.
            y = _call_fallback(xp, wf, b2, N, C, H, W, out_dtype)
    return jnp.transpose(y, (0, 3, 1, 2))               # NHWC -> NCHW (interface)


def ref_conv_transpose(x_nchw, weight, bias):
    """Plain-JAX reference for ConvTranspose2d(C, C, 4, 2, 1) with PyTorch weights."""
    N, C, H, W = x_nchw.shape
    Co = weight.shape[1]
    y = jnp.zeros((N, Co, 2 * H + 2, 2 * W + 2), jnp.float32)
    for kh in range(4):
        for kw in range(4):
            contrib = jnp.einsum('nchw,cd->ndhw', x_nchw.astype(jnp.float32),
                                 weight[:, :, kh, kw].astype(jnp.float32))
            y = y.at[:, :, kh:kh + 2 * H:2, kw:kw + 2 * W:2].add(contrib)
    return y[:, :, 1:1 + 2 * H, 1:1 + 2 * W] + bias[None, :, None, None]


if __name__ == "__main__":
    key = jax.random.PRNGKey(0)
    k1, k2, k3 = jax.random.split(key, 3)

    N, C, H, W = 2, 8, 16, 16       # dim = C = 8
    x = jax.random.normal(k1, (N, C, H, W), jnp.float32)

    # Deterministic param init (PyTorch-like uniform bound = 1/sqrt(fan_in)).
    fan_in = C * 4 * 4
    bound = 1.0 / (fan_in ** 0.5)
    weight = jax.random.uniform(k2, (C, C, 4, 4), jnp.float32, -bound, bound)
    bias = jax.random.uniform(k3, (C,), jnp.float32, -bound, bound)

    y = jax.block_until_ready(upsample(x, weight, bias))
    assert y.shape == (N, C, 2 * H, 2 * W)

    # Reference on the same bf16-rounded operands (the kernel accumulates in f32).
    x_q = x.astype(jnp.bfloat16).astype(jnp.float32)
    w_q = weight.astype(jnp.bfloat16).astype(jnp.float32)
    y_ref = ref_conv_transpose(x_q, w_q, bias)
    np.testing.assert_allclose(np.asarray(y, np.float32), np.asarray(y_ref),
                               rtol=1e-4, atol=1e-4)
    print("KERNEL_OK")
</pallas_src>

<mosaic_0001>
module attributes {stable_mosaic.version = 11 : i64} {
  func.func @_upsample_kernel(%arg0: i32, %arg1: i32, %arg2: memref<1x8x18x8xbf16, #tpu.memory_space<vmem>>, %arg3: memref<1x2x18x8xbf16, #tpu.memory_space<vmem>>, %arg4: memref<2x2x32x8xbf16, #tpu.memory_space<vmem>>, %arg5: memref<1x8xf32, #tpu.memory_space<vmem>>, %arg6: memref<1x16x32x8xf32, #tpu.memory_space<vmem>>) attributes {dimension_semantics = [#tpu.dimension_semantics<parallel>, #tpu.dimension_semantics<parallel>], iteration_bounds = array<i64: 2, 2>, scalar_prefetch = 0 : i64, scratch_operands = 0 : i64, tpu.core_type = #tpu.core_type<tc>, window_params = [{transform_indices = @transform_0, window_bounds = array<i64: 1, 8, 18, 8>}, {transform_indices = @transform_1, window_bounds = array<i64: 1, 2, 18, 8>}, {pipeline_mode = #tpu.pipeline_mode<synchronous>, transform_indices = @transform_2, window_bounds = array<i64: 2, 2, 32, 8>}, {pipeline_mode = #tpu.pipeline_mode<synchronous>, transform_indices = @transform_3, window_bounds = array<i64: 1, 8>}, {transform_indices = @transform_4, window_bounds = array<i64: 1, 16, 32, 8>}]} {
    %c0 = arith.constant 0 : index
    %c0_0 = arith.constant 0 : index
    %c0_1 = arith.constant 0 : index
    %c0_2 = arith.constant 0 : index
    %0 = vector.load %arg2[%c0, %c0_0, %c0_1, %c0_2] : memref<1x8x18x8xbf16, #tpu.memory_space<vmem>>, vector<1x8x18x8xbf16>
    %1 = vector.shape_cast %0 : vector<1x8x18x8xbf16> to vector<8x18x8xbf16>
    %c0_3 = arith.constant 0 : index
    %c0_4 = arith.constant 0 : index
    %c0_5 = arith.constant 0 : index
    %c0_6 = arith.constant 0 : index
    %2 = vector.load %arg3[%c0_3, %c0_4, %c0_5, %c0_6] : memref<1x2x18x8xbf16, #tpu.memory_space<vmem>>, vector<1x2x18x8xbf16>
    %3 = vector.shape_cast %2 : vector<1x2x18x8xbf16> to vector<2x18x8xbf16>
    %4 = tpu.concatenate %1, %3 in 0 : vector<8x18x8xbf16>, vector<2x18x8xbf16> -> vector<10x18x8xbf16>
    %5 = vector.extract_strided_slice %4 {offsets = [0, 0, 0], sizes = [8, 16, 8], strides = [1, 1, 1]} : vector<10x18x8xbf16> to vector<8x16x8xbf16>
    %6 = vector.shape_cast %5 : vector<8x16x8xbf16> to vector<128x8xbf16>
    %7 = vector.extract_strided_slice %4 {offsets = [0, 1, 0], sizes = [8, 16, 8], strides = [1, 1, 1]} : vector<10x18x8xbf16> to vector<8x16x8xbf16>
    %8 = vector.shape_cast %7 : vector<8x16x8xbf16> to vector<128x8xbf16>
    %9 = vector.extract_strided_slice %4 {offsets = [0, 2, 0], sizes = [8, 16, 8], strides = [1, 1, 1]} : vector<10x18x8xbf16> to vector<8x16x8xbf16>
    %10 = vector.shape_cast %9 : vector<8x16x8xbf16> to vector<128x8xbf16>
    %11 = vector.extract_strided_slice %4 {offsets = [1, 0, 0], sizes = [8, 16, 8], strides = [1, 1, 1]} : vector<10x18x8xbf16> to vector<8x16x8xbf16>
    %12 = vector.shape_cast %11 : vector<8x16x8xbf16> to vector<128x8xbf16>
    %13 = vector.extract_strided_slice %4 {offsets = [1, 1, 0], sizes = [8, 16, 8], strides = [1, 1, 1]} : vector<10x18x8xbf16> to vector<8x16x8xbf16>
    %14 = vector.shape_cast %13 : vector<8x16x8xbf16> to vector<128x8xbf16>
    %15 = vector.extract_strided_slice %4 {offsets = [1, 2, 0], sizes = [8, 16, 8], strides = [1, 1, 1]} : vector<10x18x8xbf16> to vector<8x16x8xbf16>
    %16 = vector.shape_cast %15 : vector<8x16x8xbf16> to vector<128x8xbf16>
    %17 = vector.extract_strided_slice %4 {offsets = [2, 0, 0], sizes = [8, 16, 8], strides = [1, 1, 1]} : vector<10x18x8xbf16> to vector<8x16x8xbf16>
    %18 = vector.shape_cast %17 : vector<8x16x8xbf16> to vector<128x8xbf16>
    %19 = vector.extract_strided_slice %4 {offsets = [2, 1, 0], sizes = [8, 16, 8], strides = [1, 1, 1]} : vector<10x18x8xbf16> to vector<8x16x8xbf16>
    %20 = vector.shape_cast %19 : vector<8x16x8xbf16> to vector<128x8xbf16>
    %21 = vector.extract_strided_slice %4 {offsets = [2, 2, 0], sizes = [8, 16, 8], strides = [1, 1, 1]} : vector<10x18x8xbf16> to vector<8x16x8xbf16>
    %22 = vector.shape_cast %21 : vector<8x16x8xbf16> to vector<128x8xbf16>
    %c0_7 = arith.constant 0 : index
    %c0_8 = arith.constant 0 : index
    %23 = vector.load %arg5[%c0_7, %c0_8] : memref<1x8xf32, #tpu.memory_space<vmem>>, vector<1x8xf32>
    %24 = tpu.concatenate %6, %8, %12, %14 in 1 : vector<128x8xbf16>, vector<128x8xbf16>, vector<128x8xbf16>, vector<128x8xbf16> -> vector<128x32xbf16>
    %c0_9 = arith.constant 0 : index
    %c0_10 = arith.constant 0 : index
    %c0_11 = arith.constant 0 : index
    %c0_12 = arith.constant 0 : index
    %25 = vector.load %arg4[%c0_9, %c0_10, %c0_11, %c0_12] : memref<2x2x32x8xbf16, #tpu.memory_space<vmem>>, vector<1x1x32x8xbf16>
    %26 = vector.shape_cast %25 : vector<1x1x32x8xbf16> to vector<32x8xbf16>
    %cst = arith.constant dense<0.000000e+00> : vector<128x8xf32>
    %27 = tpu.matmul %24, %26, %cst {dimension_numbers = #tpu.dot_dimension_numbers<[1], [0], [0], [1], [0, 0, 1, 1], [], []>} : vector<128x32xbf16>, vector<32x8xbf16>, vector<128x8xf32> -> vector<128x8xf32>
    %28 = vector.broadcast %23 : vector<1x8xf32> to vector<128x8xf32>
    %29 = arith.addf %27, %28 : vector<128x8xf32>
    %30 = tpu.concatenate %8, %10, %14, %16 in 1 : vector<128x8xbf16>, vector<128x8xbf16>, vector<128x8xbf16>, vector<128x8xbf16> -> vector<128x32xbf16>
    %c0_13 = arith.constant 0 : index
    %c1 = arith.constant 1 : index
    %c0_14 = arith.constant 0 : index
    %c0_15 = arith.constant 0 : index
    %31 = vector.load %arg4[%c0_13, %c1, %c0_14, %c0_15] : memref<2x2x32x8xbf16, #tpu.memory_space<vmem>>, vector<1x1x32x8xbf16>
    %32 = vector.shape_cast %31 : vector<1x1x32x8xbf16> to vector<32x8xbf16>
    %cst_16 = arith.constant dense<0.000000e+00> : vector<128x8xf32>
    %33 = tpu.matmul %30, %32, %cst_16 {dimension_numbers = #tpu.dot_dimension_numbers<[1], [0], [0], [1], [0, 0, 1, 1], [], []>} : vector<128x32xbf16>, vector<32x8xbf16>, vector<128x8xf32> -> vector<128x8xf32>
    %34 = vector.broadcast %23 : vector<1x8xf32> to vector<128x8xf32>
    %35 = arith.addf %33, %34 : vector<128x8xf32>
    %36 = tpu.concatenate %29, %35 in 1 : vector<128x8xf32>, vector<128x8xf32> -> vector<128x16xf32>
    %37 = vector.shape_cast %36 : vector<128x16xf32> to vector<8x32x8xf32>
    %38 = tpu.concatenate %12, %14, %18, %20 in 1 : vector<128x8xbf16>, vector<128x8xbf16>, vector<128x8xbf16>, vector<128x8xbf16> -> vector<128x32xbf16>
    %c1_17 = arith.constant 1 : index
    %c0_18 = arith.constant 0 : index
    %c0_19 = arith.constant 0 : index
    %c0_20 = arith.constant 0 : index
    %39 = vector.load %arg4[%c1_17, %c0_18, %c0_19, %c0_20] : memref<2x2x32x8xbf16, #tpu.memory_space<vmem>>, vector<1x1x32x8xbf16>
    %40 = vector.shape_cast %39 : vector<1x1x32x8xbf16> to vector<32x8xbf16>
    %cst_21 = arith.constant dense<0.000000e+00> : vector<128x8xf32>
    %41 = tpu.matmul %38, %40, %cst_21 {dimension_numbers = #tpu.dot_dimension_numbers<[1], [0], [0], [1], [0, 0, 1, 1], [], []>} : vector<128x32xbf16>, vector<32x8xbf16>, vector<128x8xf32> -> vector<128x8xf32>
    %42 = vector.broadcast %23 : vector<1x8xf32> to vector<128x8xf32>
    %43 = arith.addf %41, %42 : vector<128x8xf32>
    %44 = tpu.concatenate %14, %16, %20, %22 in 1 : vector<128x8xbf16>, vector<128x8xbf16>, vector<128x8xbf16>, vector<128x8xbf16> -> vector<128x32xbf16>
    %c1_22 = arith.constant 1 : index
    %c1_23 = arith.constant 1 : index
    %c0_24 = arith.constant 0 : index
    %c0_25 = arith.constant 0 : index
    %45 = vector.load %arg4[%c1_22, %c1_23, %c0_24, %c0_25] : memref<2x2x32x8xbf16, #tpu.memory_space<vmem>>, vector<1x1x32x8xbf16>
    %46 = vector.shape_cast %45 : vector<1x1x32x8xbf16> to vector<32x8xbf16>
    %cst_26 = arith.constant dense<0.000000e+00> : vector<128x8xf32>
    %47 = tpu.matmul %44, %46, %cst_26 {dimension_numbers = #tpu.dot_dimension_numbers<[1], [0], [0], [1], [0, 0, 1, 1], [], []>} : vector<128x32xbf16>, vector<32x8xbf16>, vector<128x8xf32> -> vector<128x8xf32>
    %48 = vector.broadcast %23 : vector<1x8xf32> to vector<128x8xf32>
    %49 = arith.addf %47, %48 : vector<128x8xf32>
    %50 = tpu.concatenate %43, %49 in 1 : vector<128x8xf32>, vector<128x8xf32> -> vector<128x16xf32>
    %51 = vector.shape_cast %50 : vector<128x16xf32> to vector<8x32x8xf32>
    %52 = vector.shape_cast %37 : vector<8x32x8xf32> to vector<8x1x32x8xf32>
    %53 = vector.shape_cast %51 : vector<8x32x8xf32> to vector<8x1x32x8xf32>
    %54 = tpu.concatenate %52, %53 in 1 : vector<8x1x32x8xf32>, vector<8x1x32x8xf32> -> vector<8x2x32x8xf32>
    %55 = vector.shape_cast %54 : vector<8x2x32x8xf32> to vector<16x32x8xf32>
    %c0_27 = arith.constant 0 : index
    %c0_28 = arith.constant 0 : index
    %c0_29 = arith.constant 0 : index
    %c0_30 = arith.constant 0 : index
    %56 = vector.load %arg6[%c0_27, %c0_28, %c0_29, %c0_30] : memref<1x16x32x8xf32, #tpu.memory_space<vmem>>, vector<1x16x32x8xf32>
    %57 = vector.shape_cast %56 : vector<1x16x32x8xf32> to vector<16x32x8xf32>
    %58 = vector.shape_cast %55 : vector<16x32x8xf32> to vector<1x16x32x8xf32>
    tpu.vector_store %arg6[%c0_27, %c0_28, %c0_29, %c0_30], %58 {strides = array<i32>} : memref<1x16x32x8xf32, #tpu.memory_space<vmem>>, vector<1x16x32x8xf32>,
    return
  }
  func.func @transform_0(%arg0: i32, %arg1: i32) -> (i32, i32, i32, i32) {
    %c0_i32 = arith.constant 0 : i32
    %c0_i32_0 = arith.constant 0 : i32
    %c0_i32_1 = arith.constant 0 : i32
    return %arg0, %arg1, %c0_i32, %c0_i32_0 : i32, i32, i32, i32
  }
  func.func @transform_1(%arg0: i32, %arg1: i32) -> (i32, i32, i32, i32) {
    %c1_i32 = arith.constant 1 : i32
    %0 = arith.addi %arg1, %c1_i32 : i32
    %c4_i32 = arith.constant 4 : i32
    %1 = arith.muli %0, %c4_i32 : i32
    %c0_i32 = arith.constant 0 : i32
    %c0_i32_0 = arith.constant 0 : i32
    %c0_i32_1 = arith.constant 0 : i32
    return %arg0, %1, %c0_i32, %c0_i32_0 : i32, i32, i32, i32
  }
  func.func @transform_2(%arg0: i32, %arg1: i32) -> (i32, i32, i32, i32) {
    %c0_i32 = arith.constant 0 : i32
    %c0_i32_0 = arith.constant 0 : i32
    %c0_i32_1 = arith.constant 0 : i32
    %c0_i32_2 = arith.constant 0 : i32
    %c0_i32_3 = arith.constant 0 : i32
    return %c0_i32, %c0_i32_0, %c0_i32_1, %c0_i32_2 : i32, i32, i32, i32
  }
  func.func @transform_3(%arg0: i32, %arg1: i32) -> (i32, i32) {
    %c0_i32 = arith.constant 0 : i32
    %c0_i32_0 = arith.constant 0 : i32
    %c0_i32_1 = arith.constant 0 : i32
    return %c0_i32, %c0_i32_0 : i32, i32
  }
  func.func @transform_4(%arg0: i32, %arg1: i32) -> (i32, i32, i32, i32) {
    %c0_i32 = arith.constant 0 : i32
    %c0_i32_0 = arith.constant 0 : i32
    %c0_i32_1 = arith.constant 0 : i32
    return %arg0, %arg1, %c0_i32, %c0_i32_0 : i32, i32, i32, i32
  }
}

module attributes {stable_mosaic.version = 11 : i64} {
  func.func @_upsample_kernel_fallback(%arg0: i32, %arg1: memref<1x18x18x8xbf16, #tpu.memory_space<vmem>>, %arg2: memref<2x2x32x8xbf16, #tpu.memory_space<vmem>>, %arg3: memref<1x8xf32, #tpu.memory_space<vmem>>, %arg4: memref<2x2x1x256x8xf32, #tpu.memory_space<vmem>>) attributes {dimension_semantics = [#tpu.dimension_semantics<parallel>], iteration_bounds = array<i64: 2>, scalar_prefetch = 0 : i64, scratch_operands = 0 : i64, tpu.core_type = #tpu.core_type<tc>, window_params = [{transform_indices = @transform_0, window_bounds = array<i64: 1, 18, 18, 8>}, {pipeline_mode = #tpu.pipeline_mode<synchronous>, transform_indices = @transform_1, window_bounds = array<i64: 2, 2, 32, 8>}, {pipeline_mode = #tpu.pipeline_mode<synchronous>, transform_indices = @transform_2, window_bounds = array<i64: 1, 8>}, {transform_indices = @transform_3, window_bounds = array<i64: 2, 2, 1, 256, 8>}]} {
    %c0 = arith.constant 0 : index
    %c0_0 = arith.constant 0 : index
    %0 = vector.load %arg3[%c0, %c0_0] : memref<1x8xf32, #tpu.memory_space<vmem>>, vector<1x8xf32>
    %cst = arith.constant 0.000000e+00 : f32
    %1 = vector.broadcast %cst : f32 to vector<256x8xf32>
    %c0_1 = arith.constant 0 : index
    %c0_2 = arith.constant 0 : index
    %c0_3 = arith.constant 0 : index
    %c0_4 = arith.constant 0 : index
    %2 = vector.load %arg1[%c0_1, %c0_2, %c0_3, %c0_4] : memref<1x18x18x8xbf16, #tpu.memory_space<vmem>>, vector<1x16x16x8xbf16>
    %3 = vector.shape_cast %2 : vector<1x16x16x8xbf16> to vector<16x16x8xbf16>
    %c0_5 = arith.constant 0 : index
    %c0_6 = arith.constant 0 : index
    %c0_7 = arith.constant 0 : index
    %c0_8 = arith.constant 0 : index
    %4 = vector.load %arg2[%c0_5, %c0_6, %c0_7, %c0_8] : memref<2x2x32x8xbf16, #tpu.memory_space<vmem>>, vector<1x1x8x8xbf16>
    %5 = vector.shape_cast %4 : vector<1x1x8x8xbf16> to vector<8x8xbf16>
    %6 = vector.shape_cast %3 : vector<16x16x8xbf16> to vector<256x8xbf16>
    %cst_9 = arith.constant dense<0.000000e+00> : vector<256x8xf32>
    %7 = tpu.matmul %6, %5, %cst_9 {dimension_numbers = #tpu.dot_dimension_numbers<[1], [0], [0], [1], [0, 0, 1, 1], [], []>} : vector<256x8xbf16>, vector<8x8xbf16>, vector<256x8xf32> -> vector<256x8xf32>
    %8 = arith.addf %1, %7 : vector<256x8xf32>
    %c0_10 = arith.constant 0 : index
    %c0_11 = arith.constant 0 : index
    %c1 = arith.constant 1 : index
    %c0_12 = arith.constant 0 : index
    %9 = vector.load %arg1[%c0_10, %c0_11, %c1, %c0_12] : memref<1x18x18x8xbf16, #tpu.memory_space<vmem>>, vector<1x16x16x8xbf16>
    %10 = vector.shape_cast %9 : vector<1x16x16x8xbf16> to vector<16x16x8xbf16>
    %c0_13 = arith.constant 0 : index
    %c0_14 = arith.constant 0 : index
    %c8 = arith.constant 8 : index
    %c0_15 = arith.constant 0 : index
    %11 = vector.load %arg2[%c0_13, %c0_14, %c8, %c0_15] : memref<2x2x32x8xbf16, #tpu.memory_space<vmem>>, vector<1x1x8x8xbf16>
    %12 = vector.shape_cast %11 : vector<1x1x8x8xbf16> to vector<8x8xbf16>
    %13 = vector.shape_cast %10 : vector<16x16x8xbf16> to vector<256x8xbf16>
    %cst_16 = arith.constant dense<0.000000e+00> : vector<256x8xf32>
    %14 = tpu.matmul %13, %12, %cst_16 {dimension_numbers = #tpu.dot_dimension_numbers<[1], [0], [0], [1], [0, 0, 1, 1], [], []>} : vector<256x8xbf16>, vector<8x8xbf16>, vector<256x8xf32> -> vector<256x8xf32>
    %15 = arith.addf %8, %14 : vector<256x8xf32>
    %c0_17 = arith.constant 0 : index
    %c1_18 = arith.constant 1 : index
    %c0_19 = arith.constant 0 : index
    %c0_20 = arith.constant 0 : index
    %16 = vector.load %arg1[%c0_17, %c1_18, %c0_19, %c0_20] : memref<1x18x18x8xbf16, #tpu.memory_space<vmem>>, vector<1x16x16x8xbf16>
    %17 = vector.shape_cast %16 : vector<1x16x16x8xbf16> to vector<16x16x8xbf16>
    %c0_21 = arith.constant 0 : index
    %c0_22 = arith.constant 0 : index
    %c16 = arith.constant 16 : index
    %c0_23 = arith.constant 0 : index
    %18 = vector.load %arg2[%c0_21, %c0_22, %c16, %c0_23] : memref<2x2x32x8xbf16, #tpu.memory_space<vmem>>, vector<1x1x8x8xbf16>
    %19 = vector.shape_cast %18 : vector<1x1x8x8xbf16> to vector<8x8xbf16>
    %20 = vector.shape_cast %17 : vector<16x16x8xbf16> to vector<256x8xbf16>
    %cst_24 = arith.constant dense<0.000000e+00> : vector<256x8xf32>
    %21 = tpu.matmul %20, %19, %cst_24 {dimension_numbers = #tpu.dot_dimension_numbers<[1], [0], [0], [1], [0, 0, 1, 1], [], []>} : vector<256x8xbf16>, vector<8x8xbf16>, vector<256x8xf32> -> vector<256x8xf32>
    %22 = arith.addf %15, %21 : vector<256x8xf32>
    %c0_25 = arith.constant 0 : index
    %c1_26 = arith.constant 1 : index
    %c1_27 = arith.constant 1 : index
    %c0_28 = arith.constant 0 : index
    %23 = vector.load %arg1[%c0_25, %c1_26, %c1_27, %c0_28] : memref<1x18x18x8xbf16, #tpu.memory_space<vmem>>, vector<1x16x16x8xbf16>
    %24 = vector.shape_cast %23 : vector<1x16x16x8xbf16> to vector<16x16x8xbf16>
    %c0_29 = arith.constant 0 : index
    %c0_30 = arith.constant 0 : index
    %c24 = arith.constant 24 : index
    %c0_31 = arith.constant 0 : index
    %25 = vector.load %arg2[%c0_29, %c0_30, %c24, %c0_31] : memref<2x2x32x8xbf16, #tpu.memory_space<vmem>>, vector<1x1x8x8xbf16>
    %26 = vector.shape_cast %25 : vector<1x1x8x8xbf16> to vector<8x8xbf16>
    %27 = vector.shape_cast %24 : vector<16x16x8xbf16> to vector<256x8xbf16>
    %cst_32 = arith.constant dense<0.000000e+00> : vector<256x8xf32>
    %28 = tpu.matmul %27, %26, %cst_32 {dimension_numbers = #tpu.dot_dimension_numbers<[1], [0], [0], [1], [0, 0, 1, 1], [], []>} : vector<256x8xbf16>, vector<8x8xbf16>, vector<256x8xf32> -> vector<256x8xf32>
    %29 = arith.addf %22, %28 : vector<256x8xf32>
    %30 = vector.broadcast %0 : vector<1x8xf32> to vector<256x8xf32>
    %31 = arith.addf %29, %30 : vector<256x8xf32>
    %c0_33 = arith.constant 0 : index
    %c0_34 = arith.constant 0 : index
    %c0_35 = arith.constant 0 : index
    %c0_36 = arith.constant 0 : index
    %c0_37 = arith.constant 0 : index
    %32 = vector.load %arg4[%c0_33, %c0_34, %c0_35, %c0_36, %c0_37] : memref<2x2x1x256x8xf32, #tpu.memory_space<vmem>>, vector<1x1x1x256x8xf32>
    %33 = vector.shape_cast %32 : vector<1x1x1x256x8xf32> to vector<256x8xf32>
    %34 = vector.shape_cast %31 : vector<256x8xf32> to vector<1x1x1x256x8xf32>
    tpu.vector_store %arg4[%c0_33, %c0_34, %c0_35, %c0_36, %c0_37], %34 {strides = array<i32>} : memref<2x2x1x256x8xf32, #tpu.memory_space<vmem>>, vector<1x1x1x256x8xf32>,
    %cst_38 = arith.constant 0.000000e+00 : f32
    %35 = vector.broadcast %cst_38 : f32 to vector<256x8xf32>
    %c0_39 = arith.constant 0 : index
    %c0_40 = arith.constant 0 : index
    %c1_41 = arith.constant 1 : index
    %c0_42 = arith.constant 0 : index
    %36 = vector.load %arg1[%c0_39, %c0_40, %c1_41, %c0_42] : memref<1x18x18x8xbf16, #tpu.memory_space<vmem>>, vector<1x16x16x8xbf16>
    %37 = vector.shape_cast %36 : vector<1x16x16x8xbf16> to vector<16x16x8xbf16>
    %c0_43 = arith.constant 0 : index
    %c1_44 = arith.constant 1 : index
    %c0_45 = arith.constant 0 : index
    %c0_46 = arith.constant 0 : index
    %38 = vector.load %arg2[%c0_43, %c1_44, %c0_45, %c0_46] : memref<2x2x32x8xbf16, #tpu.memory_space<vmem>>, vector<1x1x8x8xbf16>
    %39 = vector.shape_cast %38 : vector<1x1x8x8xbf16> to vector<8x8xbf16>
    %40 = vector.shape_cast %37 : vector<16x16x8xbf16> to vector<256x8xbf16>
    %cst_47 = arith.constant dense<0.000000e+00> : vector<256x8xf32>
    %41 = tpu.matmul %40, %39, %cst_47 {dimension_numbers = #tpu.dot_dimension_numbers<[1], [0], [0], [1], [0, 0, 1, 1], [], []>} : vector<256x8xbf16>, vector<8x8xbf16>, vector<256x8xf32> -> vector<256x8xf32>
    %42 = arith.addf %35, %41 : vector<256x8xf32>
    %c0_48 = arith.constant 0 : index
    %c0_49 = arith.constant 0 : index
    %c2 = arith.constant 2 : index
    %c0_50 = arith.constant 0 : index
    %43 = vector.load %arg1[%c0_48, %c0_49, %c2, %c0_50] : memref<1x18x18x8xbf16, #tpu.memory_space<vmem>>, vector<1x16x16x8xbf16>
    %44 = vector.shape_cast %43 : vector<1x16x16x8xbf16> to vector<16x16x8xbf16>
    %c0_51 = arith.constant 0 : index
    %c1_52 = arith.constant 1 : index
    %c8_53 = arith.constant 8 : index
    %c0_54 = arith.constant 0 : index
    %45 = vector.load %arg2[%c0_51, %c1_52, %c8_53, %c0_54] : memref<2x2x32x8xbf16, #tpu.memory_space<vmem>>, vector<1x1x8x8xbf16>
    %46 = vector.shape_cast %45 : vector<1x1x8x8xbf16> to vector<8x8xbf16>
    %47 = vector.shape_cast %44 : vector<16x16x8xbf16> to vector<256x8xbf16>
    %cst_55 = arith.constant dense<0.000000e+00> : vector<256x8xf32>
    %48 = tpu.matmul %47, %46, %cst_55 {dimension_numbers = #tpu.dot_dimension_numbers<[1], [0], [0], [1], [0, 0, 1, 1], [], []>} : vector<256x8xbf16>, vector<8x8xbf16>, vector<256x8xf32> -> vector<256x8xf32>
    %49 = arith.addf %42, %48 : vector<256x8xf32>
    %c0_56 = arith.constant 0 : index
    %c1_57 = arith.constant 1 : index
    %c1_58 = arith.constant 1 : index
    %c0_59 = arith.constant 0 : index
    %50 = vector.load %arg1[%c0_56, %c1_57, %c1_58, %c0_59] : memref<1x18x18x8xbf16, #tpu.memory_space<vmem>>, vector<1x16x16x8xbf16>
    %51 = vector.shape_cast %50 : vector<1x16x16x8xbf16> to vector<16x16x8xbf16>
    %c0_60 = arith.constant 0 : index
    %c1_61 = arith.constant 1 : index
    %c16_62 = arith.constant 16 : index
    %c0_63 = arith.constant 0 : index
    %52 = vector.load %arg2[%c0_60, %c1_61, %c16_62, %c0_63] : memref<2x2x32x8xbf16, #tpu.memory_space<vmem>>, vector<1x1x8x8xbf16>
    %53 = vector.shape_cast %52 : vector<1x1x8x8xbf16> to vector<8x8xbf16>
    %54 = vector.shape_cast %51 : vector<16x16x8xbf16> to vector<256x8xbf16>
    %cst_64 = arith.constant dense<0.000000e+00> : vector<256x8xf32>
    %55 = tpu.matmul %54, %53, %cst_64 {dimension_numbers = #tpu.dot_dimension_numbers<[1], [0], [0], [1], [0, 0, 1, 1], [], []>} : vector<256x8xbf16>, vector<8x8xbf16>, vector<256x8xf32> -> vector<256x8xf32>
    %56 = arith.addf %49, %55 : vector<256x8xf32>
    %c0_65 = arith.constant 0 : index
    %c1_66 = arith.constant 1 : index
    %c2_67 = arith.constant 2 : index
    %c0_68 = arith.constant 0 : index
    %57 = vector.load %arg1[%c0_65, %c1_66, %c2_67, %c0_68] : memref<1x18x18x8xbf16, #tpu.memory_space<vmem>>, vector<1x16x16x8xbf16>
    %58 = vector.shape_cast %57 : vector<1x16x16x8xbf16> to vector<16x16x8xbf16>
    %c0_69 = arith.constant 0 : index
    %c1_70 = arith.constant 1 : index
    %c24_71 = arith.constant 24 : index
    %c0_72 = arith.constant 0 : index
    %59 = vector.load %arg2[%c0_69, %c1_70, %c24_71, %c0_72] : memref<2x2x32x8xbf16, #tpu.memory_space<vmem>>, vector<1x1x8x8xbf16>
    %60 = vector.shape_cast %59 : vector<1x1x8x8xbf16> to vector<8x8xbf16>
    %61 = vector.shape_cast %58 : vector<16x16x8xbf16> to vector<256x8xbf16>
    %cst_73 = arith.constant dense<0.000000e+00> : vector<256x8xf32>
    %62 = tpu.matmul %61, %60, %cst_73 {dimension_numbers = #tpu.dot_dimension_numbers<[1], [0], [0], [1], [0, 0, 1, 1], [], []>} : vector<256x8xbf16>, vector<8x8xbf16>, vector<256x8xf32> -> vector<256x8xf32>
    %63 = arith.addf %56, %62 : vector<256x8xf32>
    %64 = vector.broadcast %0 : vector<1x8xf32> to vector<256x8xf32>
    %65 = arith.addf %63, %64 : vector<256x8xf32>
    %c0_74 = arith.constant 0 : index
    %c1_75 = arith.constant 1 : index
    %c0_76 = arith.constant 0 : index
    %c0_77 = arith.constant 0 : index
    %c0_78 = arith.constant 0 : index
    %66 = vector.load %arg4[%c0_74, %c1_75, %c0_76, %c0_77, %c0_78] : memref<2x2x1x256x8xf32, #tpu.memory_space<vmem>>, vector<1x1x1x256x8xf32>
    %67 = vector.shape_cast %66 : vector<1x1x1x256x8xf32> to vector<256x8xf32>
    %68 = vector.shape_cast %65 : vector<256x8xf32> to vector<1x1x1x256x8xf32>
    tpu.vector_store %arg4[%c0_74, %c1_75, %c0_76, %c0_77, %c0_78], %68 {strides = array<i32>} : memref<2x2x1x256x8xf32, #tpu.memory_space<vmem>>, vector<1x1x1x256x8xf32>,
    %cst_79 = arith.constant 0.000000e+00 : f32
    %69 = vector.broadcast %cst_79 : f32 to vector<256x8xf32>
    %c0_80 = arith.constant 0 : index
    %c1_81 = arith.constant 1 : index
    %c0_82 = arith.constant 0 : index
    %c0_83 = arith.constant 0 : index
    %70 = vector.load %arg1[%c0_80, %c1_81, %c0_82, %c0_83] : memref<1x18x18x8xbf16, #tpu.memory_space<vmem>>, vector<1x16x16x8xbf16>
    %71 = vector.shape_cast %70 : vector<1x16x16x8xbf16> to vector<16x16x8xbf16>
    %c1_84 = arith.constant 1 : index
    %c0_85 = arith.constant 0 : index
    %c0_86 = arith.constant 0 : index
    %c0_87 = arith.constant 0 : index
    %72 = vector.load %arg2[%c1_84, %c0_85, %c0_86, %c0_87] : memref<2x2x32x8xbf16, #tpu.memory_space<vmem>>, vector<1x1x8x8xbf16>
    %73 = vector.shape_cast %72 : vector<1x1x8x8xbf16> to vector<8x8xbf16>
    %74 = vector.shape_cast %71 : vector<16x16x8xbf16> to vector<256x8xbf16>
    %cst_88 = arith.constant dense<0.000000e+00> : vector<256x8xf32>
    %75 = tpu.matmul %74, %73, %cst_88 {dimension_numbers = #tpu.dot_dimension_numbers<[1], [0], [0], [1], [0, 0, 1, 1], [], []>} : vector<256x8xbf16>, vector<8x8xbf16>, vector<256x8xf32> -> vector<256x8xf32>
    %76 = arith.addf %69, %75 : vector<256x8xf32>
    %c0_89 = arith.constant 0 : index
    %c1_90 = arith.constant 1 : index
    %c1_91 = arith.constant 1 : index
    %c0_92 = arith.constant 0 : index
    %77 = vector.load %arg1[%c0_89, %c1_90, %c1_91, %c0_92] : memref<1x18x18x8xbf16, #tpu.memory_space<vmem>>, vector<1x16x16x8xbf16>
    %78 = vector.shape_cast %77 : vector<1x16x16x8xbf16> to vector<16x16x8xbf16>
    %c1_93 = arith.constant 1 : index
    %c0_94 = arith.constant 0 : index
    %c8_95 = arith.constant 8 : index
    %c0_96 = arith.constant 0 : index
    %79 = vector.load %arg2[%c1_93, %c0_94, %c8_95, %c0_96] : memref<2x2x32x8xbf16, #tpu.memory_space<vmem>>, vector<1x1x8x8xbf16>
    %80 = vector.shape_cast %79 : vector<1x1x8x8xbf16> to vector<8x8xbf16>
    %81 = vector.shape_cast %78 : vector<16x16x8xbf16> to vector<256x8xbf16>
    %cst_97 = arith.constant dense<0.000000e+00> : vector<256x8xf32>
    %82 = tpu.matmul %81, %80, %cst_97 {dimension_numbers = #tpu.dot_dimension_numbers<[1], [0], [0], [1], [0, 0, 1, 1], [], []>} : vector<256x8xbf16>, vector<8x8xbf16>, vector<256x8xf32> -> vector<256x8xf32>
    %83 = arith.addf %76, %82 : vector<256x8xf32>
    %c0_98 = arith.constant 0 : index
    %c2_99 = arith.constant 2 : index
    %c0_100 = arith.constant 0 : index
    %c0_101 = arith.constant 0 : index
    %84 = vector.load %arg1[%c0_98, %c2_99, %c0_100, %c0_101] : memref<1x18x18x8xbf16, #tpu.memory_space<vmem>>, vector<1x16x16x8xbf16>
    %85 = vector.shape_cast %84 : vector<1x16x16x8xbf16> to vector<16x16x8xbf16>
    %c1_102 = arith.constant 1 : index
    %c0_103 = arith.constant 0 : index
    %c16_104 = arith.constant 16 : index
    %c0_105 = arith.constant 0 : index
    %86 = vector.load %arg2[%c1_102, %c0_103, %c16_104, %c0_105] : memref<2x2x32x8xbf16, #tpu.memory_space<vmem>>, vector<1x1x8x8xbf16>
    %87 = vector.shape_cast %86 : vector<1x1x8x8xbf16> to vector<8x8xbf16>
    %88 = vector.shape_cast %85 : vector<16x16x8xbf16> to vector<256x8xbf16>
    %cst_106 = arith.constant dense<0.000000e+00> : vector<256x8xf32>
    %89 = tpu.matmul %88, %87, %cst_106 {dimension_numbers = #tpu.dot_dimension_numbers<[1], [0], [0], [1], [0, 0, 1, 1], [], []>} : vector<256x8xbf16>, vector<8x8xbf16>, vector<256x8xf32> -> vector<256x8xf32>
    %90 = arith.addf %83, %89 : vector<256x8xf32>
    %c0_107 = arith.constant 0 : index
    %c2_108 = arith.constant 2 : index
    %c1_109 = arith.constant 1 : index
    %c0_110 = arith.constant 0 : index
    %91 = vector.load %arg1[%c0_107, %c2_108, %c1_109, %c0_110] : memref<1x18x18x8xbf16, #tpu.memory_space<vmem>>, vector<1x16x16x8xbf16>
    %92 = vector.shape_cast %91 : vector<1x16x16x8xbf16> to vector<16x16x8xbf16>
    %c1_111 = arith.constant 1 : index
    %c0_112 = arith.constant 0 : index
    %c24_113 = arith.constant 24 : index
    %c0_114 = arith.constant 0 : index
    %93 = vector.load %arg2[%c1_111, %c0_112, %c24_113, %c0_114] : memref<2x2x32x8xbf16, #tpu.memory_space<vmem>>, vector<1x1x8x8xbf16>
    %94 = vector.shape_cast %93 : vector<1x1x8x8xbf16> to vector<8x8xbf16>
    %95 = vector.shape_cast %92 : vector<16x16x8xbf16> to vector<256x8xbf16>
    %cst_115 = arith.constant dense<0.000000e+00> : vector<256x8xf32>
    %96 = tpu.matmul %95, %94, %cst_115 {dimension_numbers = #tpu.dot_dimension_numbers<[1], [0], [0], [1], [0, 0, 1, 1], [], []>} : vector<256x8xbf16>, vector<8x8xbf16>, vector<256x8xf32> -> vector<256x8xf32>
    %97 = arith.addf %90, %96 : vector<256x8xf32>
    %98 = vector.broadcast %0 : vector<1x8xf32> to vector<256x8xf32>
    %99 = arith.addf %97, %98 : vector<256x8xf32>
    %c1_116 = arith.constant 1 : index
    %c0_117 = arith.constant 0 : index
    %c0_118 = arith.constant 0 : index
    %c0_119 = arith.constant 0 : index
    %c0_120 = arith.constant 0 : index
    %100 = vector.load %arg4[%c1_116, %c0_117, %c0_118, %c0_119, %c0_120] : memref<2x2x1x256x8xf32, #tpu.memory_space<vmem>>, vector<1x1x1x256x8xf32>
    %101 = vector.shape_cast %100 : vector<1x1x1x256x8xf32> to vector<256x8xf32>
    %102 = vector.shape_cast %99 : vector<256x8xf32> to vector<1x1x1x256x8xf32>
    tpu.vector_store %arg4[%c1_116, %c0_117, %c0_118, %c0_119, %c0_120], %102 {strides = array<i32>} : memref<2x2x1x256x8xf32, #tpu.memory_space<vmem>>, vector<1x1x1x256x8xf32>,
    %cst_121 = arith.constant 0.000000e+00 : f32
    %103 = vector.broadcast %cst_121 : f32 to vector<256x8xf32>
    %c0_122 = arith.constant 0 : index
    %c1_123 = arith.constant 1 : index
    %c1_124 = arith.constant 1 : index
    %c0_125 = arith.constant 0 : index
    %104 = vector.load %arg1[%c0_122, %c1_123, %c1_124, %c0_125] : memref<1x18x18x8xbf16, #tpu.memory_space<vmem>>, vector<1x16x16x8xbf16>
    %105 = vector.shape_cast %104 : vector<1x16x16x8xbf16> to vector<16x16x8xbf16>
    %c1_126 = arith.constant 1 : index
    %c1_127 = arith.constant 1 : index
    %c0_128 = arith.constant 0 : index
    %c0_129 = arith.constant 0 : index
    %106 = vector.load %arg2[%c1_126, %c1_127, %c0_128, %c0_129] : memref<2x2x32x8xbf16, #tpu.memory_space<vmem>>, vector<1x1x8x8xbf16>
    %107 = vector.shape_cast %106 : vector<1x1x8x8xbf16> to vector<8x8xbf16>
    %108 = vector.shape_cast %105 : vector<16x16x8xbf16> to vector<256x8xbf16>
    %cst_130 = arith.constant dense<0.000000e+00> : vector<256x8xf32>
    %109 = tpu.matmul %108, %107, %cst_130 {dimension_numbers = #tpu.dot_dimension_numbers<[1], [0], [0], [1], [0, 0, 1, 1], [], []>} : vector<256x8xbf16>, vector<8x8xbf16>, vector<256x8xf32> -> vector<256x8xf32>
    %110 = arith.addf %103, %109 : vector<256x8xf32>
    %c0_131 = arith.constant 0 : index
    %c1_132 = arith.constant 1 : index
    %c2_133 = arith.constant 2 : index
    %c0_134 = arith.constant 0 : index
    %111 = vector.load %arg1[%c0_131, %c1_132, %c2_133, %c0_134] : memref<1x18x18x8xbf16, #tpu.memory_space<vmem>>, vector<1x16x16x8xbf16>
    %112 = vector.shape_cast %111 : vector<1x16x16x8xbf16> to vector<16x16x8xbf16>
    %c1_135 = arith.constant 1 : index
    %c1_136 = arith.constant 1 : index
    %c8_137 = arith.constant 8 : index
    %c0_138 = arith.constant 0 : index
    %113 = vector.load %arg2[%c1_135, %c1_136, %c8_137, %c0_138] : memref<2x2x32x8xbf16, #tpu.memory_space<vmem>>, vector<1x1x8x8xbf16>
    %114 = vector.shape_cast %113 : vector<1x1x8x8xbf16> to vector<8x8xbf16>
    %115 = vector.shape_cast %112 : vector<16x16x8xbf16> to vector<256x8xbf16>
    %cst_139 = arith.constant dense<0.000000e+00> : vector<256x8xf32>
    %116 = tpu.matmul %115, %114, %cst_139 {dimension_numbers = #tpu.dot_dimension_numbers<[1], [0], [0], [1], [0, 0, 1, 1], [], []>} : vector<256x8xbf16>, vector<8x8xbf16>, vector<256x8xf32> -> vector<256x8xf32>
    %117 = arith.addf %110, %116 : vector<256x8xf32>
    %c0_140 = arith.constant 0 : index
    %c2_141 = arith.constant 2 : index
    %c1_142 = arith.constant 1 : index
    %c0_143 = arith.constant 0 : index
    %118 = vector.load %arg1[%c0_140, %c2_141, %c1_142, %c0_143] : memref<1x18x18x8xbf16, #tpu.memory_space<vmem>>, vector<1x16x16x8xbf16>
    %119 = vector.shape_cast %118 : vector<1x16x16x8xbf16> to vector<16x16x8xbf16>
    %c1_144 = arith.constant 1 : index
    %c1_145 = arith.constant 1 : index
    %c16_146 = arith.constant 16 : index
    %c0_147 = arith.constant 0 : index
    %120 = vector.load %arg2[%c1_144, %c1_145, %c16_146, %c0_147] : memref<2x2x32x8xbf16, #tpu.memory_space<vmem>>, vector<1x1x8x8xbf16>
    %121 = vector.shape_cast %120 : vector<1x1x8x8xbf16> to vector<8x8xbf16>
    %122 = vector.shape_cast %119 : vector<16x16x8xbf16> to vector<256x8xbf16>
    %cst_148 = arith.constant dense<0.000000e+00> : vector<256x8xf32>
    %123 = tpu.matmul %122, %121, %cst_148 {dimension_numbers = #tpu.dot_dimension_numbers<[1], [0], [0], [1], [0, 0, 1, 1], [], []>} : vector<256x8xbf16>, vector<8x8xbf16>, vector<256x8xf32> -> vector<256x8xf32>
    %124 = arith.addf %117, %123 : vector<256x8xf32>
    %c0_149 = arith.constant 0 : index
    %c2_150 = arith.constant 2 : index
    %c2_151 = arith.constant 2 : index
    %c0_152 = arith.constant 0 : index
    %125 = vector.load %arg1[%c0_149, %c2_150, %c2_151, %c0_152] : memref<1x18x18x8xbf16, #tpu.memory_space<vmem>>, vector<1x16x16x8xbf16>
    %126 = vector.shape_cast %125 : vector<1x16x16x8xbf16> to vector<16x16x8xbf16>
    %c1_153 = arith.constant 1 : index
    %c1_154 = arith.constant 1 : index
    %c24_155 = arith.constant 24 : index
    %c0_156 = arith.constant 0 : index
    %127 = vector.load %arg2[%c1_153, %c1_154, %c24_155, %c0_156] : memref<2x2x32x8xbf16, #tpu.memory_space<vmem>>, vector<1x1x8x8xbf16>
    %128 = vector.shape_cast %127 : vector<1x1x8x8xbf16> to vector<8x8xbf16>
    %129 = vector.shape_cast %126 : vector<16x16x8xbf16> to vector<256x8xbf16>
    %cst_157 = arith.constant dense<0.000000e+00> : vector<256x8xf32>
    %130 = tpu.matmul %129, %128, %cst_157 {dimension_numbers = #tpu.dot_dimension_numbers<[1], [0], [0], [1], [0, 0, 1, 1], [], []>} : vector<256x8xbf16>, vector<8x8xbf16>, vector<256x8xf32> -> vector<256x8xf32>
    %131 = arith.addf %124, %130 : vector<256x8xf32>
    %132 = vector.broadcast %0 : vector<1x8xf32> to vector<256x8xf32>
    %133 = arith.addf %131, %132 : vector<256x8xf32>
    %c1_158 = arith.constant 1 : index
    %c1_159 = arith.constant 1 : index
    %c0_160 = arith.constant 0 : index
    %c0_161 = arith.constant 0 : index
    %c0_162 = arith.constant 0 : index
    %134 = vector.load %arg4[%c1_158, %c1_159, %c0_160, %c0_161, %c0_162] : memref<2x2x1x256x8xf32, #tpu.memory_space<vmem>>, vector<1x1x1x256x8xf32>
    %135 = vector.shape_cast %134 : vector<1x1x1x256x8xf32> to vector<256x8xf32>
    %136 = vector.shape_cast %133 : vector<256x8xf32> to vector<1x1x1x256x8xf32>
    tpu.vector_store %arg4[%c1_158, %c1_159, %c0_160, %c0_161, %c0_162], %136 {strides = array<i32>} : memref<2x2x1x256x8xf32, #tpu.memory_space<vmem>>, vector<1x1x1x256x8xf32>,
    return
  }
  func.func @transform_0(%arg0: i32) -> (i32, i32, i32, i32) {
    %c0_i32 = arith.constant 0 : i32
    %c0_i32_0 = arith.constant 0 : i32
    %c0_i32_1 = arith.constant 0 : i32
    %c0_i32_2 = arith.constant 0 : i32
    return %arg0, %c0_i32, %c0_i32_0, %c0_i32_1 : i32, i32, i32, i32
  }
  func.func @transform_1(%arg0: i32) -> (i32, i32, i32, i32) {
    %c0_i32 = arith.constant 0 : i32
    %c0_i32_0 = arith.constant 0 : i32
    %c0_i32_1 = arith.constant 0 : i32
    %c0_i32_2 = arith.constant 0 : i32
    %c0_i32_3 = arith.constant 0 : i32
    return %c0_i32, %c0_i32_0, %c0_i32_1, %c0_i32_2 : i32, i32, i32, i32
  }
  func.func @transform_2(%arg0: i32) -> (i32, i32) {
    %c0_i32 = arith.constant 0 : i32
    %c0_i32_0 = arith.constant 0 : i32
    %c0_i32_1 = arith.constant 0 : i32
    return %c0_i32, %c0_i32_0 : i32, i32
  }
  func.func @transform_3(%arg0: i32) -> (i32, i32, i32, i32, i32) {
    %c0_i32 = arith.constant 0 : i32
    %c0_i32_0 = arith.constant 0 : i32
    %c0_i32_1 = arith.constant 0 : i32
    %c0_i32_2 = arith.constant 0 : i32
    %c0_i32_3 = arith.constant 0 : i32
    return %c0_i32, %c0_i32_0, %arg0, %c0_i32_1, %c0_i32_2 : i32, i32, i32, i32, i32
  }
}

</mosaic_0001>

<bundles_post_ra>
// kernel: tpu_custom_call.1
= control target key start
LH: loop header
LB: loop body
LE: loop exit
PB: predicated region body
PF: predicated region fallthrough
CT: control target
= control target key end

     0   :  { %s12330_s12 = smov 0   ;;  %s12332_s13 = smov 0   ;;  %s15599_s0 = inlined_call_operand.vmem [shape: bf16[2,18,18,8], index: 0, kind: input, shape index: {}]   ;;  %s15600_s1 = inlined_call_operand.vmem [shape: bf16[2,2,32,8], index: 1, kind: input, shape index: {}]   ;;  %s15601_s2 = inlined_call_operand.vmem [shape: f32[1,8], index: 2, kind: input, shape index: {}]   ;;  %s15602_s3 = inlined_call_operand.vmem [shape: f32[2,2,2,256,8], index: 3, kind: output, shape index: {}]  }
   0x1   :  { %s12334_s14 = smov 0  }
   0x2 LB: > { %s12343_s15 = sadd.s32 4294967295, %s12308_s14   ;;  %s12345_s16 = sadd.s32 1, %s12308_s14   ;;  %s12308_s14 = sphi %s12334_s14, %s15768_s14   ;;  %s12304_s13 = sphi %s12332_s13, %s15767_s13   ;;  %s12300_s12 = sphi %s12330_s12, %s15766_s12  }
   0x3   : > { %s85_s17 = ssub.s32 %s12308_s14, %s12345_s16  ;;  %s88_s18 = sadd.s32 1, %s12304_s13 }
   0x4   : > { %p86_p0 = scmp.eq.s32.totalorder %s85_s17, 0  ;;  %p98_p1 = scmp.ne.s32.totalorder %s12304_s13, %s12300_s12 }
   0x5   : > { %p99_p2 = scmp.eq.s32.totalorder %s12343_s15, 1  ;;  %p9833_p3 = scmp.ge.s32.totalorder %s12308_s14, 1 }
   0x6   : > { %s12353_s19 = scalar_select %p86_p0, %s12304_s13, %s88_s18  }
   0x7   : > { %p12355_p4 = por %p99_p2, %p98_p1  ;;  %p137_p5 = scmp.lt.s32.totalorder %s12308_s14, 3 }
   0x9   : > { %p138_p6 = pnand %p9833_p3, %p137_p5 }
   0xb   : > { %141 = sbr.rel (%p138_p6) target bundleno = 964 (0x3c4), region = 32 }
  0x12   : > { %vm701_vm0 = vcmask 1043456   ;;  %v10046_v0 = vld [vmem:[%s15600_s1 + $0x14] sm:$0xf]  ;;  %v216_v1 = vld [vmem:[%s15600_s1 + $0x4] sm:$0xf]  ;;  %p160_p7 = scmp.lt.s32.totalorder %s12343_s15, 1 }
  0x13   : > { %12131 = vmatprep.subr.msk.bf16.mxu1 %vm701_vm0, %v10046_v0  ;;  %v3022_v2 = vsel %vm701_vm0, %v10046_v0, 0  ;;  %12127 = vmatprep.subr.msk.bf16.mxu0 %vm701_vm0, %v216_v1  ;;  %v199_v3 = vld [vmem:[%s15600_s1] sm:$0xf]  ;;  %v703_v4 = vsel %vm701_vm0, %v216_v1, 0  ;;  %v10045_v5 = vld [vmem:[%s15600_s1 + $0x10] sm:$0xf] }
  0x14   : > { %11336 = vmatpush3.bf16.msra.mxu1 %v3022_v2  ;;  %s161_s27 = scalar_select %p160_p7, %s12343_s15, 1  ;;  %11200 = vmatpush3.bf16.msra.mxu0 %v703_v4  ;;  %v12380_v6 = vld [vmem:[%s15600_s1 + $0x8] sm:$0xf]  ;;  %v12387_v7 = vld [vmem:[%s15600_s1 + $0x18] sm:$0xf]  ;;  %vm652_vm1 = vcmask 64512  }
  0x15   : > { %12128 = vmatprep.subr.msk.bf16.mxu0 %vm701_vm0, %v199_v3  ;;  %12132 = vmatprep.subr.msk.bf16.mxu1 %vm701_vm0, %v10045_v5  ;;  %vm2810_vm2 = vcmask 1042432   ;;  %vm2811_vm3 = vcmask 1046532   ;;  %v12395_v8 = vsel %vm701_vm0, %v199_v3, 0  ;;  %v12398_v9 = vsel %vm701_vm0, %v10045_v5, 0  ;;  %s157_s11 = sand.u32 1, %s12300_s12   ;;  %s10926_s24 = sshll.u32 (%p12355_p4), %s12343_s15, 8 }
  0x16   : > { %s12143_s5 = smul.u32 216, %s161_s27  ;;  %v12402_v10 = vsel %vm701_vm0, %v12380_v6, 0  ;;  %v12406_v11 = vsel %vm701_vm0, %v12387_v7, 0  ;;  %vm217_vm4 = vsmask.f32 3328  ;;  %vm12412_vm6 = vmor %vm2810_vm2, %vm2811_vm3  ;;  %v15657_v18 = vmov 0  ;;  %s15334_s27 = scalar_lea.vmem (%p12355_p4), %s15602_s3, %s10926_s24 }
  0x17   : > { %vm218_vm5 = vsmask.f32 7440  ;;  %v15658_v18 = vsel %vm12412_vm6, 4294967295, %v15657_v18  ;;  %s14443_s12 = sshll.u32 %s157_s11, 10 }
  0x18   : > { %s12392_s10 = scalar_lea.vmem %s15599_s0, %s12143_s5  ;;  %15659 = vst [vmem:[#allocation3_spill] sm:$0xff] %v15658_v18  ;;  %vm12451_vm7 = vmor %vm217_vm4, %vm218_vm5  ;;  %s14472_s18 = scalar_lea.vmem [#allocation2], %s14443_s12 }
  0x19   : > { %v2312_v12 = vld [vmem:[%s12392_s10 + $0x4] sm:$0xf]  ;;  %v2313_v13 = vld [vmem:[%s12392_s10 + $0x8] sm:$0x1]  ;;  %v2745_v14 = vld [vmem:[%s12392_s10] sm:$0xe] }
  0x1a   : > { %v2371_v15 = vshll.u32 %v2312_v12, 16  ;;  %v2375_v16 = vshrl.u32 %v2312_v12, 16  ;;  %v2381_v17 = vshll.u32 %v2313_v13, 16  ;;  %v10047_v19 = vrot.slane %v2745_v14, 9  ;;  %v2315_v20 = vld [vmem:[%s12392_s10 + $0x10] sm:$0xf] }
  0x1b   : > { %v2815_v21 = vrot.slane %v2312_v12, 5  ;;  %v2818_v22 = vrot.slane %v2313_v13, 5  ;;  %v2316_v23 = vld [vmem:[%s12392_s10 + $0x14] sm:$0x1]  ;;  %v2395_v24 = vshll.u32 %v2315_v20, 16  ;;  %v2399_v25 = vshrl.u32 %v2315_v20, 16 }
  0x1c   : > { %v12418_v26 = vrot.slane %v2371_v15, 5  ;;  %v12420_v27 = vrot.slane %v2375_v16, 4  ;;  %v12422_v28 = vrot.slane %v2381_v17, 5  ;;  %v2405_v29 = vshll.u32 %v2316_v23, 16  ;;  %v2746_v30 = vld [vmem:[%s12392_s10 + $0xc] sm:$0xe] }
  0x1d   : > { %v2816_v31 = vsel %vm12412_vm6, %v10047_v19, %v2815_v21  ;;  %v2817_v32 = vrot.slane %v2815_v21, 4  ;;  %v12427_v33 = vrot.slane %v2395_v24, 5  ;;  %v2401_v34 = vrot.slane %v2399_v25, 4  ;;  %v167_v35 = vld [vmem:[%s12392_s10] sm:$0xf] }
  0x1e   : > { %v12430_v36 = vrot.slane %v2405_v29, 5  ;;  %v10048_v37 = vrot.slane %v2746_v30, 9  ;;  %v2822_v38 = vrot.slane %v2315_v20, 5  ;;  %v2825_v39 = vrot.slane %v2316_v23, 5  ;;  %v168_v40 = vld [vmem:[%s12392_s10 + $0x4] sm:$0xf] }
  0x1f   : > { %v2819_v41 = vsel %vm12412_vm6, %v2817_v32, %v2818_v22  ;;  %v2402_v42 = vor.u32 %v2401_v34, %v12427_v33  ;;  %v200_v43 = vld [vmem:[%s12392_s10 + $0x8] sm:$0x1]  ;;  %v221_v44 = vshrl.u32 %v167_v35, 16  ;;  %v224_v45 = vshll.u32 %v167_v35, 16  ;;  %v169_v46 = vld [vmem:[%s12392_s10 + $0xc] sm:$0xf] }
  0x20   : > { %v10063_v47 = vcombine.low %v2816_v31, %v2819_v41  ;;  %v2823_v48 = vsel %vm12412_vm6, %v10048_v37, %v2822_v38  ;;  %v2824_v49 = vrot.slane %v2822_v38, 4  ;;  %v230_v50 = vshll.u32 %v168_v40, 16  ;;  %v170_v55 = vld [vmem:[%s12392_s10 + $0x10] sm:$0xf]  ;;  %v201_v59 = vld [vmem:[%s12392_s10 + $0x14] sm:$0x1] }
  0x21   : > { %v12440_v51 = vrot.slane %v2402_v42, 4  ;;  %v223_v52 = vrot.slane %v221_v44, 4  ;;  %v226_v53 = vrot.slane %v224_v45, 5  ;;  %v234_v54 = vshrl.u32 %v168_v40, 16  ;;  %v2318_v1 = vld [vmem:[%s12392_s10 + $0x1c] sm:$0xf] }
  0x22   : > { %11337 = vmatprep.mubr.msk.bf16.mxu1 %vm652_vm1, %v10063_v47  ;;  %v2826_v56 = vsel %vm12412_vm6, %v2824_v49, %v2825_v39  ;;  %v232_v57 = vrot.slane %v230_v50, 5  ;;  %v240_v58 = vshll.u32 %v200_v43, 16  ;;  %v245_v60 = vshrl.u32 %v169_v46, 16  ;;  %v2747_v2 = vld [vmem:[%s12392_s10 + $0x18] sm:$0xe] }
  0x23   : > { %v10064_v61 = vcombine.low %v2823_v48, %v2826_v56  ;;  %v227_v62 = vor.u32 %v226_v53, %v223_v52  ;;  %v236_v63 = vrot.slane %v234_v54, 4  ;;  %v248_v0 = vshll.u32 %v169_v46, 16  ;;  %v12456_v14 = vld [vmem:[%s12392_s10 + $0x20] sm:$0x1]  ;;  %v2321_v20 = vld [vmem:[%s12392_s10 + $0x28] sm:$0xf] }
  0x24   : > { %v242_v4 = vrot.slane %v240_v58, 5  ;;  %v247_v5 = vrot.slane %v245_v60, 4  ;;  %v254_v12 = vshll.u32 %v170_v55, 16  ;;  %v258_v13 = vshrl.u32 %v170_v55, 16  ;;  %v2748_v25 = vld [vmem:[%s12392_s10 + $0x24] sm:$0xe] }
  0x25   : > { %11338 = vmatmul.mubr.msk.bf16.vlgmr.msra.gmra.mrb[0].mxu1 %vm652_vm1, %v10064_v61  ;;  %v228_v15 = vrot.slane %v227_v62, 4  ;;  %v237_v16 = vor.u32 %v236_v63, %v232_v57  ;;  %v250_v17 = vrot.slane %v248_v0, 5  ;;  %v264_v19 = vshll.u32 %v201_v59, 16  ;;  %v2322_v34 = vld [vmem:[%s12392_s10 + $0x2c] sm:$0x1] }
  0x26   : > { %v256_v21 = vrot.slane %v254_v12, 5  ;;  %v260_v22 = vrot.slane %v258_v13, 4  ;;  %11370 = vmatpush3.bf16.msra.mxu1 %v12398_v9  ;;  %v10049_v23 = vrot.slane %v2747_v2, 9  ;;  %v2829_v24 = vrot.slane %v2318_v1, 5  ;;  %v171_v39 = vld [vmem:[%s12392_s10 + $0x18] sm:$0xf] }
  0x27   : > { %v233_v29 = vsel %vm12451_vm7, %v228_v15, %v232_v57  ;;  %v238_v30 = vrot.slane %v237_v16, 4  ;;  %v251_v31 = vor.u32 %v250_v17, %v247_v5  ;;  %v266_v32 = vrot.slane %v264_v19, 5  ;;  %12133 = vmatprep.subr.msk.bf16.mxu1 %vm701_vm0, %v12387_v7  ;;  %v172_v44 = vld [vmem:[%s12392_s10 + $0x1c] sm:$0xf]  ;;  %v202_v48 = vld [vmem:[%s12392_s10 + $0x20] sm:$0x1] }
  0x28   : > { %v261_v35 = vor.u32 %v260_v22, %v256_v21  ;;  %v2830_v37 = vsel %vm12412_vm6, %v10049_v23, %v2829_v24  ;;  %v2831_v9 = vrot.slane %v2829_v24, 4  ;;  %v2832_v38 = vrot.slane %v12456_v14, 5  ;;  %v12485_v58 = vld [vmem:[%s12392_s10 + $0x24] sm:$0xf]  ;;  %v12491_v63 = vld [vmem:[%s12392_s10 + $0x28] sm:$0xf] }
  0x29   : > { %v243_v40 = vsel %vm12451_vm7, %v238_v30, %v242_v4  ;;  %v252_v41 = vrot.slane %v251_v31, 4  ;;  %v10050_v42 = vrot.slane %v2748_v25, 9  ;;  %v2836_v43 = vrot.slane %v2321_v20, 5  ;;  %v203_v0 = vld [vmem:[%s12392_s10 + $0x2c] sm:$0x1] }
  0x2a   : > { %v9836_v45 = vcombine.low %v233_v29, %v243_v40  ;;  %v262_v46 = vrot.slane %v261_v35, 4  ;;  %v2833_v7 = vsel %vm12412_vm6, %v2831_v9, %v2832_v38  ;;  %v2839_v47 = vrot.slane %v2322_v34, 5  ;;  %v12495_v12 = vld [vmem:[%s12392_s10 + $0x34] sm:$0xf]  ;;  %v2749_v13 = vld [vmem:[%s12392_s10 + $0x30] sm:$0xe] }
  0x2b   : > { %v257_v49 = vsel %vm12451_vm7, %v252_v41, %v256_v21  ;;  %v10065_v50 = vcombine.low %v2830_v37, %v2833_v7  ;;  %v2837_v52 = vsel %vm12412_vm6, %v10050_v42, %v2836_v43  ;;  %v2838_v53 = vrot.slane %v2836_v43, 4  ;;  %v12502_v20 = vld [vmem:[%s12392_s10 + $0x38] sm:$0x1]  ;;  %v2327_v25 = vld [vmem:[%s12392_s10 + $0x40] sm:$0xf] }
  0x2c   : > { %11201 = vmatprep.mubr.msk.bf16.mxu0 %vm652_vm1, %v9836_v45  ;;  %v267_v54 = vsel %vm12451_vm7, %v262_v46, %v266_v32  ;;  %v269_v55 = vshrl.u32 %v171_v39, 16  ;;  %v272_v56 = vshll.u32 %v171_v39, 16  ;;  %v278_v57 = vshll.u32 %v172_v44, 16  ;;  %v2750_v34 = vld [vmem:[%s12392_s10 + $0x3c] sm:$0xe] }
  0x2d   : > { %v9837_v59 = vcombine.low %v257_v49, %v267_v54  ;;  %11341 = vmatprep.mubr.msk.bf16.mxu1 %vm652_vm1, %v10065_v50  ;;  %v2840_v60 = vsel %vm12412_vm6, %v2838_v53, %v2839_v47  ;;  %v282_v61 = vshrl.u32 %v172_v44, 16  ;;  %v288_v62 = vshll.u32 %v202_v48, 16  ;;  %v12517_v44 = vld [vmem:[%s12392_s10 + $0x44] sm:$0x1]  ;;  %v12520_v46 = vld [vmem:[%s12392_s10 + $0x30] sm:$0xf] }
  0x2e   : > { %v10066_v1 = vcombine.low %v2837_v52, %v2840_v60  ;;  %v271_v2 = vrot.slane %v269_v55, 4  ;;  %v274_v4 = vrot.slane %v272_v56, 5  ;;  %v280_v5 = vrot.slane %v278_v57, 5  ;;  %v12527_v50 = vld [vmem:[%s12392_s10 + $0x34] sm:$0xf] }
  0x2f   : > { %11202 = vmatmul.mubr.msk.bf16.vlgmr.msra.gmra.mrb[0].mxu0 %vm652_vm1, %v9837_v59  ;;  %v284_v15 = vrot.slane %v282_v61, 4  ;;  %v290_v16 = vrot.slane %v288_v62, 5  ;;  %v293_v17 = vshrl.u32 %v12485_v58, 16  ;;  %v296_v19 = vshll.u32 %v12485_v58, 16  ;;  %v204_v60 = vld [vmem:[%s12392_s10 + $0x38] sm:$0x1] }
  0x30   : > { %11234 = vmatpush3.bf16.msra.mxu0 %v12395_v8  ;;  %11342 = vmatmul.mubr.msk.bf16.gmra.mrb[4].mxu1 %vm652_vm1, %v10066_v1  ;;  %v275_v21 = vor.u32 %v274_v4, %v271_v2  ;;  %v302_v22 = vshll.u32 %v12491_v63, 16  ;;  %v306_v23 = vshrl.u32 %v12491_v63, 16  ;;  %v312_v24 = vshll.u32 %v203_v0, 16  ;;  %v12544_v4 = vld [vmem:[%s12392_s10 + $0x3c] sm:$0xf] }
  0x31   : > { %v285_v29 = vor.u32 %v284_v15, %v280_v5  ;;  %v295_v30 = vrot.slane %v293_v17, 4  ;;  %v298_v31 = vrot.slane %v296_v19, 5  ;;  %v10051_v32 = vrot.slane %v2749_v13, 9  ;;  %12129 = vmatprep.subr.msk.bf16.mxu0 %vm701_vm0, %v12380_v6  ;;  %v205_v19 = vld [vmem:[%s12392_s10 + $0x44] sm:$0x1] }
  0x32   : > { %v276_v8 = vrot.slane %v275_v21, 4  ;;  %v304_v35 = vrot.slane %v302_v22, 5  ;;  %v308_v37 = vrot.slane %v306_v23, 4  ;;  %v314_v9 = vrot.slane %v312_v24, 5 }
  0x33   : > { %v286_v38 = vrot.slane %v285_v29, 4  ;;  %v299_v39 = vor.u32 %v298_v31, %v295_v30  ;;  %v2843_v40 = vrot.slane %v12495_v12, 5  ;;  %v2846_v41 = vrot.slane %v12502_v20, 5  ;;  %v12558_v29 = vld [vmem:[%s12392_s10 + $0x50] sm:$0x1] }
  0x34   : > { %v281_v42 = vsel %vm12451_vm7, %v276_v8, %v280_v5  ;;  %v309_v43 = vor.u32 %v308_v37, %v304_v35  ;;  %v10052_v45 = vrot.slane %v2750_v34, 9  ;;  %v2850_v6 = vrot.slane %v2327_v25, 5  ;;  %v12547_v5 = vld [vmem:[%s12392_s10 + $0x40] sm:$0xf]  ;;  %v12555_v25 = vld [vmem:[%s12392_s10 + $0x4c] sm:$0xf] }
  0x35   : > { %v291_v7 = vsel %vm12451_vm7, %v286_v38, %v290_v16  ;;  %v300_v47 = vrot.slane %v299_v39, 4  ;;  %v2844_v48 = vsel %vm12412_vm6, %v10051_v32, %v2843_v40  ;;  %v2845_v49 = vrot.slane %v2843_v40, 4  ;;  %v2751_v8 = vld [vmem:[%s12392_s10 + $0x48] sm:$0xe]  ;;  %v12568_v39 = vld [vmem:[%s12392_s10 + $0x58] sm:$0xf] }
  0x36   : > { %v9838_v52 = vcombine.low %v281_v42, %v291_v7  ;;  %v310_v53 = vrot.slane %v309_v43, 4  ;;  %v2851_v54 = vsel %vm12412_vm6, %v10052_v45, %v2850_v6  ;;  %v2852_v55 = vrot.slane %v2850_v6, 4  ;;  %v2752_v45 = vld [vmem:[%s12392_s10 + $0x54] sm:$0xe] }
  0x37   : > { %v305_v56 = vsel %vm12451_vm7, %v300_v47, %v304_v35  ;;  %v2847_v57 = vsel %vm12412_vm6, %v2845_v49, %v2846_v41  ;;  %v2853_v59 = vrot.slane %v12517_v44, 5  ;;  %v317_v61 = vshrl.u32 %v12520_v46, 16 }
  0x38   : > { %11205 = vmatprep.mubr.msk.bf16.mxu0 %vm652_vm1, %v9838_v52  ;;  %v315_v62 = vsel %vm12451_vm7, %v310_v53, %v314_v9  ;;  %v10067_v0 = vcombine.low %v2844_v48, %v2847_v57  ;;  %v320_v1 = vshll.u32 %v12520_v46, 16  ;;  %v326_v2 = vshll.u32 %v12527_v50, 16  ;;  %v12576_v57 = vld [vmem:[%s12392_s10 + $0x5c] sm:$0x1] }
  0x39   : > { %v9839_v13 = vcombine.low %v305_v56, %v315_v62  ;;  %v2854_v15 = vsel %vm12412_vm6, %v2852_v55, %v2853_v59  ;;  %v319_v16 = vrot.slane %v317_v61, 4  ;;  %v330_v17 = vshrl.u32 %v12527_v50, 16  ;;  %v12580_v61 = vld [vmem:[%s12392_s10 + $0x48] sm:$0xf] }
  0x3a   : > { %11345 = vmatprep.mubr.msk.bf16.mxu1 %vm652_vm1, %v10067_v0  ;;  %v10068_v21 = vcombine.low %v2851_v54, %v2854_v15  ;;  %v322_v22 = vrot.slane %v320_v1, 5  ;;  %v328_v23 = vrot.slane %v326_v2, 5  ;;  %v336_v24 = vshll.u32 %v204_v60, 16 }
  0x3b   : > { %11206 = vmatmul.mubr.msk.bf16.gmra.mrb[4].mxu0 %vm652_vm1, %v9839_v13  ;;  %v332_v30 = vrot.slane %v330_v17, 4  ;;  %v341_v31 = vshrl.u32 %v12544_v4, 16  ;;  %v344_v32 = vshll.u32 %v12544_v4, 16  ;;  %v350_v34 = vshll.u32 %v12547_v5, 16  ;;  %v12587_v13 = vld [vmem:[%s12392_s10 + $0x4c] sm:$0xf] }
  0x3c   : > { %11346 = vmatmul.mubr.msk.bf16.gmra.mrb[8].mxu1 %vm652_vm1, %v10068_v21  ;;  %v323_v35 = vor.u32 %v322_v22, %v319_v16  ;;  %v338_v37 = vrot.slane %v336_v24, 5  ;;  %v354_v9 = vshrl.u32 %v12547_v5, 16  ;;  %v360_v38 = vshll.u32 %v205_v19, 16  ;;  %v206_v24 = vld [vmem:[%s12392_s10 + $0x50] sm:$0x1] }
  0x3d   : > { %v333_v40 = vor.u32 %v332_v30, %v328_v23  ;;  %v343_v41 = vrot.slane %v341_v31, 4  ;;  %v346_v42 = vrot.slane %v344_v32, 5  ;;  %v352_v43 = vrot.slane %v350_v34, 5 }
  0x3e   : > { %v324_v6 = vrot.slane %v323_v35, 4  ;;  %v356_v7 = vrot.slane %v354_v9, 4  ;;  %v362_v47 = vrot.slane %v360_v38, 5  ;;  %v10053_v48 = vrot.slane %v2751_v8, 9  ;;  %v12604_v35 = vld [vmem:[%s12392_s10 + $0x54] sm:$0xf] }
  0x3f   : > { %v334_v49 = vrot.slane %v333_v40, 4  ;;  %v347_v52 = vor.u32 %v346_v42, %v343_v41  ;;  %v2857_v53 = vrot.slane %v12555_v25, 5  ;;  %v2860_v54 = vrot.slane %v12558_v29, 5  ;;  %v207_v42 = vld [vmem:[%s12392_s10 + $0x5c] sm:$0x1] }
  0x40   : > { %v329_v55 = vsel %vm12451_vm7, %v324_v6, %v328_v23  ;;  %v357_v56 = vor.u32 %v356_v7, %v352_v43  ;;  %v10054_v59 = vrot.slane %v2752_v45, 9  ;;  %v2864_v60 = vrot.slane %v12568_v39, 5 }
  0x41   : > { %v339_v62 = vsel %vm12451_vm7, %v334_v49, %v338_v37  ;;  %v348_v0 = vrot.slane %v347_v52, 4  ;;  %v2858_v1 = vsel %vm12412_vm6, %v10053_v48, %v2857_v53  ;;  %v2859_v2 = vrot.slane %v2857_v53, 4  ;;  %v12607_v37 = vld [vmem:[%s12392_s10 + $0x58] sm:$0xf]  ;;  %v12618_v48 = vld [vmem:[%s12392_s10 + $0x68] sm:$0x1] }
  0x42   : > { %v9840_v15 = vcombine.low %v329_v55, %v339_v62  ;;  %v358_v16 = vrot.slane %v357_v56, 4  ;;  %v2865_v17 = vsel %vm12412_vm6, %v10054_v59, %v2864_v60  ;;  %v2866_v19 = vrot.slane %v2864_v60, 4  ;;  %v2753_v55 = vld [vmem:[%s12392_s10 + $0x60] sm:$0xe] }
  0x43   : > { %v353_v21 = vsel %vm12451_vm7, %v348_v0, %v352_v43  ;;  %v2861_v22 = vsel %vm12412_vm6, %v2859_v2, %v2860_v54  ;;  %v2867_v23 = vrot.slane %v12576_v57, 5  ;;  %v365_v30 = vshrl.u32 %v12580_v61, 16  ;;  %v12628_v0 = vld [vmem:[%s12392_s10 + $0x70] sm:$0xf] }
  0x44   : > { %11209 = vmatprep.mubr.msk.bf16.mxu0 %vm652_vm1, %v9840_v15  ;;  %v363_v31 = vsel %vm12451_vm7, %v358_v16, %v362_v47  ;;  %v10069_v32 = vcombine.low %v2858_v1, %v2861_v22  ;;  %v368_v34 = vshll.u32 %v12580_v61, 16  ;;  %v374_v8 = vshll.u32 %v12587_v13, 16  ;;  %v12615_v47 = vld [vmem:[%s12392_s10 + $0x64] sm:$0xf] }
  0x45   : > { %v9841_v9 = vcombine.low %v353_v21, %v363_v31  ;;  %v2868_v38 = vsel %vm12412_vm6, %v2866_v19, %v2867_v23  ;;  %v367_v40 = vrot.slane %v365_v30, 4  ;;  %v378_v41 = vshrl.u32 %v12587_v13, 16 }
  0x46   : > { %11349 = vmatprep.mubr.msk.bf16.mxu1 %vm652_vm1, %v10069_v32  ;;  %v10070_v43 = vcombine.low %v2865_v17, %v2868_v38  ;;  %v370_v45 = vrot.slane %v368_v34, 5  ;;  %v376_v6 = vrot.slane %v374_v8, 5  ;;  %v384_v7 = vshll.u32 %v206_v24, 16  ;;  %v2754_v17 = vld [vmem:[%s12392_s10 + $0x6c] sm:$0xe] }
  0x47   : > { %11210 = vmatmul.mubr.msk.bf16.gmra.mrb[8].mxu0 %vm652_vm1, %v9841_v9  ;;  %v380_v49 = vrot.slane %v378_v41, 4  ;;  %v389_v52 = vshrl.u32 %v12604_v35, 16  ;;  %v392_v53 = vshll.u32 %v12604_v35, 16  ;;  %v398_v54 = vshll.u32 %v12607_v37, 16  ;;  %v12636_v9 = vld [vmem:[%s12392_s10 + $0x74] sm:$0x1] }
  0x48   : > { %11350 = vmatmul.mubr.msk.bf16.gmra.mrb[12].mxu1 %vm652_vm1, %v10070_v43  ;;  %v371_v56 = vor.u32 %v370_v45, %v367_v40  ;;  %v386_v59 = vrot.slane %v384_v7, 5  ;;  %v402_v60 = vshrl.u32 %v12607_v37, 16  ;;  %v408_v62 = vshll.u32 %v207_v42, 16  ;;  %v12640_v41 = vld [vmem:[%s12392_s10 + $0x60] sm:$0xf] }
  0x49   : > { %v381_v1 = vor.u32 %v380_v49, %v376_v6  ;;  %v391_v2 = vrot.slane %v389_v52, 4  ;;  %v394_v15 = vrot.slane %v392_v53, 5  ;;  %v400_v16 = vrot.slane %v398_v54, 5  ;;  %v12647_v49 = vld [vmem:[%s12392_s10 + $0x64] sm:$0xf] }
  0x4a   : > { %v372_v19 = vrot.slane %v371_v56, 4  ;;  %v404_v21 = vrot.slane %v402_v60, 4  ;;  %v410_v22 = vrot.slane %v408_v62, 5  ;;  %v10055_v23 = vrot.slane %v2753_v55, 9  ;;  %v208_v60 = vld [vmem:[%s12392_s10 + $0x68] sm:$0x1] }
  0x4b   : > { %v382_v24 = vrot.slane %v381_v1, 4  ;;  %v395_v30 = vor.u32 %v394_v15, %v391_v2  ;;  %v2871_v31 = vrot.slane %v12615_v47, 5  ;;  %v2874_v32 = vrot.slane %v12618_v48, 5 }
  0x4c   : > { %v377_v34 = vsel %vm12451_vm7, %v372_v19, %v376_v6  ;;  %v405_v8 = vor.u32 %v404_v21, %v400_v16  ;;  %v10056_v38 = vrot.slane %v2754_v17, 9  ;;  %v2878_v40 = vrot.slane %v12628_v0, 5  ;;  %v12664_v17 = vld [vmem:[%s12392_s10 + $0x6c] sm:$0xf]  ;;  %v12667_v19 = vld [vmem:[%s12392_s10 + $0x70] sm:$0xf] }
  0x4d   : > { %v387_v42 = vsel %vm12451_vm7, %v382_v24, %v386_v59  ;;  %v396_v43 = vrot.slane %v395_v30, 4  ;;  %v2872_v45 = vsel %vm12412_vm6, %v10055_v23, %v2871_v31  ;;  %v2873_v7 = vrot.slane %v2871_v31, 4  ;;  %15662 = vst [vmem:[#allocation4_spill] sm:$0xff] %v12664_v17  ;;  %15663 = vst [vmem:[#allocation5_spill] sm:$0xff] %v12667_v19 }
  0x4e   : > { %v9842_v6 = vcombine.low %v377_v34, %v387_v42  ;;  %v406_v52 = vrot.slane %v405_v8, 4  ;;  %v2879_v53 = vsel %vm12412_vm6, %v10056_v38, %v2878_v40  ;;  %v2880_v54 = vrot.slane %v2878_v40, 4  ;;  %v12675_v38 = vld [vmem:[%s12392_s10 + $0x7c] sm:$0xf]  ;;  %v12678_v40 = vld [vmem:[%s12392_s10 + $0x80] sm:$0x1] }
  0x4f   : > { %v401_v55 = vsel %vm12451_vm7, %v396_v43, %v400_v16  ;;  %v2875_v56 = vsel %vm12412_vm6, %v2873_v7, %v2874_v32  ;;  %v2881_v59 = vrot.slane %v12636_v9, 5  ;;  %v413_v62 = vshrl.u32 %v12640_v41, 16  ;;  %15664 = vst [vmem:[#allocation6_spill] sm:$0xff] %v12675_v38  ;;  %15665 = vst [vmem:[#allocation7_spill] sm:$0xff] %v12678_v40 }
  0x50   : > { %11213 = vmatprep.mubr.msk.bf16.mxu0 %vm652_vm1, %v9842_v6  ;;  %v411_v1 = vsel %vm12451_vm7, %v406_v52, %v410_v22  ;;  %v10071_v2 = vcombine.low %v2872_v45, %v2875_v56  ;;  %v416_v15 = vshll.u32 %v12640_v41, 16  ;;  %v422_v16 = vshll.u32 %v12647_v49, 16  ;;  %v209_v22 = vld [vmem:[%s12392_s10 + $0x74] sm:$0x1]  ;;  %v2755_v6 = vld [vmem:[%s12392_s10 + $0x78] sm:$0xe] }
  0x51   : > { %v9843_v21 = vcombine.low %v401_v55, %v411_v1  ;;  %v2882_v23 = vsel %vm12412_vm6, %v2880_v54, %v2881_v59  ;;  %v415_v24 = vrot.slane %v413_v62, 4  ;;  %v426_v30 = vshrl.u32 %v12647_v49, 16  ;;  %v12688_v56 = vld [vmem:[%s12392_s10 + $0x88] sm:$0xf] }
  0x52   : > { %11353 = vmatprep.mubr.msk.bf16.mxu1 %vm652_vm1, %v10071_v2  ;;  %v10072_v31 = vcombine.low %v2879_v53, %v2882_v23  ;;  %v418_v32 = vrot.slane %v416_v15, 5  ;;  %v424_v34 = vrot.slane %v422_v16, 5  ;;  %v432_v8 = vshll.u32 %v208_v60, 16  ;;  %15666 = vst [vmem:[#allocation8_spill] sm:$0xff] %v12688_v56  ;;  %v2756_v2 = vld [vmem:[%s12392_s10 + $0x84] sm:$0xe] }
  0x53   : > { %11214 = vmatmul.mubr.msk.bf16.gmra.mrb[12].mxu0 %vm652_vm1, %v9843_v21  ;;  %v428_v42 = vrot.slane %v426_v30, 4  ;;  %v437_v43 = vshrl.u32 %v12664_v17, 16  ;;  %v440_v45 = vshll.u32 %v12664_v17, 16  ;;  %v446_v7 = vshll.u32 %v12667_v19, 16 }
  0x54   : > { %11354 = vmatmul.mubr.msk.bf16.gmra.mrb[16].mxu1 %vm652_vm1, %v10072_v31  ;;  %v419_v52 = vor.u32 %v418_v32, %v415_v24  ;;  %v434_v53 = vrot.slane %v432_v8, 5  ;;  %v450_v54 = vshrl.u32 %v12667_v19, 16  ;;  %v456_v55 = vshll.u32 %v209_v22, 16 }
  0x55   : > { %v429_v59 = vor.u32 %v428_v42, %v424_v34  ;;  %v439_v60 = vrot.slane %v437_v43, 4  ;;  %v442_v62 = vrot.slane %v440_v45, 5  ;;  %v448_v1 = vrot.slane %v446_v7, 5  ;;  %v12696_v42 = vld [vmem:[%s12392_s10 + $0x8c] sm:$0x1] }
  0x56   : > { %v420_v15 = vrot.slane %v419_v52, 4  ;;  %v452_v16 = vrot.slane %v450_v54, 4  ;;  %v458_v21 = vrot.slane %v456_v55, 5  ;;  %v10057_v23 = vrot.slane %v2755_v6, 9  ;;  %15667 = vst [vmem:[#allocation9_spill] sm:$0xff] %v12696_v42 }
  0x57   : > { %v430_v30 = vrot.slane %v429_v59, 4  ;;  %v443_v24 = vor.u32 %v442_v62, %v439_v60  ;;  %v2885_v31 = vrot.slane %v12675_v38, 5  ;;  %v2888_v22 = vrot.slane %v12678_v40, 5  ;;  %v12700_v7 = vld [vmem:[%s12392_s10 + $0x78] sm:$0xf] }
  0x58   : > { %v425_v32 = vsel %vm12451_vm7, %v420_v15, %v424_v34  ;;  %v453_v8 = vor.u32 %v452_v16, %v448_v1  ;;  %v10058_v43 = vrot.slane %v2756_v2, 9  ;;  %v2892_v45 = vrot.slane %v12688_v56, 5  ;;  %15668 = vst [vmem:[#allocation10_spill] sm:$0xff] %v12700_v7  ;;  %v12707_v59 = vld [vmem:[%s12392_s10 + $0x7c] sm:$0xf] }
  0x59   : > { %v435_v6 = vsel %vm12451_vm7, %v430_v30, %v434_v53  ;;  %v444_v52 = vrot.slane %v443_v24, 4  ;;  %v2886_v54 = vsel %vm12412_vm6, %v10057_v23, %v2885_v31  ;;  %v2887_v55 = vrot.slane %v2885_v31, 4  ;;  %15669 = vst [vmem:[#allocation11_spill] sm:$0xff] %v12707_v59  ;;  %v210_v23 = vld [vmem:[%s12392_s10 + $0x80] sm:$0x1] }
  0x5a   : > { %v9844_v34 = vcombine.low %v425_v32, %v435_v6  ;;  %v454_v60 = vrot.slane %v453_v8, 4  ;;  %v2893_v62 = vsel %vm12412_vm6, %v10058_v43, %v2892_v45  ;;  %v2894_v2 = vrot.slane %v2892_v45, 4  ;;  %v12724_v8 = vld [vmem:[%s12392_s10 + $0x84] sm:$0xf] }
  0x5b   : > { %v449_v15 = vsel %vm12451_vm7, %v444_v52, %v448_v1  ;;  %v2889_v53 = vsel %vm12412_vm6, %v2887_v55, %v2888_v22  ;;  %v2895_v16 = vrot.slane %v12696_v42, 5  ;;  %v461_v30 = vshrl.u32 %v12700_v7, 16  ;;  %15670 = vst [vmem:[#allocation12_spill] sm:$0xff] %v12724_v8  ;;  %v12727_v22 = vld [vmem:[%s12392_s10 + $0x88] sm:$0xf] }
  0x5c   : > { %11217 = vmatprep.mubr.msk.bf16.mxu0 %vm652_vm1, %v9844_v34  ;;  %v459_v24 = vsel %vm12451_vm7, %v454_v60, %v458_v21  ;;  %v10073_v31 = vcombine.low %v2886_v54, %v2889_v53  ;;  %v464_v32 = vshll.u32 %v12700_v7, 16  ;;  %v470_v1 = vshll.u32 %v12707_v59, 16  ;;  %15671 = vst [vmem:[#allocation13_spill] sm:$0xff] %v12727_v22  ;;  %v211_v21 = vld [vmem:[%s12392_s10 + $0x8c] sm:$0x1] }
  0x5d   : > { %v9845_v43 = vcombine.low %v449_v15, %v459_v24  ;;  %v2896_v45 = vsel %vm12412_vm6, %v2894_v2, %v2895_v16  ;;  %v463_v6 = vrot.slane %v461_v30, 4  ;;  %v474_v52 = vshrl.u32 %v12707_v59, 16  ;;  %v12735_v53 = vld [vmem:[%s12392_s10 + $0x94] sm:$0xf]  ;;  %v12738_v7 = vld [vmem:[%s12392_s10 + $0x98] sm:$0x1] }
  0x5e   : > { %11357 = vmatprep.mubr.msk.bf16.mxu1 %vm652_vm1, %v10073_v31  ;;  %v10074_v54 = vcombine.low %v2893_v62, %v2896_v45  ;;  %v466_v55 = vrot.slane %v464_v32, 5  ;;  %v472_v34 = vrot.slane %v470_v1, 5  ;;  %v480_v60 = vshll.u32 %v210_v23, 16  ;;  %15672 = vst [vmem:[#allocation14_spill] sm:$0xff] %v12735_v53  ;;  %15673 = vst [vmem:[#allocation15_spill] sm:$0xff] %v12738_v7 }
  0x5f   : > { %11218 = vmatmul.mubr.msk.bf16.gmra.mrb[16].mxu0 %vm652_vm1, %v9845_v43  ;;  %v476_v2 = vrot.slane %v474_v52, 4  ;;  %v485_v15 = vshrl.u32 %v12724_v8, 16  ;;  %v488_v16 = vshll.u32 %v12724_v8, 16  ;;  %v494_v30 = vshll.u32 %v12727_v22, 16  ;;  %v2757_v24 = vld [vmem:[%s12392_s10 + $0x90] sm:$0xe] }
  0x60   : > { %11358 = vmatmul.mubr.msk.bf16.gmra.mrb[20].mxu1 %vm652_vm1, %v10074_v54  ;;  %v467_v62 = vor.u32 %v466_v55, %v463_v6  ;;  %v482_v31 = vrot.slane %v480_v60, 5  ;;  %v498_v23 = vshrl.u32 %v12727_v22, 16  ;;  %v504_v32 = vshll.u32 %v211_v21, 16  ;;  %v12748_v1 = vld [vmem:[%s12392_s10 + $0xa0] sm:$0xf] }
  0x61   : > { %15674 = vst [vmem:[#allocation16_spill] sm:$0xff] %v12748_v1  ;;  %v477_v43 = vor.u32 %v476_v2, %v472_v34  ;;  %v487_v45 = vrot.slane %v485_v15, 4  ;;  %v490_v52 = vrot.slane %v488_v16, 5  ;;  %v496_v59 = vrot.slane %v494_v30, 5  ;;  %v2758_v42 = vld [vmem:[%s12392_s10 + $0x9c] sm:$0xe] }
  0x62   : > { %v468_v8 = vrot.slane %v467_v62, 4  ;;  %v500_v56 = vrot.slane %v498_v23, 4  ;;  %v506_v40 = vrot.slane %v504_v32, 5  ;;  %v10059_v38 = vrot.slane %v2757_v24, 9  ;;  %v12756_v15 = vld [vmem:[%s12392_s10 + $0xa4] sm:$0x1] }
  0x63   : > { %v478_v54 = vrot.slane %v477_v43, 4  ;;  %v491_v6 = vor.u32 %v490_v52, %v487_v45  ;;  %v2899_v55 = vrot.slane %v12735_v53, 5  ;;  %v2902_v21 = vrot.slane %v12738_v7, 5  ;;  %15675 = vst [vmem:[#allocation17_spill] sm:$0xff] %v12756_v15  ;;  %v12760_v62 = vld [vmem:[%s12392_s10 + $0x90] sm:$0xf] }
  0x64   : > { %v473_v60 = vsel %vm12451_vm7, %v468_v8, %v472_v34  ;;  %v501_v2 = vor.u32 %v500_v56, %v496_v59  ;;  %v10060_v16 = vrot.slane %v2758_v42, 9  ;;  %v2906_v30 = vrot.slane %v12748_v1, 5  ;;  %15676 = vst [vmem:[#allocation18_spill] sm:$0xff] %v12760_v62  ;;  %v12767_v45 = vld [vmem:[%s12392_s10 + $0x94] sm:$0xf] }
  0x65   : > { %v483_v24 = vsel %vm12451_vm7, %v478_v54, %v482_v31  ;;  %v492_v23 = vrot.slane %v491_v6, 4  ;;  %v2900_v32 = vsel %vm12412_vm6, %v10059_v38, %v2899_v55  ;;  %v2901_v43 = vrot.slane %v2899_v55, 4  ;;  %15677 = vst [vmem:[#allocation19_spill] sm:$0xff] %v12767_v45  ;;  %v212_v38 = vld [vmem:[%s12392_s10 + $0x98] sm:$0x1] }
  0x66   : > { %v9846_v56 = vcombine.low %v473_v60, %v483_v24  ;;  %v502_v8 = vrot.slane %v501_v2, 4  ;;  %v2907_v42 = vsel %vm12412_vm6, %v10060_v16, %v2906_v30  ;;  %v2908_v34 = vrot.slane %v2906_v30, 4  ;;  %v12779_v55 = vld [vmem:[%s12392_s10 + $0x9c] sm:$0xf]  ;;  %v12787_v16 = vld [vmem:[%s12392_s10 + $0xa0] sm:$0xf] }
  0x67   : > { %v497_v52 = vsel %vm12451_vm7, %v492_v23, %v496_v59  ;;  %v2903_v31 = vsel %vm12412_vm6, %v2901_v43, %v2902_v21  ;;  %v2909_v54 = vrot.slane %v12756_v15, 5  ;;  %v509_v6 = vshrl.u32 %v12760_v62, 16  ;;  %15678 = vst [vmem:[#allocation20_spill] sm:$0xff] %v12779_v55  ;;  %v12798_v15 = vld [vmem:[%s12392_s10 + $0xb0] sm:$0x1] }
  0x68   : > { %11221 = vmatprep.mubr.msk.bf16.mxu0 %vm652_vm1, %v9846_v56  ;;  %v507_v60 = vsel %vm12451_vm7, %v502_v8, %v506_v40  ;;  %v10075_v2 = vcombine.low %v2900_v32, %v2903_v31  ;;  %v512_v59 = vshll.u32 %v12760_v62, 16  ;;  %v518_v21 = vshll.u32 %v12767_v45, 16  ;;  %v213_v56 = vld [vmem:[%s12392_s10 + $0xa4] sm:$0x1]  ;;  %v12795_v62 = vld [vmem:[%s12392_s10 + $0xac] sm:$0xf] }
  0x69   : > { %v9847_v30 = vcombine.low %v497_v52, %v507_v60  ;;  %v2910_v24 = vsel %vm12412_vm6, %v2908_v34, %v2909_v54  ;;  %v511_v23 = vrot.slane %v509_v6, 4  ;;  %v522_v43 = vshrl.u32 %v12767_v45, 16  ;;  %v2759_v1 = vld [vmem:[%s12392_s10 + $0xa8] sm:$0xe]  ;;  %v12806_v60 = vld [vmem:[%s12392_s10 + $0xb8] sm:$0xf] }
  0x6a   : > { %11361 = vmatprep.mubr.msk.bf16.mxu1 %vm652_vm1, %v10075_v2  ;;  %v10076_v40 = vcombine.low %v2907_v42, %v2910_v24  ;;  %v514_v32 = vrot.slane %v512_v59, 5  ;;  %v520_v8 = vrot.slane %v518_v21, 5  ;;  %v528_v31 = vshll.u32 %v212_v38, 16  ;;  %15679 = vst [vmem:[#allocation21_spill] sm:$0xff] %v12806_v60  ;;  %v2760_v45 = vld [vmem:[%s12392_s10 + $0xb4] sm:$0xe] }
  0x6b   : > { %11222 = vmatmul.mubr.msk.bf16.gmra.mrb[20].mxu0 %vm652_vm1, %v9847_v30  ;;  %v524_v34 = vrot.slane %v522_v43, 4  ;;  %v533_v52 = vshrl.u32 %v12779_v55, 16  ;;  %v536_v54 = vshll.u32 %v12779_v55, 16  ;;  %v542_v6 = vshll.u32 %v12787_v16, 16 }
  0x6c   : > { %11362 = vmatmul.mubr.msk.bf16.gmra.mrb[24].mxu1 %vm652_vm1, %v10076_v40  ;;  %v515_v42 = vor.u32 %v514_v32, %v511_v23  ;;  %v530_v38 = vrot.slane %v528_v31, 5  ;;  %v546_v2 = vshrl.u32 %v12787_v16, 16  ;;  %v552_v59 = vshll.u32 %v213_v56, 16  ;;  %v12816_v31 = vld [vmem:[%s12392_s10 + $0xbc] sm:$0x1] }
  0x6d   : > { %v525_v21 = vor.u32 %v524_v34, %v520_v8  ;;  %v535_v24 = vrot.slane %v533_v52, 4  ;;  %v538_v30 = vrot.slane %v536_v54, 5  ;;  %v544_v43 = vrot.slane %v542_v6, 5  ;;  %15680 = vst [vmem:[#allocation22_spill] sm:$0xff] %v12816_v31  ;;  %v12820_v54 = vld [vmem:[%s12392_s10 + $0xa8] sm:$0xf] }
  0x6e   : > { %v516_v7 = vrot.slane %v515_v42, 4  ;;  %v548_v55 = vrot.slane %v546_v2, 4  ;;  %v554_v53 = vrot.slane %v552_v59, 5  ;;  %v10061_v22 = vrot.slane %v2759_v1, 9  ;;  %15681 = vst [vmem:[#allocation23_spill] sm:$0xff] %v12820_v54 }
  0x6f   : > { %v526_v17 = vrot.slane %v525_v21, 4  ;;  %v539_v19 = vor.u32 %v538_v30, %v535_v24  ;;  %v2913_v23 = vrot.slane %v12795_v62, 5  ;;  %v2916_v40 = vrot.slane %v12798_v15, 5  ;;  %v12827_v59 = vld [vmem:[%s12392_s10 + $0xac] sm:$0xf] }
  0x70   : > { %v521_v56 = vsel %vm12451_vm7, %v516_v7, %v520_v8  ;;  %v549_v32 = vor.u32 %v548_v55, %v544_v43  ;;  %v10062_v34 = vrot.slane %v2760_v45, 9  ;;  %v2920_v52 = vrot.slane %v12806_v60, 5  ;;  %15682 = vst [vmem:[#allocation24_spill] sm:$0xff] %v12827_v59 }
  0x71   : > { %v531_v1 = vsel %vm12451_vm7, %v526_v17, %v530_v38  ;;  %v540_v6 = vrot.slane %v539_v19, 4  ;;  %v2914_v42 = vsel %vm12412_vm6, %v10061_v22, %v2913_v23  ;;  %v2915_v2 = vrot.slane %v2913_v23, 4  ;;  %v214_v22 = vld [vmem:[%s12392_s10 + $0xb0] sm:$0x1] }
  0x72   : > { %v9848_v7 = vcombine.low %v521_v56, %v531_v1  ;;  %v550_v55 = vrot.slane %v549_v32, 4  ;;  %v2921_v45 = vsel %vm12412_vm6, %v10062_v34, %v2920_v52  ;;  %v2922_v8 = vrot.slane %v2920_v52, 4  ;;  %v12844_v56 = vld [vmem:[%s12392_s10 + $0xb4] sm:$0xf]  ;;  %v12847_v32 = vld [vmem:[%s12392_s10 + $0xb8] sm:$0xf] }
  0x73   : > { %v545_v21 = vsel %vm12451_vm7, %v540_v6, %v544_v43  ;;  %v2917_v17 = vsel %vm12412_vm6, %v2915_v2, %v2916_v40  ;;  %v2923_v19 = vrot.slane %v12816_v31, 5  ;;  %v557_v38 = vshrl.u32 %v12820_v54, 16  ;;  %15683 = vst [vmem:[#allocation25_spill] sm:$0xff] %v12844_v56  ;;  %v215_v6 = vld [vmem:[%s12392_s10 + $0xbc] sm:$0x1] }
  0x74   : > { %11225 = vmatprep.mubr.msk.bf16.mxu0 %vm652_vm1, %v9848_v7  ;;  %v555_v24 = vsel %vm12451_vm7, %v550_v55, %v554_v53  ;;  %v10077_v30 = vcombine.low %v2914_v42, %v2917_v17  ;;  %v560_v23 = vshll.u32 %v12820_v54, 16  ;;  %v566_v43 = vshll.u32 %v12827_v59, 16  ;;  %v2311_v55 = vld [vmem:[%s12392_s10] sm:$0xf] }
  0x75   : > { %v9849_v40 = vcombine.low %v545_v21, %v555_v24  ;;  %v2924_v34 = vsel %vm12412_vm6, %v2922_v8, %v2923_v19  ;;  %v559_v52 = vrot.slane %v557_v38, 4  ;;  %v570_v1 = vshrl.u32 %v12827_v59, 16  ;;  %v2314_v19 = vld [vmem:[%s12392_s10 + $0xc] sm:$0xf] }
  0x76   : > { %11365 = vmatprep.mubr.msk.bf16.mxu1 %vm652_vm1, %v10077_v30  ;;  %v10078_v53 = vcombine.low %v2921_v45, %v2924_v34  ;;  %v562_v42 = vrot.slane %v560_v23, 5  ;;  %v568_v2 = vrot.slane %v566_v43, 5  ;;  %v576_v7 = vshll.u32 %v214_v22, 16 }
  0x77   : > { %11226 = vmatmul.mubr.msk.bf16.gmra.mrb[24].mxu0 %vm652_vm1, %v9849_v40  ;;  %v572_v17 = vrot.slane %v570_v1, 4  ;;  %v581_v21 = vshrl.u32 %v12844_v56, 16  ;;  %v584_v24 = vshll.u32 %v12844_v56, 16  ;;  %v590_v8 = vshll.u32 %v12847_v32, 16 }
  0x78   : > { %11366 = vmatmul.mubr.msk.bf16.gmra.mrb[28].mxu1 %vm652_vm1, %v10078_v53  ;;  %v563_v38 = vor.u32 %v562_v42, %v559_v52  ;;  %v578_v18 = vrot.slane %v576_v7, 5  ;;  %v594_v45 = vshrl.u32 %v12847_v32, 16  ;;  %v600_v30 = vshll.u32 %v215_v6, 16 }
  0x79   : > { %v573_v23 = vor.u32 %v572_v17, %v568_v2  ;;  %v583_v22 = vrot.slane %v581_v21, 4  ;;  %v586_v43 = vrot.slane %v584_v24, 5  ;;  %v592_v34 = vrot.slane %v590_v8, 5 }
  0x7a   : > { %v564_v40 = vrot.slane %v563_v38, 4  ;;  %v596_v1 = vrot.slane %v594_v45, 4  ;;  %v602_v54 = vrot.slane %v600_v30, 5  ;;  %v2362_v59 = vshrl.u32 %v2311_v55, 16  ;;  %v2317_v30 = vld [vmem:[%s12392_s10 + $0x18] sm:$0xf] }
  0x7b   : > { %v574_v31 = vrot.slane %v573_v23, 4  ;;  %v587_v56 = vor.u32 %v586_v43, %v583_v22  ;;  %v2365_v60 = vshll.u32 %v2311_v55, 16  ;;  %v2378_v53 = vor.u32 %v12420_v27, %v12418_v26  ;;  %v12233_v23 = vld [vmem:[%s12392_s10 + $0x4] sm:$0xf]  ;;  %v12234_v43 = vld [vmem:[%s12392_s10 + $0xc] sm:$0xf] }
  0x7c   : > { %v569_v52 = vsel %vm12451_vm7, %v564_v40, %v568_v2  ;;  %v597_v42 = vor.u32 %v596_v1, %v592_v34  ;;  %v2364_v6 = vrot.slane %v2362_v59, 4  ;;  %v2386_v7 = vshrl.u32 %v2314_v19, 16  ;;  %v2320_v1 = vld [vmem:[%s12392_s10 + $0x24] sm:$0xf] }
  0x7d   : > { %v579_v17 = vsel %vm12451_vm7, %v574_v31, %v578_v18  ;;  %v588_v21 = vrot.slane %v587_v56, 4  ;;  %v2367_v24 = vrot.slane %v2365_v60, 5  ;;  %v2379_v8 = vrot.slane %v2378_v53, 4 }
  0x7e   : > { %v9850_v38 = vcombine.low %v569_v52, %v579_v17  ;;  %v598_v55 = vrot.slane %v597_v42, 4  ;;  %v2388_v45 = vrot.slane %v2386_v7, 4  ;;  %v2389_v27 = vshll.u32 %v2314_v19, 16  ;;  %v12232_v19 = vld [vmem:[%s12392_s10] sm:$0xf] }
  0x7f   : > { %v593_v59 = vsel %vm12451_vm7, %v588_v21, %v592_v34  ;;  %v2368_v2 = vor.u32 %v2367_v24, %v2364_v6  ;;  %v2384_v18 = vsel %vm12451_vm7, %v2379_v8, %v12422_v28  ;;  %v2408_v60 = vsel %vm12451_vm7, %v12440_v51, %v12430_v36  ;;  %v12235_v34 = vld [vmem:[%s12392_s10 + $0x10] sm:$0xf]  ;;  %v12236_v36 = vld [vmem:[%s12392_s10 + $0x1c] sm:$0xf] }
  0x80   : > { %11229 = vmatprep.mubr.msk.bf16.mxu0 %vm652_vm1, %v9850_v38  ;;  %v603_v31 = vsel %vm12451_vm7, %v598_v55, %v602_v54  ;;  %v2391_v56 = vrot.slane %v2389_v27, 5  ;;  %v9868_v22 = vcombine.low %v12232_v19, %v12233_v23  ;;  %v9869_v40 = vcombine.low %v12234_v43, %v12235_v34 }
  0x81   : > { %v9851_v28 = vcombine.low %v593_v59, %v603_v31  ;;  %v2369_v53 = vrot.slane %v2368_v2, 4  ;;  %v2410_v52 = vshrl.u32 %v2317_v30, 16  ;;  %v2413_v42 = vshll.u32 %v2317_v30, 16  ;;  %v2323_v31 = vld [vmem:[%s12392_s10 + $0x30] sm:$0xf] }
  0x82   : > { %v2392_v6 = vor.u32 %v2391_v56, %v2388_v45  ;;  %v2419_v51 = vshll.u32 %v12236_v36, 16  ;;  %v2423_v7 = vshrl.u32 %v12236_v36, 16  ;;  %v2429_v17 = vshll.u32 %v12456_v14, 16  ;;  %v12237_v56 = vld [vmem:[%s12392_s10 + $0x28] sm:$0xf] }
  0x83   : > { %11230 = vmatmul.mubr.msk.bf16.gmra.mrb[28].mxu0 %vm652_vm1, %v9851_v28  ;;  %v2374_v54 = vsel %vm12451_vm7, %v2369_v53, %v12418_v26  ;;  %v2412_v21 = vrot.slane %v2410_v52, 4  ;;  %v2415_v24 = vrot.slane %v2413_v42, 5  ;;  %v2434_v8 = vshrl.u32 %v2320_v1, 16  ;;  %v12238_v28 = vld [vmem:[%s12392_s10 + $0x2c] sm:$0x1] }
  0x84   : > { %v10095_v38 = vcombine.low %v2374_v54, %v2384_v18  ;;  %v2393_v55 = vrot.slane %v2392_v6, 4  ;;  %11235 = vmatprep.mubr.msk.bf16.mxu0 %vm652_vm1, %v9868_v22  ;;  %v2421_v45 = vrot.slane %v2419_v51, 5  ;;  %v2425_v27 = vrot.slane %v2423_v7, 4  ;;  %v12902_v22 = vld [vmem:[%s15600_s1 + $0x1c] sm:$0xf] }
  0x85   : > { %v2416_v30 = vor.u32 %v2415_v24, %v2412_v21  ;;  %v2431_v59 = vrot.slane %v2429_v17, 5  ;;  %v2436_v14 = vrot.slane %v2434_v8, 4  ;;  %v2437_v2 = vshll.u32 %v2320_v1, 16  ;;  %v12239_v36 = vld [vmem:[%s12392_s10 + $0x18] sm:$0xf] }
  0x86   : > { %11371 = vmatprep.mubr.msk.bf16.mxu1 %vm652_vm1, %v10095_v38  ;;  %v2398_v26 = vsel %vm12451_vm7, %v2393_v55, %v12427_v33  ;;  %v2426_v18 = vor.u32 %v2425_v27, %v2421_v45  ;;  %v2443_v19 = vshll.u32 %v12237_v56, 16  ;;  %v2447_v23 = vshrl.u32 %v12237_v56, 16  ;;  %v12240_v33 = vld [vmem:[%s12392_s10 + $0x1c] sm:$0xf]  ;;  %v12919_v27 = vld [vmem:[%s15600_s1 + $0xc] sm:$0xf] }
  0x87   : > { %v10096_v43 = vcombine.low %v2398_v26, %v2408_v60  ;;  %v2417_v34 = vrot.slane %v2416_v30, 4  ;;  %v2439_v1 = vrot.slane %v2437_v2, 5  ;;  %v2453_v53 = vshll.u32 %v12238_v28, 16  ;;  %v2326_v55 = vld [vmem:[%s12392_s10 + $0x3c] sm:$0xf] }
  0x88   : > { %v2427_v52 = vrot.slane %v2426_v18, 4  ;;  %v2445_v42 = vrot.slane %v2443_v19, 5  ;;  %v2449_v6 = vrot.slane %v2447_v23, 4  ;;  %v9870_v51 = vcombine.low %v12239_v36, %v12240_v33 }
  0x89   : > { %11372 = vmatmul.mubr.msk.bf16.vlgmr.msra.gmra.mrb[0].mxu1 %vm652_vm1, %v10096_v43  ;;  %v2422_v7 = vsel %vm12451_vm7, %v2417_v34, %v2421_v45  ;;  %v2440_v17 = vor.u32 %v2439_v1, %v2436_v14  ;;  %v2455_v54 = vrot.slane %v2453_v53, 5  ;;  %v9871_v60 = vcombine.low %v12485_v58, %v12491_v63  ;;  %v12241_v34 = vld [vmem:[%s12392_s10 + $0x40] sm:$0xf] }
  0x8a   : > { %11404 = vmatpush3.bf16.msra.mxu1 %v12406_v11  ;;  %v2432_v21 = vsel %vm12451_vm7, %v2427_v52, %v2431_v59  ;;  %v2450_v24 = vor.u32 %v2449_v6, %v2445_v42  ;;  %v2458_v8 = vshrl.u32 %v2323_v31, 16  ;;  %v2461_v38 = vshll.u32 %v2323_v31, 16  ;;  %v2329_v6 = vld [vmem:[%s12392_s10 + $0x48] sm:$0xf] }
  0x8b   : > { %11236 = vmatmul.mubr.msk.bf16.vlgmr.msra.gmra.mrb[0].mxu0 %vm652_vm1, %v9869_v40  ;;  %v10097_v45 = vcombine.low %v2422_v7, %v2432_v21  ;;  %v2441_v30 = vrot.slane %v2440_v17, 4  ;;  %v2467_v58 = vshll.u32 %v12495_v12, 16  ;;  %v2471_v11 = vshrl.u32 %v12495_v12, 16  ;;  %12134 = vmatprep.subr.msk.bf16.mxu1 %vm701_vm0, %v12902_v22 }
  0x8c   : > { %11268 = vmatpush3.bf16.msra.mxu0 %v12402_v10  ;;  %v2451_v63 = vrot.slane %v2450_v24, 4  ;;  %11239 = vmatprep.mubr.msk.bf16.mxu0 %vm652_vm1, %v9870_v51  ;;  %v2460_v59 = vrot.slane %v2458_v8, 4  ;;  %v2463_v14 = vrot.slane %v2461_v38, 5  ;;  %v2477_v2 = vshll.u32 %v12502_v20, 16  ;;  %v2332_v8 = vld [vmem:[%s12392_s10 + $0x54] sm:$0xf] }
  0x8d   : > { %11375 = vmatprep.mubr.msk.bf16.mxu1 %vm652_vm1, %v10097_v45  ;;  %v2446_v40 = vsel %vm12451_vm7, %v2441_v30, %v2445_v42  ;;  %v2469_v31 = vrot.slane %v2467_v58, 5  ;;  %v2473_v12 = vrot.slane %v2471_v11, 4  ;;  %v2482_v26 = vshrl.u32 %v2326_v55, 16  ;;  %12130 = vmatprep.subr.msk.bf16.mxu0 %vm701_vm0, %v12919_v27 }
  0x8e   : > { %v2456_v10 = vsel %vm12451_vm7, %v2451_v63, %v2455_v54  ;;  %v2464_v18 = vor.u32 %v2463_v14, %v2460_v59  ;;  %v2479_v56 = vrot.slane %v2477_v2, 5  ;;  %v2485_v19 = vshll.u32 %v2326_v55, 16 }
  0x8f   : > { %v10098_v23 = vcombine.low %v2446_v40, %v2456_v10  ;;  %v2474_v20 = vor.u32 %v2473_v12, %v2469_v31  ;;  %v2484_v43 = vrot.slane %v2482_v26, 4  ;;  %v2491_v1 = vshll.u32 %v12241_v34, 16 }
  0x90   : > { %v2465_v28 = vrot.slane %v2464_v18, 4  ;;  %v2487_v53 = vrot.slane %v2485_v19, 5  ;;  %v2495_v52 = vshrl.u32 %v12241_v34, 16  ;;  %v2501_v42 = vshll.u32 %v12517_v44, 16 }
  0x91   : > { %11376 = vmatmul.mubr.msk.bf16.gmra.mrb[4].mxu1 %vm652_vm1, %v10098_v23  ;;  %v2475_v36 = vrot.slane %v2474_v20, 4  ;;  %v2493_v33 = vrot.slane %v2491_v1, 5  ;;  %v9872_v51 = vcombine.low %v12520_v46, %v12527_v50  ;;  %v9873_v7 = vcombine.low %v12544_v4, %v12547_v5 }
  0x92   : > { %v2470_v17 = vsel %vm12451_vm7, %v2465_v28, %v2469_v31  ;;  %v2488_v54 = vor.u32 %v2487_v53, %v2484_v43  ;;  %v2497_v21 = vrot.slane %v2495_v52, 4  ;;  %v2503_v24 = vrot.slane %v2501_v42, 5  ;;  %v2338_v52 = vld [vmem:[%s12392_s10 + $0x6c] sm:$0xf] }
  0x93   : > { %11240 = vmatmul.mubr.msk.bf16.gmra.mrb[4].mxu0 %vm652_vm1, %v9871_v60  ;;  %v2480_v44 = vsel %vm12451_vm7, %v2475_v36, %v2479_v56  ;;  %v2506_v38 = vshrl.u32 %v2329_v6, 16  ;;  %v2509_v55 = vshll.u32 %v2329_v6, 16  ;;  %v2515_v45 = vshll.u32 %v12555_v25, 16  ;;  %v2335_v56 = vld [vmem:[%s12392_s10 + $0x60] sm:$0xf] }
  0x94   : > { %v10099_v46 = vcombine.low %v2470_v17, %v2480_v44  ;;  %v2489_v50 = vrot.slane %v2488_v54, 4  ;;  %v2498_v30 = vor.u32 %v2497_v21, %v2493_v33  ;;  %11243 = vmatprep.mubr.msk.bf16.mxu0 %vm652_vm1, %v9872_v51  ;;  %v2519_v4 = vshrl.u32 %v12555_v25, 16 }
  0x95   : > { %v2508_v5 = vrot.slane %v2506_v38, 4  ;;  %v2511_v58 = vrot.slane %v2509_v55, 5  ;;  %v2517_v11 = vrot.slane %v2515_v45, 5  ;;  %v2525_v60 = vshll.u32 %v12558_v29, 16 }
  0x96   : > { %11379 = vmatprep.mubr.msk.bf16.mxu1 %vm652_vm1, %v10099_v46  ;;  %v2494_v63 = vsel %vm12451_vm7, %v2489_v50, %v2493_v33  ;;  %v2499_v59 = vrot.slane %v2498_v30, 4  ;;  %v2521_v14 = vrot.slane %v2519_v4, 4  ;;  %v2530_v2 = vshrl.u32 %v2332_v8, 16 }
  0x97   : > { %v2512_v40 = vor.u32 %v2511_v58, %v2508_v5  ;;  %v2527_v31 = vrot.slane %v2525_v60, 5  ;;  %v2533_v12 = vshll.u32 %v2332_v8, 16  ;;  %v2539_v25 = vshll.u32 %v12568_v39, 16 }
  0x98   : > { %v2504_v26 = vsel %vm12451_vm7, %v2499_v59, %v2503_v24  ;;  %v2522_v10 = vor.u32 %v2521_v14, %v2517_v11  ;;  %v2532_v18 = vrot.slane %v2530_v2, 4  ;;  %v2543_v29 = vshrl.u32 %v12568_v39, 16  ;;  %v2341_v59 = vld [vmem:[%s12392_s10 + $0x78] sm:$0xf] }
  0x99   : > { %v10100_v19 = vcombine.low %v2494_v63, %v2504_v26  ;;  %v2513_v23 = vrot.slane %v2512_v40, 4  ;;  %v2535_v20 = vrot.slane %v2533_v12, 5  ;;  %v2541_v43 = vrot.slane %v2539_v25, 5  ;;  %v15685_v12 = vld [vmem:[#allocation4_spill] sm:$0xff] }
  0x9a   : > { %v2523_v34 = vrot.slane %v2522_v10, 4  ;;  %v2545_v1 = vrot.slane %v2543_v29, 4  ;;  %v2549_v28 = vshll.u32 %v12576_v57, 16  ;;  %v9874_v53 = vcombine.low %v12580_v61, %v12587_v13 }
  0x9b   : > { %11380 = vmatmul.mubr.msk.bf16.gmra.mrb[8].mxu1 %vm652_vm1, %v10100_v19  ;;  %11244 = vmatmul.mubr.msk.bf16.gmra.mrb[8].mxu0 %vm652_vm1, %v9873_v7  ;;  %v2518_v39 = vsel %vm12451_vm7, %v2513_v23, %v2517_v11  ;;  %v2536_v42 = vor.u32 %v2535_v20, %v2532_v18  ;;  %v9875_v6 = vcombine.low %v12604_v35, %v12607_v37  ;;  %v2554_v36 = vshrl.u32 %v2335_v56, 16  ;;  %v15686_v19 = vld [vmem:[#allocation6_spill] sm:$0xff] }
  0x9c   : > { %v2528_v33 = vsel %vm12451_vm7, %v2523_v34, %v2527_v31  ;;  %v2546_v57 = vor.u32 %v2545_v1, %v2541_v43  ;;  %v2551_v51 = vrot.slane %v2549_v28, 5  ;;  %11247 = vmatprep.mubr.msk.bf16.mxu0 %vm652_vm1, %v9874_v53  ;;  %v2557_v61 = vshll.u32 %v2335_v56, 16  ;;  %v15684_v31 = vld [vmem:[#allocation5_spill] sm:$0xff]  ;;  %v2344_v1 = vld [vmem:[%s12392_s10 + $0x84] sm:$0xf] }
  0x9d   : > { %v10101_v13 = vcombine.low %v2518_v39, %v2528_v33  ;;  %v2537_v17 = vrot.slane %v2536_v42, 4  ;;  %v2556_v54 = vrot.slane %v2554_v36, 4  ;;  %v2563_v7 = vshll.u32 %v12615_v47, 16 }
  0x9e   : > { %v2547_v21 = vrot.slane %v2546_v57, 4  ;;  %v2559_v24 = vrot.slane %v2557_v61, 5  ;;  %v2567_v8 = vshrl.u32 %v12615_v47, 16  ;;  %v2573_v35 = vshll.u32 %v12618_v48, 16 }
  0x9f   : > { %11383 = vmatprep.mubr.msk.bf16.mxu1 %vm652_vm1, %v10101_v13  ;;  %v2542_v37 = vsel %vm12451_vm7, %v2537_v17, %v2541_v43  ;;  %v2565_v44 = vrot.slane %v2563_v7, 5  ;;  %v2578_v38 = vshrl.u32 %v2338_v52, 16  ;;  %v2581_v55 = vshll.u32 %v2338_v52, 16  ;;  %v15687_v43 = vld [vmem:[#allocation7_spill] sm:$0xff]  ;;  %v15688_v13 = vld [vmem:[#allocation8_spill] sm:$0xff] }
  0xa0   : > { %v2552_v45 = vsel %vm12451_vm7, %v2547_v21, %v2551_v51  ;;  %v2560_v46 = vor.u32 %v2559_v24, %v2556_v54  ;;  %v2569_v50 = vrot.slane %v2567_v8, 4  ;;  %v2575_v30 = vrot.slane %v2573_v35, 5  ;;  %v15689_v24 = vld [vmem:[#allocation9_spill] sm:$0xff] }
  0xa1   : > { %v10102_v4 = vcombine.low %v2542_v37, %v2552_v45  ;;  %v2580_v5 = vrot.slane %v2578_v38, 4  ;;  %v2583_v47 = vrot.slane %v2581_v55, 5  ;;  %v2587_v48 = vshll.u32 %v12628_v0, 16  ;;  %v2347_v55 = vld [vmem:[%s12392_s10 + $0x90] sm:$0xf] }
  0xa2   : > { %v2561_v58 = vrot.slane %v2560_v46, 4  ;;  %v2570_v11 = vor.u32 %v2569_v50, %v2565_v44  ;;  %v2591_v60 = vshrl.u32 %v12628_v0, 16  ;;  %v2597_v63 = vshll.u32 %v12636_v9, 16 }
  0xa3   : > { %11384 = vmatmul.mubr.msk.bf16.gmra.mrb[12].mxu1 %vm652_vm1, %v10102_v4  ;;  %11248 = vmatmul.mubr.msk.bf16.gmra.mrb[12].mxu0 %vm652_vm1, %v9875_v6  ;;  %v2584_v14 = vor.u32 %v2583_v47, %v2580_v5  ;;  %v2589_v2 = vrot.slane %v2587_v48, 5  ;;  %v9876_v40 = vcombine.low %v12640_v41, %v12647_v49  ;;  %v9877_v25 = vcombine.low %v15685_v12, %v15684_v31  ;;  %v15690_v47 = vld [vmem:[#allocation11_spill] sm:$0xff]  ;;  %v15691_v48 = vld [vmem:[#allocation10_spill] sm:$0xff] }
  0xa4   : > { %v2566_v26 = vsel %vm12451_vm7, %v2561_v58, %v2565_v44  ;;  %v2571_v0 = vrot.slane %v2570_v11, 4  ;;  %v2593_v10 = vrot.slane %v2591_v60, 4  ;;  %v2599_v9 = vrot.slane %v2597_v63, 5  ;;  %v15692_v11 = vld [vmem:[#allocation13_spill] sm:$0xff]  ;;  %v15693_v60 = vld [vmem:[#allocation12_spill] sm:$0xff] }
  0xa5   : > { %v2585_v18 = vrot.slane %v2584_v14, 4  ;;  %11251 = vmatprep.mubr.msk.bf16.mxu0 %vm652_vm1, %v9876_v40  ;;  %v2602_v29 = vshrl.u32 %v2341_v59, 16  ;;  %v2605_v56 = vshll.u32 %v2341_v59, 16  ;;  %v2611_v23 = vshll.u32 %v15686_v19, 16  ;;  %v2350_v31 = vld [vmem:[%s12392_s10 + $0x9c] sm:$0xf] }
  0xa6   : > { %v2576_v20 = vsel %vm12451_vm7, %v2571_v0, %v2575_v30  ;;  %v2594_v41 = vor.u32 %v2593_v10, %v2589_v2  ;;  %v2615_v49 = vshrl.u32 %v15686_v19, 16  ;;  %v2621_v34 = vshll.u32 %v15687_v43, 16 }
  0xa7   : > { %v10103_v28 = vcombine.low %v2566_v26, %v2576_v20  ;;  %v2590_v53 = vsel %vm12451_vm7, %v2585_v18, %v2589_v2  ;;  %v2604_v52 = vrot.slane %v2602_v29, 4  ;;  %v2607_v39 = vrot.slane %v2605_v56, 5  ;;  %v15694_v26 = vld [vmem:[#allocation14_spill] sm:$0xff]  ;;  %v15695_v56 = vld [vmem:[#allocation15_spill] sm:$0xff] }
  0xa8   : > { %v2595_v42 = vrot.slane %v2594_v41, 4  ;;  %v2613_v6 = vrot.slane %v2611_v23, 5  ;;  %v2617_v36 = vrot.slane %v2615_v49, 4  ;;  %v2623_v33 = vrot.slane %v2621_v34, 5 }
  0xa9   : > { %11387 = vmatprep.mubr.msk.bf16.mxu1 %vm652_vm1, %v10103_v28  ;;  %v2608_v57 = vor.u32 %v2607_v39, %v2604_v52  ;;  %v2626_v51 = vshrl.u32 %v2344_v1, 16  ;;  %v2629_v61 = vshll.u32 %v2344_v1, 16  ;;  %v2635_v17 = vshll.u32 %v15688_v13, 16 }
  0xaa   : > { %v2600_v54 = vsel %vm12451_vm7, %v2595_v42, %v2599_v9  ;;  %v2618_v7 = vor.u32 %v2617_v36, %v2613_v6  ;;  %v2639_v21 = vshrl.u32 %v15688_v13, 16  ;;  %v2645_v8 = vshll.u32 %v15689_v24, 16  ;;  %v15696_v42 = vld [vmem:[#allocation16_spill] sm:$0xff] }
  0xab   : > { %v10104_v35 = vcombine.low %v2590_v53, %v2600_v54  ;;  %11252 = vmatmul.mubr.msk.bf16.gmra.mrb[16].mxu0 %vm652_vm1, %v9877_v25  ;;  %v2609_v37 = vrot.slane %v2608_v57, 4  ;;  %v2628_v44 = vrot.slane %v2626_v51, 4  ;;  %v2631_v38 = vrot.slane %v2629_v61, 5  ;;  %v15697_v51 = vld [vmem:[#allocation17_spill] sm:$0xff]  ;;  %v2353_v13 = vld [vmem:[%s12392_s10 + $0xa8] sm:$0xf] }
  0xac   : > { %v2619_v45 = vrot.slane %v2618_v7, 4  ;;  %v2637_v46 = vrot.slane %v2635_v17, 5  ;;  %v2641_v50 = vrot.slane %v2639_v21, 4  ;;  %v2647_v30 = vrot.slane %v2645_v8, 5  ;;  %v15698_v7 = vld [vmem:[#allocation19_spill] sm:$0xff]  ;;  %v15699_v21 = vld [vmem:[#allocation18_spill] sm:$0xff] }
  0xad   : > { %11388 = vmatmul.mubr.msk.bf16.gmra.mrb[16].mxu1 %vm652_vm1, %v10104_v35  ;;  %v2614_v4 = vsel %vm12451_vm7, %v2609_v37, %v2613_v6  ;;  %v2632_v5 = vor.u32 %v2631_v38, %v2628_v44  ;;  %v9878_v58 = vcombine.low %v15691_v48, %v15690_v47  ;;  %v9879_v63 = vcombine.low %v15693_v60, %v15692_v11  ;;  %v15700_v8 = vld [vmem:[#allocation20_spill] sm:$0xff]  ;;  %v2356_v37 = vld [vmem:[%s12392_s10 + $0xb4] sm:$0xf] }
  0xae   : > { %v2624_v59 = vsel %vm12451_vm7, %v2619_v45, %v2623_v33  ;;  %v2642_v14 = vor.u32 %v2641_v50, %v2637_v46  ;;  %v2650_v2 = vshrl.u32 %v2347_v55, 16  ;;  %v2653_v40 = vshll.u32 %v2347_v55, 16 }
  0xaf   : > { %v10105_v12 = vcombine.low %v2614_v4, %v2624_v59  ;;  %v2633_v25 = vrot.slane %v2632_v5, 4  ;;  %11255 = vmatprep.mubr.msk.bf16.mxu0 %vm652_vm1, %v9878_v58  ;;  %v2659_v0 = vshll.u32 %v15694_v26, 16  ;;  %v2663_v10 = vshrl.u32 %v15694_v26, 16 }
  0xb0   : > { %v2643_v9 = vrot.slane %v2642_v14, 4  ;;  %v2652_v18 = vrot.slane %v2650_v2, 4  ;;  %v2655_v29 = vrot.slane %v2653_v40, 5  ;;  %v2669_v19 = vshll.u32 %v15695_v56, 16 }
  0xb1   : > { %11391 = vmatprep.mubr.msk.bf16.mxu1 %vm652_vm1, %v10105_v12  ;;  %v2638_v23 = vsel %vm12451_vm7, %v2633_v25, %v2637_v46  ;;  %v2661_v20 = vrot.slane %v2659_v0, 5  ;;  %v2665_v41 = vrot.slane %v2663_v10, 4  ;;  %v2674_v49 = vshrl.u32 %v2350_v31, 16  ;;  %v15701_v25 = vld [vmem:[#allocation21_spill] sm:$0xff] }
  0xb2   : > { %v2648_v43 = vsel %vm12451_vm7, %v2643_v9, %v2647_v30  ;;  %v2656_v34 = vor.u32 %v2655_v29, %v2652_v18  ;;  %v2671_v1 = vrot.slane %v2669_v19, 5  ;;  %v2677_v28 = vshll.u32 %v2350_v31, 16  ;;  %v10127_v18 = vld [vmem:[%s12392_s10 + $0xc] sm:$0xf]  ;;  %v13060_v29 = vld [vmem:[%s12392_s10 + $0x10] sm:$0xf] }
  0xb3   : > { %v10106_v53 = vcombine.low %v2638_v23, %v2648_v43  ;;  %11256 = vmatmul.mubr.msk.bf16.gmra.mrb[20].mxu0 %vm652_vm1, %v9879_v63  ;;  %v2666_v52 = vor.u32 %v2665_v41, %v2661_v20  ;;  %v2676_v39 = vrot.slane %v2674_v49, 4  ;;  %v2683_v6 = vshll.u32 %v15696_v42, 16  ;;  %v13063_v41 = vld [vmem:[%s12392_s10 + $0x14] sm:$0x1] }
  0xb4   : > { %v2657_v36 = vrot.slane %v2656_v34, 4  ;;  %v2679_v33 = vrot.slane %v2677_v28, 5  ;;  %v2687_v57 = vshrl.u32 %v15696_v42, 16  ;;  %v2693_v61 = vshll.u32 %v15697_v51, 16  ;;  %v15702_v34 = vld [vmem:[#allocation22_spill] sm:$0xff]  ;;  %v15703_v28 = vld [vmem:[#allocation24_spill] sm:$0xff] }
  0xb5   : > { %11392 = vmatmul.mubr.msk.bf16.gmra.mrb[20].mxu1 %vm652_vm1, %v10106_v53  ;;  %v2667_v17 = vrot.slane %v2666_v52, 4  ;;  %v2685_v54 = vrot.slane %v2683_v6, 5  ;;  %v9880_v24 = vcombine.low %v15699_v21, %v15698_v7  ;;  %v9881_v35 = vcombine.low %v15700_v8, %v12787_v16  ;;  %v15704_v53 = vld [vmem:[#allocation23_spill] sm:$0xff]  ;;  %v15705_v6 = vld [vmem:[#allocation25_spill] sm:$0xff]  ;;  %v13079_v7 = vld [vmem:[%s12392_s10 + $0x1c] sm:$0xf] }
  0xb6   : > { %v2662_v44 = vsel %vm12451_vm7, %v2657_v36, %v2661_v20  ;;  %v2680_v38 = vor.u32 %v2679_v33, %v2676_v39  ;;  %v2689_v55 = vrot.slane %v2687_v57, 4  ;;  %v2695_v45 = vrot.slane %v2693_v61, 5  ;;  %v10130_v57 = vld [vmem:[%s12392_s10 + $0x18] sm:$0xf]  ;;  %v12184_v51 = vld [vmem:[%s12392_s10 + $0xc] sm:$0xff]  }
  0xb7   : > { %v2672_v46 = vsel %vm12451_vm7, %v2667_v17, %v2671_v1  ;;  %11259 = vmatprep.mubr.msk.bf16.mxu0 %vm652_vm1, %v9880_v24  ;;  %v2698_v50 = vshrl.u32 %v2353_v13, 16  ;;  %v2701_v30 = vshll.u32 %v2353_v13, 16  ;;  %v2707_v4 = vshll.u32 %v12795_v62, 16 }
  0xb8   : > { %v10107_v5 = vcombine.low %v2662_v44, %v2672_v46  ;;  %v2681_v47 = vrot.slane %v2680_v38, 4  ;;  %v2690_v48 = vor.u32 %v2689_v55, %v2685_v54  ;;  %v2711_v16 = vshrl.u32 %v12795_v62, 16 }
  0xb9   : > { %v2700_v58 = vrot.slane %v2698_v50, 4  ;;  %v2703_v11 = vrot.slane %v2701_v30, 5  ;;  %v2709_v60 = vrot.slane %v2707_v4, 5  ;;  %v2717_v63 = vshll.u32 %v12798_v15, 16 }
  0xba   : > { %11395 = vmatprep.mubr.msk.bf16.mxu1 %vm652_vm1, %v10107_v5  ;;  %v2686_v59 = vsel %vm12451_vm7, %v2681_v47, %v2685_v54  ;;  %v2691_v14 = vrot.slane %v2690_v48, 4  ;;  %v2713_v2 = vrot.slane %v2711_v16, 4  ;;  %v2722_v40 = vshrl.u32 %v2356_v37, 16  ;;  %v10133_v16 = vld [vmem:[%s12392_s10 + $0x24] sm:$0xf] }
  0xbb   : > { %11260 = vmatmul.mubr.msk.bf16.gmra.mrb[24].mxu0 %vm652_vm1, %v9881_v35  ;;  %v2704_v31 = vor.u32 %v2703_v11, %v2700_v58  ;;  %v2719_v62 = vrot.slane %v2717_v63, 5  ;;  %v2725_v12 = vshll.u32 %v2356_v37, 16  ;;  %v2731_v26 = vshll.u32 %v15701_v25, 16  ;;  %v13083_v37 = vld [vmem:[%s12392_s10 + $0x20] sm:$0x1] }
  0xbc   : > { %v2696_v15 = vsel %vm12451_vm7, %v2691_v14, %v2695_v45  ;;  %v2714_v0 = vor.u32 %v2713_v2, %v2709_v60  ;;  %v2724_v10 = vrot.slane %v2722_v40, 4  ;;  %v2735_v9 = vshrl.u32 %v15701_v25, 16  ;;  %v12185_v25 = vld [vmem:[%s12392_s10 + $0x18] sm:$0xff]  }
  0xbd   : > { %v10108_v56 = vcombine.low %v2686_v59, %v2696_v15  ;;  %v2705_v19 = vrot.slane %v2704_v31, 4  ;;  %v2727_v23 = vrot.slane %v2725_v12, 5  ;;  %v2733_v20 = vrot.slane %v2731_v26, 5  ;;  %v13099_v31 = vld [vmem:[%s12392_s10 + $0x28] sm:$0xf] }
  0xbe   : > { %v2715_v49 = vrot.slane %v2714_v0, 4  ;;  %v2737_v43 = vrot.slane %v2735_v9, 4  ;;  %v2741_v1 = vshll.u32 %v15702_v34, 16  ;;  %v9882_v52 = vcombine.low %v15704_v53, %v15703_v28  ;;  %v13108_v0 = vld [vmem:[%s12392_s10 + $0x2c] sm:$0x1] }
  0xbf   : > { %11396 = vmatmul.mubr.msk.bf16.gmra.mrb[24].mxu1 %vm652_vm1, %v10108_v56  ;;  %v2710_v39 = vsel %vm12451_vm7, %v2705_v19, %v2709_v60  ;;  %v2728_v42 = vor.u32 %v2727_v23, %v2724_v10  ;;  %v9883_v36 = vcombine.low %v15705_v6, %v12847_v32  ;;  %v3495_v33 = vshrl.u32 %v10127_v18, 16  ;;  %v10136_v19 = vld [vmem:[%s12392_s10 + $0x30] sm:$0xf]  ;;  %v12186_v23 = vld [vmem:[%s12392_s10 + $0x24] sm:$0xff]  }
  0xc0   : > { %v2720_v61 = vsel %vm12451_vm7, %v2715_v49, %v2719_v62  ;;  %v2738_v13 = vor.u32 %v2737_v43, %v2733_v20  ;;  %v2743_v17 = vrot.slane %v2741_v1, 5  ;;  %11263 = vmatprep.mubr.msk.bf16.mxu0 %vm652_vm1, %v9882_v52  ;;  %v3498_v54 = vshll.u32 %v10127_v18, 16  ;;  %v13123_v52 = vld [vmem:[%s12392_s10 + $0x38] sm:$0x1] }
  0xc1   : > { %v10109_v21 = vcombine.low %v2710_v39, %v2720_v61  ;;  %v2729_v24 = vrot.slane %v2728_v42, 4  ;;  %v3497_v8 = vrot.slane %v3495_v33, 4  ;;  %v3504_v35 = vshll.u32 %v13060_v29, 16  ;;  %v13128_v39 = vld [vmem:[%s15600_s1 + $0x24] sm:$0xf] }
  0xc2   : > { %v2739_v32 = vrot.slane %v2738_v13, 4  ;;  %v3500_v44 = vrot.slane %v3498_v54, 5  ;;  %v3508_v38 = vshrl.u32 %v13060_v29, 16  ;;  %v3514_v55 = vshll.u32 %v13063_v41, 16 }
  0xc3   : > { %11399 = vmatprep.mubr.msk.bf16.mxu1 %vm652_vm1, %v10109_v21  ;;  %v2734_v45 = vsel %vm12451_vm7, %v2729_v24, %v2733_v20  ;;  %11264 = vmatmul.mubr.msk.bf16.gmra.mrb[28].mxu0 %vm652_vm1, %v9883_v36  ;;  %v3506_v46 = vrot.slane %v3504_v35, 5  ;;  %v3519_v50 = vshrl.u32 %v10130_v57, 16  ;;  %v3522_v30 = vshll.u32 %v10130_v57, 16  ;;  %v12187_v35 = vld [vmem:[%s12392_s10 + $0x30] sm:$0xff]  }
  0xc4   : > { %v2744_v4 = vsel %vm12451_vm7, %v2739_v32, %v2743_v17  ;;  %v3501_v5 = vor.u32 %v3500_v44, %v3497_v8  ;;  %v3510_v47 = vrot.slane %v3508_v38, 4  ;;  %v3516_v48 = vrot.slane %v3514_v55, 5  ;;  %11269 = vmatprep.mubr.msk.bf16.mxu0 %vm652_vm1, %v12184_v51  ;;  %v10139_v17 = vld [vmem:[%s12392_s10 + $0x3c] sm:$0xf]  ;;  %v13139_v32 = vld [vmem:[%s12392_s10 + $0x40] sm:$0xf] }
  0xc5   : > { %v10110_v58 = vcombine.low %v2734_v45, %v2744_v4  ;;  %v3521_v11 = vrot.slane %v3519_v50, 4  ;;  %v3524_v60 = vrot.slane %v3522_v30, 5  ;;  %v3528_v63 = vshll.u32 %v13079_v7, 16 }
  0xc6   : > { %v3502_v59 = vrot.slane %v3501_v5, 4  ;;  %v3511_v14 = vor.u32 %v3510_v47, %v3506_v46  ;;  %v3532_v2 = vshrl.u32 %v13079_v7, 16  ;;  %v3538_v40 = vshll.u32 %v13083_v37, 16  ;;  %v12188_v5 = vld [vmem:[%s12392_s10 + $0x3c] sm:$0xff]  }
  0xc7   : > { %11400 = vmatmul.mubr.msk.bf16.gmra.mrb[28].mxu1 %vm652_vm1, %v10110_v58  ;;  %v3525_v62 = vor.u32 %v3524_v60, %v3521_v11  ;;  %v3530_v12 = vrot.slane %v3528_v63, 5  ;;  %v2046_v26 = vsel %vm701_vm0, %v12919_v27, 0  ;;  %v4444_v15 = vsel %vm701_vm0, %v12902_v22, 0  ;;  %v13116_v27 = vld [vmem:[%s12392_s10 + $0x34] sm:$0xf] }
  0xc8   : > { %v3507_v10 = vsel %vm12451_vm7, %v3502_v59, %v3506_v46  ;;  %v3512_v9 = vrot.slane %v3511_v14, 4  ;;  %v3534_v18 = vrot.slane %v3532_v2, 4  ;;  %v3540_v56 = vrot.slane %v3538_v40, 5  ;;  %v13151_v11 = vld [vmem:[%s15600_s1 + $0x34] sm:$0xf] }
  0xc9   : > { %v3526_v20 = vrot.slane %v3525_v62, 4  ;;  %v3543_v49 = vshrl.u32 %v10133_v16, 16  ;;  %v3546_v43 = vshll.u32 %v10133_v16, 16  ;;  %v3552_v34 = vshll.u32 %v13099_v31, 16  ;;  %v13157_v59 = vld [vmem:[%s12392_s10 + $0x44] sm:$0x1] }
  0xca   : > { %v3517_v22 = vsel %vm12451_vm7, %v3512_v9, %v3516_v48  ;;  %v3535_v1 = vor.u32 %v3534_v18, %v3530_v12  ;;  %v3556_v28 = vshrl.u32 %v13099_v31, 16  ;;  %v3562_v53 = vshll.u32 %v13108_v0, 16 }
  0xcb   : > { %v10176_v42 = vcombine.low %v3507_v10, %v3517_v22  ;;  %v3531_v6 = vsel %vm12451_vm7, %v3526_v20, %v3530_v12  ;;  %11270 = vmatmul.mubr.msk.bf16.vlgmr.msra.gmra.mrb[0].mxu0 %vm652_vm1, %v12185_v25  ;;  %v3545_v36 = vrot.slane %v3543_v49, 4  ;;  %v3548_v33 = vrot.slane %v3546_v43, 5  ;;  %v13172_v43 = vld [vmem:[%s12392_s10 + $0x50] sm:$0x1] }
  0xcc   : > { %v3536_v57 = vrot.slane %v3535_v1, 4  ;;  %11302 = vmatpush3.bf16.msra.mxu0 %v2046_v26  ;;  %v3554_v51 = vrot.slane %v3552_v34, 5  ;;  %v3558_v61 = vrot.slane %v3556_v28, 4  ;;  %v3564_v13 = vrot.slane %v3562_v53, 5  ;;  %11273 = vmatprep.mubr.msk.bf16.mxu0 %vm652_vm1, %v12186_v23  ;;  %v10142_v26 = vld [vmem:[%s12392_s10 + $0x48] sm:$0xf] }
  0xcd   : > { %11405 = vmatprep.mubr.msk.bf16.mxu1 %vm652_vm1, %v10176_v42  ;;  %v3549_v54 = vor.u32 %v3548_v33, %v3545_v36  ;;  %v3567_v21 = vshrl.u32 %v10136_v19, 16  ;;  %v3570_v24 = vshll.u32 %v10136_v19, 16  ;;  %v3576_v8 = vshll.u32 %v13116_v27, 16  ;;  %12135 = vmatprep.subr.msk.bf16.mxu0 %vm701_vm0, %v13128_v39  ;;  %v13166_v19 = vld [vmem:[%s12392_s10 + $0x4c] sm:$0xf] }
  0xce   : > { %v3541_v44 = vsel %vm12451_vm7, %v3536_v57, %v3540_v56  ;;  %v3559_v38 = vor.u32 %v3558_v61, %v3554_v51  ;;  %v3580_v55 = vshrl.u32 %v13116_v27, 16  ;;  %v3586_v45 = vshll.u32 %v13123_v52, 16  ;;  %v12189_v53 = vld [vmem:[%s12392_s10 + $0x48] sm:$0xff]   ;;  %v10145_v42 = vld [vmem:[%s12392_s10 + $0x54] sm:$0xf] }
  0xcf   : > { %v10177_v46 = vcombine.low %v3531_v6, %v3541_v44  ;;  %v3550_v50 = vrot.slane %v3549_v54, 4  ;;  %v3569_v30 = vrot.slane %v3567_v21, 4  ;;  %v3572_v4 = vrot.slane %v3570_v24, 5  ;;  %v13187_v21 = vld [vmem:[%s12392_s10 + $0x5c] sm:$0x1]  ;;  %v12190_v24 = vld [vmem:[%s12392_s10 + $0x54] sm:$0xff]  }
  0xd0   : > { %v3560_v47 = vrot.slane %v3559_v38, 4  ;;  %v3578_v48 = vrot.slane %v3576_v8, 5  ;;  %v3582_v16 = vrot.slane %v3580_v55, 4  ;;  %v3588_v58 = vrot.slane %v3586_v45, 5  ;;  %v10148_v55 = vld [vmem:[%s12392_s10 + $0x60] sm:$0xf] }
  0xd1   : > { %11406 = vmatmul.mubr.msk.bf16.vlgmr.msra.gmra.mrb[0].mxu1 %vm652_vm1, %v10177_v46  ;;  %v3555_v60 = vsel %vm12451_vm7, %v3550_v50, %v3554_v51  ;;  %v3573_v63 = vor.u32 %v3572_v4, %v3569_v30  ;;  %v3591_v14 = vshrl.u32 %v10139_v17, 16  ;;  %v3594_v2 = vshll.u32 %v10139_v17, 16  ;;  %v13184_v51 = vld [vmem:[%s12392_s10 + $0x58] sm:$0xf]  ;;  %v13197_v4 = vld [vmem:[%s12392_s10 + $0x64] sm:$0xf] }
  0xd2   : > { %11438 = vmatpush3.bf16.msra.mxu1 %v4444_v15  ;;  %v3565_v40 = vsel %vm12451_vm7, %v3560_v47, %v3564_v13  ;;  %v3583_v62 = vor.u32 %v3582_v16, %v3578_v48  ;;  %v3600_v12 = vshll.u32 %v13139_v32, 16  ;;  %v3604_v25 = vshrl.u32 %v13139_v32, 16 }
  0xd3   : > { %v10178_v10 = vcombine.low %v3555_v60, %v3565_v40  ;;  %v3574_v9 = vrot.slane %v3573_v63, 4  ;;  %11274 = vmatmul.mubr.msk.bf16.gmra.mrb[4].mxu0 %vm652_vm1, %v12187_v35  ;;  %v3593_v18 = vrot.slane %v3591_v14, 4  ;;  %v3596_v56 = vrot.slane %v3594_v2, 5  ;;  %12139 = vmatprep.subr.msk.bf16.mxu1 %vm701_vm0, %v13151_v11 }
  0xd4   : > { %v3584_v15 = vrot.slane %v3583_v62, 4  ;;  %v3602_v23 = vrot.slane %v3600_v12, 5  ;;  %v3606_v20 = vrot.slane %v3604_v25, 4  ;;  %v3610_v49 = vshll.u32 %v13157_v59, 16  ;;  %11277 = vmatprep.mubr.msk.bf16.mxu0 %vm652_vm1, %v12188_v5 }
  0xd5   : > { %11409 = vmatprep.mubr.msk.bf16.mxu1 %vm652_vm1, %v10178_v10  ;;  %v3579_v34 = vsel %vm12451_vm7, %v3574_v9, %v3578_v48  ;;  %v3597_v22 = vor.u32 %v3596_v56, %v3593_v18  ;;  %v3615_v1 = vshrl.u32 %v10142_v26, 16  ;;  %v3618_v28 = vshll.u32 %v10142_v26, 16  ;;  %v13210_v10 = vld [vmem:[%s12392_s10 + $0x68] sm:$0x1] }
  0xd6   : > { %v3589_v6 = vsel %vm12451_vm7, %v3584_v15, %v3588_v58  ;;  %v3607_v36 = vor.u32 %v3606_v20, %v3602_v23  ;;  %v3612_v33 = vrot.slane %v3610_v49, 5  ;;  %v3624_v57 = vshll.u32 %v13166_v19, 16  ;;  %v12191_v49 = vld [vmem:[%s12392_s10 + $0x60] sm:$0xff]  }
  0xd7   : > { %v10179_v61 = vcombine.low %v3579_v34, %v3589_v6  ;;  %v3598_v13 = vrot.slane %v3597_v22, 4  ;;  %v3617_v17 = vrot.slane %v3615_v1, 4  ;;  %v3620_v54 = vrot.slane %v3618_v28, 5 }
  0xd8   : > { %v3608_v8 = vrot.slane %v3607_v36, 4  ;;  %v3626_v35 = vrot.slane %v3624_v57, 5  ;;  %v3628_v44 = vshrl.u32 %v13166_v19, 16  ;;  %v3634_v38 = vshll.u32 %v13172_v43, 16  ;;  %v13220_v57 = vld [vmem:[%s12392_s10 + $0x70] sm:$0xf] }
  0xd9   : > { %11410 = vmatmul.mubr.msk.bf16.gmra.mrb[4].mxu1 %vm652_vm1, %v10179_v61  ;;  %v3603_v45 = vsel %vm12451_vm7, %v3598_v13, %v3602_v23  ;;  %v3621_v46 = vor.u32 %v3620_v54, %v3617_v17  ;;  %v3639_v50 = vshrl.u32 %v10145_v42, 16  ;;  %v3642_v30 = vshll.u32 %v10145_v42, 16  ;;  %v12192_v61 = vld [vmem:[%s12392_s10 + $0x6c] sm:$0xff]  }
  0xda   : > { %v3613_v5 = vsel %vm12451_vm7, %v3608_v8, %v3612_v33  ;;  %v3630_v47 = vrot.slane %v3628_v44, 4  ;;  %v3636_v48 = vrot.slane %v3634_v38, 5  ;;  %v3648_v16 = vshll.u32 %v13184_v51, 16  ;;  %v13226_v8 = vld [vmem:[%s12392_s10 + $0x74] sm:$0x1] }
  0xdb   : > { %v10180_v58 = vcombine.low %v3603_v45, %v3613_v5  ;;  %v3622_v60 = vrot.slane %v3621_v46, 4  ;;  %11278 = vmatmul.mubr.msk.bf16.gmra.mrb[8].mxu0 %vm652_vm1, %v12189_v53  ;;  %v3641_v63 = vrot.slane %v3639_v50, 4  ;;  %v3644_v14 = vrot.slane %v3642_v30, 5  ;;  %v10151_v53 = vld [vmem:[%s12392_s10 + $0x6c] sm:$0xf] }
  0xdc   : > { %v3631_v2 = vor.u32 %v3630_v47, %v3626_v35  ;;  %v3650_v40 = vrot.slane %v3648_v16, 5  ;;  %v3652_v62 = vshrl.u32 %v13184_v51, 16  ;;  %v3658_v12 = vshll.u32 %v13187_v21, 16  ;;  %11281 = vmatprep.mubr.msk.bf16.mxu0 %vm652_vm1, %v12190_v24  ;;  %v10154_v5 = vld [vmem:[%s12392_s10 + $0x78] sm:$0xf] }
  0xdd   : > { %11413 = vmatprep.mubr.msk.bf16.mxu1 %vm652_vm1, %v10180_v58  ;;  %v3627_v25 = vsel %vm12451_vm7, %v3622_v60, %v3626_v35  ;;  %v3645_v26 = vor.u32 %v3644_v14, %v3641_v63  ;;  %v3663_v9 = vshrl.u32 %v10148_v55, 16  ;;  %v3666_v18 = vshll.u32 %v10148_v55, 16  ;;  %v13237_v60 = vld [vmem:[%s12392_s10 + $0x7c] sm:$0xf] }
  0xde   : > { %v3632_v56 = vrot.slane %v3631_v2, 4  ;;  %v3654_v15 = vrot.slane %v3652_v62, 4  ;;  %v3660_v23 = vrot.slane %v3658_v12, 5  ;;  %v3672_v20 = vshll.u32 %v13197_v4, 16 }
  0xdf   : > { %v3646_v34 = vrot.slane %v3645_v26, 4  ;;  %v3665_v22 = vrot.slane %v3663_v9, 4  ;;  %v3668_v1 = vrot.slane %v3666_v18, 5  ;;  %v3676_v28 = vshrl.u32 %v13197_v4, 16  ;;  %v13243_v26 = vld [vmem:[%s12392_s10 + $0x80] sm:$0x1] }
  0xe0   : > { %v3637_v42 = vsel %vm12451_vm7, %v3632_v56, %v3636_v48  ;;  %v3655_v6 = vor.u32 %v3654_v15, %v3650_v40  ;;  %v3674_v36 = vrot.slane %v3672_v20, 5  ;;  %v3682_v33 = vshll.u32 %v13210_v10, 16  ;;  %v12193_v20 = vld [vmem:[%s12392_s10 + $0x78] sm:$0xff]  }
  0xe1   : > { %v10181_v13 = vcombine.low %v3627_v25, %v3637_v42  ;;  %v3651_v17 = vsel %vm12451_vm7, %v3646_v34, %v3650_v40  ;;  %v3669_v54 = vor.u32 %v3668_v1, %v3665_v22  ;;  %v3678_v24 = vrot.slane %v3676_v28, 4  ;;  %v12194_v42 = vld [vmem:[%s12392_s10 + $0x84] sm:$0xff]  }
  0xe2   : > { %v3656_v35 = vrot.slane %v3655_v6, 4  ;;  %v3684_v44 = vrot.slane %v3682_v33, 5  ;;  %v3687_v38 = vshrl.u32 %v10151_v53, 16  ;;  %v3690_v55 = vshll.u32 %v10151_v53, 16  ;;  %v13253_v53 = vld [vmem:[%s12392_s10 + $0x88] sm:$0xf] }
  0xe3   : > { %11414 = vmatmul.mubr.msk.bf16.gmra.mrb[8].mxu1 %vm652_vm1, %v10181_v13  ;;  %v3670_v45 = vrot.slane %v3669_v54, 4  ;;  %v3679_v46 = vor.u32 %v3678_v24, %v3674_v36  ;;  %11282 = vmatmul.mubr.msk.bf16.gmra.mrb[12].mxu0 %vm652_vm1, %v12191_v49  ;;  %v3696_v50 = vshll.u32 %v13220_v57, 16  ;;  %v3700_v30 = vshrl.u32 %v13220_v57, 16  ;;  %v10157_v49 = vld [vmem:[%s12392_s10 + $0x84] sm:$0xf] }
  0xe4   : > { %v3661_v47 = vsel %vm12451_vm7, %v3656_v35, %v3660_v23  ;;  %v3689_v48 = vrot.slane %v3687_v38, 4  ;;  %v3692_v16 = vrot.slane %v3690_v55, 5  ;;  %v3706_v58 = vshll.u32 %v13226_v8, 16  ;;  %11285 = vmatprep.mubr.msk.bf16.mxu0 %vm652_vm1, %v12192_v61  ;;  %v13262_v55 = vld [vmem:[%s12392_s10 + $0x8c] sm:$0x1] }
  0xe5   : > { %v10182_v63 = vcombine.low %v3651_v17, %v3661_v47  ;;  %v3675_v14 = vsel %vm12451_vm7, %v3670_v45, %v3674_v36  ;;  %v3680_v2 = vrot.slane %v3679_v46, 4  ;;  %v3698_v40 = vrot.slane %v3696_v50, 5  ;;  %v10160_v46 = vld [vmem:[%s12392_s10 + $0x90] sm:$0xf] }
  0xe6   : > { %v3693_v62 = vor.u32 %v3692_v16, %v3689_v48  ;;  %v3702_v12 = vrot.slane %v3700_v30, 4  ;;  %v3708_v25 = vrot.slane %v3706_v58, 5  ;;  %v3711_v9 = vshrl.u32 %v10154_v5, 16  ;;  %v13270_v48 = vld [vmem:[%s12392_s10 + $0x94] sm:$0xf] }
  0xe7   : > { %11417 = vmatprep.mubr.msk.bf16.mxu1 %vm652_vm1, %v10182_v63  ;;  %v3685_v18 = vsel %vm12451_vm7, %v3680_v2, %v3684_v44  ;;  %v3714_v56 = vshll.u32 %v10154_v5, 16  ;;  %v3720_v15 = vshll.u32 %v13237_v60, 16  ;;  %v3724_v23 = vshrl.u32 %v13237_v60, 16 }
  0xe8   : > { %v10183_v34 = vcombine.low %v3675_v14, %v3685_v18  ;;  %v3694_v22 = vrot.slane %v3693_v62, 4  ;;  %v3703_v1 = vor.u32 %v3702_v12, %v3698_v40  ;;  %v3713_v28 = vrot.slane %v3711_v9, 4 }
  0xe9   : > { %v3716_v6 = vrot.slane %v3714_v56, 5  ;;  %v3722_v36 = vrot.slane %v3720_v15, 5  ;;  %v3726_v33 = vrot.slane %v3724_v23, 4  ;;  %v3730_v61 = vshll.u32 %v13243_v26, 16  ;;  %v13281_v56 = vld [vmem:[%s12392_s10 + $0x98] sm:$0x1] }
  0xea   : > { %v3699_v13 = vsel %vm12451_vm7, %v3694_v22, %v3698_v40  ;;  %v3704_v17 = vrot.slane %v3703_v1, 4  ;;  %v3735_v54 = vshrl.u32 %v10157_v49, 16  ;;  %v3738_v24 = vshll.u32 %v10157_v49, 16 }
  0xeb   : > { %11418 = vmatmul.mubr.msk.bf16.gmra.mrb[12].mxu1 %vm652_vm1, %v10183_v34  ;;  %v3717_v35 = vor.u32 %v3716_v6, %v3713_v28  ;;  %v3727_v44 = vor.u32 %v3726_v33, %v3722_v36  ;;  %v3732_v38 = vrot.slane %v3730_v61, 5  ;;  %11286 = vmatmul.mubr.msk.bf16.gmra.mrb[16].mxu0 %vm652_vm1, %v12193_v20  ;;  %v3744_v45 = vshll.u32 %v13253_v53, 16  ;;  %v10163_v20 = vld [vmem:[%s12392_s10 + $0x9c] sm:$0xf]  ;;  %v13286_v28 = vld [vmem:[%s12392_s10 + $0xa0] sm:$0xf] }
  0xec   : > { %v3709_v50 = vsel %vm12451_vm7, %v3704_v17, %v3708_v25  ;;  %v3737_v30 = vrot.slane %v3735_v54, 4  ;;  %v3740_v5 = vrot.slane %v3738_v24, 5  ;;  %v3748_v47 = vshrl.u32 %v13253_v53, 16  ;;  %11289 = vmatprep.mubr.msk.bf16.mxu0 %vm652_vm1, %v12194_v42  ;;  %v12195_v25 = vld [vmem:[%s12392_s10 + $0x90] sm:$0xff]   ;;  %v12196_v42 = vld [vmem:[%s12392_s10 + $0x9c] sm:$0xff]  }
  0xed   : > { %v10184_v16 = vcombine.low %v3699_v13, %v3709_v50  ;;  %v3718_v58 = vrot.slane %v3717_v35, 4  ;;  %v3728_v63 = vrot.slane %v3727_v44, 4  ;;  %v3746_v14 = vrot.slane %v3744_v45, 5  ;;  %v13294_v24 = vld [vmem:[%s12392_s10 + $0xa4] sm:$0x1] }
  0xee   : > { %v3741_v2 = vor.u32 %v3740_v5, %v3737_v30  ;;  %v3750_v40 = vrot.slane %v3748_v47, 4  ;;  %v3754_v62 = vshll.u32 %v13262_v55, 16  ;;  %v3759_v12 = vshrl.u32 %v10160_v46, 16  ;;  %v10166_v50 = vld [vmem:[%s12392_s10 + $0xa8] sm:$0xf] }
  0xef   : > { %11421 = vmatprep.mubr.msk.bf16.mxu1 %vm652_vm1, %v10184_v16  ;;  %v3723_v9 = vsel %vm12451_vm7, %v3718_v58, %v3722_v36  ;;  %v3733_v18 = vsel %vm12451_vm7, %v3728_v63, %v3732_v38  ;;  %v3762_v15 = vshll.u32 %v10160_v46, 16  ;;  %v3768_v23 = vshll.u32 %v13270_v48, 16 }
  0xf0   : > { %v10185_v49 = vcombine.low %v3723_v9, %v3733_v18  ;;  %v3742_v34 = vrot.slane %v3741_v2, 4  ;;  %v3751_v22 = vor.u32 %v3750_v40, %v3746_v14  ;;  %v3756_v1 = vrot.slane %v3754_v62, 5  ;;  %v13305_v40 = vld [vmem:[%s12392_s10 + $0xac] sm:$0xf] }
  0xf1   : > { %v3761_v6 = vrot.slane %v3759_v12, 4  ;;  %v3764_v36 = vrot.slane %v3762_v15, 5  ;;  %v3770_v33 = vrot.slane %v3768_v23, 5  ;;  %v3772_v61 = vshrl.u32 %v13270_v48, 16 }
  0xf2   : > { %v3747_v13 = vsel %vm12451_vm7, %v3742_v34, %v3746_v14  ;;  %v3752_v17 = vrot.slane %v3751_v22, 4  ;;  %v3778_v54 = vshll.u32 %v13281_v56, 16  ;;  %v3783_v35 = vshrl.u32 %v10163_v20, 16  ;;  %v12197_v34 = vld [vmem:[%s12392_s10 + $0xa8] sm:$0xff]  }
  0xf3   : > { %11422 = vmatmul.mubr.msk.bf16.gmra.mrb[16].mxu1 %vm652_vm1, %v10185_v49  ;;  %v3765_v44 = vor.u32 %v3764_v36, %v3761_v6  ;;  %v3774_v38 = vrot.slane %v3772_v61, 4  ;;  %11290 = vmatmul.mubr.msk.bf16.gmra.mrb[20].mxu0 %vm652_vm1, %v12195_v25  ;;  %v3786_v45 = vshll.u32 %v10163_v20, 16  ;;  %v3792_v46 = vshll.u32 %v13286_v28, 16  ;;  %v13312_v20 = vld [vmem:[%s12392_s10 + $0xb0] sm:$0x1]  ;;  %v12198_v61 = vld [vmem:[%s12392_s10 + $0xb4] sm:$0xff]  }
  0xf4   : > { %v3757_v30 = vsel %vm12451_vm7, %v3752_v17, %v3756_v1  ;;  %v3780_v5 = vrot.slane %v3778_v54, 5  ;;  %v3785_v47 = vrot.slane %v3783_v35, 4  ;;  %v3796_v16 = vshrl.u32 %v13286_v28, 16  ;;  %11293 = vmatprep.mubr.msk.bf16.mxu0 %vm652_vm1, %v12196_v42  ;;  %v10169_v36 = vld [vmem:[%s12392_s10 + $0xb4] sm:$0xf] }
  0xf5   : > { %v10186_v58 = vcombine.low %v3747_v13, %v3757_v30  ;;  %v3766_v63 = vrot.slane %v3765_v44, 4  ;;  %v3775_v14 = vor.u32 %v3774_v38, %v3770_v33  ;;  %v3788_v2 = vrot.slane %v3786_v45, 5  ;;  %v13322_v35 = vld [vmem:[%s12392_s10 + $0xb8] sm:$0xf] }
  0xf6   : > { %v3794_v62 = vrot.slane %v3792_v46, 5  ;;  %v3798_v12 = vrot.slane %v3796_v16, 4  ;;  %v3802_v25 = vshll.u32 %v13294_v24, 16  ;;  %v3807_v9 = vshrl.u32 %v10166_v50, 16 }
  0xf7   : > { %11425 = vmatprep.mubr.msk.bf16.mxu1 %vm652_vm1, %v10186_v58  ;;  %v3771_v18 = vsel %vm12451_vm7, %v3766_v63, %v3770_v33  ;;  %v3776_v15 = vrot.slane %v3775_v14, 4  ;;  %v3789_v23 = vor.u32 %v3788_v2, %v3785_v47  ;;  %v3810_v49 = vshll.u32 %v10166_v50, 16 }
  0xf8   : > { %v3799_v22 = vor.u32 %v3798_v12, %v3794_v62  ;;  %v3804_v1 = vrot.slane %v3802_v25, 5  ;;  %v3809_v42 = vrot.slane %v3807_v9, 4  ;;  %v3816_v6 = vshll.u32 %v13305_v40, 16  ;;  %v10172_v12 = vld [vmem:[%s12392_s10 + $0xc0] sm:$0xf] }
  0xf9   : > { %v3781_v13 = vsel %vm12451_vm7, %v3776_v15, %v3780_v5  ;;  %v3790_v17 = vrot.slane %v3789_v23, 4  ;;  %v3812_v33 = vrot.slane %v3810_v49, 5  ;;  %v3820_v54 = vshrl.u32 %v13305_v40, 16  ;;  %v13329_v5 = vld [vmem:[%s12392_s10 + $0xbc] sm:$0x1] }
  0xfa   : > { %v10187_v44 = vcombine.low %v3771_v18, %v3781_v13  ;;  %v3800_v38 = vrot.slane %v3799_v22, 4  ;;  %v3818_v45 = vrot.slane %v3816_v6, 5  ;;  %v3826_v46 = vshll.u32 %v13312_v20, 16  ;;  %v13338_v15 = vld [vmem:[%s12392_s10 + $0xc4] sm:$0xf] }
  0xfb   : > { %v3795_v50 = vsel %vm12451_vm7, %v3790_v17, %v3794_v62  ;;  %v3813_v30 = vor.u32 %v3812_v33, %v3809_v42  ;;  %v3822_v47 = vrot.slane %v3820_v54, 4  ;;  %11294 = vmatmul.mubr.msk.bf16.gmra.mrb[24].mxu0 %vm652_vm1, %v12197_v34  ;;  %v3831_v16 = vshrl.u32 %v10169_v36, 16  ;;  %v13346_v6 = vld [vmem:[%s12392_s10 + $0xc8] sm:$0x1]  ;;  %v12199_v13 = vld [vmem:[%s12392_s10 + $0xc0] sm:$0xff]  }
  0xfc   : > { %11426 = vmatmul.mubr.msk.bf16.gmra.mrb[20].mxu1 %vm652_vm1, %v10187_v44  ;;  %v3805_v58 = vsel %vm12451_vm7, %v3800_v38, %v3804_v1  ;;  %v3828_v63 = vrot.slane %v3826_v46, 5  ;;  %v3834_v14 = vshll.u32 %v10169_v36, 16  ;;  %v3840_v2 = vshll.u32 %v13322_v35, 16  ;;  %11297 = vmatprep.mubr.msk.bf16.mxu0 %vm652_vm1, %v12198_v61  ;;  %v10208_v38 = vld [vmem:[%s12392_s10 + $0xc] sm:$0xe] }
  0xfd   : > { %v10188_v62 = vcombine.low %v3795_v50, %v3805_v58  ;;  %v3814_v25 = vrot.slane %v3813_v30, 4  ;;  %v3823_v9 = vor.u32 %v3822_v47, %v3818_v45  ;;  %v3833_v18 = vrot.slane %v3831_v16, 4 }
  0xfe   : > { %v3836_v23 = vrot.slane %v3834_v14, 5  ;;  %v3842_v49 = vrot.slane %v3840_v2, 5  ;;  %v3844_v34 = vshrl.u32 %v13322_v35, 16  ;;  %v3850_v22 = vshll.u32 %v13329_v5, 16  ;;  %v10209_v2 = vld [vmem:[%s12392_s10 + $0x18] sm:$0xe] }
  0xff   : > { %11429 = vmatprep.mubr.msk.bf16.mxu1 %vm652_vm1, %v10188_v62  ;;  %v3819_v1 = vsel %vm12451_vm7, %v3814_v25, %v3818_v45  ;;  %v3824_v42 = vrot.slane %v3823_v9, 4  ;;  %v3855_v36 = vshrl.u32 %v10172_v12, 16  ;;  %v3858_v61 = vshll.u32 %v10172_v12, 16 }
 0x100   : > { %v3837_v17 = vor.u32 %v3836_v23, %v3833_v18  ;;  %v3846_v33 = vrot.slane %v3844_v34, 4  ;;  %v3852_v54 = vrot.slane %v3850_v22, 5  ;;  %v3864_v44 = vshll.u32 %v13338_v15, 16 }
 0x101   : > { %v3829_v46 = vsel %vm12451_vm7, %v3824_v42, %v3828_v63  ;;  %v3857_v50 = vrot.slane %v3855_v36, 4  ;;  %v3860_v30 = vrot.slane %v3858_v61, 5  ;;  %v3868_v45 = vshrl.u32 %v13338_v15, 16  ;;  %v9964_v61 = vld [vmem:[%s12392_s10 + $0xc] sm:$0xf] }
 0x102   : > { %v10189_v47 = vcombine.low %v3819_v1, %v3829_v46  ;;  %v3838_v16 = vrot.slane %v3837_v17, 4  ;;  %v3847_v58 = vor.u32 %v3846_v33, %v3842_v49  ;;  %v3866_v14 = vrot.slane %v3864_v44, 5 }
 0x103   : > { %v3861_v12 = vor.u32 %v3860_v30, %v3857_v50  ;;  %v3870_v62 = vrot.slane %v3868_v45, 4  ;;  %v3874_v25 = vshll.u32 %v13346_v6, 16  ;;  %11298 = vmatmul.mubr.msk.bf16.gmra.mrb[28].mxu0 %vm652_vm1, %v12199_v13  ;;  %v10225_v9 = vrot.slane %v10208_v38, 9  ;;  %v9965_v38 = vld [vmem:[%s12392_s10 + $0x10] sm:$0xf] }
 0x104   : > { %11430 = vmatmul.mubr.msk.bf16.gmra.mrb[24].mxu1 %vm652_vm1, %v10189_v47  ;;  %v3843_v63 = vsel %vm12451_vm7, %v3838_v16, %v3842_v49  ;;  %v3848_v18 = vrot.slane %v3847_v58, 4  ;;  %v4237_v23 = vrot.slane %v13060_v29, 5  ;;  %v4240_v34 = vrot.slane %v13063_v41, 5  ;;  %v9966_v47 = vld [vmem:[%s12392_s10 + $0x14] sm:$0x1] }
 0x105   : > { %v3862_v22 = vrot.slane %v3861_v12, 4  ;;  %v3871_v1 = vor.u32 %v3870_v62, %v3866_v14  ;;  %v3876_v42 = vrot.slane %v3874_v25, 5  ;;  %v10226_v36 = vrot.slane %v10209_v2, 9  ;;  %v9967_v12 = vld [vmem:[%s12392_s10 + $0x18] sm:$0xf] }
 0x106   : > { %v3853_v13 = vsel %vm12451_vm7, %v3848_v18, %v3852_v54  ;;  %v4238_v33 = vsel %vm12412_vm6, %v10225_v9, %v4237_v23  ;;  %v4239_v44 = vrot.slane %v4237_v23, 4  ;;  %v4244_v49 = vrot.slane %v13079_v7, 5  ;;  %v9969_v18 = vld [vmem:[%s12392_s10 + $0x20] sm:$0x1] }
 0x107   : > { %v10190_v29 = vcombine.low %v3843_v63, %v3853_v13  ;;  %v3867_v41 = vsel %vm12451_vm7, %v3862_v22, %v3866_v14  ;;  %v3872_v46 = vrot.slane %v3871_v1, 4  ;;  %v4247_v50 = vrot.slane %v13083_v37, 5  ;;  %v9968_v37 = vld [vmem:[%s12392_s10 + $0x1c] sm:$0xf] }
 0x108   : > { %v4241_v30 = vsel %vm12412_vm6, %v4239_v44, %v4240_v34  ;;  %v4245_v54 = vsel %vm12412_vm6, %v10226_v36, %v4244_v49  ;;  %v4246_v45 = vrot.slane %v4244_v49, 4  ;;  %v1566_v7 = vshrl.u32 %v9964_v61, 16 }
 0x109   : > { %11433 = vmatprep.mubr.msk.bf16.mxu1 %vm652_vm1, %v10190_v29  ;;  %v3877_v16 = vsel %vm12451_vm7, %v3872_v46, %v3876_v42  ;;  %v10241_v58 = vcombine.low %v4238_v33, %v4241_v30  ;;  %v1569_v14 = vshll.u32 %v9964_v61, 16  ;;  %v1575_v2 = vshll.u32 %v9965_v38, 16 }
 0x10a   : > { %v10191_v62 = vcombine.low %v3867_v41, %v3877_v16  ;;  %v4248_v25 = vsel %vm12412_vm6, %v4246_v45, %v4247_v50  ;;  %v1568_v9 = vrot.slane %v1566_v7, 4  ;;  %v1579_v63 = vshrl.u32 %v9965_v38, 16  ;;  %v10210_v38 = vld [vmem:[%s12392_s10 + $0x24] sm:$0xe]  ;;  %v10211_v16 = vld [vmem:[%s12392_s10 + $0x30] sm:$0xe] }
 0x10b   : > { %v10242_v23 = vcombine.low %v4245_v54, %v4248_v25  ;;  %v1571_v34 = vrot.slane %v1569_v14, 5  ;;  %v1577_v22 = vrot.slane %v1575_v2, 5  ;;  %v1585_v1 = vshll.u32 %v9966_v47, 16 }
 0x10c   : > { %11434 = vmatmul.mubr.msk.bf16.gmra.mrb[28].mxu1 %vm652_vm1, %v10191_v62  ;;  %v1581_v42 = vrot.slane %v1579_v63, 4  ;;  %v1590_v36 = vshrl.u32 %v9967_v12, 16  ;;  %v1593_v61 = vshll.u32 %v9967_v12, 16  ;;  %v1599_v13 = vshll.u32 %v9968_v37, 16 }
 0x10d   : > { %11439 = vmatprep.mubr.msk.bf16.mxu1 %vm652_vm1, %v10241_v58  ;;  %v1572_v33 = vor.u32 %v1571_v34, %v1568_v9  ;;  %v1587_v44 = vrot.slane %v1585_v1, 5  ;;  %v1603_v49 = vshrl.u32 %v9968_v37, 16  ;;  %v1609_v29 = vshll.u32 %v9969_v18, 16  ;;  %v9970_v1 = vld [vmem:[%s12392_s10 + $0x24] sm:$0xf] }
 0x10e   : > { %v1582_v41 = vor.u32 %v1581_v42, %v1577_v22  ;;  %v1592_v46 = vrot.slane %v1590_v36, 4  ;;  %v1595_v50 = vrot.slane %v1593_v61, 5  ;;  %v1601_v30 = vrot.slane %v1599_v13, 5  ;;  %v9971_v61 = vld [vmem:[%s12392_s10 + $0x28] sm:$0xf] }
 0x10f   : > { %v1573_v54 = vrot.slane %v1572_v33, 4  ;;  %v1605_v45 = vrot.slane %v1603_v49, 4  ;;  %v1611_v47 = vrot.slane %v1609_v29, 5  ;;  %v5236_v7 = vsel %vm701_vm0, %v13128_v39, 0  ;;  %v9972_v49 = vld [vmem:[%s12392_s10 + $0x2c] sm:$0x1] }
 0x110   : > { %v1583_v14 = vrot.slane %v1582_v41, 4  ;;  %v1596_v2 = vor.u32 %v1595_v50, %v1592_v46  ;;  %v7547_v58 = vsel %vm701_vm0, %v13151_v11, 0  ;;  %v10227_v12 = vrot.slane %v10210_v38, 9  ;;  %v9973_v41 = vld [vmem:[%s12392_s10 + $0x30] sm:$0xf] }
 0x111   : > { %v1578_v37 = vsel %vm12451_vm7, %v1573_v54, %v1577_v22  ;;  %v1606_v62 = vor.u32 %v1605_v45, %v1601_v30  ;;  %v4251_v25 = vrot.slane %v13099_v31, 5  ;;  %v4254_v9 = vrot.slane %v13108_v0, 5  ;;  %v13407_v31 = vld [vmem:[%s15600_s1 + $0x30] sm:$0xf]  ;;  %v9975_v45 = vld [vmem:[%s12392_s10 + $0x38] sm:$0x1] }
 0x112   : > { %v1588_v63 = vsel %vm12451_vm7, %v1583_v14, %v1587_v44  ;;  %v1597_v39 = vrot.slane %v1596_v2, 4  ;;  %v10228_v18 = vrot.slane %v10211_v16, 9  ;;  %v4258_v34 = vrot.slane %v13116_v27, 5 }
 0x113   : > { %v10012_v42 = vcombine.low %v1578_v37, %v1588_v63  ;;  %v1607_v11 = vrot.slane %v1606_v62, 4  ;;  %v4252_v36 = vsel %vm12412_vm6, %v10227_v12, %v4251_v25  ;;  %v4253_v22 = vrot.slane %v4251_v25, 4 }
 0x114   : > { %11440 = vmatmul.mubr.msk.bf16.vlgmr.msra.gmra.mrb[0].mxu1 %vm652_vm1, %v10242_v23  ;;  %v1602_v0 = vsel %vm12451_vm7, %v1597_v39, %v1601_v30  ;;  %v4259_v27 = vsel %vm12412_vm6, %v10228_v18, %v4258_v34  ;;  %v4260_v13 = vrot.slane %v4258_v34, 4  ;;  %v4261_v33 = vrot.slane %v13123_v52, 5  ;;  %v9974_v52 = vld [vmem:[%s12392_s10 + $0x34] sm:$0xf]  ;;  %v10212_v34 = vld [vmem:[%s12392_s10 + $0x3c] sm:$0xe] }
 0x115   : > { %11303 = vmatprep.mubr.msk.bf16.mxu0 %vm652_vm1, %v10012_v42  ;;  %v1612_v44 = vsel %vm12451_vm7, %v1607_v11, %v1611_v47  ;;  %11608 = vmatpush3.bf16.msra.mxu1 %v7547_v58  ;;  %v4255_v23 = vsel %vm12412_vm6, %v4253_v22, %v4254_v9  ;;  %v1614_v29 = vshrl.u32 %v9970_v1, 16  ;;  %v1617_v38 = vshll.u32 %v9970_v1, 16  ;;  %v13431_v58 = vld [vmem:[%s15600_s1 + $0x20] sm:$0xf] }
 0x116   : > { %v10013_v46 = vcombine.low %v1602_v0, %v1612_v44  ;;  %v10243_v50 = vcombine.low %v4252_v36, %v4255_v23  ;;  %v4262_v30 = vsel %vm12412_vm6, %v4260_v13, %v4261_v33  ;;  %v1623_v54 = vshll.u32 %v9971_v61, 16  ;;  %12140 = vmatprep.subr.msk.bf16.mxu1 %vm701_vm0, %v13407_v31  ;;  %v10213_v13 = vld [vmem:[%s12392_s10 + $0x48] sm:$0xe] }
 0x117   : > { %v10244_v47 = vcombine.low %v4259_v27, %v4262_v30  ;;  %v1616_v16 = vrot.slane %v1614_v29, 4  ;;  %v1619_v14 = vrot.slane %v1617_v38, 5  ;;  %v1627_v2 = vshrl.u32 %v9971_v61, 16 }
 0x118   : > { %11304 = vmatmul.mubr.msk.bf16.vlgmr.msra.gmra.mrb[0].mxu0 %vm652_vm1, %v10013_v46  ;;  %11443 = vmatprep.mubr.msk.bf16.mxu1 %vm652_vm1, %v10243_v50  ;;  %v1625_v12 = vrot.slane %v1623_v54, 5  ;;  %v1633_v37 = vshll.u32 %v9972_v49, 16  ;;  %v1638_v62 = vshrl.u32 %v9973_v41, 16  ;;  %v1641_v25 = vshll.u32 %v9973_v41, 16  ;;  %v9976_v46 = vld [vmem:[%s12392_s10 + $0x3c] sm:$0xf] }
 0x119   : > { %11472 = vmatpush3.bf16.msra.mxu0 %v5236_v7  ;;  %v1620_v9 = vor.u32 %v1619_v14, %v1616_v16  ;;  %v1629_v63 = vrot.slane %v1627_v2, 4  ;;  %v1647_v39 = vshll.u32 %v9974_v52, 16  ;;  %v1651_v18 = vshrl.u32 %v9974_v52, 16  ;;  %v9977_v14 = vld [vmem:[%s12392_s10 + $0x40] sm:$0xf] }
 0x11a   : > { %v1635_v1 = vrot.slane %v1633_v37, 5  ;;  %v1640_v42 = vrot.slane %v1638_v62, 4  ;;  %v1643_v11 = vrot.slane %v1641_v25, 5  ;;  %v1657_v36 = vshll.u32 %v9975_v45, 16  ;;  %12136 = vmatprep.subr.msk.bf16.mxu0 %vm701_vm0, %v13431_v58  ;;  %v9978_v37 = vld [vmem:[%s12392_s10 + $0x44] sm:$0x1] }
 0x11b   : > { %v1621_v22 = vrot.slane %v1620_v9, 4  ;;  %v1630_v61 = vor.u32 %v1629_v63, %v1625_v12  ;;  %v1649_v0 = vrot.slane %v1647_v39, 5  ;;  %v1653_v27 = vrot.slane %v1651_v18, 4  ;;  %v9979_v25 = vld [vmem:[%s12392_s10 + $0x48] sm:$0xf] }
 0x11c   : > { %11444 = vmatmul.mubr.msk.bf16.gmra.mrb[4].mxu1 %vm652_vm1, %v10244_v47  ;;  %v1644_v7 = vor.u32 %v1643_v11, %v1640_v42  ;;  %v1659_v33 = vrot.slane %v1657_v36, 5  ;;  %v10229_v44 = vrot.slane %v10212_v34, 9  ;;  %v4265_v23 = vrot.slane %v13139_v32, 5  ;;  %v9980_v42 = vld [vmem:[%s12392_s10 + $0x4c] sm:$0xf] }
 0x11d   : > { %v1626_v49 = vsel %vm12451_vm7, %v1621_v22, %v1625_v12  ;;  %v1631_v29 = vrot.slane %v1630_v61, 4  ;;  %v1654_v38 = vor.u32 %v1653_v27, %v1649_v0  ;;  %v4268_v41 = vrot.slane %v13157_v59, 5  ;;  %v9981_v61 = vld [vmem:[%s12392_s10 + $0x50] sm:$0x1] }
 0x11e   : > { %v1645_v50 = vrot.slane %v1644_v7, 4  ;;  %v4266_v30 = vsel %vm12412_vm6, %v10229_v44, %v4265_v23  ;;  %v4267_v54 = vrot.slane %v4265_v23, 4  ;;  %v10230_v52 = vrot.slane %v10213_v13, 9  ;;  %v10214_v44 = vld [vmem:[%s12392_s10 + $0x54] sm:$0xe] }
 0x11f   : > { %v1636_v45 = vsel %vm12451_vm7, %v1631_v29, %v1635_v1  ;;  %v1655_v32 = vrot.slane %v1654_v38, 4  ;;  %v4272_v47 = vrot.slane %v13166_v19, 5  ;;  %v4275_v16 = vrot.slane %v13172_v43, 5 }
 0x120   : > { %v10014_v2 = vcombine.low %v1626_v49, %v1636_v45  ;;  %v1650_v59 = vsel %vm12451_vm7, %v1645_v50, %v1649_v0  ;;  %v4269_v12 = vsel %vm12412_vm6, %v4267_v54, %v4268_v41  ;;  %v1662_v62 = vshrl.u32 %v9976_v46, 16 }
 0x121   : > { %v1660_v9 = vsel %vm12451_vm7, %v1655_v32, %v1659_v33  ;;  %v10245_v63 = vcombine.low %v4266_v30, %v4269_v12  ;;  %v4273_v19 = vsel %vm12412_vm6, %v10230_v52, %v4272_v47  ;;  %v4274_v43 = vrot.slane %v4272_v47, 4  ;;  %v10215_v47 = vld [vmem:[%s12392_s10 + $0x60] sm:$0xe] }
 0x122   : > { %11307 = vmatprep.mubr.msk.bf16.mxu0 %vm652_vm1, %v10014_v2  ;;  %v10015_v39 = vcombine.low %v1650_v59, %v1660_v9  ;;  %v1664_v18 = vrot.slane %v1662_v62, 4  ;;  %v1665_v34 = vshll.u32 %v9976_v46, 16  ;;  %v1671_v1 = vshll.u32 %v9977_v14, 16 }
 0x123   : > { %11447 = vmatprep.mubr.msk.bf16.mxu1 %vm652_vm1, %v10245_v63  ;;  %v4276_v11 = vsel %vm12412_vm6, %v4274_v43, %v4275_v16  ;;  %v1675_v36 = vshrl.u32 %v9977_v14, 16  ;;  %v1681_v22 = vshll.u32 %v9978_v37, 16  ;;  %v1686_v0 = vshrl.u32 %v9979_v25, 16  ;;  %v9982_v43 = vld [vmem:[%s12392_s10 + $0x54] sm:$0xf] }
 0x124   : > { %11308 = vmatmul.mubr.msk.bf16.gmra.mrb[4].mxu0 %vm652_vm1, %v10015_v39  ;;  %v10246_v27 = vcombine.low %v4273_v19, %v4276_v11  ;;  %v1667_v13 = vrot.slane %v1665_v34, 5  ;;  %v1673_v7 = vrot.slane %v1671_v1, 5  ;;  %v1689_v33 = vshll.u32 %v9979_v25, 16 }
 0x125   : > { %v1677_v23 = vrot.slane %v1675_v36, 4  ;;  %v1683_v49 = vrot.slane %v1681_v22, 5  ;;  %v1688_v29 = vrot.slane %v1686_v0, 4  ;;  %v1695_v38 = vshll.u32 %v9980_v42, 16 }
 0x126   : > { %11448 = vmatmul.mubr.msk.bf16.gmra.mrb[8].mxu1 %vm652_vm1, %v10246_v27  ;;  %v1668_v41 = vor.u32 %v1667_v13, %v1664_v18  ;;  %v1691_v46 = vrot.slane %v1689_v33, 5  ;;  %v1699_v50 = vshrl.u32 %v9980_v42, 16  ;;  %v1705_v30 = vshll.u32 %v9981_v61, 16  ;;  %v9983_v42 = vld [vmem:[%s12392_s10 + $0x58] sm:$0xf] }
 0x127   : > { %v1678_v54 = vor.u32 %v1677_v23, %v1673_v7  ;;  %v1697_v52 = vrot.slane %v1695_v38, 5  ;;  %v10231_v45 = vrot.slane %v10214_v44, 9  ;;  %v4279_v32 = vrot.slane %v13184_v51, 5 }
 0x128   : > { %v1669_v16 = vrot.slane %v1668_v41, 4  ;;  %v1692_v14 = vor.u32 %v1691_v46, %v1688_v29  ;;  %v1701_v2 = vrot.slane %v1699_v50, 4  ;;  %v1707_v59 = vrot.slane %v1705_v30, 5  ;;  %v9987_v50 = vld [vmem:[%s12392_s10 + $0x68] sm:$0x1] }
 0x129   : > { %v1679_v12 = vrot.slane %v1678_v54, 4  ;;  %v4280_v37 = vsel %vm12412_vm6, %v10231_v45, %v4279_v32  ;;  %v4281_v62 = vrot.slane %v4279_v32, 4  ;;  %v4282_v25 = vrot.slane %v13187_v21, 5  ;;  %v9984_v21 = vld [vmem:[%s12392_s10 + $0x5c] sm:$0x1] }
 0x12a   : > { %v1674_v9 = vsel %vm12451_vm7, %v1669_v16, %v1673_v7  ;;  %v1693_v63 = vrot.slane %v1692_v14, 4  ;;  %v1702_v19 = vor.u32 %v1701_v2, %v1697_v52  ;;  %v10232_v51 = vrot.slane %v10215_v47, 9  ;;  %v10216_v30 = vld [vmem:[%s12392_s10 + $0x6c] sm:$0xe] }
 0x12b   : > { %v1684_v39 = vsel %vm12451_vm7, %v1679_v12, %v1683_v49  ;;  %v4283_v18 = vsel %vm12412_vm6, %v4281_v62, %v4282_v25  ;;  %v4286_v34 = vrot.slane %v13197_v4, 5  ;;  %v4289_v1 = vrot.slane %v13210_v10, 5  ;;  %v9985_v4 = vld [vmem:[%s12392_s10 + $0x60] sm:$0xf]  ;;  %v9986_v49 = vld [vmem:[%s12392_s10 + $0x64] sm:$0xf] }
 0x12c   : > { %v10016_v11 = vcombine.low %v1674_v9, %v1684_v39  ;;  %v1698_v36 = vsel %vm12451_vm7, %v1693_v63, %v1697_v52  ;;  %v1703_v22 = vrot.slane %v1702_v19, 4  ;;  %v10247_v61 = vcombine.low %v4280_v37, %v4283_v18  ;;  %v10217_v25 = vld [vmem:[%s12392_s10 + $0x78] sm:$0xe] }
 0x12d   : > { %v4287_v0 = vsel %vm12412_vm6, %v10232_v51, %v4286_v34  ;;  %v4288_v27 = vrot.slane %v4286_v34, 4  ;;  %v1710_v13 = vshrl.u32 %v9982_v43, 16  ;;  %v1713_v7 = vshll.u32 %v9982_v43, 16 }
 0x12e   : > { %11311 = vmatprep.mubr.msk.bf16.mxu0 %vm652_vm1, %v10016_v11  ;;  %v1708_v10 = vsel %vm12451_vm7, %v1703_v22, %v1707_v59  ;;  %11451 = vmatprep.mubr.msk.bf16.mxu1 %vm652_vm1, %v10247_v61  ;;  %v1719_v33 = vshll.u32 %v9983_v42, 16  ;;  %v1723_v44 = vshrl.u32 %v9983_v42, 16  ;;  %v1729_v23 = vshll.u32 %v9984_v21, 16 }
 0x12f   : > { %v10017_v29 = vcombine.low %v1698_v36, %v1708_v10  ;;  %v4290_v38 = vsel %vm12412_vm6, %v4288_v27, %v4289_v1  ;;  %v1712_v41 = vrot.slane %v1710_v13, 4  ;;  %v1715_v46 = vrot.slane %v1713_v7, 5  ;;  %v9988_v36 = vld [vmem:[%s12392_s10 + $0x6c] sm:$0xf]  ;;  %v9989_v10 = vld [vmem:[%s12392_s10 + $0x70] sm:$0xf] }
 0x130   : > { %v10248_v54 = vcombine.low %v4287_v0, %v4290_v38  ;;  %v1721_v52 = vrot.slane %v1719_v33, 5  ;;  %v1725_v45 = vrot.slane %v1723_v44, 4  ;;  %v1731_v32 = vrot.slane %v1729_v23, 5  ;;  %v9990_v44 = vld [vmem:[%s12392_s10 + $0x74] sm:$0x1] }
 0x131   : > { %11312 = vmatmul.mubr.msk.bf16.gmra.mrb[8].mxu0 %vm652_vm1, %v10017_v29  ;;  %v1716_v47 = vor.u32 %v1715_v46, %v1712_v41  ;;  %v1734_v16 = vshrl.u32 %v9985_v4, 16  ;;  %v1737_v14 = vshll.u32 %v9985_v4, 16  ;;  %v1743_v2 = vshll.u32 %v9986_v49, 16  ;;  %v9991_v41 = vld [vmem:[%s12392_s10 + $0x78] sm:$0xf] }
 0x132   : > { %11452 = vmatmul.mubr.msk.bf16.gmra.mrb[12].mxu1 %vm652_vm1, %v10248_v54  ;;  %v1726_v59 = vor.u32 %v1725_v45, %v1721_v52  ;;  %v1747_v12 = vshrl.u32 %v9986_v49, 16  ;;  %v1753_v37 = vshll.u32 %v9987_v50, 16  ;;  %v10233_v62 = vrot.slane %v10216_v30, 9 }
 0x133   : > { %v1717_v9 = vrot.slane %v1716_v47, 4  ;;  %v1736_v63 = vrot.slane %v1734_v16, 4  ;;  %v1739_v19 = vrot.slane %v1737_v14, 5  ;;  %v1745_v51 = vrot.slane %v1743_v2, 5  ;;  %v9993_v14 = vld [vmem:[%s12392_s10 + $0x80] sm:$0x1] }
 0x134   : > { %v1727_v43 = vrot.slane %v1726_v59, 4  ;;  %v1749_v39 = vrot.slane %v1747_v12, 4  ;;  %v1755_v18 = vrot.slane %v1753_v37, 5  ;;  %v4293_v34 = vrot.slane %v13220_v57, 5 }
 0x135   : > { %v1722_v1 = vsel %vm12451_vm7, %v1717_v9, %v1721_v52  ;;  %v1740_v42 = vor.u32 %v1739_v19, %v1736_v63  ;;  %v4296_v21 = vrot.slane %v13226_v8, 5  ;;  %v10234_v11 = vrot.slane %v10217_v25, 9  ;;  %v9992_v52 = vld [vmem:[%s12392_s10 + $0x7c] sm:$0xf] }
 0x136   : > { %v1732_v22 = vsel %vm12451_vm7, %v1727_v43, %v1731_v32  ;;  %v1750_v61 = vor.u32 %v1749_v39, %v1745_v51  ;;  %v4294_v0 = vsel %vm12412_vm6, %v10233_v62, %v4293_v34  ;;  %v4295_v27 = vrot.slane %v4293_v34, 4  ;;  %v10218_v62 = vld [vmem:[%s12392_s10 + $0x84] sm:$0xe]  ;;  %v10219_v34 = vld [vmem:[%s12392_s10 + $0x90] sm:$0xe] }
 0x137   : > { %v10018_v13 = vcombine.low %v1722_v1, %v1732_v22  ;;  %v1741_v57 = vrot.slane %v1740_v42, 4  ;;  %v4300_v7 = vrot.slane %v13237_v60, 5  ;;  %v4303_v4 = vrot.slane %v13243_v26, 5 }
 0x138   : > { %v1751_v8 = vrot.slane %v1750_v61, 4  ;;  %v4297_v33 = vsel %vm12412_vm6, %v4295_v27, %v4296_v21  ;;  %v1758_v23 = vshrl.u32 %v9988_v36, 16  ;;  %v1761_v49 = vshll.u32 %v9988_v36, 16  ;;  %v9994_v27 = vld [vmem:[%s12392_s10 + $0x84] sm:$0xf] }
 0x139   : > { %11315 = vmatprep.mubr.msk.bf16.mxu0 %vm652_vm1, %v10018_v13  ;;  %v1746_v29 = vsel %vm12451_vm7, %v1741_v57, %v1745_v51  ;;  %v10249_v38 = vcombine.low %v4294_v0, %v4297_v33  ;;  %v4301_v60 = vsel %vm12412_vm6, %v10234_v11, %v4300_v7  ;;  %v4302_v26 = vrot.slane %v4300_v7, 4 }
 0x13a   : > { %v1756_v46 = vsel %vm12451_vm7, %v1751_v8, %v1755_v18  ;;  %v1760_v50 = vrot.slane %v1758_v23, 4  ;;  %v1763_v30 = vrot.slane %v1761_v49, 5  ;;  %v1767_v54 = vshll.u32 %v9989_v10, 16 }
 0x13b   : > { %v10019_v45 = vcombine.low %v1746_v29, %v1756_v46  ;;  %11455 = vmatprep.mubr.msk.bf16.mxu1 %vm652_vm1, %v10249_v38  ;;  %v4304_v32 = vsel %vm12412_vm6, %v4302_v26, %v4303_v4  ;;  %v1771_v47 = vshrl.u32 %v9989_v10, 16  ;;  %v1777_v16 = vshll.u32 %v9990_v44, 16  ;;  %v9995_v29 = vld [vmem:[%s12392_s10 + $0x88] sm:$0xf]  ;;  %v9996_v46 = vld [vmem:[%s12392_s10 + $0x8c] sm:$0x1] }
 0x13c   : > { %v10250_v2 = vcombine.low %v4301_v60, %v4304_v32  ;;  %v1764_v59 = vor.u32 %v1763_v30, %v1760_v50  ;;  %v1769_v12 = vrot.slane %v1767_v54, 5  ;;  %v1782_v37 = vshrl.u32 %v9991_v41, 16 }
 0x13d   : > { %11316 = vmatmul.mubr.msk.bf16.gmra.mrb[12].mxu0 %vm652_vm1, %v10019_v45  ;;  %v1773_v25 = vrot.slane %v1771_v47, 4  ;;  %v1779_v9 = vrot.slane %v1777_v16, 5  ;;  %v1785_v63 = vshll.u32 %v9991_v41, 16  ;;  %v1791_v19 = vshll.u32 %v9992_v52, 16  ;;  %v9998_v16 = vld [vmem:[%s12392_s10 + $0x94] sm:$0xf] }
 0x13e   : > { %11456 = vmatmul.mubr.msk.bf16.gmra.mrb[16].mxu1 %vm652_vm1, %v10250_v2  ;;  %v1765_v51 = vrot.slane %v1764_v59, 4  ;;  %v1784_v43 = vrot.slane %v1782_v37, 4  ;;  %v1795_v39 = vshrl.u32 %v9992_v52, 16  ;;  %v1801_v18 = vshll.u32 %v9993_v14, 16 }
 0x13f   : > { %v1774_v1 = vor.u32 %v1773_v25, %v1769_v12  ;;  %v1787_v42 = vrot.slane %v1785_v63, 5  ;;  %v1793_v21 = vrot.slane %v1791_v19, 5  ;;  %v10235_v11 = vrot.slane %v10218_v62, 9  ;;  %v10220_v19 = vld [vmem:[%s12392_s10 + $0x9c] sm:$0xe] }
 0x140   : > { %v1770_v36 = vsel %vm12451_vm7, %v1765_v51, %v1769_v12  ;;  %v1797_v22 = vrot.slane %v1795_v39, 4  ;;  %v1803_v61 = vrot.slane %v1801_v18, 5  ;;  %v4307_v0 = vrot.slane %v13253_v53, 5  ;;  %v9999_v12 = vld [vmem:[%s12392_s10 + $0x98] sm:$0x1] }
 0x141   : > { %v1775_v13 = vrot.slane %v1774_v1, 4  ;;  %v1788_v57 = vor.u32 %v1787_v42, %v1784_v43  ;;  %v4310_v7 = vrot.slane %v13262_v55, 5  ;;  %v10236_v4 = vrot.slane %v10219_v34, 9 }
 0x142   : > { %v1798_v10 = vor.u32 %v1797_v22, %v1793_v21  ;;  %v4308_v8 = vsel %vm12412_vm6, %v10235_v11, %v4307_v0  ;;  %v4309_v33 = vrot.slane %v4307_v0, 4  ;;  %v4314_v44 = vrot.slane %v13270_v48, 5  ;;  %v9997_v48 = vld [vmem:[%s12392_s10 + $0x90] sm:$0xf]  ;;  %v10221_v0 = vld [vmem:[%s12392_s10 + $0xa8] sm:$0xe] }
 0x143   : > { %v1780_v23 = vsel %vm12451_vm7, %v1775_v13, %v1779_v9  ;;  %v1789_v49 = vrot.slane %v1788_v57, 4  ;;  %v4317_v53 = vrot.slane %v13281_v56, 5  ;;  %v1806_v38 = vshrl.u32 %v9994_v27, 16 }
 0x144   : > { %v10020_v60 = vcombine.low %v1770_v36, %v1780_v23  ;;  %v1799_v55 = vrot.slane %v1798_v10, 4  ;;  %v4311_v26 = vsel %vm12412_vm6, %v4309_v33, %v4310_v7  ;;  %v4315_v41 = vsel %vm12412_vm6, %v10236_v4, %v4314_v44 }
 0x145   : > { %v1794_v50 = vsel %vm12451_vm7, %v1789_v49, %v1793_v21  ;;  %v10251_v30 = vcombine.low %v4308_v8, %v4311_v26  ;;  %v4316_v54 = vrot.slane %v4314_v44, 4  ;;  %v1808_v56 = vrot.slane %v1806_v38, 4  ;;  %v10000_v44 = vld [vmem:[%s12392_s10 + $0x9c] sm:$0xf]  ;;  %v10001_v26 = vld [vmem:[%s12392_s10 + $0xa0] sm:$0xf] }
 0x146   : > { %11319 = vmatprep.mubr.msk.bf16.mxu0 %vm652_vm1, %v10020_v60  ;;  %v1804_v52 = vsel %vm12451_vm7, %v1799_v55, %v1803_v61  ;;  %v1809_v45 = vshll.u32 %v9994_v27, 16  ;;  %v1815_v32 = vshll.u32 %v9995_v29, 16  ;;  %v1819_v47 = vshrl.u32 %v9995_v29, 16 }
 0x147   : > { %v10021_v14 = vcombine.low %v1794_v50, %v1804_v52  ;;  %11459 = vmatprep.mubr.msk.bf16.mxu1 %vm652_vm1, %v10251_v30  ;;  %v4318_v2 = vsel %vm12412_vm6, %v4316_v54, %v4317_v53  ;;  %v1825_v59 = vshll.u32 %v9996_v46, 16  ;;  %v1830_v37 = vshrl.u32 %v9997_v48, 16 }
 0x148   : > { %v10252_v62 = vcombine.low %v4315_v41, %v4318_v2  ;;  %v1811_v25 = vrot.slane %v1809_v45, 5  ;;  %v1817_v9 = vrot.slane %v1815_v32, 5  ;;  %v1821_v63 = vrot.slane %v1819_v47, 4 }
 0x149   : > { %11320 = vmatmul.mubr.msk.bf16.gmra.mrb[16].mxu0 %vm652_vm1, %v10021_v14  ;;  %v1827_v51 = vrot.slane %v1825_v59, 5  ;;  %v1832_v43 = vrot.slane %v1830_v37, 4  ;;  %v1833_v39 = vshll.u32 %v9997_v48, 16  ;;  %v1839_v18 = vshll.u32 %v9998_v16, 16  ;;  %v10002_v48 = vld [vmem:[%s12392_s10 + $0xa4] sm:$0x1] }
 0x14a   : > { %11460 = vmatmul.mubr.msk.bf16.gmra.mrb[20].mxu1 %vm652_vm1, %v10252_v62  ;;  %v1812_v34 = vor.u32 %v1811_v25, %v1808_v56  ;;  %v1822_v1 = vor.u32 %v1821_v63, %v1817_v9  ;;  %v1843_v42 = vshrl.u32 %v9998_v16, 16  ;;  %v1849_v21 = vshll.u32 %v9999_v12, 16  ;;  %v10004_v16 = vld [vmem:[%s12392_s10 + $0xac] sm:$0xf]  ;;  %v10005_v37 = vld [vmem:[%s12392_s10 + $0xb0] sm:$0x1] }
 0x14b   : > { %v1835_v11 = vrot.slane %v1833_v39, 5  ;;  %v1841_v36 = vrot.slane %v1839_v18, 5  ;;  %v10237_v22 = vrot.slane %v10220_v19, 9  ;;  %v4321_v61 = vrot.slane %v13286_v28, 5  ;;  %v10222_v19 = vld [vmem:[%s12392_s10 + $0xb4] sm:$0xe] }
 0x14c   : > { %v1813_v27 = vrot.slane %v1812_v34, 4  ;;  %v1823_v13 = vrot.slane %v1822_v1, 4  ;;  %v1845_v57 = vrot.slane %v1843_v42, 4  ;;  %v1851_v7 = vrot.slane %v1849_v21, 5 }
 0x14d   : > { %v1836_v4 = vor.u32 %v1835_v11, %v1832_v43  ;;  %v4322_v10 = vsel %vm12412_vm6, %v10237_v22, %v4321_v61  ;;  %v4323_v8 = vrot.slane %v4321_v61, 4  ;;  %v4324_v33 = vrot.slane %v13294_v24, 5  ;;  %v10223_v11 = vld [vmem:[%s12392_s10 + $0xc0] sm:$0xe] }
 0x14e   : > { %v1818_v23 = vsel %vm12451_vm7, %v1813_v27, %v1817_v9  ;;  %v1828_v28 = vsel %vm12451_vm7, %v1823_v13, %v1827_v51  ;;  %v1846_v49 = vor.u32 %v1845_v57, %v1841_v36  ;;  %v10238_v53 = vrot.slane %v10221_v0, 9 }
 0x14f   : > { %v10022_v29 = vcombine.low %v1818_v23, %v1828_v28  ;;  %v1837_v38 = vrot.slane %v1836_v4, 4  ;;  %v4325_v60 = vsel %vm12412_vm6, %v4323_v8, %v4324_v33  ;;  %v4328_v55 = vrot.slane %v13305_v40, 5  ;;  %v10003_v40 = vld [vmem:[%s12392_s10 + $0xa8] sm:$0xf] }
 0x150   : > { %v1847_v41 = vrot.slane %v1846_v49, 4  ;;  %v10253_v24 = vcombine.low %v4322_v10, %v4325_v60  ;;  %v4331_v46 = vrot.slane %v13312_v20, 5  ;;  %v1854_v50 = vshrl.u32 %v10000_v44, 16 }
 0x151   : > { %11323 = vmatprep.mubr.msk.bf16.mxu0 %vm652_vm1, %v10022_v29  ;;  %v1842_v30 = vsel %vm12451_vm7, %v1837_v38, %v1841_v36  ;;  %v4329_v54 = vsel %vm12412_vm6, %v10238_v53, %v4328_v55  ;;  %v4330_v56 = vrot.slane %v4328_v55, 4  ;;  %v1857_v52 = vshll.u32 %v10000_v44, 16  ;;  %v10006_v44 = vld [vmem:[%s12392_s10 + $0xb4] sm:$0xf]  ;;  %v10007_v55 = vld [vmem:[%s12392_s10 + $0xb8] sm:$0xf] }
 0x152   : > { %v1852_v45 = vsel %vm12451_vm7, %v1847_v41, %v1851_v7  ;;  %11463 = vmatprep.mubr.msk.bf16.mxu1 %vm652_vm1, %v10253_v24  ;;  %v1856_v20 = vrot.slane %v1854_v50, 4  ;;  %v1863_v32 = vshll.u32 %v10001_v26, 16  ;;  %v1867_v47 = vshrl.u32 %v10001_v26, 16  ;;  %v10008_v41 = vld [vmem:[%s12392_s10 + $0xbc] sm:$0x1] }
 0x153   : > { %v10023_v14 = vcombine.low %v1842_v30, %v1852_v45  ;;  %v4332_v2 = vsel %vm12412_vm6, %v4330_v56, %v4331_v46  ;;  %v1859_v59 = vrot.slane %v1857_v52, 5  ;;  %v1873_v12 = vshll.u32 %v10002_v48, 16  ;;  %v10009_v30 = vld [vmem:[%s12392_s10 + $0xc0] sm:$0xf]  ;;  %v10010_v45 = vld [vmem:[%s12392_s10 + $0xc4] sm:$0xf] }
 0x154   : > { %v10254_v62 = vcombine.low %v4329_v54, %v4332_v2  ;;  %v1865_v25 = vrot.slane %v1863_v32, 5  ;;  %v1869_v9 = vrot.slane %v1867_v47, 4  ;;  %v1878_v63 = vshrl.u32 %v10003_v40, 16 }
 0x155   : > { %11324 = vmatmul.mubr.msk.bf16.gmra.mrb[20].mxu0 %vm652_vm1, %v10023_v14  ;;  %v1860_v51 = vor.u32 %v1859_v59, %v1856_v20  ;;  %v1875_v43 = vrot.slane %v1873_v12, 5  ;;  %v1881_v39 = vshll.u32 %v10003_v40, 16  ;;  %v1887_v18 = vshll.u32 %v10004_v16, 16  ;;  %v10011_v14 = vld [vmem:[%s12392_s10 + $0xc8] sm:$0x1] }
 0x156   : > { %11464 = vmatmul.mubr.msk.bf16.gmra.mrb[24].mxu1 %vm652_vm1, %v10254_v62  ;;  %v1870_v34 = vor.u32 %v1869_v9, %v1865_v25  ;;  %v1880_v1 = vrot.slane %v1878_v63, 4  ;;  %v1891_v42 = vshrl.u32 %v10004_v16, 16  ;;  %v1897_v21 = vshll.u32 %v10005_v37, 16  ;;  %v10598_v62 = vld [vmem:[%s12392_s10 + $0x10] sm:$0xf] }
 0x157   : > { %v1861_v36 = vrot.slane %v1860_v51, 4  ;;  %v1883_v22 = vrot.slane %v1881_v39, 5  ;;  %v1889_v61 = vrot.slane %v1887_v18, 5  ;;  %v10239_v0 = vrot.slane %v10222_v19, 9 }
 0x158   : > { %v1871_v27 = vrot.slane %v1870_v34, 4  ;;  %v1893_v13 = vrot.slane %v1891_v42, 4  ;;  %v1899_v57 = vrot.slane %v1897_v21, 5  ;;  %v4335_v7 = vrot.slane %v13322_v35, 5  ;;  %v10647_v42 = vld [vmem:[%s12392_s10 + $0x18] sm:$0xe] }
 0x159   : > { %v1866_v4 = vsel %vm12451_vm7, %v1861_v36, %v1865_v25  ;;  %v1884_v10 = vor.u32 %v1883_v22, %v1880_v1  ;;  %v4338_v8 = vrot.slane %v13329_v5, 5  ;;  %v10240_v33 = vrot.slane %v10223_v11, 9  ;;  %v10646_v25 = vld [vmem:[%s12392_s10 + $0xc] sm:$0xe] }
 0x15a   : > { %v1876_v23 = vsel %vm12451_vm7, %v1871_v27, %v1875_v43  ;;  %v1894_v28 = vor.u32 %v1893_v13, %v1889_v61  ;;  %v4336_v49 = vsel %vm12412_vm6, %v10239_v0, %v4335_v7  ;;  %v4337_v53 = vrot.slane %v4335_v7, 4  ;;  %v10599_v43 = vld [vmem:[%s12392_s10 + $0x14] sm:$0x1]  ;;  %v10305_v21 = vld [vmem:[%s12392_s10 + $0xc] sm:$0xf] }
 0x15b   : > { %v10024_v29 = vcombine.low %v1866_v4, %v1876_v23  ;;  %v1885_v35 = vrot.slane %v1884_v10, 4  ;;  %v4342_v38 = vrot.slane %v13338_v15, 5  ;;  %v4345_v60 = vrot.slane %v13346_v6, 5  ;;  %v10601_v0 = vld [vmem:[%s12392_s10 + $0x1c] sm:$0xf] }
 0x15c   : > { %v1895_v5 = vrot.slane %v1894_v28, 4  ;;  %v4339_v26 = vsel %vm12412_vm6, %v4337_v53, %v4338_v8  ;;  %v1902_v24 = vshrl.u32 %v10006_v44, 16  ;;  %v1905_v46 = vshll.u32 %v10006_v44, 16  ;;  %v10602_v4 = vld [vmem:[%s12392_s10 + $0x20] sm:$0x1] }
 0x15d   : > { %11327 = vmatprep.mubr.msk.bf16.mxu0 %vm652_vm1, %v10024_v29  ;;  %v1890_v48 = vsel %vm12451_vm7, %v1885_v35, %v1889_v61  ;;  %v10255_v50 = vcombine.low %v4336_v49, %v4339_v26  ;;  %v4343_v15 = vsel %vm12412_vm6, %v10240_v33, %v4342_v38  ;;  %v4344_v6 = vrot.slane %v4342_v38, 4 }
 0x15e   : > { %v1900_v54 = vsel %vm12451_vm7, %v1895_v5, %v1899_v57  ;;  %v1904_v56 = vrot.slane %v1902_v24, 4  ;;  %v1907_v52 = vrot.slane %v1905_v46, 5  ;;  %v1911_v40 = vshll.u32 %v10007_v55, 16  ;;  %v10338_v46 = vld [vmem:[%s12392_s10 + $0x14] sm:$0x1] }
 0x15f   : > { %v10025_v20 = vcombine.low %v1890_v48, %v1900_v54  ;;  %11467 = vmatprep.mubr.msk.bf16.mxu1 %vm652_vm1, %v10255_v50  ;;  %v4346_v32 = vsel %vm12412_vm6, %v4344_v6, %v4345_v60  ;;  %v1915_v47 = vshrl.u32 %v10007_v55, 16  ;;  %v1921_v16 = vshll.u32 %v10008_v41, 16  ;;  %v10306_v60 = vld [vmem:[%s12392_s10 + $0x10] sm:$0xf]  ;;  %v10307_v48 = vld [vmem:[%s12392_s10 + $0x18] sm:$0xf] }
 0x160   : > { %v10256_v2 = vcombine.low %v4343_v15, %v4346_v32  ;;  %v1908_v59 = vor.u32 %v1907_v52, %v1904_v56  ;;  %v1913_v12 = vrot.slane %v1911_v40, 5  ;;  %v1926_v37 = vshrl.u32 %v10009_v30, 16 }
 0x161   : > { %11328 = vmatmul.mubr.msk.bf16.gmra.mrb[24].mxu0 %vm652_vm1, %v10025_v20  ;;  %v1917_v9 = vrot.slane %v1915_v47, 4  ;;  %v1923_v63 = vrot.slane %v1921_v16, 5  ;;  %v1929_v19 = vshll.u32 %v10009_v30, 16  ;;  %v1935_v51 = vshll.u32 %v10010_v45, 16  ;;  %v10339_v16 = vld [vmem:[%s12392_s10 + $0x20] sm:$0x1] }
 0x162   : > { %11468 = vmatmul.mubr.msk.bf16.gmra.mrb[28].mxu1 %vm652_vm1, %v10256_v2  ;;  %v1909_v39 = vrot.slane %v1908_v59, 4  ;;  %v1928_v18 = vrot.slane %v1926_v37, 4  ;;  %v1939_v34 = vshrl.u32 %v10010_v45, 16  ;;  %v1945_v1 = vshll.u32 %v10011_v14, 16  ;;  %v10308_v45 = vld [vmem:[%s12392_s10 + $0x1c] sm:$0xf] }
 0x163   : > { %v1918_v11 = vor.u32 %v1917_v9, %v1913_v12  ;;  %v1931_v36 = vrot.slane %v1929_v19, 5  ;;  %v1937_v22 = vrot.slane %v1935_v51, 5  ;;  %v10663_v61 = vrot.slane %v10646_v25, 9  ;;  %v10605_v51 = vld [vmem:[%s12392_s10 + $0x2c] sm:$0x1] }
 0x164   : > { %v1914_v27 = vsel %vm12451_vm7, %v1909_v39, %v1913_v12  ;;  %v1941_v13 = vrot.slane %v1939_v34, 4  ;;  %v1947_v57 = vrot.slane %v1945_v1, 5  ;;  %v7340_v7 = vrot.slane %v10598_v62, 5  ;;  %v10604_v62 = vld [vmem:[%s12392_s10 + $0x28] sm:$0xf] }
 0x165   : > { %v1919_v10 = vrot.slane %v1918_v11, 4  ;;  %v1932_v8 = vor.u32 %v1931_v36, %v1928_v18  ;;  %v7343_v33 = vrot.slane %v10599_v43, 5  ;;  %v10664_v44 = vrot.slane %v10647_v42, 9  ;;  %v10648_v1 = vld [vmem:[%s12392_s10 + $0x24] sm:$0xe] }
 0x166   : > { %v1942_v23 = vor.u32 %v1941_v13, %v1937_v22  ;;  %v7341_v28 = vsel %vm12412_vm6, %v10663_v61, %v7340_v7  ;;  %v7342_v49 = vrot.slane %v7340_v7, 4  ;;  %v7347_v53 = vrot.slane %v10601_v0, 5  ;;  %v13668_v42 = vld [vmem:[%s15600_s1 + $0x38] sm:$0xf]  ;;  %v10607_v61 = vld [vmem:[%s12392_s10 + $0x34] sm:$0xf] }
 0x167   : > { %v1924_v29 = vsel %vm12451_vm7, %v1919_v10, %v1923_v63  ;;  %v1933_v35 = vrot.slane %v1932_v8, 4  ;;  %v7350_v38 = vrot.slane %v10602_v4, 5  ;;  %v4756_v55 = vshrl.u32 %v10305_v21, 16  ;;  %v10649_v0 = vld [vmem:[%s12392_s10 + $0x30] sm:$0xe] }
 0x168   : > { %v10026_v5 = vcombine.low %v1914_v27, %v1924_v29  ;;  %v1943_v26 = vrot.slane %v1942_v23, 4  ;;  %v7344_v41 = vsel %vm12412_vm6, %v7342_v49, %v7343_v33  ;;  %v7348_v24 = vsel %vm12412_vm6, %v10664_v44, %v7347_v53  ;;  %v10608_v4 = vld [vmem:[%s12392_s10 + $0x38] sm:$0x1]  ;;  %v10309_v23 = vld [vmem:[%s12392_s10 + $0x24] sm:$0xf] }
 0x169   : > { %v1938_v50 = vsel %vm12451_vm7, %v1933_v35, %v1937_v22  ;;  %v10679_v15 = vcombine.low %v7341_v28, %v7344_v41  ;;  %v7349_v6 = vrot.slane %v7347_v53, 4  ;;  %v4758_v30 = vrot.slane %v4756_v55, 4  ;;  %v10310_v53 = vld [vmem:[%s12392_s10 + $0x28] sm:$0xf] }
 0x16a   : > { %11331 = vmatprep.mubr.msk.bf16.mxu0 %vm652_vm1, %v10026_v5  ;;  %v1948_v54 = vsel %vm12451_vm7, %v1943_v26, %v1947_v57  ;;  %v4759_v56 = vshll.u32 %v10305_v21, 16  ;;  %v4765_v52 = vshll.u32 %v10306_v60, 16  ;;  %v4769_v40 = vshrl.u32 %v10306_v60, 16 }
 0x16b   : > { %v10027_v20 = vcombine.low %v1938_v50, %v1948_v54  ;;  %11609 = vmatprep.mubr.msk.bf16.mxu1 %vm652_vm1, %v10679_v15  ;;  %v7351_v32 = vsel %vm12412_vm6, %v7349_v6, %v7350_v38  ;;  %v4775_v47 = vshll.u32 %v10338_v46, 16  ;;  %v4780_v14 = vshrl.u32 %v10307_v48, 16  ;;  %v13694_v6 = vld [vmem:[%s12392_s10 + $0x30] sm:$0xf] }
 0x16c   : > { %v10680_v2 = vcombine.low %v7348_v24, %v7351_v32  ;;  %v4761_v59 = vrot.slane %v4759_v56, 5  ;;  %v4767_v12 = vrot.slane %v4765_v52, 5  ;;  %v4771_v37 = vrot.slane %v4769_v40, 4  ;;  %v13701_v40 = vld [vmem:[%s12392_s10 + $0x34] sm:$0xf] }
 0x16d   : > { %11332 = vmatmul.mubr.msk.bf16.gmra.mrb[28].mxu0 %vm652_vm1, %v10027_v20  ;;  %v4777_v25 = vrot.slane %v4775_v47, 5  ;;  %v4782_v9 = vrot.slane %v4780_v14, 4  ;;  %v4783_v63 = vshll.u32 %v10307_v48, 16  ;;  %v4789_v19 = vshll.u32 %v10308_v45, 16  ;;  %v10340_v48 = vld [vmem:[%s12392_s10 + $0x2c] sm:$0x1] }
 0x16e   : > { %11610 = vmatmul.mubr.msk.bf16.vlgmr.msra.gmra.mrb[32].mxu1 %vm652_vm1, %v10680_v2  ;;  %v4762_v43 = vor.u32 %v4761_v59, %v4758_v30  ;;  %v4772_v39 = vor.u32 %v4771_v37, %v4767_v12  ;;  %v4793_v18 = vshrl.u32 %v10308_v45, 16  ;;  %v4799_v34 = vshll.u32 %v10339_v16, 16  ;;  %v10341_v16 = vld [vmem:[%s12392_s10 + $0x38] sm:$0x1]  ;;  %v13711_v37 = vld [vmem:[%s15600_s1 + $0x28] sm:$0xf] }
 0x16f   : > { %v4785_v21 = vrot.slane %v4783_v63, 5  ;;  %v4791_v11 = vrot.slane %v4789_v19, 5  ;;  %v5528_v36 = vsel %vm701_vm0, %v13431_v58, 0  ;;  %v7807_v22 = vsel %vm701_vm0, %v13407_v31, 0  ;;  %v13717_v19 = vld [vmem:[%s12392_s10 + $0x40] sm:$0xf] }
 0x170   : > { %v4763_v27 = vrot.slane %v4762_v43, 4  ;;  %v4773_v13 = vrot.slane %v4772_v39, 4  ;;  %v4795_v57 = vrot.slane %v4793_v18, 4  ;;  %v4801_v7 = vrot.slane %v4799_v34, 5  ;;  %11642 = vmatpush3.bf16.msra.mxu1 %v7807_v22 }
 0x171   : > { %v4786_v10 = vor.u32 %v4785_v21, %v4782_v9  ;;  %v10665_v8 = vrot.slane %v10648_v1, 9  ;;  %v7354_v33 = vrot.slane %v10604_v62, 5  ;;  %v7357_v44 = vrot.slane %v10605_v51, 5  ;;  %12141 = vmatprep.subr.msk.bf16.mxu1 %vm701_vm0, %v13668_v42  ;;  %v10650_v51 = vld [vmem:[%s12392_s10 + $0x3c] sm:$0xe] }
 0x172   : > { %v4768_v31 = vsel %vm12451_vm7, %v4763_v27, %v4767_v12  ;;  %v4778_v58 = vsel %vm12451_vm7, %v4773_v13, %v4777_v25  ;;  %v4796_v28 = vor.u32 %v4795_v57, %v4791_v11  ;;  %v10666_v49 = vrot.slane %v10649_v0, 9  ;;  %v13722_v1 = vld [vmem:[%s12392_s10 + $0x44] sm:$0x1]  ;;  %v13725_v21 = vld [vmem:[%s12392_s10 + $0x4c] sm:$0xf] }
 0x173   : > { %v10355_v29 = vcombine.low %v4768_v31, %v4778_v58  ;;  %v4787_v35 = vrot.slane %v4786_v10, 4  ;;  %v7355_v38 = vsel %vm12412_vm6, %v10665_v8, %v7354_v33  ;;  %v7356_v60 = vrot.slane %v7354_v33, 4  ;;  %v13729_v27 = vld [vmem:[%s12392_s10 + $0x50] sm:$0x1] }
 0x174   : > { %v4797_v55 = vrot.slane %v4796_v28, 4  ;;  %v7361_v5 = vrot.slane %v10607_v61, 5  ;;  %v7364_v26 = vrot.slane %v10608_v4, 5  ;;  %v4804_v41 = vshrl.u32 %v10309_v23, 16  ;;  %v10651_v4 = vld [vmem:[%s12392_s10 + $0x48] sm:$0xe] }
 0x175   : > { %11473 = vmatprep.mubr.msk.bf16.mxu0 %vm652_vm1, %v10355_v29  ;;  %v4792_v24 = vsel %vm12451_vm7, %v4787_v35, %v4791_v11  ;;  %v7358_v46 = vsel %vm12412_vm6, %v7356_v60, %v7357_v44  ;;  %v4807_v50 = vshll.u32 %v10309_v23, 16  ;;  %v4813_v15 = vshll.u32 %v10310_v53, 16  ;;  %v13739_v23 = vld [vmem:[%s12392_s10 + $0x3c] sm:$0xf] }
 0x176   : > { %v4802_v30 = vsel %vm12451_vm7, %v4797_v55, %v4801_v7  ;;  %v10681_v54 = vcombine.low %v7355_v38, %v7358_v46  ;;  %v7362_v56 = vsel %vm12412_vm6, %v10666_v49, %v7361_v5  ;;  %v7363_v52 = vrot.slane %v7361_v5, 4 }
 0x177   : > { %v10356_v45 = vcombine.low %v4792_v24, %v4802_v30  ;;  %v4806_v20 = vrot.slane %v4804_v41, 4  ;;  %v4809_v32 = vrot.slane %v4807_v50, 5  ;;  %v4815_v47 = vrot.slane %v4813_v15, 5  ;;  %v10342_v41 = vld [vmem:[%s12392_s10 + $0x44] sm:$0x1] }
 0x178   : > { %11613 = vmatprep.mubr.msk.bf16.mxu1 %vm652_vm1, %v10681_v54  ;;  %v7365_v14 = vsel %vm12412_vm6, %v7363_v52, %v7364_v26  ;;  %v4817_v2 = vshrl.u32 %v10310_v53, 16  ;;  %v4823_v59 = vshll.u32 %v10340_v48, 16  ;;  %v4828_v12 = vshrl.u32 %v13694_v6, 16  ;;  %v13750_v26 = vld [vmem:[%s12392_s10 + $0x40] sm:$0xf] }
 0x179   : > { %11474 = vmatmul.mubr.msk.bf16.vlgmr.msra.gmra.mrb[32].mxu0 %vm652_vm1, %v10356_v45  ;;  %v10682_v62 = vcombine.low %v7362_v56, %v7365_v14  ;;  %v4810_v25 = vor.u32 %v4809_v32, %v4806_v20  ;;  %v4831_v9 = vshll.u32 %v13694_v6, 16  ;;  %v4837_v63 = vshll.u32 %v13701_v40, 16  ;;  %v13759_v30 = vld [vmem:[%s12392_s10 + $0x48] sm:$0xf]  ;;  %v13765_v20 = vld [vmem:[%s12392_s10 + $0x4c] sm:$0xf] }
 0x17a   : > { %11506 = vmatpush3.bf16.msra.mxu0 %v5528_v36  ;;  %v4819_v43 = vrot.slane %v4817_v2, 4  ;;  %v4825_v39 = vrot.slane %v4823_v59, 5  ;;  %v4830_v18 = vrot.slane %v4828_v12, 4  ;;  %v4841_v34 = vshrl.u32 %v13701_v40, 16  ;;  %v10343_v2 = vld [vmem:[%s12392_s10 + $0x50] sm:$0x1] }
 0x17b   : > { %11614 = vmatmul.mubr.msk.bf16.gmra.mrb[36].mxu1 %vm652_vm1, %v10682_v62  ;;  %v4811_v11 = vrot.slane %v4810_v25, 4  ;;  %v4833_v22 = vrot.slane %v4831_v9, 5  ;;  %v4839_v61 = vrot.slane %v4837_v63, 5  ;;  %v4847_v0 = vshll.u32 %v10341_v16, 16  ;;  %12137 = vmatprep.subr.msk.bf16.mxu0 %vm701_vm0, %v13711_v37  ;;  %v10652_v9 = vld [vmem:[%s12392_s10 + $0x54] sm:$0xe] }
 0x17c   : > { %v4820_v36 = vor.u32 %v4819_v43, %v4815_v47  ;;  %v4843_v13 = vrot.slane %v4841_v34, 4  ;;  %v10667_v57 = vrot.slane %v10650_v51, 9  ;;  %v7368_v7 = vrot.slane %v13717_v19, 5 }
 0x17d   : > { %v4816_v10 = vsel %vm12451_vm7, %v4811_v11, %v4815_v47  ;;  %v4834_v8 = vor.u32 %v4833_v22, %v4830_v18  ;;  %v4849_v33 = vrot.slane %v4847_v0, 5  ;;  %v7371_v44 = vrot.slane %v13722_v1, 5  ;;  %v13779_v18 = vld [vmem:[%s12392_s10 + $0x58] sm:$0xf]  ;;  %v13783_v0 = vld [vmem:[%s12392_s10 + $0x5c] sm:$0x1] }
 0x17e   : > { %v4821_v31 = vrot.slane %v4820_v36, 4  ;;  %v4844_v58 = vor.u32 %v4843_v13, %v4839_v61  ;;  %v7369_v28 = vsel %vm12412_vm6, %v10667_v57, %v7368_v7  ;;  %v7370_v49 = vrot.slane %v7368_v7, 4 }
 0x17f   : > { %v4835_v53 = vrot.slane %v4834_v8, 4  ;;  %v10668_v29 = vrot.slane %v10651_v4, 9  ;;  %v7375_v35 = vrot.slane %v13725_v21, 5  ;;  %v7378_v38 = vrot.slane %v13729_v27, 5  ;;  %v13788_v4 = vld [vmem:[%s12392_s10 + $0x64] sm:$0xf] }
 0x180   : > { %v4826_v60 = vsel %vm12451_vm7, %v4821_v31, %v4825_v39  ;;  %v4845_v55 = vrot.slane %v4844_v58, 4  ;;  %v7372_v5 = vsel %vm12412_vm6, %v7370_v49, %v7371_v44  ;;  %v4852_v24 = vshrl.u32 %v13739_v23, 16  ;;  %v10653_v31 = vld [vmem:[%s12392_s10 + $0x60] sm:$0xe] }
 0x181   : > { %v10357_v46 = vcombine.low %v4816_v10, %v4826_v60  ;;  %v4840_v48 = vsel %vm12451_vm7, %v4835_v53, %v4839_v61  ;;  %v10683_v50 = vcombine.low %v7369_v28, %v7372_v5  ;;  %v7376_v15 = vsel %vm12412_vm6, %v10668_v29, %v7375_v35  ;;  %v13794_v29 = vld [vmem:[%s12392_s10 + $0x68] sm:$0x1] }
 0x182   : > { %v4850_v54 = vsel %vm12451_vm7, %v4845_v55, %v4849_v33  ;;  %v7377_v56 = vrot.slane %v7375_v35, 4  ;;  %v4854_v52 = vrot.slane %v4852_v24, 4  ;;  %v4855_v45 = vshll.u32 %v13739_v23, 16 }
 0x183   : > { %11477 = vmatprep.mubr.msk.bf16.mxu0 %vm652_vm1, %v10357_v46  ;;  %v10358_v32 = vcombine.low %v4840_v48, %v4850_v54  ;;  %11617 = vmatprep.mubr.msk.bf16.mxu1 %vm652_vm1, %v10683_v50  ;;  %v4861_v47 = vshll.u32 %v13750_v26, 16  ;;  %v4865_v16 = vshrl.u32 %v13750_v26, 16  ;;  %v4871_v14 = vshll.u32 %v10342_v41, 16  ;;  %v13804_v48 = vld [vmem:[%s12392_s10 + $0x54] sm:$0xf] }
 0x184   : > { %v7379_v59 = vsel %vm12412_vm6, %v7377_v56, %v7378_v38  ;;  %v4857_v12 = vrot.slane %v4855_v45, 5  ;;  %v4876_v62 = vshrl.u32 %v13759_v30, 16  ;;  %v4879_v25 = vshll.u32 %v13759_v30, 16  ;;  %v13807_v50 = vld [vmem:[%s12392_s10 + $0x58] sm:$0xf] }
 0x185   : > { %11478 = vmatmul.mubr.msk.bf16.gmra.mrb[36].mxu0 %vm652_vm1, %v10358_v32  ;;  %v10684_v63 = vcombine.low %v7376_v15, %v7379_v59  ;;  %v4863_v51 = vrot.slane %v4861_v47, 5  ;;  %v4867_v43 = vrot.slane %v4865_v16, 4  ;;  %v4873_v39 = vrot.slane %v4871_v14, 5  ;;  %v10344_v45 = vld [vmem:[%s12392_s10 + $0x5c] sm:$0x1] }
 0x186   : > { %v4858_v34 = vor.u32 %v4857_v12, %v4854_v52  ;;  %v4878_v11 = vrot.slane %v4876_v62, 4  ;;  %v4881_v22 = vrot.slane %v4879_v25, 5  ;;  %v4885_v61 = vshll.u32 %v13765_v20, 16  ;;  %v13816_v32 = vld [vmem:[%s12392_s10 + $0x60] sm:$0xf] }
 0x187   : > { %11618 = vmatmul.mubr.msk.bf16.gmra.mrb[40].mxu1 %vm652_vm1, %v10684_v63  ;;  %v4868_v36 = vor.u32 %v4867_v43, %v4863_v51  ;;  %v4889_v13 = vshrl.u32 %v13765_v20, 16  ;;  %v4895_v57 = vshll.u32 %v10343_v2, 16  ;;  %v10669_v7 = vrot.slane %v10652_v9, 9  ;;  %v13831_v43 = vld [vmem:[%s12392_s10 + $0x64] sm:$0xf] }
 0x188   : > { %v4859_v10 = vrot.slane %v4858_v34, 4  ;;  %v4882_v8 = vor.u32 %v4881_v22, %v4878_v11  ;;  %v4887_v33 = vrot.slane %v4885_v61, 5  ;;  %v7382_v44 = vrot.slane %v13779_v18, 5 }
 0x189   : > { %v4869_v58 = vrot.slane %v4868_v36, 4  ;;  %v4891_v28 = vrot.slane %v4889_v13, 4  ;;  %v4897_v49 = vrot.slane %v4895_v57, 5  ;;  %v7385_v53 = vrot.slane %v13783_v0, 5  ;;  %v13836_v13 = vld [vmem:[%s12392_s10 + $0x70] sm:$0xf] }
 0x18a   : > { %v4864_v35 = vsel %vm12451_vm7, %v4859_v10, %v4863_v51  ;;  %v4883_v38 = vrot.slane %v4882_v8, 4  ;;  %v7383_v60 = vsel %vm12412_vm6, %v10669_v7, %v7382_v44  ;;  %v7384_v55 = vrot.slane %v7382_v44, 4  ;;  %v10654_v57 = vld [vmem:[%s12392_s10 + $0x6c] sm:$0xe] }
 0x18b   : > { %v4874_v5 = vsel %vm12451_vm7, %v4869_v58, %v4873_v39  ;;  %v4892_v41 = vor.u32 %v4891_v28, %v4887_v33  ;;  %v10670_v24 = vrot.slane %v10653_v31, 9  ;;  %v7389_v46 = vrot.slane %v13788_v4, 5  ;;  %v10345_v39 = vld [vmem:[%s12392_s10 + $0x68] sm:$0x1] }
 0x18c   : > { %v10359_v15 = vcombine.low %v4864_v35, %v4874_v5  ;;  %v4888_v54 = vsel %vm12451_vm7, %v4883_v38, %v4887_v33  ;;  %v7386_v56 = vsel %vm12412_vm6, %v7384_v55, %v7385_v53  ;;  %v7392_v52 = vrot.slane %v13794_v29, 5  ;;  %v13848_v53 = vld [vmem:[%s12392_s10 + $0x7c] sm:$0xf]  ;;  %v13852_v5 = vld [vmem:[%s12392_s10 + $0x80] sm:$0x1] }
 0x18d   : > { %v4893_v47 = vrot.slane %v4892_v41, 4  ;;  %v10685_v16 = vcombine.low %v7383_v60, %v7386_v56  ;;  %v7390_v14 = vsel %vm12412_vm6, %v10670_v24, %v7389_v46  ;;  %v7391_v2 = vrot.slane %v7389_v46, 4 }
 0x18e   : > { %11481 = vmatprep.mubr.msk.bf16.mxu0 %vm652_vm1, %v10359_v15  ;;  %v4900_v59 = vshrl.u32 %v13804_v48, 16  ;;  %v4903_v12 = vshll.u32 %v13804_v48, 16  ;;  %v4909_v62 = vshll.u32 %v13807_v50, 16  ;;  %v4913_v25 = vshrl.u32 %v13807_v50, 16 }
 0x18f   : > { %v4898_v9 = vsel %vm12451_vm7, %v4893_v47, %v4897_v49  ;;  %11621 = vmatprep.mubr.msk.bf16.mxu1 %vm652_vm1, %v10685_v16  ;;  %v7393_v63 = vsel %vm12412_vm6, %v7391_v2, %v7392_v52  ;;  %v4919_v51 = vshll.u32 %v10344_v45, 16  ;;  %v4924_v34 = vshrl.u32 %v13816_v32, 16  ;;  %v13845_v49 = vld [vmem:[%s12392_s10 + $0x74] sm:$0x1] }
 0x190   : > { %v10360_v11 = vcombine.low %v4888_v54, %v4898_v9  ;;  %v10686_v22 = vcombine.low %v7390_v14, %v7393_v63  ;;  %v4902_v61 = vrot.slane %v4900_v59, 4  ;;  %v4905_v36 = vrot.slane %v4903_v12, 5  ;;  %v10655_v54 = vld [vmem:[%s12392_s10 + $0x78] sm:$0xe]  ;;  %v13861_v12 = vld [vmem:[%s12392_s10 + $0x6c] sm:$0xf] }
 0x191   : > { %v4911_v7 = vrot.slane %v4909_v62, 5  ;;  %v4915_v10 = vrot.slane %v4913_v25, 4  ;;  %v4921_v8 = vrot.slane %v4919_v51, 5  ;;  %v4926_v33 = vrot.slane %v4924_v34, 4  ;;  %v13868_v51 = vld [vmem:[%s12392_s10 + $0x70] sm:$0xf] }
 0x192   : > { %11482 = vmatmul.mubr.msk.bf16.gmra.mrb[40].mxu0 %vm652_vm1, %v10360_v11  ;;  %11622 = vmatmul.mubr.msk.bf16.gmra.mrb[44].mxu1 %vm652_vm1, %v10686_v22  ;;  %v4906_v44 = vor.u32 %v4905_v36, %v4902_v61  ;;  %v4927_v31 = vshll.u32 %v13816_v32, 16  ;;  %v4933_v58 = vshll.u32 %v13831_v43, 16  ;;  %v4937_v28 = vshrl.u32 %v13831_v43, 16 }
 0x193   : > { %v4916_v35 = vor.u32 %v4915_v10, %v4911_v7  ;;  %v4943_v38 = vshll.u32 %v10345_v39, 16  ;;  %v10671_v60 = vrot.slane %v10654_v57, 9  ;;  %v7396_v55 = vrot.slane %v13836_v13, 5 }
 0x194   : > { %v4907_v41 = vrot.slane %v4906_v44, 4  ;;  %v4929_v24 = vrot.slane %v4927_v31, 5  ;;  %v4935_v46 = vrot.slane %v4933_v58, 5  ;;  %v4939_v15 = vrot.slane %v4937_v28, 4  ;;  %v13884_v58 = vld [vmem:[%s12392_s10 + $0x78] sm:$0xf] }
 0x195   : > { %v4917_v56 = vrot.slane %v4916_v35, 4  ;;  %v4945_v52 = vrot.slane %v4943_v38, 5  ;;  %v7397_v45 = vsel %vm12412_vm6, %v10671_v60, %v7396_v55  ;;  %v7398_v47 = vrot.slane %v7396_v55, 4  ;;  %v13887_v28 = vld [vmem:[%s12392_s10 + $0x7c] sm:$0xf] }
 0x196   : > { %v4912_v16 = vsel %vm12451_vm7, %v4907_v41, %v4911_v7  ;;  %v4930_v14 = vor.u32 %v4929_v24, %v4926_v33  ;;  %v4940_v2 = vor.u32 %v4939_v15, %v4935_v46  ;;  %v7399_v59 = vrot.slane %v13845_v49, 5  ;;  %v10346_v7 = vld [vmem:[%s12392_s10 + $0x74] sm:$0x1]  ;;  %v10347_v41 = vld [vmem:[%s12392_s10 + $0x80] sm:$0x1] }
 0x197   : > { %v4922_v62 = vsel %vm12451_vm7, %v4917_v56, %v4921_v8  ;;  %v10672_v25 = vrot.slane %v10655_v54, 9  ;;  %v7403_v9 = vrot.slane %v13848_v53, 5  ;;  %v7406_v63 = vrot.slane %v13852_v5, 5  ;;  %v13895_v56 = vld [vmem:[%s12392_s10 + $0x88] sm:$0xf] }
 0x198   : > { %v10361_v39 = vcombine.low %v4912_v16, %v4922_v62  ;;  %v4931_v34 = vrot.slane %v4930_v14, 4  ;;  %v4941_v11 = vrot.slane %v4940_v2, 4  ;;  %v7400_v22 = vsel %vm12412_vm6, %v7398_v47, %v7399_v59  ;;  %v10656_v14 = vld [vmem:[%s12392_s10 + $0x84] sm:$0xe]  ;;  %v13903_v2 = vld [vmem:[%s12392_s10 + $0x94] sm:$0xf] }
 0x199   : > { %v10687_v61 = vcombine.low %v7397_v45, %v7400_v22  ;;  %v7404_v36 = vsel %vm12412_vm6, %v10672_v25, %v7403_v9  ;;  %v7405_v57 = vrot.slane %v7403_v9, 4  ;;  %v4948_v10 = vshrl.u32 %v13861_v12, 16 }
 0x19a   : > { %11485 = vmatprep.mubr.msk.bf16.mxu0 %vm652_vm1, %v10361_v39  ;;  %v4936_v8 = vsel %vm12451_vm7, %v4931_v34, %v4935_v46  ;;  %v4946_v33 = vsel %vm12451_vm7, %v4941_v11, %v4945_v52  ;;  %v4951_v44 = vshll.u32 %v13861_v12, 16  ;;  %v4957_v31 = vshll.u32 %v13868_v51, 16 }
 0x19b   : > { %v10362_v35 = vcombine.low %v4936_v8, %v4946_v33  ;;  %11625 = vmatprep.mubr.msk.bf16.mxu1 %vm652_vm1, %v10687_v61  ;;  %v7407_v38 = vsel %vm12412_vm6, %v7405_v57, %v7406_v63  ;;  %v4950_v60 = vrot.slane %v4948_v10, 4  ;;  %v4961_v55 = vshrl.u32 %v13868_v51, 16  ;;  %v13908_v63 = vld [vmem:[%s12392_s10 + $0x8c] sm:$0x1]  ;;  %v10657_v61 = vld [vmem:[%s12392_s10 + $0x90] sm:$0xe] }
 0x19c   : > { %v10688_v24 = vcombine.low %v7404_v36, %v7407_v38  ;;  %v4953_v46 = vrot.slane %v4951_v44, 5  ;;  %v4959_v15 = vrot.slane %v4957_v31, 5  ;;  %v4967_v54 = vshll.u32 %v10346_v7, 16 }
 0x19d   : > { %11486 = vmatmul.mubr.msk.bf16.gmra.mrb[44].mxu0 %vm652_vm1, %v10362_v35  ;;  %v4963_v52 = vrot.slane %v4961_v55, 4  ;;  %v4972_v45 = vshrl.u32 %v13884_v58, 16  ;;  %v4975_v47 = vshll.u32 %v13884_v58, 16  ;;  %v4981_v16 = vshll.u32 %v13887_v28, 16 }
 0x19e   : > { %11626 = vmatmul.mubr.msk.bf16.gmra.mrb[48].mxu1 %vm652_vm1, %v10688_v24  ;;  %v4954_v59 = vor.u32 %v4953_v46, %v4950_v60  ;;  %v4969_v62 = vrot.slane %v4967_v54, 5  ;;  %v4985_v25 = vshrl.u32 %v13887_v28, 16  ;;  %v4991_v9 = vshll.u32 %v10347_v41, 16  ;;  %v13916_v60 = vld [vmem:[%s12392_s10 + $0x98] sm:$0x1] }
 0x19f   : > { %v4964_v39 = vor.u32 %v4963_v52, %v4959_v15  ;;  %v4974_v34 = vrot.slane %v4972_v45, 4  ;;  %v4977_v11 = vrot.slane %v4975_v47, 5  ;;  %v4983_v22 = vrot.slane %v4981_v16, 5  ;;  %v13920_v24 = vld [vmem:[%s12392_s10 + $0x84] sm:$0xf] }
 0x1a0   : > { %v4955_v36 = vrot.slane %v4954_v59, 4  ;;  %v4987_v57 = vrot.slane %v4985_v25, 4  ;;  %v4993_v7 = vrot.slane %v4991_v9, 5  ;;  %v10673_v10 = vrot.slane %v10656_v14, 9  ;;  %v13927_v47 = vld [vmem:[%s12392_s10 + $0x88] sm:$0xf] }
 0x1a1   : > { %v4965_v8 = vrot.slane %v4964_v39, 4  ;;  %v4978_v33 = vor.u32 %v4977_v11, %v4974_v34  ;;  %v7410_v44 = vrot.slane %v13895_v56, 5  ;;  %v7413_v31 = vrot.slane %v13908_v63, 5  ;;  %v10348_v39 = vld [vmem:[%s12392_s10 + $0x8c] sm:$0x1] }
 0x1a2   : > { %v4960_v35 = vsel %vm12451_vm7, %v4955_v36, %v4959_v15  ;;  %v4988_v38 = vor.u32 %v4987_v57, %v4983_v22  ;;  %v10674_v55 = vrot.slane %v10657_v61, 9  ;;  %v7417_v41 = vrot.slane %v13903_v2, 5  ;;  %v13944_v57 = vld [vmem:[%s12392_s10 + $0x90] sm:$0xf] }
 0x1a3   : > { %v4970_v46 = vsel %vm12451_vm7, %v4965_v8, %v4969_v62  ;;  %v4979_v54 = vrot.slane %v4978_v33, 4  ;;  %v7411_v52 = vsel %vm12412_vm6, %v10673_v10, %v7410_v44  ;;  %v7412_v45 = vrot.slane %v7410_v44, 4  ;;  %15707 = vst [vmem:[#allocation5_spill] sm:$0xff] %v13944_v57  ;;  %v13947_v10 = vld [vmem:[%s12392_s10 + $0x94] sm:$0xf] }
 0x1a4   : > { %v10363_v15 = vcombine.low %v4960_v35, %v4970_v46  ;;  %v4989_v16 = vrot.slane %v4988_v38, 4  ;;  %v7418_v14 = vsel %vm12412_vm6, %v10674_v55, %v7417_v41  ;;  %v7419_v59 = vrot.slane %v7417_v41, 4  ;;  %15708 = vst [vmem:[#allocation4_spill] sm:$0xff] %v13947_v10  ;;  %v13955_v46 = vld [vmem:[%s12392_s10 + $0xa0] sm:$0xf] }
 0x1a5   : > { %v4984_v25 = vsel %vm12451_vm7, %v4979_v54, %v4983_v22  ;;  %v7414_v62 = vsel %vm12412_vm6, %v7412_v45, %v7413_v31  ;;  %v7420_v9 = vrot.slane %v13916_v60, 5  ;;  %v4996_v34 = vshrl.u32 %v13920_v24, 16  ;;  %15709 = vst [vmem:[#allocation6_spill] sm:$0xff] %v13955_v46 }
 0x1a6   : > { %11489 = vmatprep.mubr.msk.bf16.mxu0 %vm652_vm1, %v10363_v15  ;;  %v4994_v11 = vsel %vm12451_vm7, %v4989_v16, %v4993_v7  ;;  %v10689_v61 = vcombine.low %v7411_v52, %v7414_v62  ;;  %v4999_v36 = vshll.u32 %v13920_v24, 16  ;;  %v5005_v22 = vshll.u32 %v13927_v47, 16  ;;  %v10349_v7 = vld [vmem:[%s12392_s10 + $0x98] sm:$0x1]  ;;  %v10658_v16 = vld [vmem:[%s12392_s10 + $0x9c] sm:$0xe] }
 0x1a7   : > { %v10364_v8 = vcombine.low %v4984_v25, %v4994_v11  ;;  %v7421_v33 = vsel %vm12412_vm6, %v7419_v59, %v7420_v9  ;;  %v4998_v44 = vrot.slane %v4996_v34, 4  ;;  %v5009_v31 = vshrl.u32 %v13927_v47, 16  ;;  %v13963_v59 = vld [vmem:[%s12392_s10 + $0xac] sm:$0xf] }
 0x1a8   : > { %11629 = vmatprep.mubr.msk.bf16.mxu1 %vm652_vm1, %v10689_v61  ;;  %v10690_v35 = vcombine.low %v7418_v14, %v7421_v33  ;;  %v5001_v38 = vrot.slane %v4999_v36, 5  ;;  %v5007_v55 = vrot.slane %v5005_v22, 5  ;;  %v5015_v41 = vshll.u32 %v10348_v39, 16  ;;  %15710 = vst [vmem:[#allocation7_spill] sm:$0xff] %v13963_v59  ;;  %v13968_v39 = vld [vmem:[%s12392_s10 + $0xa4] sm:$0x1] }
 0x1a9   : > { %11490 = vmatmul.mubr.msk.bf16.gmra.mrb[48].mxu0 %vm652_vm1, %v10364_v8  ;;  %v5011_v54 = vrot.slane %v5009_v31, 4  ;;  %v5020_v52 = vshrl.u32 %v13944_v57, 16  ;;  %v5023_v45 = vshll.u32 %v13944_v57, 16  ;;  %v5029_v15 = vshll.u32 %v13947_v10, 16  ;;  %15711 = vst [vmem:[#allocation8_spill] sm:$0xff] %v13968_v39 }
 0x1aa   : > { %11630 = vmatmul.mubr.msk.bf16.gmra.mrb[52].mxu1 %vm652_vm1, %v10690_v35  ;;  %v5002_v14 = vor.u32 %v5001_v38, %v4998_v44  ;;  %v5017_v25 = vrot.slane %v5015_v41, 5  ;;  %v5033_v62 = vshrl.u32 %v13947_v10, 16  ;;  %v5039_v9 = vshll.u32 %v10349_v7, 16  ;;  %v10659_v22 = vld [vmem:[%s12392_s10 + $0xa8] sm:$0xe] }
 0x1ab   : > { %v5012_v34 = vor.u32 %v5011_v54, %v5007_v55  ;;  %v5022_v11 = vrot.slane %v5020_v52, 4  ;;  %v5025_v61 = vrot.slane %v5023_v45, 5  ;;  %v5031_v36 = vrot.slane %v5029_v15, 5  ;;  %v13976_v52 = vld [vmem:[%s12392_s10 + $0xb0] sm:$0x1] }
 0x1ac   : > { %v5003_v8 = vrot.slane %v5002_v14, 4  ;;  %v5035_v33 = vrot.slane %v5033_v62, 4  ;;  %v5041_v31 = vrot.slane %v5039_v9, 5  ;;  %v10675_v57 = vrot.slane %v10658_v16, 9  ;;  %15712 = vst [vmem:[#allocation9_spill] sm:$0xff] %v13976_v52 }
 0x1ad   : > { %v5013_v35 = vrot.slane %v5012_v34, 4  ;;  %v5026_v44 = vor.u32 %v5025_v61, %v5022_v11  ;;  %v7424_v38 = vrot.slane %v13955_v46, 5  ;;  %v7427_v7 = vrot.slane %v13968_v39, 5  ;;  %v13980_v14 = vld [vmem:[%s12392_s10 + $0x9c] sm:$0xf] }
 0x1ae   : > { %v5008_v41 = vsel %vm12451_vm7, %v5003_v8, %v5007_v55  ;;  %v5036_v54 = vor.u32 %v5035_v33, %v5031_v36  ;;  %v10676_v45 = vrot.slane %v10659_v22, 9  ;;  %v7431_v15 = vrot.slane %v13963_v59, 5  ;;  %15713 = vst [vmem:[#allocation11_spill] sm:$0xff] %v13980_v14  ;;  %v13987_v11 = vld [vmem:[%s12392_s10 + $0xa0] sm:$0xf] }
 0x1af   : > { %v5018_v16 = vsel %vm12451_vm7, %v5013_v35, %v5017_v25  ;;  %v5027_v62 = vrot.slane %v5026_v44, 4  ;;  %v7425_v9 = vsel %vm12412_vm6, %v10675_v57, %v7424_v38  ;;  %v7426_v34 = vrot.slane %v7424_v38, 4  ;;  %15714 = vst [vmem:[#allocation10_spill] sm:$0xff] %v13987_v11  ;;  %v10350_v35 = vld [vmem:[%s12392_s10 + $0xa4] sm:$0x1] }
 0x1b0   : > { %v10365_v55 = vcombine.low %v5008_v41, %v5018_v16  ;;  %v5037_v61 = vrot.slane %v5036_v54, 4  ;;  %v7432_v22 = vsel %vm12412_vm6, %v10676_v45, %v7431_v15  ;;  %v7433_v8 = vrot.slane %v7431_v15, 4  ;;  %v14004_v45 = vld [vmem:[%s12392_s10 + $0xa8] sm:$0xf]  ;;  %v14007_v15 = vld [vmem:[%s12392_s10 + $0xac] sm:$0xf] }
 0x1b1   : > { %v5032_v33 = vsel %vm12451_vm7, %v5027_v62, %v5031_v36  ;;  %v7428_v25 = vsel %vm12412_vm6, %v7426_v34, %v7427_v7  ;;  %v7434_v57 = vrot.slane %v13976_v52, 5  ;;  %v5044_v44 = vshrl.u32 %v13980_v14, 16  ;;  %15715 = vst [vmem:[#allocation13_spill] sm:$0xff] %v14004_v45  ;;  %v10661_v52 = vld [vmem:[%s12392_s10 + $0xc0] sm:$0xe] }
 0x1b2   : > { %11493 = vmatprep.mubr.msk.bf16.mxu0 %vm652_vm1, %v10365_v55  ;;  %v5042_v38 = vsel %vm12451_vm7, %v5037_v61, %v5041_v31  ;;  %v10691_v41 = vcombine.low %v7425_v9, %v7428_v25  ;;  %v5047_v54 = vshll.u32 %v13980_v14, 16  ;;  %v5053_v36 = vshll.u32 %v13987_v11, 16  ;;  %v10351_v31 = vld [vmem:[%s12392_s10 + $0xb0] sm:$0x1]  ;;  %v14015_v14 = vld [vmem:[%s12392_s10 + $0xb8] sm:$0xf] }
 0x1b3   : > { %v10366_v7 = vcombine.low %v5032_v33, %v5042_v38  ;;  %v7435_v16 = vsel %vm12412_vm6, %v7433_v8, %v7434_v57  ;;  %v5046_v62 = vrot.slane %v5044_v44, 4  ;;  %v5057_v34 = vshrl.u32 %v13987_v11, 16  ;;  %15716 = vst [vmem:[#allocation12_spill] sm:$0xff] %v14015_v14  ;;  %v10660_v38 = vld [vmem:[%s12392_s10 + $0xb4] sm:$0xe] }
 0x1b4   : > { %11633 = vmatprep.mubr.msk.bf16.mxu1 %vm652_vm1, %v10691_v41  ;;  %v10692_v9 = vcombine.low %v7432_v22, %v7435_v16  ;;  %v5049_v55 = vrot.slane %v5047_v54, 5  ;;  %v5055_v61 = vrot.slane %v5053_v36, 5  ;;  %v5063_v25 = vshll.u32 %v10350_v35, 16  ;;  %v14023_v11 = vld [vmem:[%s12392_s10 + $0xc4] sm:$0xf] }
 0x1b5   : > { %11494 = vmatmul.mubr.msk.bf16.gmra.mrb[52].mxu0 %vm652_vm1, %v10366_v7  ;;  %v5059_v33 = vrot.slane %v5057_v34, 4  ;;  %v5068_v8 = vshrl.u32 %v14004_v45, 16  ;;  %v5071_v57 = vshll.u32 %v14004_v45, 16  ;;  %v5077_v44 = vshll.u32 %v14007_v15, 16  ;;  %15717 = vst [vmem:[#allocation14_spill] sm:$0xff] %v14023_v11 }
 0x1b6   : > { %11634 = vmatmul.mubr.msk.bf16.gmra.mrb[56].mxu1 %vm652_vm1, %v10692_v9  ;;  %v5050_v22 = vor.u32 %v5049_v55, %v5046_v62  ;;  %v5065_v41 = vrot.slane %v5063_v25, 5  ;;  %v5081_v35 = vshrl.u32 %v14007_v15, 16  ;;  %v5087_v54 = vshll.u32 %v10351_v31, 16  ;;  %v14028_v36 = vld [vmem:[%s12392_s10 + $0xbc] sm:$0x1] }
 0x1b7   : > { %15718 = vst [vmem:[#allocation15_spill] sm:$0xff] %v14028_v36  ;;  %v5060_v7 = vor.u32 %v5059_v33, %v5055_v61  ;;  %v5070_v16 = vrot.slane %v5068_v8, 4  ;;  %v5073_v34 = vrot.slane %v5071_v57, 5  ;;  %v5079_v45 = vrot.slane %v5077_v44, 5  ;;  %v14036_v8 = vld [vmem:[%s12392_s10 + $0xc8] sm:$0x1] }
 0x1b8   : > { %v5051_v59 = vrot.slane %v5050_v22, 4  ;;  %v5083_v39 = vrot.slane %v5081_v35, 4  ;;  %v5089_v46 = vrot.slane %v5087_v54, 5  ;;  %v10677_v10 = vrot.slane %v10660_v38, 9  ;;  %15719 = vst [vmem:[#allocation16_spill] sm:$0xff] %v14036_v8 }
 0x1b9   : > { %v5061_v9 = vrot.slane %v5060_v7, 4  ;;  %v5074_v62 = vor.u32 %v5073_v34, %v5070_v16  ;;  %v7438_v55 = vrot.slane %v14015_v14, 5  ;;  %v7441_v31 = vrot.slane %v14028_v36, 5  ;;  %v14040_v22 = vld [vmem:[%s12392_s10 + $0xb4] sm:$0xf] }
 0x1ba   : > { %v5056_v25 = vsel %vm12451_vm7, %v5051_v59, %v5055_v61  ;;  %v5084_v33 = vor.u32 %v5083_v39, %v5079_v45  ;;  %v10678_v57 = vrot.slane %v10661_v52, 9  ;;  %v7445_v44 = vrot.slane %v14023_v11, 5  ;;  %15720 = vst [vmem:[#allocation17_spill] sm:$0xff] %v14040_v22  ;;  %v14047_v16 = vld [vmem:[%s12392_s10 + $0xb8] sm:$0xf] }
 0x1bb   : > { %v5066_v38 = vsel %vm12451_vm7, %v5061_v9, %v5065_v41  ;;  %v5075_v35 = vrot.slane %v5074_v62, 4  ;;  %v7439_v54 = vsel %vm12412_vm6, %v10677_v10, %v7438_v55  ;;  %v7440_v7 = vrot.slane %v7438_v55, 4  ;;  %15721 = vst [vmem:[#allocation19_spill] sm:$0xff] %v14047_v16  ;;  %v10352_v9 = vld [vmem:[%s12392_s10 + $0xbc] sm:$0x1] }
 0x1bc   : > { %v10367_v59 = vcombine.low %v5056_v25, %v5066_v38  ;;  %v5085_v39 = vrot.slane %v5084_v33, 4  ;;  %v7446_v52 = vsel %vm12412_vm6, %v10678_v57, %v7445_v44  ;;  %v7447_v61 = vrot.slane %v7445_v44, 4  ;;  %v14067_v44 = vld [vmem:[%s12392_s10 + $0xc4] sm:$0xf] }
 0x1bd   : > { %v5080_v34 = vsel %vm12451_vm7, %v5075_v35, %v5079_v45  ;;  %v7442_v41 = vsel %vm12412_vm6, %v7440_v7, %v7441_v31  ;;  %v7448_v10 = vrot.slane %v14036_v8, 5  ;;  %v5092_v62 = vshrl.u32 %v14040_v22, 16  ;;  %v14064_v45 = vld [vmem:[%s12392_s10 + $0xc0] sm:$0xf] }
 0x1be   : > { %11497 = vmatprep.mubr.msk.bf16.mxu0 %vm652_vm1, %v10367_v59  ;;  %v5090_v55 = vsel %vm12451_vm7, %v5085_v39, %v5089_v46  ;;  %v10693_v25 = vcombine.low %v7439_v54, %v7442_v41  ;;  %v5095_v33 = vshll.u32 %v14040_v22, 16  ;;  %v5101_v57 = vshll.u32 %v14047_v16, 16  ;;  %15722 = vst [vmem:[#allocation18_spill] sm:$0xff] %v14064_v45  ;;  %v10353_v59 = vld [vmem:[%s12392_s10 + $0xc8] sm:$0x1] }
 0x1bf   : > { %v10368_v31 = vcombine.low %v5080_v34, %v5090_v55  ;;  %v7449_v38 = vsel %vm12412_vm6, %v7447_v61, %v7448_v10  ;;  %v5094_v35 = vrot.slane %v5092_v62, 4  ;;  %v5105_v7 = vshrl.u32 %v14047_v16, 16  ;;  %v10597_v61 = vld [vmem:[%s12392_s10 + $0xc] sm:$0xf] }
 0x1c0   : > { %11637 = vmatprep.mubr.msk.bf16.mxu1 %vm652_vm1, %v10693_v25  ;;  %v10694_v46 = vcombine.low %v7446_v52, %v7449_v38  ;;  %v5097_v54 = vrot.slane %v5095_v33, 5  ;;  %v5103_v39 = vrot.slane %v5101_v57, 5  ;;  %v5111_v41 = vshll.u32 %v10352_v9, 16 }
 0x1c1   : > { %11498 = vmatmul.mubr.msk.bf16.gmra.mrb[56].mxu0 %vm652_vm1, %v10368_v31  ;;  %v5107_v22 = vrot.slane %v5105_v7, 4  ;;  %v5116_v8 = vshrl.u32 %v14064_v45, 16  ;;  %v5119_v34 = vshll.u32 %v14064_v45, 16  ;;  %v5125_v55 = vshll.u32 %v14067_v44, 16 }
 0x1c2   : > { %11638 = vmatmul.mubr.msk.bf16.gmra.mrb[60].mxu1 %vm652_vm1, %v10694_v46  ;;  %v5098_v10 = vor.u32 %v5097_v54, %v5094_v35  ;;  %v5113_v62 = vrot.slane %v5111_v41, 5  ;;  %v5129_v52 = vshrl.u32 %v14067_v44, 16  ;;  %v5135_v25 = vshll.u32 %v10353_v59, 16  ;;  %v12242_v46 = vld [vmem:[%s12392_s10 + $0x10] sm:$0xf] }
 0x1c3   : > { %v5108_v33 = vor.u32 %v5107_v22, %v5103_v39  ;;  %v5118_v9 = vrot.slane %v5116_v8, 4  ;;  %v5121_v57 = vrot.slane %v5119_v34, 5  ;;  %v5127_v31 = vrot.slane %v5125_v55, 5  ;;  %v10600_v8 = vld [vmem:[%s12392_s10 + $0x18] sm:$0xf] }
 0x1c4   : > { %v5099_v38 = vrot.slane %v5098_v10, 4  ;;  %v5131_v7 = vrot.slane %v5129_v52, 4  ;;  %v5137_v17 = vrot.slane %v5135_v25, 5  ;;  %v6890_v45 = vshrl.u32 %v10597_v61, 16 }
 0x1c5   : > { %v5109_v16 = vrot.slane %v5108_v33, 4  ;;  %v5122_v11 = vor.u32 %v5121_v57, %v5118_v9  ;;  %v6893_v36 = vshll.u32 %v10597_v61, 16  ;;  %v6899_v14 = vshll.u32 %v12242_v46, 16  ;;  %v12243_v61 = vld [vmem:[%s12392_s10 + $0x14] sm:$0x1] }
 0x1c6   : > { %v5104_v35 = vsel %vm12451_vm7, %v5099_v38, %v5103_v39  ;;  %v5132_v54 = vor.u32 %v5131_v7, %v5127_v31  ;;  %v6892_v59 = vrot.slane %v6890_v45, 4  ;;  %v6903_v22 = vshrl.u32 %v12242_v46, 16 }
 0x1c7   : > { %v5114_v41 = vsel %vm12451_vm7, %v5109_v16, %v5113_v62  ;;  %v5123_v34 = vrot.slane %v5122_v11, 4  ;;  %v6895_v55 = vrot.slane %v6893_v36, 5  ;;  %v6901_v10 = vrot.slane %v6899_v14, 5  ;;  %v12244_v16 = vld [vmem:[%s12392_s10 + $0x1c] sm:$0xf] }
 0x1c8   : > { %v10369_v52 = vcombine.low %v5104_v35, %v5114_v41  ;;  %v5133_v25 = vrot.slane %v5132_v54, 4  ;;  %v6905_v33 = vrot.slane %v6903_v22, 4  ;;  %v6909_v9 = vshll.u32 %v12243_v61, 16  ;;  %v12248_v61 = vld [vmem:[%s12392_s10 + $0x18] sm:$0xf] }
 0x1c9   : > { %v5128_v57 = vsel %vm12451_vm7, %v5123_v34, %v5127_v31  ;;  %v6896_v39 = vor.u32 %v6895_v55, %v6892_v59  ;;  %v6914_v45 = vshrl.u32 %v10600_v8, 16  ;;  %v6917_v38 = vshll.u32 %v10600_v8, 16  ;;  %v12245_v8 = vld [vmem:[%s12392_s10 + $0x20] sm:$0x1]  ;;  %v10603_v34 = vld [vmem:[%s12392_s10 + $0x24] sm:$0xf] }
 0x1ca   : > { %11501 = vmatprep.mubr.msk.bf16.mxu0 %vm652_vm1, %v10369_v52  ;;  %v5138_v11 = vsel %vm12451_vm7, %v5133_v25, %v5137_v17  ;;  %v6906_v36 = vor.u32 %v6905_v33, %v6901_v10  ;;  %v6911_v14 = vrot.slane %v6909_v9, 5  ;;  %v6923_v62 = vshll.u32 %v12244_v16, 16  ;;  %v12246_v52 = vld [vmem:[%s12392_s10 + $0xc] sm:$0xf]  ;;  %v12247_v25 = vld [vmem:[%s12392_s10 + $0x10] sm:$0xf] }
 0x1cb   : > { %v10370_v7 = vcombine.low %v5128_v57, %v5138_v11  ;;  %v6897_v46 = vrot.slane %v6896_v39, 4  ;;  %v6916_v31 = vrot.slane %v6914_v45, 4  ;;  %v6919_v35 = vrot.slane %v6917_v38, 5  ;;  %v12249_v9 = vld [vmem:[%s12392_s10 + $0x1c] sm:$0xf] }
 0x1cc   : > { %v6907_v54 = vrot.slane %v6906_v36, 4  ;;  %v6925_v59 = vrot.slane %v6923_v62, 5  ;;  %v6927_v22 = vshrl.u32 %v12244_v16, 16  ;;  %v6933_v41 = vshll.u32 %v12245_v8, 16  ;;  %v10606_v36 = vld [vmem:[%s12392_s10 + $0x30] sm:$0xf] }
 0x1cd   : > { %11502 = vmatmul.mubr.msk.bf16.gmra.mrb[60].mxu0 %vm652_vm1, %v10370_v7  ;;  %v6902_v17 = vsel %vm12451_vm7, %v6897_v46, %v6901_v10  ;;  %v6920_v55 = vor.u32 %v6919_v35, %v6916_v31  ;;  %v10387_v33 = vcombine.low %v12246_v52, %v12247_v25  ;;  %v10388_v57 = vcombine.low %v12248_v61, %v12249_v9  ;;  %v12250_v35 = vld [vmem:[%s12392_s10 + $0x28] sm:$0xf]  ;;  %v12251_v8 = vld [vmem:[%s12392_s10 + $0x2c] sm:$0x1]  ;;  %v12252_v9 = vld [vmem:[%s12392_s10 + $0x34] sm:$0xf] }
 0x1ce   : > { %v6912_v39 = vsel %vm12451_vm7, %v6907_v54, %v6911_v14  ;;  %v6929_v45 = vrot.slane %v6927_v22, 4  ;;  %v6935_v38 = vrot.slane %v6933_v41, 5  ;;  %v5854_v11 = vsel %vm701_vm0, %v13711_v37, 0 }
 0x1cf   : > { %v10711_v16 = vcombine.low %v6902_v17, %v6912_v39  ;;  %v6921_v10 = vrot.slane %v6920_v55, 4  ;;  %11507 = vmatprep.mubr.msk.bf16.mxu0 %vm652_vm1, %v10387_v33  ;;  %v8500_v62 = vsel %vm701_vm0, %v13668_v42, 0  ;;  %v6938_v7 = vshrl.u32 %v10603_v34, 16 }
 0x1d0   : > { %v6930_v46 = vor.u32 %v6929_v45, %v6925_v59  ;;  %v6941_v31 = vshll.u32 %v10603_v34, 16  ;;  %v6947_v14 = vshll.u32 %v12250_v35, 16  ;;  %v6951_v54 = vshrl.u32 %v12250_v35, 16 }
 0x1d1   : > { %11643 = vmatprep.mubr.msk.bf16.mxu1 %vm652_vm1, %v10711_v16  ;;  %v6926_v37 = vsel %vm12451_vm7, %v6921_v10, %v6925_v59  ;;  %v6940_v22 = vrot.slane %v6938_v7, 4  ;;  %v6957_v41 = vshll.u32 %v12251_v8, 16  ;;  %v6962_v17 = vshrl.u32 %v10606_v36, 16  ;;  %v10609_v7 = vld [vmem:[%s12392_s10 + $0x3c] sm:$0xf] }
 0x1d2   : > { %v6931_v55 = vrot.slane %v6930_v46, 4  ;;  %v6943_v52 = vrot.slane %v6941_v31, 5  ;;  %v6949_v42 = vrot.slane %v6947_v14, 5  ;;  %v6953_v25 = vrot.slane %v6951_v54, 4  ;;  %v14123_v46 = vld [vmem:[%s15600_s1 + $0x2c] sm:$0xf] }
 0x1d3   : > { %v6959_v34 = vrot.slane %v6957_v41, 5  ;;  %v6964_v33 = vrot.slane %v6962_v17, 4  ;;  %v6965_v61 = vshll.u32 %v10606_v36, 16  ;;  %v6971_v39 = vshll.u32 %v12252_v9, 16  ;;  %v12253_v14 = vld [vmem:[%s12392_s10 + $0x38] sm:$0x1] }
 0x1d4   : > { %v6936_v45 = vsel %vm12451_vm7, %v6931_v55, %v6935_v38  ;;  %v6944_v59 = vor.u32 %v6943_v52, %v6940_v22  ;;  %v6954_v16 = vor.u32 %v6953_v25, %v6949_v42  ;;  %v6975_v10 = vshrl.u32 %v12252_v9, 16  ;;  %v12254_v41 = vld [vmem:[%s12392_s10 + $0x24] sm:$0xf]  ;;  %v12255_v17 = vld [vmem:[%s12392_s10 + $0x28] sm:$0xf] }
 0x1d5   : > { %v10712_v31 = vcombine.low %v6926_v37, %v6936_v45  ;;  %11508 = vmatmul.mubr.msk.bf16.vlgmr.msra.gmra.mrb[32].mxu0 %vm652_vm1, %v10388_v57  ;;  %v6967_v36 = vrot.slane %v6965_v61, 5  ;;  %v6973_v35 = vrot.slane %v6971_v39, 5  ;;  %v6981_v54 = vshll.u32 %v12253_v14, 16  ;;  %v14132_v52 = vld [vmem:[%s15600_s1 + $0x3c] sm:$0xf] }
 0x1d6   : > { %11540 = vmatpush3.bf16.msra.mxu0 %v5854_v11  ;;  %v6945_v38 = vrot.slane %v6944_v59, 4  ;;  %v6955_v8 = vrot.slane %v6954_v16, 4  ;;  %v6977_v22 = vrot.slane %v6975_v10, 4  ;;  %v10389_v55 = vcombine.low %v12254_v41, %v12255_v17 }
 0x1d7   : > { %11644 = vmatmul.mubr.msk.bf16.vlgmr.msra.gmra.mrb[32].mxu1 %vm652_vm1, %v10712_v31  ;;  %v6968_v57 = vor.u32 %v6967_v36, %v6964_v33  ;;  %v6983_v37 = vrot.slane %v6981_v54, 5  ;;  %v10390_v25 = vcombine.low %v13694_v6, %v13701_v40  ;;  %v6986_v11 = vshrl.u32 %v10609_v7, 16  ;;  %12138 = vmatprep.subr.msk.bf16.mxu0 %vm701_vm0, %v14123_v46  ;;  %v10612_v33 = vld [vmem:[%s12392_s10 + $0x48] sm:$0xf] }
 0x1d8   : > { %11676 = vmatpush3.bf16.msra.mxu1 %v8500_v62  ;;  %v6950_v61 = vsel %vm12451_vm7, %v6945_v38, %v6949_v42  ;;  %v6960_v9 = vsel %vm12451_vm7, %v6955_v8, %v6959_v34  ;;  %v6978_v39 = vor.u32 %v6977_v22, %v6973_v35  ;;  %11511 = vmatprep.mubr.msk.bf16.mxu0 %vm652_vm1, %v10389_v55  ;;  %v6989_v45 = vshll.u32 %v10609_v7, 16 }
 0x1d9   : > { %v10713_v59 = vcombine.low %v6950_v61, %v6960_v9  ;;  %v6969_v16 = vrot.slane %v6968_v57, 4  ;;  %v6988_v10 = vrot.slane %v6986_v11, 4  ;;  %v6995_v6 = vshll.u32 %v13717_v19, 16  ;;  %12142 = vmatprep.subr.msk.bf16.mxu1 %vm701_vm0, %v14132_v52  ;;  %v10615_v9 = vld [vmem:[%s12392_s10 + $0x54] sm:$0xf] }
 0x1da   : > { %v6979_v40 = vrot.slane %v6978_v39, 4  ;;  %v6991_v62 = vrot.slane %v6989_v45, 5  ;;  %v6999_v42 = vshrl.u32 %v13717_v19, 16  ;;  %v7005_v31 = vshll.u32 %v13722_v1, 16 }
 0x1db   : > { %11647 = vmatprep.mubr.msk.bf16.mxu1 %vm652_vm1, %v10713_v59  ;;  %v6974_v34 = vsel %vm12451_vm7, %v6969_v16, %v6973_v35  ;;  %v6997_v7 = vrot.slane %v6995_v6, 5  ;;  %v7010_v36 = vshrl.u32 %v10612_v33, 16  ;;  %v7013_v14 = vshll.u32 %v10612_v33, 16  ;;  %v12256_v35 = vld [vmem:[%s12392_s10 + $0x4c] sm:$0xf] }
 0x1dc   : > { %v6984_v54 = vsel %vm12451_vm7, %v6979_v40, %v6983_v37  ;;  %v6992_v38 = vor.u32 %v6991_v62, %v6988_v10  ;;  %v7001_v8 = vrot.slane %v6999_v42, 4  ;;  %v7007_v22 = vrot.slane %v7005_v31, 5 }
 0x1dd   : > { %v10714_v41 = vcombine.low %v6974_v34, %v6984_v54  ;;  %11512 = vmatmul.mubr.msk.bf16.gmra.mrb[36].mxu0 %vm652_vm1, %v10390_v25  ;;  %v7012_v19 = vrot.slane %v7010_v36, 4  ;;  %v7015_v1 = vrot.slane %v7013_v14, 5  ;;  %v7019_v17 = vshll.u32 %v13725_v21, 16 }
 0x1de   : > { %v6993_v55 = vrot.slane %v6992_v38, 4  ;;  %v7002_v57 = vor.u32 %v7001_v8, %v6997_v7  ;;  %v7023_v11 = vshrl.u32 %v12256_v35, 16  ;;  %v7029_v61 = vshll.u32 %v13729_v27, 16 }
 0x1df   : > { %11648 = vmatmul.mubr.msk.bf16.gmra.mrb[36].mxu1 %vm652_vm1, %v10714_v41  ;;  %v7016_v37 = vor.u32 %v7015_v1, %v7012_v19  ;;  %v7021_v39 = vrot.slane %v7019_v17, 5  ;;  %v10391_v45 = vcombine.low %v13739_v23, %v13750_v26  ;;  %v10392_v25 = vcombine.low %v13759_v30, %v13765_v20  ;;  %v10618_v20 = vld [vmem:[%s12392_s10 + $0x60] sm:$0xf] }
 0x1e0   : > { %v6998_v21 = vsel %vm12451_vm7, %v6993_v55, %v6997_v7  ;;  %v7003_v33 = vrot.slane %v7002_v57, 4  ;;  %v7025_v59 = vrot.slane %v7023_v11, 4  ;;  %v7031_v16 = vrot.slane %v7029_v61, 5  ;;  %v10621_v61 = vld [vmem:[%s12392_s10 + $0x6c] sm:$0xf] }
 0x1e1   : > { %v7017_v10 = vrot.slane %v7016_v37, 4  ;;  %11515 = vmatprep.mubr.msk.bf16.mxu0 %vm652_vm1, %v10391_v45  ;;  %v7034_v27 = vshrl.u32 %v10615_v9, 16  ;;  %v7037_v6 = vshll.u32 %v10615_v9, 16  ;;  %v7043_v40 = vshll.u32 %v13779_v18, 16 }
 0x1e2   : > { %v7008_v62 = vsel %vm12451_vm7, %v7003_v33, %v7007_v22  ;;  %v7026_v23 = vor.u32 %v7025_v59, %v7021_v39  ;;  %v7047_v26 = vshrl.u32 %v13779_v18, 16  ;;  %v7053_v30 = vshll.u32 %v13783_v0, 16 }
 0x1e3   : > { %v10715_v42 = vcombine.low %v6998_v21, %v7008_v62  ;;  %v7022_v31 = vsel %vm12451_vm7, %v7017_v10, %v7021_v39  ;;  %v7036_v34 = vrot.slane %v7034_v27, 4  ;;  %v7039_v7 = vrot.slane %v7037_v6, 5  ;;  %v10624_v62 = vld [vmem:[%s12392_s10 + $0x78] sm:$0xf] }
 0x1e4   : > { %v7027_v36 = vrot.slane %v7026_v23, 4  ;;  %v7045_v14 = vrot.slane %v7043_v40, 5  ;;  %v7049_v54 = vrot.slane %v7047_v26, 4  ;;  %v7055_v38 = vrot.slane %v7053_v30, 5 }
 0x1e5   : > { %11651 = vmatprep.mubr.msk.bf16.mxu1 %vm652_vm1, %v10715_v42  ;;  %11516 = vmatmul.mubr.msk.bf16.gmra.mrb[40].mxu0 %vm652_vm1, %v10392_v25  ;;  %v7040_v8 = vor.u32 %v7039_v7, %v7036_v34  ;;  %v7058_v18 = vshrl.u32 %v10618_v20, 16  ;;  %v7061_v22 = vshll.u32 %v10618_v20, 16  ;;  %v7067_v0 = vshll.u32 %v13788_v4, 16 }
 0x1e6   : > { %v7032_v41 = vsel %vm12451_vm7, %v7027_v36, %v7031_v16  ;;  %v7050_v19 = vor.u32 %v7049_v54, %v7045_v14  ;;  %v7071_v1 = vshrl.u32 %v13788_v4, 16  ;;  %v7077_v17 = vshll.u32 %v13794_v29, 16 }
 0x1e7   : > { %v10716_v55 = vcombine.low %v7022_v31, %v7032_v41  ;;  %v7041_v57 = vrot.slane %v7040_v8, 4  ;;  %v7060_v35 = vrot.slane %v7058_v18, 4  ;;  %v7063_v11 = vrot.slane %v7061_v22, 5  ;;  %v14184_v9 = vpop.f32.mrb[0].mxu1 }
 0x1e8   : > { %v7051_v37 = vrot.slane %v7050_v19, 4  ;;  %v7069_v39 = vrot.slane %v7067_v0, 5  ;;  %v7073_v45 = vrot.slane %v7071_v1, 4  ;;  %v7079_v25 = vrot.slane %v7077_v17, 5  ;;  %v14186_v21 = vpop.f32.mrb[1].mxu1 }
 0x1e9   : > { %11652 = vmatmul.mubr.msk.bf16.gmra.mrb[40].mxu1 %vm652_vm1, %v10716_v55  ;;  %v7046_v4 = vsel %vm12451_vm7, %v7041_v57, %v7045_v14  ;;  %v7064_v29 = vor.u32 %v7063_v11, %v7060_v35  ;;  %v10393_v33 = vcombine.low %v13804_v48, %v13807_v50  ;;  %v10394_v59 = vcombine.low %v13816_v32, %v13831_v43  ;;  %v14195_v16 = vpop.f32.mrb[2].mxu1  ;;  %v10627_v17 = vld [vmem:[%s12392_s10 + $0x84] sm:$0xf] }
 0x1ea   : > { %v7056_v10 = vsel %vm12451_vm7, %v7051_v37, %v7055_v38  ;;  %v7074_v27 = vor.u32 %v7073_v45, %v7069_v39  ;;  %v7082_v6 = vshrl.u32 %v10621_v61, 16  ;;  %v7085_v40 = vshll.u32 %v10621_v61, 16  ;;  %v14200_v23 = vpop.f32.mrb[3].mxu1 }
 0x1eb   : > { %v10717_v26 = vcombine.low %v7046_v4, %v7056_v10  ;;  %v7065_v30 = vrot.slane %v7064_v29, 4  ;;  %11519 = vmatprep.mubr.msk.bf16.mxu0 %vm652_vm1, %v10393_v33  ;;  %v7091_v48 = vshll.u32 %v13836_v13, 16  ;;  %v7095_v50 = vshrl.u32 %v13836_v13, 16  ;;  %v14205_v32 = vpop.f32.mrb[0].mxu0 }
 0x1ec   : > { %v7075_v43 = vrot.slane %v7074_v27, 4  ;;  %v7084_v20 = vrot.slane %v7082_v6, 4  ;;  %v7087_v42 = vrot.slane %v7085_v40, 5  ;;  %v7101_v31 = vshll.u32 %v13845_v49, 16  ;;  %v14208_v34 = vpop.f32.mrb[1].mxu0 }
 0x1ed   : > { %11655 = vmatprep.mubr.msk.bf16.mxu1 %vm652_vm1, %v10717_v26  ;;  %v7070_v7 = vsel %vm12451_vm7, %v7065_v30, %v7069_v39  ;;  %11520 = vmatmul.mubr.msk.bf16.gmra.mrb[44].mxu0 %vm652_vm1, %v10394_v59  ;;  %v7093_v36 = vrot.slane %v7091_v48, 5  ;;  %v7097_v14 = vrot.slane %v7095_v50, 4  ;;  %v7106_v13 = vshrl.u32 %v10624_v62, 16  ;;  %v14214_v54 = vpop.f32.mrb[2].mxu0 }
 0x1ee   : > { %v7080_v38 = vsel %vm12451_vm7, %v7075_v43, %v7079_v25  ;;  %v7088_v8 = vor.u32 %v7087_v42, %v7084_v20  ;;  %v7103_v49 = vrot.slane %v7101_v31, 5  ;;  %v7109_v18 = vshll.u32 %v10624_v62, 16  ;;  %v14218_v22 = vpop.f32.mrb[3].mxu0 }
 0x1ef   : > { %v10718_v0 = vcombine.low %v7070_v7, %v7080_v38  ;;  %v7098_v41 = vor.u32 %v7097_v14, %v7093_v36  ;;  %v7108_v19 = vrot.slane %v7106_v13, 4  ;;  %v7115_v1 = vshll.u32 %v13848_v53, 16  ;;  %v14222_v55 = vpop.f32.mrb[4].mxu1 }
 0x1f0   : > { %v7089_v57 = vrot.slane %v7088_v8, 4  ;;  %v7111_v35 = vrot.slane %v7109_v18, 5  ;;  %v7119_v11 = vshrl.u32 %v13848_v53, 16  ;;  %v7125_v61 = vshll.u32 %v13852_v5, 16  ;;  %v14226_v37 = vpop.f32.mrb[5].mxu1 }
 0x1f1   : > { %11656 = vmatmul.mubr.msk.bf16.gmra.mrb[44].mxu1 %vm652_vm1, %v10718_v0  ;;  %v7099_v39 = vrot.slane %v7098_v41, 4  ;;  %v7117_v45 = vrot.slane %v7115_v1, 5  ;;  %v10395_v25 = vcombine.low %v13861_v12, %v13868_v51  ;;  %v10396_v4 = vcombine.low %v13884_v58, %v13887_v28  ;;  %v14233_v29 = vpop.f32.mrb[6].mxu1  ;;  %v10630_v58 = vld [vmem:[%s12392_s10 + $0x90] sm:$0xf] }
 0x1f2   : > { %v7094_v53 = vsel %vm12451_vm7, %v7089_v57, %v7093_v36  ;;  %v7112_v33 = vor.u32 %v7111_v35, %v7108_v19  ;;  %v7121_v5 = vrot.slane %v7119_v11, 4  ;;  %v7127_v59 = vrot.slane %v7125_v61, 5  ;;  %v14237_v10 = vpop.f32.mrb[7].mxu1  ;;  %v10633_v0 = vld [vmem:[%s12392_s10 + $0x9c] sm:$0xf] }
 0x1f3   : > { %v7104_v27 = vsel %vm12451_vm7, %v7099_v39, %v7103_v49  ;;  %11523 = vmatprep.mubr.msk.bf16.mxu0 %vm652_vm1, %v10395_v25  ;;  %v7130_v6 = vshrl.u32 %v10627_v17, 16  ;;  %v7133_v12 = vshll.u32 %v10627_v17, 16  ;;  %v7139_v51 = vshll.u32 %v13895_v56, 16 }
 0x1f4   : > { %v10719_v28 = vcombine.low %v7094_v53, %v7104_v27  ;;  %v7113_v40 = vrot.slane %v7112_v33, 4  ;;  %v7122_v62 = vor.u32 %v7121_v5, %v7117_v45  ;;  %v7143_v26 = vshrl.u32 %v13895_v56, 16  ;;  %v15723_v5 = vld [vmem:[#allocation4_spill] sm:$0xff] }
 0x1f5   : > { %11524 = vmatmul.mubr.msk.bf16.gmra.mrb[48].mxu0 %vm652_vm1, %v10396_v4  ;;  %v7132_v30 = vrot.slane %v7130_v6, 4  ;;  %v7135_v48 = vrot.slane %v7133_v12, 5  ;;  %v7141_v50 = vrot.slane %v7139_v51, 5  ;;  %v7149_v43 = vshll.u32 %v13908_v63, 16 }
 0x1f6   : > { %11659 = vmatprep.mubr.msk.bf16.mxu1 %vm652_vm1, %v10719_v28  ;;  %v7118_v20 = vsel %vm12451_vm7, %v7113_v40, %v7117_v45  ;;  %v7123_v42 = vrot.slane %v7122_v62, 4  ;;  %v7145_v31 = vrot.slane %v7143_v26, 4  ;;  %v7154_v7 = vshrl.u32 %v10630_v58, 16 }
 0x1f7   : > { %v7136_v36 = vor.u32 %v7135_v48, %v7132_v30  ;;  %v7151_v14 = vrot.slane %v7149_v43, 5  ;;  %v7157_v13 = vshll.u32 %v10630_v58, 16  ;;  %v7163_v56 = vshll.u32 %v13903_v2, 16  ;;  %v14251_v38 = vpop.f32.mrb[4].mxu0  ;;  %v10636_v58 = vld [vmem:[%s12392_s10 + $0xa8] sm:$0xf] }
 0x1f8   : > { %v7128_v8 = vsel %vm12451_vm7, %v7123_v42, %v7127_v59  ;;  %v7146_v49 = vor.u32 %v7145_v31, %v7141_v50  ;;  %v7156_v63 = vrot.slane %v7154_v7, 4  ;;  %v7167_v18 = vshrl.u32 %v13903_v2, 16  ;;  %v14257_v41 = vpop.f32.mrb[5].mxu0  ;;  %v15724_v59 = vld [vmem:[#allocation5_spill] sm:$0xff]  ;;  %v15725_v30 = vld [vmem:[#allocation6_spill] sm:$0xff]  ;;  %v15726_v42 = vld [vmem:[#allocation8_spill] sm:$0xff] }
 0x1f9   : > { %v10720_v19 = vcombine.low %v7118_v20, %v7128_v8  ;;  %v7137_v1 = vrot.slane %v7136_v36, 4  ;;  %v7159_v17 = vrot.slane %v7157_v13, 5  ;;  %v7165_v57 = vrot.slane %v7163_v56, 5  ;;  %v14259_v35 = vpop.f32.mrb[6].mxu0  ;;  %v14261_v11 = vpop.f32.mrb[8].mxu1 }
 0x1fa   : > { %v7147_v61 = vrot.slane %v7146_v49, 4  ;;  %v7169_v39 = vrot.slane %v7167_v18, 4  ;;  %v7173_v45 = vshll.u32 %v13916_v60, 16  ;;  %v10397_v25 = vcombine.low %v13920_v24, %v13927_v47  ;;  %v14266_v2 = vpop.f32.mrb[7].mxu0  ;;  %v14268_v4 = vpop.f32.mrb[9].mxu1 }
 0x1fb   : > { %11660 = vmatmul.mubr.msk.bf16.gmra.mrb[48].mxu1 %vm652_vm1, %v10720_v19  ;;  %v7142_v53 = vsel %vm12451_vm7, %v7137_v1, %v7141_v50  ;;  %v7160_v33 = vor.u32 %v7159_v17, %v7156_v63  ;;  %v10398_v27 = vcombine.low %v15724_v59, %v15723_v5  ;;  %v7178_v6 = vshrl.u32 %v10633_v0, 16  ;;  %v14275_v12 = vpop.f32.mrb[10].mxu1  ;;  %v15727_v1 = vld [vmem:[#allocation7_spill] sm:$0xff]  ;;  %v15729_v59 = vld [vmem:[#allocation10_spill] sm:$0xff] }
 0x1fc   : > { %v7152_v60 = vsel %vm12451_vm7, %v7147_v61, %v7151_v14  ;;  %v7170_v24 = vor.u32 %v7169_v39, %v7165_v57  ;;  %v7175_v47 = vrot.slane %v7173_v45, 5  ;;  %11527 = vmatprep.mubr.msk.bf16.mxu0 %vm652_vm1, %v10397_v25  ;;  %v7181_v51 = vshll.u32 %v10633_v0, 16  ;;  %v14281_v28 = vpop.f32.mrb[11].mxu1 }
 0x1fd   : > { %v10721_v40 = vcombine.low %v7142_v53, %v7152_v60  ;;  %v7161_v62 = vrot.slane %v7160_v33, 4  ;;  %11528 = vmatmul.mubr.msk.bf16.gmra.mrb[52].mxu0 %vm652_vm1, %v10398_v27  ;;  %v7180_v26 = vrot.slane %v7178_v6, 4  ;;  %v7187_v48 = vshll.u32 %v15725_v30, 16  ;;  %v10639_v53 = vld [vmem:[%s12392_s10 + $0xb4] sm:$0xf]  ;;  %v15730_v27 = vld [vmem:[#allocation11_spill] sm:$0xff] }
 0x1fe   : > { %v7171_v50 = vrot.slane %v7170_v24, 4  ;;  %v7183_v43 = vrot.slane %v7181_v51, 5  ;;  %v7191_v20 = vshrl.u32 %v15725_v30, 16  ;;  %v7197_v31 = vshll.u32 %v15726_v42, 16  ;;  %v15731_v60 = vld [vmem:[#allocation13_spill] sm:$0xff] }
 0x1ff   : > { %11663 = vmatprep.mubr.msk.bf16.mxu1 %vm652_vm1, %v10721_v40  ;;  %v7166_v7 = vsel %vm12451_vm7, %v7161_v62, %v7165_v57  ;;  %v7189_v36 = vrot.slane %v7187_v48, 5  ;;  %v7202_v14 = vshrl.u32 %v10636_v58, 16  ;;  %v7205_v13 = vshll.u32 %v10636_v58, 16  ;;  %v15728_v57 = vld [vmem:[#allocation9_spill] sm:$0xff] }
 0x200   : > { %v7176_v56 = vsel %vm12451_vm7, %v7171_v50, %v7175_v47  ;;  %v7184_v8 = vor.u32 %v7183_v43, %v7180_v26  ;;  %v7193_v49 = vrot.slane %v7191_v20, 4  ;;  %v7199_v63 = vrot.slane %v7197_v31, 5  ;;  %v15732_v50 = vld [vmem:[#allocation12_spill] sm:$0xff] }
 0x201   : > { %v10722_v18 = vcombine.low %v7166_v7, %v7176_v56  ;;  %v7204_v0 = vrot.slane %v7202_v14, 4  ;;  %v7207_v19 = vrot.slane %v7205_v13, 5  ;;  %v7211_v17 = vshll.u32 %v15727_v1, 16  ;;  %v10642_v13 = vld [vmem:[%s12392_s10 + $0xc0] sm:$0xf] }
 0x202   : > { %v7185_v61 = vrot.slane %v7184_v8, 4  ;;  %v7194_v39 = vor.u32 %v7193_v49, %v7189_v36  ;;  %v7215_v45 = vshrl.u32 %v15727_v1, 16  ;;  %v7221_v25 = vshll.u32 %v15728_v57, 16 }
 0x203   : > { %11664 = vmatmul.mubr.msk.bf16.gmra.mrb[52].mxu1 %vm652_vm1, %v10722_v18  ;;  %v7208_v33 = vor.u32 %v7207_v19, %v7204_v0  ;;  %v7213_v5 = vrot.slane %v7211_v17, 5  ;;  %v10399_v6 = vcombine.low %v15730_v27, %v15729_v59  ;;  %v10400_v24 = vcombine.low %v15731_v60, %v14007_v15 }
 0x204   : > { %v7190_v47 = vsel %vm12451_vm7, %v7185_v61, %v7189_v36  ;;  %v7195_v51 = vrot.slane %v7194_v39, 4  ;;  %v7217_v58 = vrot.slane %v7215_v45, 4  ;;  %v7223_v40 = vrot.slane %v7221_v25, 5  ;;  %v14303_v62 = vpop.f32.mrb[8].mxu0  ;;  %v15733_v36 = vld [vmem:[#allocation15_spill] sm:$0xff] }
 0x205   : > { %v7209_v26 = vrot.slane %v7208_v33, 4  ;;  %11531 = vmatprep.mubr.msk.bf16.mxu0 %vm652_vm1, %v10399_v6  ;;  %v7226_v30 = vshrl.u32 %v10639_v53, 16  ;;  %v7229_v48 = vshll.u32 %v10639_v53, 16  ;;  %v7235_v43 = vshll.u32 %v15732_v50, 16  ;;  %v14307_v20 = vpop.f32.mrb[9].mxu0  ;;  %v14309_v42 = vpop.f32.mrb[12].mxu1 }
 0x206   : > { %v7200_v15 = vsel %vm12451_vm7, %v7195_v51, %v7199_v63  ;;  %v7218_v31 = vor.u32 %v7217_v58, %v7213_v5  ;;  %11532 = vmatmul.mubr.msk.bf16.gmra.mrb[56].mxu0 %vm652_vm1, %v10400_v24  ;;  %v7239_v7 = vshrl.u32 %v15732_v50, 16  ;;  %v7245_v14 = vshll.u32 %v15733_v36, 16  ;;  %v14317_v56 = vpop.f32.mrb[10].mxu0  ;;  %v14319_v8 = vpop.f32.mrb[13].mxu1  ;;  %v15735_v24 = vld [vmem:[#allocation16_spill] sm:$0xff] }
 0x207   : > { %v10723_v49 = vcombine.low %v7190_v47, %v7200_v15  ;;  %v7214_v18 = vsel %vm12451_vm7, %v7209_v26, %v7213_v5  ;;  %v7228_v0 = vrot.slane %v7226_v30, 4  ;;  %v7231_v19 = vrot.slane %v7229_v48, 5  ;;  %v14323_v1 = vpop.f32.mrb[11].mxu0  ;;  %v14325_v63 = vpop.f32.mrb[14].mxu1  ;;  %v15734_v5 = vld [vmem:[#allocation14_spill] sm:$0xff] }
 0x208   : > { %v7219_v17 = vrot.slane %v7218_v31, 4  ;;  %v7237_v61 = vrot.slane %v7235_v43, 5  ;;  %v7241_v39 = vrot.slane %v7239_v7, 4  ;;  %v7247_v45 = vrot.slane %v7245_v14, 5  ;;  %v14327_v57 = vpop.f32.mrb[15].mxu1  ;;  %v15736_v14 = vld [vmem:[#allocation19_spill] sm:$0xff] }
 0x209   : > { %11667 = vmatprep.mubr.msk.bf16.mxu1 %vm652_vm1, %v10723_v49  ;;  %v7232_v25 = vor.u32 %v7231_v19, %v7228_v0  ;;  %v7250_v53 = vshrl.u32 %v10642_v13, 16  ;;  %v7253_v33 = vshll.u32 %v10642_v13, 16  ;;  %v7259_v59 = vshll.u32 %v15734_v5, 16  ;;  %v10743_v48 = vld [vmem:[%s12392_s10 + $0x18] sm:$0xf]  ;;  %v15737_v13 = vld [vmem:[#allocation17_spill] sm:$0xff] }
 0x20a   : > { %v7224_v27 = vsel %vm12451_vm7, %v7219_v17, %v7223_v40  ;;  %v7242_v6 = vor.u32 %v7241_v39, %v7237_v61  ;;  %v7263_v60 = vshrl.u32 %v15734_v5, 16  ;;  %v7269_v47 = vshll.u32 %v15735_v24, 16  ;;  %v10744_v7 = vld [vmem:[%s12392_s10 + $0x1c] sm:$0xf]  ;;  %v14345_v19 = vld [vmem:[%s12392_s10 + $0x20] sm:$0x1] }
 0x20b   : > { %v10724_v51 = vcombine.low %v7214_v18, %v7224_v27  ;;  %v7233_v58 = vrot.slane %v7232_v25, 4  ;;  %v7252_v26 = vrot.slane %v7250_v53, 4  ;;  %v7255_v30 = vrot.slane %v7253_v33, 5  ;;  %v15738_v18 = vld [vmem:[#allocation18_spill] sm:$0xff]  ;;  %15739 = vst [vmem:[#allocation20_spill] sm:$0xff] %v14345_v19 }
 0x20c   : > { %v7243_v50 = vrot.slane %v7242_v6, 4  ;;  %v7261_v43 = vrot.slane %v7259_v59, 5  ;;  %v7265_v15 = vrot.slane %v7263_v60, 4  ;;  %v7271_v31 = vrot.slane %v7269_v47, 5  ;;  %v12216_v17 = vld [vmem:[%s12392_s10 + $0x18] sm:$0xff]  }
 0x20d   : > { %11668 = vmatmul.mubr.msk.bf16.gmra.mrb[56].mxu1 %vm652_vm1, %v10724_v51  ;;  %v7238_v40 = vsel %vm12451_vm7, %v7233_v58, %v7237_v61  ;;  %v7256_v36 = vor.u32 %v7255_v30, %v7252_v26  ;;  %v10401_v49 = vcombine.low %v15737_v13, %v15736_v14  ;;  %v10402_v0 = vcombine.low %v15738_v18, %v14067_v44  ;;  %v10746_v5 = vld [vmem:[%s12392_s10 + $0x24] sm:$0xf]  ;;  %v14352_v59 = vld [vmem:[%s12392_s10 + $0x28] sm:$0xf]  ;;  %v14356_v24 = vld [vmem:[%s12392_s10 + $0x2c] sm:$0x1] }
 0x20e   : > { %v7248_v39 = vsel %vm12451_vm7, %v7243_v50, %v7247_v45  ;;  %v7266_v25 = vor.u32 %v7265_v15, %v7261_v43  ;;  %v8020_v53 = vshrl.u32 %v10743_v48, 16  ;;  %v8023_v33 = vshll.u32 %v10743_v48, 16  ;;  %15740 = vst [vmem:[#allocation21_spill] sm:$0xff] %v14352_v59  ;;  %15741 = vst [vmem:[#allocation22_spill] sm:$0xff] %v14356_v24 }
 0x20f   : > { %v10725_v61 = vcombine.low %v7238_v40, %v7248_v39  ;;  %v7257_v27 = vrot.slane %v7256_v36, 4  ;;  %11535 = vmatprep.mubr.msk.bf16.mxu0 %vm652_vm1, %v10401_v49  ;;  %v8029_v6 = vshll.u32 %v10744_v7, 16  ;;  %v8033_v60 = vshrl.u32 %v10744_v7, 16  ;;  %v10749_v49 = vld [vmem:[%s12392_s10 + $0x30] sm:$0xf] }
 0x210   : > { %v7267_v44 = vrot.slane %v7266_v25, 4  ;;  %11536 = vmatmul.mubr.msk.bf16.gmra.mrb[60].mxu0 %vm652_vm1, %v10402_v0  ;;  %v8022_v47 = vrot.slane %v8020_v53, 4  ;;  %v8025_v45 = vrot.slane %v8023_v33, 5  ;;  %v8039_v51 = vshll.u32 %v14345_v19, 16  ;;  %v14360_v58 = vpop.f32.mrb[12].mxu0 }
 0x211   : > { %11671 = vmatprep.mubr.msk.bf16.mxu1 %vm652_vm1, %v10725_v61  ;;  %v7262_v26 = vsel %vm12451_vm7, %v7257_v27, %v7261_v43  ;;  %v8031_v30 = vrot.slane %v8029_v6, 5  ;;  %v8035_v48 = vrot.slane %v8033_v60, 4  ;;  %v8044_v50 = vshrl.u32 %v10746_v5, 16  ;;  %11541 = vmatprep.mubr.msk.bf16.mxu0 %vm652_vm1, %v12216_v17  ;;  %v14366_v15 = vpop.f32.mrb[13].mxu0  ;;  %v14368_v7 = vpop.f32.mrb[16].mxu1  ;;  %v12217_v60 = vld [vmem:[%s12392_s10 + $0x24] sm:$0xff]  }
 0x212   : > { %v7272_v40 = vsel %vm12451_vm7, %v7267_v44, %v7271_v31  ;;  %v8026_v36 = vor.u32 %v8025_v45, %v8022_v47  ;;  %v8041_v14 = vrot.slane %v8039_v51, 5  ;;  %v8047_v13 = vshll.u32 %v10746_v5, 16  ;;  %v14373_v18 = vpop.f32.mrb[14].mxu0  ;;  %v14375_v43 = vpop.f32.mrb[17].mxu1  ;;  %v10750_v53 = vld [vmem:[%s12392_s10 + $0x34] sm:$0xf] }
 0x213   : > { %15742 = vst [vmem:[#allocation24_spill] sm:$0xff] %v14375_v43  ;;  %v10726_v0 = vcombine.low %v7262_v26, %v7272_v40  ;;  %v8036_v39 = vor.u32 %v8035_v48, %v8031_v30  ;;  %v8046_v25 = vrot.slane %v8044_v50, 4  ;;  %v8053_v17 = vshll.u32 %v14352_v59, 16  ;;  %v14379_v33 = vpop.f32.mrb[15].mxu0  ;;  %v14381_v61 = vpop.f32.mrb[18].mxu1  ;;  %v12218_v48 = vld [vmem:[%s12392_s10 + $0x30] sm:$0xff]  }
 0x214   : > { %15743 = vst [vmem:[#allocation23_spill] sm:$0xff] %v14381_v61  ;;  %v8027_v31 = vrot.slane %v8026_v36, 4  ;;  %v8049_v27 = vrot.slane %v8047_v13, 5  ;;  %v8057_v5 = vshrl.u32 %v14352_v59, 16  ;;  %v8063_v6 = vshll.u32 %v14356_v24, 16  ;;  %v14386_v44 = vpop.f32.mrb[19].mxu1 }
 0x215   : > { %15744 = vst [vmem:[#allocation25_spill] sm:$0xff] %v14386_v44  ;;  %11672 = vmatmul.mubr.msk.bf16.gmra.mrb[60].mxu1 %vm652_vm1, %v10726_v0  ;;  %v8037_v47 = vrot.slane %v8036_v39, 4  ;;  %v8055_v45 = vrot.slane %v8053_v17, 5  ;;  %v6579_v51 = vsel %vm701_vm0, %v14123_v46, 0  ;;  %v14393_v26 = vsel %vm701_vm0, %v14132_v52, 0 }
 0x216   : > { %v8032_v50 = vsel %vm12451_vm7, %v8027_v31, %v8031_v30  ;;  %v8050_v40 = vor.u32 %v8049_v27, %v8046_v25  ;;  %v8059_v36 = vrot.slane %v8057_v5, 4  ;;  %v8065_v13 = vrot.slane %v8063_v6, 5  ;;  %v10751_v24 = vld [vmem:[%s12392_s10 + $0x38] sm:$0x1]  ;;  %v10752_v46 = vld [vmem:[%s12392_s10 + $0x3c] sm:$0xf] }
 0x217   : > { %v8042_v0 = vsel %vm12451_vm7, %v8037_v47, %v8041_v14  ;;  %v8068_v39 = vshrl.u32 %v10749_v49, 16  ;;  %v8071_v17 = vshll.u32 %v10749_v49, 16  ;;  %v8077_v59 = vshll.u32 %v10750_v53, 16  ;;  %v10753_v43 = vld [vmem:[%s12392_s10 + $0x40] sm:$0xf] }
 0x218   : > { %v10792_v19 = vcombine.low %v8032_v50, %v8042_v0  ;;  %v8051_v52 = vrot.slane %v8050_v40, 4  ;;  %v8060_v44 = vor.u32 %v8059_v36, %v8055_v45  ;;  %11542 = vmatmul.mubr.msk.bf16.vlgmr.msra.gmra.mrb[32].mxu0 %vm652_vm1, %v12217_v60  ;;  %v8081_v61 = vshrl.u32 %v10750_v53, 16  ;;  %v10754_v6 = vld [vmem:[%s12392_s10 + $0x44] sm:$0x1]  ;;  %v12219_v36 = vld [vmem:[%s12392_s10 + $0x3c] sm:$0xff]  }
 0x219   : > { %11574 = vmatpush3.bf16.msra.mxu0 %v6579_v51  ;;  %v8070_v30 = vrot.slane %v8068_v39, 4  ;;  %v8073_v25 = vrot.slane %v8071_v17, 5  ;;  %v8079_v31 = vrot.slane %v8077_v59, 5  ;;  %v8087_v27 = vshll.u32 %v10751_v24, 16  ;;  %11545 = vmatprep.mubr.msk.bf16.mxu0 %vm652_vm1, %v12218_v48  ;;  %v10755_v24 = vld [vmem:[%s12392_s10 + $0x48] sm:$0xf] }
 0x21a   : > { %11677 = vmatprep.mubr.msk.bf16.mxu1 %vm652_vm1, %v10792_v19  ;;  %v8056_v14 = vsel %vm12451_vm7, %v8051_v52, %v8055_v45  ;;  %v8061_v49 = vrot.slane %v8060_v44, 4  ;;  %v8083_v5 = vrot.slane %v8081_v61, 4  ;;  %v8092_v53 = vshrl.u32 %v10752_v46, 16  ;;  %v10756_v45 = vld [vmem:[%s12392_s10 + $0x4c] sm:$0xf] }
 0x21b   : > { %v8074_v60 = vor.u32 %v8073_v25, %v8070_v30  ;;  %v8089_v47 = vrot.slane %v8087_v27, 5  ;;  %v8095_v51 = vshll.u32 %v10752_v46, 16  ;;  %v8101_v59 = vshll.u32 %v10753_v43, 16  ;;  %v10757_v52 = vld [vmem:[%s12392_s10 + $0x50] sm:$0x1]  ;;  %v12220_v30 = vld [vmem:[%s12392_s10 + $0x48] sm:$0xff]  }
 0x21c   : > { %v8066_v48 = vsel %vm12451_vm7, %v8061_v49, %v8065_v13  ;;  %v8084_v19 = vor.u32 %v8083_v5, %v8079_v31  ;;  %v8094_v50 = vrot.slane %v8092_v53, 4  ;;  %v8105_v40 = vshrl.u32 %v10753_v43, 16  ;;  %v14414_v44 = vpop.f32.mrb[16].mxu0  ;;  %v10758_v46 = vld [vmem:[%s12392_s10 + $0x54] sm:$0xf] }
 0x21d   : > { %15745 = vst [vmem:[#allocation4_spill] sm:$0xff] %v14414_v44  ;;  %v10793_v61 = vcombine.low %v8056_v14, %v8066_v48  ;;  %v8075_v0 = vrot.slane %v8074_v60, 4  ;;  %v8097_v39 = vrot.slane %v8095_v51, 5  ;;  %v8103_v17 = vrot.slane %v8101_v59, 5  ;;  %v14419_v25 = vpop.f32.mrb[17].mxu0  ;;  %v14421_v27 = vpop.f32.mrb[20].mxu1 }
 0x21e   : > { %15746 = vst [vmem:[#allocation5_spill] sm:$0xff] %v14421_v27  ;;  %v8085_v13 = vrot.slane %v8084_v19, 4  ;;  %v8107_v49 = vrot.slane %v8105_v40, 4  ;;  %v8111_v5 = vshll.u32 %v10754_v6, 16  ;;  %v8116_v43 = vshrl.u32 %v10755_v24, 16  ;;  %v14423_v53 = vpop.f32.mrb[18].mxu0 }
 0x21f   : > { %v14425_v44 = vpop.f32.mrb[21].mxu1  ;;  %11678 = vmatmul.mubr.msk.bf16.vlgmr.msra.gmra.mrb[32].mxu1 %vm652_vm1, %v10793_v61  ;;  %v8080_v14 = vsel %vm12451_vm7, %v8075_v0, %v8079_v31  ;;  %v8098_v60 = vor.u32 %v8097_v39, %v8094_v50  ;;  %v8119_v51 = vshll.u32 %v10755_v24, 16  ;;  %v8125_v59 = vshll.u32 %v10756_v45, 16  ;;  %v14431_v48 = vpop.f32.mrb[19].mxu0  ;;  %v10759_v31 = vld [vmem:[%s12392_s10 + $0x58] sm:$0xf] }
 0x220   : > { %15747 = vst [vmem:[#allocation6_spill] sm:$0xff] %v14425_v44  ;;  %15748 = vst [vmem:[#allocation8_spill] sm:$0xff] %v14431_v48  ;;  %v14433_v19 = vpop.f32.mrb[22].mxu1  ;;  %11710 = vmatpush3.bf16.msra.mxu1 %v14393_v26  ;;  %v8090_v6 = vsel %vm12451_vm7, %v8085_v13, %v8089_v47  ;;  %v8108_v40 = vor.u32 %v8107_v49, %v8103_v17  ;;  %v8113_v44 = vrot.slane %v8111_v5, 5  ;;  %11546 = vmatmul.mubr.msk.bf16.gmra.mrb[36].mxu0 %vm652_vm1, %v12219_v36  ;;  %v10760_v49 = vld [vmem:[%s12392_s10 + $0x5c] sm:$0x1] }
 0x221   : > { %15749 = vst [vmem:[#allocation7_spill] sm:$0xff] %v14433_v19  ;;  %v8118_v61 = vrot.slane %v8116_v43, 4  ;;  %v14440_v50 = vpop.f32.mrb[23].mxu1  ;;  %v10794_v24 = vcombine.low %v8080_v14, %v8090_v6  ;;  %v8099_v0 = vrot.slane %v8098_v60, 4  ;;  %v8121_v39 = vrot.slane %v8119_v51, 5  ;;  %11549 = vmatprep.mubr.msk.bf16.mxu0 %vm652_vm1, %v12220_v30  ;;  %v12221_v51 = vld [vmem:[%s12392_s10 + $0x54] sm:$0xff]  }
 0x222   : > { %v8127_v27 = vrot.slane %v8125_v59, 5  ;;  %v8109_v19 = vrot.slane %v8108_v40, 4  ;;  %v8129_v26 = vshrl.u32 %v10756_v45, 16  ;;  %v8135_v48 = vshll.u32 %v10757_v52, 16  ;;  %v14452_v30 = vld [vmem:[%s15601_s2] ss:$0 sm:$0xff] }
 0x223   : > { %v8140_v47 = vshrl.u32 %v10758_v46, 16  ;;  %11681 = vmatprep.mubr.msk.bf16.mxu1 %vm652_vm1, %v10794_v24  ;;  %v8104_v36 = vsel %vm12451_vm7, %v8099_v0, %v8103_v17  ;;  %v8122_v13 = vor.u32 %v8121_v39, %v8118_v61  ;;  %v8143_v5 = vshll.u32 %v10758_v46, 16  ;;  %v12222_v46 = vld [vmem:[%s12392_s10 + $0x60] sm:$0xff]  }
 0x224   : > { %v8149_v43 = vshll.u32 %v10759_v31, 16  ;;  %v8114_v45 = vsel %vm12451_vm7, %v8109_v19, %v8113_v44  ;;  %v8131_v52 = vrot.slane %v8129_v26, 4  ;;  %v8137_v14 = vrot.slane %v8135_v48, 5  ;;  %v10761_v44 = vld [vmem:[%s12392_s10 + $0x60] sm:$0xf] }
 0x225   : > { %v8142_v60 = vrot.slane %v8140_v47, 4  ;;  %v10795_v59 = vcombine.low %v8104_v36, %v8114_v45  ;;  %v8123_v17 = vrot.slane %v8122_v13, 4  ;;  %v8145_v6 = vrot.slane %v8143_v5, 5  ;;  %v10762_v36 = vld [vmem:[%s12392_s10 + $0x64] sm:$0xf] }
 0x226   : > { %v14457_v40 = vrot.slane %v8149_v43, 5  ;;  %v8132_v61 = vor.u32 %v8131_v52, %v8127_v27  ;;  %v8153_v24 = vshrl.u32 %v10759_v31, 16  ;;  %v8159_v0 = vshll.u32 %v10760_v49, 16 }
 0x227   : > { %v4641_v39 = vadd.f32 %v14184_v9, %v14452_v30  ;;  %11682 = vmatmul.mubr.msk.bf16.gmra.mrb[36].mxu1 %vm652_vm1, %v10795_v59  ;;  %v8128_v48 = vsel %vm12451_vm7, %v8123_v17, %v8127_v27  ;;  %v8146_v19 = vor.u32 %v8145_v6, %v8142_v60  ;;  %v4639_v26 = vadd.f32 %v14452_v30, %v14186_v21  ;;  %v10763_v21 = vld [vmem:[%s12392_s10 + $0x68] sm:$0x1] }
 0x228   : > { %v4642_v47 = vadd.f32 %v14195_v16, %v14452_v30  ;;  %v8133_v31 = vrot.slane %v8132_v61, 4  ;;  %v8155_v13 = vrot.slane %v8153_v24, 4  ;;  %v8161_v49 = vrot.slane %v8159_v0, 5  ;;  %11550 = vmatmul.mubr.msk.bf16.gmra.mrb[40].mxu0 %vm652_vm1, %v12221_v51  ;;  %v14480_v16 = vpop.f32.mrb[20].mxu0 }
 0x229   : > { %10275 = vst.msk [vmem:[%s14472_s18 + $0x110] sm:$0xff] %vm652_vm1, %v4641_v39  ;;  %v4640_v9 = vadd.f32 %v14452_v30, %v14200_v23  ;;  %v8147_v27 = vrot.slane %v8146_v19, 4  ;;  %10273 = vst.msk [vmem:[%s14472_s18 + $0x100] sm:$0xff] %vm652_vm1, %v4639_v26  ;;  %v2249_v5 = vadd.f32 %v14205_v32, %v14452_v30  ;;  %v8164_v43 = vshrl.u32 %v10761_v44, 16  ;;  %11553 = vmatprep.mubr.msk.bf16.mxu0 %vm652_vm1, %v12222_v46  ;;  %v14489_v52 = vpop.f32.mrb[21].mxu0  ;;  %v14491_v23 = vpop.f32.mrb[24].mxu1 }
 0x22a   : > { %10276 = vst.msk [vmem:[%s14472_s18 + $0x118] sm:$0xff] %vm652_vm1, %v4642_v47  ;;  %v8167_v45 = vshll.u32 %v10761_v44, 16  ;;  %v8138_v60 = vsel %vm12451_vm7, %v8133_v31, %v8137_v14  ;;  %v8156_v51 = vor.u32 %v8155_v13, %v14457_v40  ;;  %v8173_v59 = vshll.u32 %v10762_v36, 16  ;;  %v10764_v32 = vld [vmem:[%s12392_s10 + $0x6c] sm:$0xf]  ;;  %v14499_v6 = vpop.f32.mrb[22].mxu0 }
 0x22b   : > { %10274 = vst.msk [vmem:[%s14472_s18 + $0x108] sm:$0xff] %vm652_vm1, %v4640_v9  ;;  %v8177_v17 = vshrl.u32 %v10762_v36, 16  ;;  %v14501_v61 = vpop.f32.mrb[25].mxu1  ;;  %v10796_v46 = vcombine.low %v8128_v48, %v8138_v60  ;;  %v8152_v24 = vsel %vm12451_vm7, %v8147_v27, %v14457_v40  ;;  %2281 = vst.msk [vmem:[%s14472_s18 + $0x10] sm:$0xff] %vm652_vm1, %v2249_v5  ;;  %v8166_v14 = vrot.slane %v8164_v43, 4  ;;  %v14509_v44 = vpop.f32.mrb[23].mxu0 }
 0x22c   : > { %v8169_v0 = vrot.slane %v8167_v45, 5  ;;  %v10765_v39 = vld [vmem:[%s12392_s10 + $0x70] sm:$0xf]  ;;  %v14511_v19 = vpop.f32.mrb[26].mxu1  ;;  %v8157_v26 = vrot.slane %v8156_v51, 4  ;;  %v8175_v47 = vrot.slane %v8173_v59, 5  ;;  %v2247_v9 = vadd.f32 %v14452_v30, %v14208_v34 }
 0x22d   : > { %15750 = vst [vmem:[#allocation9_spill] sm:$0xff] %v14511_v19  ;;  %v8179_v36 = vrot.slane %v8177_v17, 4  ;;  %v8183_v31 = vshll.u32 %v10763_v21, 16  ;;  %v12223_v48 = vld [vmem:[%s12392_s10 + $0x6c] sm:$0xff]   ;;  %v14514_v13 = vpop.f32.mrb[27].mxu1  ;;  %11685 = vmatprep.mubr.msk.bf16.mxu1 %vm652_vm1, %v10796_v46  ;;  %v8188_v5 = vshrl.u32 %v10764_v32, 16 }
 0x22e   : > { %15751 = vst [vmem:[#allocation10_spill] sm:$0xff] %v14514_v13  ;;  %v8170_v40 = vor.u32 %v8169_v0, %v8166_v14  ;;  %v10766_v27 = vld [vmem:[%s12392_s10 + $0x74] sm:$0x1]  ;;  %v8191_v43 = vshll.u32 %v10764_v32, 16  ;;  %v8162_v45 = vsel %vm12451_vm7, %v8157_v26, %v8161_v49  ;;  %v8197_v59 = vshll.u32 %v10765_v39, 16  ;;  %v12224_v21 = vld [vmem:[%s12392_s10 + $0x78] sm:$0xff]  }
 0x22f   : > { %v8180_v60 = vor.u32 %v8179_v36, %v8175_v47  ;;  %v8185_v51 = vrot.slane %v8183_v31, 5  ;;  %v10797_v17 = vcombine.low %v8152_v24, %v8162_v45  ;;  %2279 = vst.msk [vmem:[%s14472_s18] sm:$0xff] %vm652_vm1, %v2247_v9  ;;  %v8190_v46 = vrot.slane %v8188_v5, 4 }
 0x230   : > { %v8171_v19 = vrot.slane %v8170_v40, 4  ;;  %v8193_v14 = vrot.slane %v8191_v43, 5  ;;  %v14525_v34 = vrot.slane %v8197_v59, 5  ;;  %v8201_v13 = vshrl.u32 %v10765_v39, 16  ;;  %11554 = vmatmul.mubr.msk.bf16.gmra.mrb[44].mxu0 %vm652_vm1, %v12223_v48  ;;  %v10767_v39 = vld [vmem:[%s12392_s10 + $0x78] sm:$0xf] }
 0x231   : > { %v8181_v0 = vrot.slane %v8180_v60, 4  ;;  %v8207_v32 = vshll.u32 %v10766_v27, 16  ;;  %11686 = vmatmul.mubr.msk.bf16.gmra.mrb[40].mxu1 %vm652_vm1, %v10797_v17  ;;  %v2250_v26 = vadd.f32 %v14214_v54, %v14452_v30  ;;  %v2248_v36 = vadd.f32 %v14452_v30, %v14218_v22  ;;  %11557 = vmatprep.mubr.msk.bf16.mxu0 %vm652_vm1, %v12224_v21  ;;  %v10770_v27 = vld [vmem:[%s12392_s10 + $0x84] sm:$0xf]  ;;  %v10772_v17 = vld [vmem:[%s12392_s10 + $0x8c] sm:$0x1] }
 0x232   : > { %v8176_v49 = vsel %vm12451_vm7, %v8171_v19, %v8175_v47  ;;  %v8194_v24 = vor.u32 %v8193_v14, %v8190_v46  ;;  %v8203_v48 = vrot.slane %v8201_v13, 4  ;;  %v4645_v9 = vadd.f32 %v14222_v55, %v14452_v30  ;;  %v10768_v19 = vld [vmem:[%s12392_s10 + $0x7c] sm:$0xf]  ;;  %v10769_v55 = vld [vmem:[%s12392_s10 + $0x80] sm:$0x1]  ;;  %v12226_v46 = vld [vmem:[%s12392_s10 + $0x90] sm:$0xff]  }
 0x233   : > { %v8186_v31 = vsel %vm12451_vm7, %v8181_v0, %v8185_v51  ;;  %v8209_v40 = vrot.slane %v8207_v32, 5  ;;  %2282 = vst.msk [vmem:[%s14472_s18 + $0x18] sm:$0xff] %vm652_vm1, %v2250_v26  ;;  %2280 = vst.msk [vmem:[%s14472_s18 + $0x8] sm:$0xff] %vm652_vm1, %v2248_v36  ;;  %v4643_v22 = vadd.f32 %v14452_v30, %v14226_v37  ;;  %v4646_v13 = vadd.f32 %v14233_v29, %v14452_v30  ;;  %v10771_v37 = vld [vmem:[%s12392_s10 + $0x88] sm:$0xf] }
 0x234   : > { %v10798_v54 = vcombine.low %v8176_v49, %v8186_v31  ;;  %v8195_v47 = vrot.slane %v8194_v24, 4  ;;  %v8204_v5 = vor.u32 %v8203_v48, %v14525_v34  ;;  %10279 = vst.msk [vmem:[%s14472_s18 + $0x130] sm:$0xff] %vm652_vm1, %v4645_v9  ;;  %v4644_v43 = vadd.f32 %v14452_v30, %v14237_v10  ;;  %v12225_v51 = vld [vmem:[%s12392_s10 + $0x84] sm:$0xff]   ;;  %v14561_v29 = vpop.f32.mrb[24].mxu0 }
 0x235   : > { %v2253_v45 = vadd.f32 %v14251_v38, %v14452_v30  ;;  %v8212_v60 = vshrl.u32 %v10767_v39, 16  ;;  %10277 = vst.msk [vmem:[%s14472_s18 + $0x120] sm:$0xff] %vm652_vm1, %v4643_v22  ;;  %10280 = vst.msk [vmem:[%s14472_s18 + $0x138] sm:$0xff] %vm652_vm1, %v4646_v13  ;;  %v8215_v10 = vshll.u32 %v10767_v39, 16  ;;  %v8221_v21 = vshll.u32 %v10768_v19, 16  ;;  %v14573_v14 = vpop.f32.mrb[25].mxu0 }
 0x236   : > { %11689 = vmatprep.mubr.msk.bf16.mxu1 %vm652_vm1, %v10798_v54  ;;  %v8200_v59 = vsel %vm12451_vm7, %v8195_v47, %v14525_v34  ;;  %v8225_v38 = vshrl.u32 %v10768_v19, 16  ;;  %v14575_v0 = vpop.f32.mrb[28].mxu1  ;;  %v8205_v32 = vrot.slane %v8204_v5, 4  ;;  %10278 = vst.msk [vmem:[%s14472_s18 + $0x128] sm:$0xff] %vm652_vm1, %v4644_v43  ;;  %v8231_v49 = vshll.u32 %v10769_v55, 16  ;;  %v14583_v26 = vpop.f32.mrb[26].mxu0 }
 0x237   : > { %2285 = vst.msk [vmem:[%s14472_s18 + $0x30] sm:$0xff] %vm652_vm1, %v2253_v45  ;;  %v8214_v34 = vrot.slane %v8212_v60, 4  ;;  %v2251_v24 = vadd.f32 %v14452_v30, %v14257_v41  ;;  %v14585_v36 = vpop.f32.mrb[29].mxu1  ;;  %v8217_v39 = vrot.slane %v8215_v10, 5  ;;  %v8223_v31 = vrot.slane %v8221_v21, 5  ;;  %v14587_v19 = vpop.f32.mrb[27].mxu0 }
 0x238   : > { %v8227_v48 = vrot.slane %v8225_v38, 4  ;;  %v8236_v9 = vshrl.u32 %v10770_v27, 16  ;;  %v14589_v54 = vpop.f32.mrb[30].mxu1  ;;  %v8210_v47 = vsel %vm12451_vm7, %v8205_v32, %v8209_v40  ;;  %v8233_v22 = vrot.slane %v8231_v49, 5  ;;  %11558 = vmatmul.mubr.msk.bf16.gmra.mrb[48].mxu0 %vm652_vm1, %v12225_v51 }
 0x239   : > { %2283 = vst.msk [vmem:[%s14472_s18 + $0x20] sm:$0xff] %vm652_vm1, %v2251_v24  ;;  %v8239_v13 = vshll.u32 %v10770_v27, 16  ;;  %v8245_v41 = vshll.u32 %v10771_v37, 16  ;;  %v14596_v55 = vpop.f32.mrb[31].mxu1  ;;  %v10799_v5 = vcombine.low %v8200_v59, %v8210_v47  ;;  %v8218_v43 = vor.u32 %v8217_v39, %v8214_v34  ;;  %11561 = vmatprep.mubr.msk.bf16.mxu0 %vm652_vm1, %v12226_v46  ;;  %v10773_v46 = vld [vmem:[%s12392_s10 + $0x90] sm:$0xf] }
 0x23a   : > { %v8228_v45 = vor.u32 %v8227_v48, %v8223_v31  ;;  %v8238_v60 = vrot.slane %v8236_v9, 4  ;;  %v8249_v21 = vshrl.u32 %v10771_v37, 16  ;;  %v8255_v38 = vshll.u32 %v10772_v17, 16  ;;  %v10774_v24 = vld [vmem:[%s12392_s10 + $0x94] sm:$0xf]  ;;  %v12227_v39 = vld [vmem:[%s12392_s10 + $0x9c] sm:$0xff]  }
 0x23b   : > { %v8241_v10 = vrot.slane %v8239_v13, 5  ;;  %v8247_v40 = vrot.slane %v8245_v41, 5  ;;  %11690 = vmatmul.mubr.msk.bf16.gmra.mrb[44].mxu1 %vm652_vm1, %v10799_v5  ;;  %v8219_v27 = vrot.slane %v8218_v43, 4  ;;  %v2254_v59 = vadd.f32 %v14259_v35, %v14452_v30  ;;  %v10775_v9 = vld [vmem:[%s12392_s10 + $0x98] sm:$0x1]  ;;  %v12228_v47 = vld [vmem:[%s12392_s10 + $0xa8] sm:$0xff]  }
 0x23c   : > { %v8229_v51 = vrot.slane %v8228_v45, 4  ;;  %v2252_v32 = vadd.f32 %v14452_v30, %v14266_v2  ;;  %v8251_v49 = vrot.slane %v8249_v21, 4  ;;  %v8257_v37 = vrot.slane %v8255_v38, 5  ;;  %v10776_v45 = vld [vmem:[%s12392_s10 + $0x9c] sm:$0xf] }
 0x23d   : > { %v8242_v34 = vor.u32 %v8241_v10, %v8238_v60  ;;  %v4649_v17 = vadd.f32 %v14261_v11, %v14452_v30  ;;  %v8224_v48 = vsel %vm12451_vm7, %v8219_v27, %v8223_v31  ;;  %2286 = vst.msk [vmem:[%s14472_s18 + $0x38] sm:$0xff] %vm652_vm1, %v2254_v59  ;;  %v4647_v2 = vadd.f32 %v14452_v30, %v14268_v4  ;;  %v10777_v38 = vld [vmem:[%s12392_s10 + $0xa0] sm:$0xf] }
 0x23e   : > { %v8234_v35 = vsel %vm12451_vm7, %v8229_v51, %v8233_v22  ;;  %2284 = vst.msk [vmem:[%s14472_s18 + $0x28] sm:$0xff] %vm652_vm1, %v2252_v32  ;;  %v4650_v11 = vadd.f32 %v14275_v12, %v14452_v30  ;;  %v8252_v31 = vor.u32 %v8251_v49, %v8247_v40  ;;  %v4648_v22 = vadd.f32 %v14452_v30, %v14281_v28 }
 0x23f   : > { %v10800_v13 = vcombine.low %v8224_v48, %v8234_v35  ;;  %v8243_v41 = vrot.slane %v8242_v34, 4  ;;  %10283 = vst.msk [vmem:[%s14472_s18 + $0x150] sm:$0xff] %vm652_vm1, %v4649_v17  ;;  %10281 = vst.msk [vmem:[%s14472_s18 + $0x140] sm:$0xff] %vm652_vm1, %v4647_v2  ;;  %v2257_v4 = vadd.f32 %v14303_v62, %v14452_v30  ;;  %v8260_v12 = vshrl.u32 %v10773_v46, 16 }
 0x240   : > { %10284 = vst.msk [vmem:[%s14472_s18 + $0x158] sm:$0xff] %vm652_vm1, %v4650_v11  ;;  %v8263_v5 = vshll.u32 %v10773_v46, 16  ;;  %v8269_v43 = vshll.u32 %v10774_v24, 16  ;;  %v8253_v10 = vrot.slane %v8252_v31, 4  ;;  %10282 = vst.msk [vmem:[%s14472_s18 + $0x148] sm:$0xff] %vm652_vm1, %v4648_v22  ;;  %v8273_v28 = vshrl.u32 %v10774_v24, 16  ;;  %11562 = vmatmul.mubr.msk.bf16.gmra.mrb[52].mxu0 %vm652_vm1, %v12227_v39 }
 0x241   : > { %11693 = vmatprep.mubr.msk.bf16.mxu1 %vm652_vm1, %v10800_v13  ;;  %v8248_v60 = vsel %vm12451_vm7, %v8243_v41, %v8247_v40  ;;  %v8279_v21 = vshll.u32 %v10775_v9, 16  ;;  %v14641_v27 = vpop.f32.mrb[28].mxu0  ;;  %2289 = vst.msk [vmem:[%s14472_s18 + $0x50] sm:$0xff] %vm652_vm1, %v2257_v4  ;;  %v8262_v62 = vrot.slane %v8260_v12, 4  ;;  %v2255_v32 = vadd.f32 %v14452_v30, %v14307_v20  ;;  %v10778_v40 = vld [vmem:[%s12392_s10 + $0xa4] sm:$0x1]  ;;  %11565 = vmatprep.mubr.msk.bf16.mxu0 %vm652_vm1, %v12228_v47 }
 0x242   : > { %v8265_v51 = vrot.slane %v8263_v5, 5  ;;  %v8271_v59 = vrot.slane %v8269_v43, 5  ;;  %v14649_v46 = vpop.f32.mrb[29].mxu0  ;;  %v8258_v34 = vsel %vm12451_vm7, %v8253_v10, %v8257_v37  ;;  %v8275_v49 = vrot.slane %v8273_v28, 4  ;;  %v12229_v41 = vld [vmem:[%s12392_s10 + $0xb4] sm:$0xff]   ;;  %v12230_v5 = vld [vmem:[%s12392_s10 + $0xc0] sm:$0xff]  }
 0x243   : > { %v8281_v17 = vrot.slane %v8279_v21, 5  ;;  %v8284_v24 = vshrl.u32 %v10776_v45, 16  ;;  %v14653_v39 = vpop.f32.mrb[30].mxu0  ;;  %v10801_v48 = vcombine.low %v8248_v60, %v8258_v34  ;;  %2287 = vst.msk [vmem:[%s14472_s18 + $0x40] sm:$0xff] %vm652_vm1, %v2255_v32  ;;  %v8287_v20 = vshll.u32 %v10776_v45, 16 }
 0x244   : > { %v8266_v35 = vor.u32 %v8265_v51, %v8262_v62  ;;  %v8293_v2 = vshll.u32 %v10777_v38, 16  ;;  %v14657_v11 = vpop.f32.mrb[31].mxu0  ;;  %v8276_v9 = vor.u32 %v8275_v49, %v8271_v59  ;;  %v8297_v13 = vshrl.u32 %v10777_v38, 16  ;;  %v10779_v28 = vld [vmem:[%s12392_s10 + $0xa8] sm:$0xf] }
 0x245   : > { %v8286_v47 = vrot.slane %v8284_v24, 4  ;;  %v8303_v37 = vshll.u32 %v10778_v40, 16  ;;  %11694 = vmatmul.mubr.msk.bf16.gmra.mrb[48].mxu1 %vm652_vm1, %v10801_v48  ;;  %v8289_v22 = vrot.slane %v8287_v20, 5  ;;  %v2258_v12 = vadd.f32 %v14317_v56, %v14452_v30  ;;  %v10780_v51 = vld [vmem:[%s12392_s10 + $0xac] sm:$0xf] }
 0x246   : > { %v8267_v31 = vrot.slane %v8266_v35, 4  ;;  %v8295_v4 = vrot.slane %v8293_v2, 5  ;;  %v8277_v43 = vrot.slane %v8276_v9, 4  ;;  %v8299_v45 = vrot.slane %v8297_v13, 4  ;;  %v10782_v35 = vld [vmem:[%s12392_s10 + $0xb4] sm:$0xf] }
 0x247   : > { %v8305_v60 = vrot.slane %v8303_v37, 5  ;;  %v2256_v10 = vadd.f32 %v14452_v30, %v14323_v1  ;;  %v8290_v38 = vor.u32 %v8289_v22, %v8286_v47  ;;  %2290 = vst.msk [vmem:[%s14472_s18 + $0x58] sm:$0xff] %vm652_vm1, %v2258_v12  ;;  %v4653_v56 = vadd.f32 %v14309_v42, %v14452_v30  ;;  %v10781_v42 = vld [vmem:[%s12392_s10 + $0xb0] sm:$0x1]  ;;  %v14706_v47 = vld [vmem:[%s12392_s10 + $0xb8] sm:$0xf] }
 0x248   : > { %v8272_v21 = vsel %vm12451_vm7, %v8267_v31, %v8271_v59  ;;  %v4651_v62 = vadd.f32 %v14452_v30, %v14319_v8  ;;  %v8282_v1 = vsel %vm12451_vm7, %v8277_v43, %v8281_v17  ;;  %v8300_v32 = vor.u32 %v8299_v45, %v8295_v4  ;;  %11566 = vmatmul.mubr.msk.bf16.gmra.mrb[56].mxu0 %vm652_vm1, %v12229_v41  ;;  %v10784_v22 = vld [vmem:[%s12392_s10 + $0xbc] sm:$0x1]  ;;  %v12231_v12 = vld [vmem:[%s12392_s10 + $0xcc] sm:$0xff]  }
 0x249   : > { %2288 = vst.msk [vmem:[%s14472_s18 + $0x48] sm:$0xff] %vm652_vm1, %v2256_v10  ;;  %v4654_v59 = vadd.f32 %v14325_v63, %v14452_v30  ;;  %v4652_v40 = vadd.f32 %v14452_v30, %v14327_v57  ;;  %v10802_v8 = vcombine.low %v8272_v21, %v8282_v1  ;;  %v8291_v34 = vrot.slane %v8290_v38, 4  ;;  %10287 = vst.msk [vmem:[%s14472_s18 + $0x170] sm:$0xff] %vm652_vm1, %v4653_v56 }
 0x24a   : > { %10285 = vst.msk [vmem:[%s14472_s18 + $0x160] sm:$0xff] %vm652_vm1, %v4651_v62  ;;  %v2261_v49 = vadd.f32 %v14360_v58, %v14452_v30  ;;  %v8308_v17 = vshrl.u32 %v10779_v28, 16  ;;  %11569 = vmatprep.mubr.msk.bf16.mxu0 %vm652_vm1, %v12230_v5  ;;  %v8301_v63 = vrot.slane %v8300_v32, 4  ;;  %v8311_v57 = vshll.u32 %v10779_v28, 16 }
 0x24b   : > { %10288 = vst.msk [vmem:[%s14472_s18 + $0x178] sm:$0xff] %vm652_vm1, %v4654_v59  ;;  %10286 = vst.msk [vmem:[%s14472_s18 + $0x168] sm:$0xff] %vm652_vm1, %v4652_v40  ;;  %v8317_v24 = vshll.u32 %v10780_v51, 16  ;;  %v8321_v48 = vshrl.u32 %v10780_v51, 16  ;;  %11697 = vmatprep.mubr.msk.bf16.mxu1 %vm652_vm1, %v10802_v8  ;;  %v8296_v58 = vsel %vm12451_vm7, %v8291_v34, %v8295_v4  ;;  %v8327_v2 = vshll.u32 %v10781_v42, 16 }
 0x24c   : > { %2293 = vst.msk [vmem:[%s14472_s18 + $0x70] sm:$0xff] %vm652_vm1, %v2261_v49  ;;  %v8310_v20 = vrot.slane %v8308_v17, 4  ;;  %v2259_v9 = vadd.f32 %v14452_v30, %v14366_v15  ;;  %v8306_v13 = vsel %vm12451_vm7, %v8301_v63, %v8305_v60  ;;  %v8313_v37 = vrot.slane %v8311_v57, 5  ;;  %v10785_v34 = vld [vmem:[%s12392_s10 + $0xc0] sm:$0xf]  ;;  %v15752_v57 = vld [vmem:[#allocation24_spill] sm:$0xff] }
 0x24d   : > { %v8319_v41 = vrot.slane %v8317_v24, 5  ;;  %v8323_v31 = vrot.slane %v8321_v48, 4  ;;  %v10803_v5 = vcombine.low %v8296_v58, %v8306_v13  ;;  %v8329_v43 = vrot.slane %v8327_v2, 5  ;;  %v10786_v48 = vld [vmem:[%s12392_s10 + $0xc4] sm:$0xf]  ;;  %v15754_v2 = vld [vmem:[#allocation25_spill] sm:$0xff] }
 0x24e   : > { %2291 = vst.msk [vmem:[%s14472_s18 + $0x60] sm:$0xff] %vm652_vm1, %v2259_v9  ;;  %v8332_v4 = vshrl.u32 %v10782_v35, 16  ;;  %v8335_v45 = vshll.u32 %v10782_v35, 16  ;;  %v8314_v10 = vor.u32 %v8313_v37, %v8310_v20  ;;  %v8341_v15 = vshll.u32 %v14706_v47, 16  ;;  %v10787_v35 = vld [vmem:[%s12392_s10 + $0xc8] sm:$0x1] }
 0x24f   : > { %v8324_v28 = vor.u32 %v8323_v31, %v8319_v41  ;;  %v8345_v21 = vshrl.u32 %v14706_v47, 16  ;;  %11698 = vmatmul.mubr.msk.bf16.gmra.mrb[52].mxu1 %vm652_vm1, %v10803_v5  ;;  %v8351_v56 = vshll.u32 %v10784_v22, 16  ;;  %v2262_v62 = vadd.f32 %v14373_v18, %v14452_v30  ;;  %v15755_v37 = vld [vmem:[#allocation4_spill] sm:$0xff] }
 0x250   : > { %v8334_v60 = vrot.slane %v8332_v4, 4  ;;  %v8337_v38 = vrot.slane %v8335_v45, 5  ;;  %v8315_v51 = vrot.slane %v8314_v10, 4  ;;  %v8343_v32 = vrot.slane %v8341_v15, 5  ;;  %11570 = vmatmul.mubr.msk.bf16.gmra.mrb[60].mxu0 %vm652_vm1, %v12231_v12  ;;  %v10788_v12 = vld [vmem:[%s12392_s10 + $0xcc] sm:$0xf] }
 0x251   : > { %v8325_v1 = vrot.slane %v8324_v28, 4  ;;  %v8347_v59 = vrot.slane %v8345_v21, 4  ;;  %v8353_v42 = vrot.slane %v8351_v56, 5  ;;  %2294 = vst.msk [vmem:[%s14472_s18 + $0x78] sm:$0xff] %vm652_vm1, %v2262_v62  ;;  %v2260_v8 = vadd.f32 %v14452_v30, %v14379_v33  ;;  %v14756_v10 = vld [vmem:[%s12392_s10 + $0xd0] sm:$0xf] }
 0x252   : > { %v8338_v40 = vor.u32 %v8337_v38, %v8334_v60  ;;  %v4657_v18 = vadd.f32 %v14368_v7, %v14452_v30  ;;  %v8320_v49 = vsel %vm12451_vm7, %v8315_v51, %v8319_v41  ;;  %v4655_v24 = vadd.f32 %v14452_v30, %v15752_v57  ;;  %v15753_v7 = vld [vmem:[#allocation23_spill] sm:$0xff]  ;;  %v10790_v38 = vld [vmem:[%s12392_s10 + $0xd4] sm:$0x1] }
 0x253   : > { %v8330_v17 = vsel %vm12451_vm7, %v8325_v1, %v8329_v43  ;;  %v8348_v63 = vor.u32 %v8347_v59, %v8343_v32  ;;  %2292 = vst.msk [vmem:[%s14472_s18 + $0x68] sm:$0xff] %vm652_vm1, %v2260_v8  ;;  %v4658_v20 = vadd.f32 %v15753_v7, %v14452_v30  ;;  %v4656_v9 = vadd.f32 %v14452_v30, %v15754_v2  ;;  %v10824_v7 = vld [vmem:[%s12392_s10 + $0x18] sm:$0xe]  ;;  %v15757_v2 = vld [vmem:[#allocation5_spill] sm:$0xff] }
 0x254   : > { %v10804_v33 = vcombine.low %v8320_v49, %v8330_v17  ;;  %v8339_v58 = vrot.slane %v8338_v40, 4  ;;  %10291 = vst.msk [vmem:[%s14472_s18 + $0x190] sm:$0xff] %vm652_vm1, %v4657_v18  ;;  %10289 = vst.msk [vmem:[%s14472_s18 + $0x180] sm:$0xff] %vm652_vm1, %v4655_v24  ;;  %v2265_v41 = vadd.f32 %v15755_v37, %v14452_v30  ;;  %v8356_v31 = vshrl.u32 %v10785_v34, 16 }
 0x255   : > { %v8349_v13 = vrot.slane %v8348_v63, 4  ;;  %v8359_v22 = vshll.u32 %v10785_v34, 16  ;;  %10292 = vst.msk [vmem:[%s14472_s18 + $0x198] sm:$0xff] %vm652_vm1, %v4658_v20  ;;  %10290 = vst.msk [vmem:[%s14472_s18 + $0x188] sm:$0xff] %vm652_vm1, %v4656_v9  ;;  %v8365_v43 = vshll.u32 %v10786_v48, 16  ;;  %v8369_v4 = vshrl.u32 %v10786_v48, 16 }
 0x256   : > { %11701 = vmatprep.mubr.msk.bf16.mxu1 %vm652_vm1, %v10804_v33  ;;  %v8344_v5 = vsel %vm12451_vm7, %v8339_v58, %v8343_v32  ;;  %v8375_v45 = vshll.u32 %v10787_v35, 16  ;;  %2297 = vst.msk [vmem:[%s14472_s18 + $0x90] sm:$0xff] %vm652_vm1, %v2265_v41  ;;  %v8358_v15 = vrot.slane %v8356_v31, 4  ;;  %v2263_v60 = vadd.f32 %v14452_v30, %v14419_v25  ;;  %v15756_v33 = vld [vmem:[#allocation8_spill] sm:$0xff] }
 0x257   : > { %v8354_v28 = vsel %vm12451_vm7, %v8349_v13, %v8353_v42  ;;  %v8361_v21 = vrot.slane %v8359_v22, 5  ;;  %v8367_v62 = vrot.slane %v8365_v43, 5  ;;  %v8371_v51 = vrot.slane %v8369_v4, 4  ;;  %v15758_v13 = vld [vmem:[#allocation6_spill] sm:$0xff]  ;;  %v15759_v22 = vld [vmem:[#allocation7_spill] sm:$0xff] }
 0x258   : > { %v10805_v56 = vcombine.low %v8344_v5, %v8354_v28  ;;  %v8377_v1 = vrot.slane %v8375_v45, 5  ;;  %2295 = vst.msk [vmem:[%s14472_s18 + $0x80] sm:$0xff] %vm652_vm1, %v2263_v60  ;;  %v8380_v59 = vshrl.u32 %v10788_v12, 16  ;;  %v8383_v40 = vshll.u32 %v10788_v12, 16  ;;  %v10825_v43 = vld [vmem:[%s12392_s10 + $0x24] sm:$0xe] }
 0x259   : > { %v8362_v32 = vor.u32 %v8361_v21, %v8358_v15  ;;  %v8389_v42 = vshll.u32 %v14756_v10, 16  ;;  %v8372_v8 = vor.u32 %v8371_v51, %v8367_v62  ;;  %v8393_v18 = vshrl.u32 %v14756_v10, 16 }
 0x25a   : > { %11702 = vmatmul.mubr.msk.bf16.gmra.mrb[56].mxu1 %vm652_vm1, %v10805_v56  ;;  %v8399_v25 = vshll.u32 %v10790_v38, 16  ;;  %v2266_v34 = vadd.f32 %v14423_v53, %v14452_v30  ;;  %v8382_v17 = vrot.slane %v8380_v59, 4  ;;  %v8385_v63 = vrot.slane %v8383_v40, 5  ;;  %v15760_v38 = vld [vmem:[#allocation20_spill] sm:$0xff]  ;;  %v15762_v59 = vld [vmem:[#allocation22_spill] sm:$0xff] }
 0x25b   : > { %v8363_v49 = vrot.slane %v8362_v32, 4  ;;  %v8391_v57 = vrot.slane %v8389_v42, 5  ;;  %v8373_v24 = vrot.slane %v8372_v8, 4  ;;  %v8395_v48 = vrot.slane %v8393_v18, 4  ;;  %v10484_v42 = vld [vmem:[%s12392_s10 + $0x18] sm:$0xf] }
 0x25c   : > { %v8401_v35 = vrot.slane %v8399_v25, 5  ;;  %2298 = vst.msk [vmem:[%s14472_s18 + $0x98] sm:$0xff] %vm652_vm1, %v2266_v34  ;;  %v2264_v58 = vadd.f32 %v14452_v30, %v15756_v33  ;;  %v8386_v20 = vor.u32 %v8385_v63, %v8382_v17  ;;  %v4661_v9 = vadd.f32 %v15757_v2, %v14452_v30 }
 0x25d   : > { %v8368_v53 = vsel %vm12451_vm7, %v8363_v49, %v8367_v62  ;;  %v4659_v37 = vadd.f32 %v14452_v30, %v15758_v13  ;;  %v8378_v41 = vsel %vm12451_vm7, %v8373_v24, %v8377_v1  ;;  %v8396_v31 = vor.u32 %v8395_v48, %v8391_v57  ;;  %v15761_v1 = vld [vmem:[#allocation21_spill] sm:$0xff]  ;;  %v10485_v49 = vld [vmem:[%s12392_s10 + $0x1c] sm:$0xf]  ;;  %v10486_v48 = vld [vmem:[%s12392_s10 + $0x20] sm:$0x1] }
 0x25e   : > { %2296 = vst.msk [vmem:[%s14472_s18 + $0x88] sm:$0xff] %vm652_vm1, %v2264_v58  ;;  %v4662_v12 = vadd.f32 %v15759_v22, %v14452_v30  ;;  %v4660_v5 = vadd.f32 %v14452_v30, %v14440_v50  ;;  %v10806_v4 = vcombine.low %v8368_v53, %v8378_v41  ;;  %v8387_v45 = vrot.slane %v8386_v20, 4  ;;  %10295 = vst.msk [vmem:[%s14472_s18 + $0x1b0] sm:$0xff] %vm652_vm1, %v4661_v9  ;;  %v12257_v50 = vld [vmem:[%s12392_s10 + $0x1c] sm:$0xf] }
 0x25f   : > { %10293 = vst.msk [vmem:[%s14472_s18 + $0x1a0] sm:$0xff] %vm652_vm1, %v4659_v37  ;;  %v2269_v28 = vadd.f32 %v14480_v16, %v14452_v30  ;;  %v10841_v15 = vrot.slane %v10824_v7, 9  ;;  %v8397_v21 = vrot.slane %v8396_v31, 4  ;;  %v8762_v60 = vrot.slane %v12257_v50, 5  ;;  %v10487_v7 = vld [vmem:[%s12392_s10 + $0x24] sm:$0xf] }
 0x260   : > { %10296 = vst.msk [vmem:[%s14472_s18 + $0x1b8] sm:$0xff] %vm652_vm1, %v4662_v12  ;;  %10294 = vst.msk [vmem:[%s14472_s18 + $0x1a8] sm:$0xff] %vm652_vm1, %v4660_v5  ;;  %v8765_v56 = vrot.slane %v15760_v38, 5  ;;  %v2267_v62 = vadd.f32 %v14452_v30, %v14489_v52  ;;  %11705 = vmatprep.mubr.msk.bf16.mxu1 %vm652_vm1, %v10806_v4  ;;  %v8392_v16 = vsel %vm12451_vm7, %v8387_v45, %v8391_v57  ;;  %v10842_v51 = vrot.slane %v10825_v43, 9  ;;  %v10488_v9 = vld [vmem:[%s12392_s10 + $0x28] sm:$0xf] }
 0x261   : > { %2301 = vst.msk [vmem:[%s14472_s18 + $0xb0] sm:$0xff] %vm652_vm1, %v2269_v28  ;;  %v8769_v32 = vrot.slane %v15761_v1, 5  ;;  %v8772_v40 = vrot.slane %v15762_v59, 5  ;;  %v8402_v8 = vsel %vm12451_vm7, %v8397_v21, %v8401_v35  ;;  %v8763_v52 = vsel %vm12412_vm6, %v10841_v15, %v8762_v60  ;;  %v10489_v31 = vld [vmem:[%s12392_s10 + $0x2c] sm:$0x1] }
 0x262   : > { %v8764_v25 = vrot.slane %v8762_v60, 4  ;;  %2299 = vst.msk [vmem:[%s14472_s18 + $0xa0] sm:$0xff] %vm652_vm1, %v2267_v62  ;;  %v2270_v34 = vadd.f32 %v14499_v6, %v14452_v30  ;;  %v10807_v17 = vcombine.low %v8392_v16, %v8402_v8  ;;  %v2268_v24 = vadd.f32 %v14452_v30, %v14509_v44 }
 0x263   : > { %v8770_v63 = vsel %vm12412_vm6, %v10842_v51, %v8769_v32  ;;  %v8771_v57 = vrot.slane %v8769_v32, 4  ;;  %v4665_v6 = vadd.f32 %v14491_v23, %v14452_v30  ;;  %v6099_v33 = vshrl.u32 %v10484_v42, 16 }
 0x264   : > { %v8766_v35 = vsel %vm12412_vm6, %v8764_v25, %v8765_v56  ;;  %2302 = vst.msk [vmem:[%s14472_s18 + $0xb8] sm:$0xff] %vm652_vm1, %v2270_v34  ;;  %v6102_v58 = vshll.u32 %v10484_v42, 16  ;;  %11706 = vmatmul.mubr.msk.bf16.gmra.mrb[60].mxu1 %vm652_vm1, %v10807_v17  ;;  %2300 = vst.msk [vmem:[%s14472_s18 + $0xa8] sm:$0xff] %vm652_vm1, %v2268_v24  ;;  %v6108_v20 = vshll.u32 %v10485_v49, 16  ;;  %v6112_v2 = vshrl.u32 %v10485_v49, 16  ;;  %v15765_v42 = vld [vmem:[#allocation10_spill] sm:$0xff] }
 0x265   : > { %v10857_v53 = vcombine.low %v8763_v52, %v8766_v35  ;;  %v8773_v44 = vsel %vm12412_vm6, %v8771_v57, %v8772_v40  ;;  %10299 = vst.msk [vmem:[%s14472_s18 + $0x1d0] sm:$0xff] %vm652_vm1, %v4665_v6  ;;  %v6101_v23 = vrot.slane %v6099_v33, 4  ;;  %v6118_v41 = vshll.u32 %v10486_v48, 16  ;;  %v10826_v56 = vld [vmem:[%s12392_s10 + $0x30] sm:$0xe] }
 0x266   : > { %v10858_v13 = vcombine.low %v8770_v63, %v8773_v44  ;;  %v6104_v37 = vrot.slane %v6102_v58, 5  ;;  %v6110_v22 = vrot.slane %v6108_v20, 5  ;;  %v6114_v12 = vrot.slane %v6112_v2, 4  ;;  %v10827_v52 = vld [vmem:[%s12392_s10 + $0x3c] sm:$0xe] }
 0x267   : > { %11711 = vmatprep.mubr.msk.bf16.mxu1 %vm652_vm1, %v10857_v53  ;;  %v4663_v5 = vadd.f32 %v14452_v30, %v14501_v61  ;;  %v6123_v43 = vshrl.u32 %v10487_v7, 16  ;;  %v6120_v45 = vrot.slane %v6118_v41, 5  ;;  %v6126_v28 = vshll.u32 %v10487_v7, 16  ;;  %v15764_v61 = vld [vmem:[#allocation9_spill] sm:$0xff]  ;;  %v12259_v35 = vld [vmem:[%s12392_s10 + $0x38] sm:$0x1] }
 0x268   : > { %v6105_v4 = vor.u32 %v6104_v37, %v6101_v23  ;;  %v6132_v15 = vshll.u32 %v10488_v9, 16  ;;  %v6115_v21 = vor.u32 %v6114_v12, %v6110_v22  ;;  %v6136_v60 = vshrl.u32 %v10488_v9, 16  ;;  %v12258_v24 = vld [vmem:[%s12392_s10 + $0x34] sm:$0xf]  ;;  %v12260_v2 = vld [vmem:[%s12392_s10 + $0x40] sm:$0xf] }
 0x269   : > { %10297 = vst.msk [vmem:[%s14472_s18 + $0x1c0] sm:$0xff] %vm652_vm1, %v4663_v5  ;;  %v6125_v50 = vrot.slane %v6123_v43, 4  ;;  %v6142_v38 = vshll.u32 %v10489_v31, 16  ;;  %v6128_v16 = vrot.slane %v6126_v28, 5  ;;  %v4666_v1 = vadd.f32 %v15764_v61, %v14452_v30 }
 0x26a   : > { %v6106_v62 = vrot.slane %v6105_v4, 4  ;;  %v6134_v51 = vrot.slane %v6132_v15, 5  ;;  %v6116_v32 = vrot.slane %v6115_v21, 4  ;;  %v6138_v59 = vrot.slane %v6136_v60, 4  ;;  %v10493_v21 = vld [vmem:[%s12392_s10 + $0x3c] sm:$0xf] }
 0x26b   : > { %v6144_v40 = vrot.slane %v6142_v38, 5  ;;  %v4664_v8 = vadd.f32 %v14452_v30, %v15765_v42  ;;  %v6129_v34 = vor.u32 %v6128_v16, %v6125_v50  ;;  %10300 = vst.msk [vmem:[%s14472_s18 + $0x1d8] sm:$0xff] %vm652_vm1, %v4666_v1  ;;  %v2273_v49 = vadd.f32 %v14561_v29, %v14452_v30  ;;  %v10495_v1 = vld [vmem:[%s12392_s10 + $0x44] sm:$0x1] }
 0x26c   : > { %v6111_v25 = vsel %vm12451_vm7, %v6106_v62, %v6110_v22  ;;  %v10843_v17 = vrot.slane %v10826_v56, 9  ;;  %11712 = vmatmul.mubr.msk.bf16.vlgmr.msra.gmra.mrb[32].mxu1 %vm652_vm1, %v10858_v13  ;;  %v6121_v63 = vsel %vm12451_vm7, %v6116_v32, %v6120_v45  ;;  %v6139_v57 = vor.u32 %v6138_v59, %v6134_v51  ;;  %v10490_v13 = vld [vmem:[%s12392_s10 + $0x30] sm:$0xf]  ;;  %v10491_v22 = vld [vmem:[%s12392_s10 + $0x34] sm:$0xf] }
 0x26d   : > { %10298 = vst.msk [vmem:[%s14472_s18 + $0x1c8] sm:$0xff] %vm652_vm1, %v4664_v8  ;;  %v8776_v48 = vrot.slane %v12258_v24, 5  ;;  %v8779_v6 = vrot.slane %v12259_v35, 5  ;;  %v10533_v33 = vcombine.low %v6111_v25, %v6121_v63  ;;  %v6130_v58 = vrot.slane %v6129_v34, 4  ;;  %2305 = vst.msk [vmem:[%s14472_s18 + $0xd0] sm:$0xff] %vm652_vm1, %v2273_v49 }
 0x26e   : > { %v2271_v29 = vadd.f32 %v14452_v30, %v14573_v14  ;;  %v10844_v7 = vrot.slane %v10827_v52, 9  ;;  %v6140_v53 = vrot.slane %v6139_v57, 4  ;;  %v8783_v9 = vrot.slane %v12260_v2, 5  ;;  %v12261_v14 = vld [vmem:[%s12392_s10 + $0x44] sm:$0x1] }
 0x26f   : > { %v8777_v44 = vsel %vm12412_vm6, %v10843_v17, %v8776_v48  ;;  %v8778_v20 = vrot.slane %v8776_v48, 4  ;;  %11575 = vmatprep.mubr.msk.bf16.mxu0 %vm652_vm1, %v10533_v33  ;;  %v6135_v23 = vsel %vm12451_vm7, %v6130_v58, %v6134_v51  ;;  %v8786_v37 = vrot.slane %v12261_v14, 5  ;;  %v10492_v45 = vld [vmem:[%s12392_s10 + $0x38] sm:$0x1]  ;;  %v10494_v62 = vld [vmem:[%s12392_s10 + $0x40] sm:$0xf] }
 0x270   : > { %2303 = vst.msk [vmem:[%s14472_s18 + $0xc0] sm:$0xff] %vm652_vm1, %v2271_v29  ;;  %v2274_v41 = vadd.f32 %v14583_v26, %v14452_v30  ;;  %v2272_v31 = vadd.f32 %v14452_v30, %v14587_v19  ;;  %v6145_v12 = vsel %vm12451_vm7, %v6140_v53, %v6144_v40  ;;  %v8784_v43 = vsel %vm12412_vm6, %v10844_v7, %v8783_v9  ;;  %v10828_v57 = vld [vmem:[%s12392_s10 + $0x48] sm:$0xe]  ;;  %v12263_v14 = vld [vmem:[%s12392_s10 + $0x50] sm:$0x1] }
 0x271   : > { %v8780_v5 = vsel %vm12412_vm6, %v8778_v20, %v8779_v6  ;;  %v8785_v4 = vrot.slane %v8783_v9, 4  ;;  %v10534_v28 = vcombine.low %v6135_v23, %v6145_v12  ;;  %v4669_v26 = vadd.f32 %v14575_v0, %v14452_v30  ;;  %v10829_v9 = vld [vmem:[%s12392_s10 + $0x54] sm:$0xe] }
 0x272   : > { %v10859_v15 = vcombine.low %v8777_v44, %v8780_v5  ;;  %2306 = vst.msk [vmem:[%s14472_s18 + $0xd8] sm:$0xff] %vm652_vm1, %v2274_v41  ;;  %2304 = vst.msk [vmem:[%s14472_s18 + $0xc8] sm:$0xff] %vm652_vm1, %v2272_v31  ;;  %v6147_v19 = vshrl.u32 %v10490_v13, 16  ;;  %v6150_v60 = vshll.u32 %v10490_v13, 16  ;;  %v6156_v38 = vshll.u32 %v10491_v22, 16 }
 0x273   : > { %v8787_v50 = vsel %vm12412_vm6, %v8785_v4, %v8786_v37  ;;  %v6160_v56 = vshrl.u32 %v10491_v22, 16  ;;  %11576 = vmatmul.mubr.msk.bf16.vlgmr.msra.gmra.mrb[32].mxu0 %vm652_vm1, %v10534_v28  ;;  %10303 = vst.msk [vmem:[%s14472_s18 + $0x1f0] sm:$0xff] %vm652_vm1, %v4669_v26  ;;  %v6166_v61 = vshll.u32 %v10492_v45, 16  ;;  %v4667_v0 = vadd.f32 %v14452_v30, %v14585_v36  ;;  %v14937_v31 = vld [vmem:[%s15601_s2] ss:$0 sm:$0xff] }
 0x274   : > { %11715 = vmatprep.mubr.msk.bf16.mxu1 %vm652_vm1, %v10859_v15  ;;  %v10860_v16 = vcombine.low %v8784_v43, %v8787_v50  ;;  %v6149_v51 = vrot.slane %v6147_v19, 4  ;;  %v6152_v32 = vrot.slane %v6150_v60, 5  ;;  %v6158_v59 = vrot.slane %v6156_v38, 5  ;;  %v12265_v4 = vld [vmem:[%s12392_s10 + $0x58] sm:$0xf] }
 0x275   : > { %v6162_v40 = vrot.slane %v6160_v56, 4  ;;  %v6171_v42 = vshrl.u32 %v10493_v21, 16  ;;  %v6168_v8 = vrot.slane %v6166_v61, 5  ;;  %10301 = vst.msk [vmem:[%s14472_s18 + $0x1e0] sm:$0xff] %vm652_vm1, %v4667_v0  ;;  %v6174_v52 = vshll.u32 %v10493_v21, 16 }
 0x276   : > { %11716 = vmatmul.mubr.msk.bf16.gmra.mrb[36].mxu1 %vm652_vm1, %v10860_v16  ;;  %v6180_v25 = vshll.u32 %v10494_v62, 16  ;;  %v6184_v34 = vshrl.u32 %v10494_v62, 16  ;;  %v6153_v49 = vor.u32 %v6152_v32, %v6149_v51  ;;  %v6190_v36 = vshll.u32 %v10495_v1, 16  ;;  %v10496_v28 = vld [vmem:[%s12392_s10 + $0x48] sm:$0xf] }
 0x277   : > { %v6163_v17 = vor.u32 %v6162_v40, %v6158_v59  ;;  %v6173_v63 = vrot.slane %v6171_v42, 4  ;;  %v6176_v24 = vrot.slane %v6174_v52, 5  ;;  %v4670_v6 = vadd.f32 %v14589_v54, %v14452_v30  ;;  %v10497_v50 = vld [vmem:[%s12392_s10 + $0x4c] sm:$0xf]  ;;  %v10498_v60 = vld [vmem:[%s12392_s10 + $0x50] sm:$0x1] }
 0x278   : > { %v6182_v48 = vrot.slane %v6180_v25, 5  ;;  %v6186_v35 = vrot.slane %v6184_v34, 4  ;;  %v6154_v33 = vrot.slane %v6153_v49, 4  ;;  %v6192_v29 = vrot.slane %v6190_v36, 5  ;;  %v10499_v51 = vld [vmem:[%s12392_s10 + $0x54] sm:$0xf] }
 0x279   : > { %v6164_v58 = vrot.slane %v6163_v17, 4  ;;  %v4668_v7 = vadd.f32 %v14452_v30, %v14596_v55  ;;  %v6177_v53 = vor.u32 %v6176_v24, %v6173_v63  ;;  %10304 = vst.msk [vmem:[%s14472_s18 + $0x1f8] sm:$0xff] %vm652_vm1, %v4670_v6  ;;  %v2277_v20 = vadd.f32 %v14641_v27, %v14452_v30  ;;  %v12262_v55 = vld [vmem:[%s12392_s10 + $0x4c] sm:$0xf]  ;;  %v10500_v32 = vld [vmem:[%s12392_s10 + $0x58] sm:$0xf] }
 0x27a   : > { %v6187_v44 = vor.u32 %v6186_v35, %v6182_v48  ;;  %v10845_v2 = vrot.slane %v10828_v57, 9  ;;  %v6159_v54 = vsel %vm12451_vm7, %v6154_v33, %v6158_v59  ;;  %v8790_v23 = vrot.slane %v12262_v55, 5  ;;  %v10501_v52 = vld [vmem:[%s12392_s10 + $0x5c] sm:$0x1]  ;;  %v10830_v17 = vld [vmem:[%s12392_s10 + $0x60] sm:$0xe] }
 0x27b   : > { %v6169_v13 = vsel %vm12451_vm7, %v6164_v58, %v6168_v8  ;;  %10302 = vst.msk [vmem:[%s14472_s18 + $0x1e8] sm:$0xff] %vm652_vm1, %v4668_v7  ;;  %v8793_v37 = vrot.slane %v12263_v14, 5  ;;  %v6178_v30 = vrot.slane %v6177_v53, 4  ;;  %2309 = vst.msk [vmem:[%s14472_s18 + $0xf0] sm:$0xff] %vm652_vm1, %v2277_v20  ;;  %v2275_v22 = vadd.f32 %v14937_v31, %v14649_v46  ;;  %v12266_v46 = vld [vmem:[%s12392_s10 + $0x5c] sm:$0x1] }
 0x27c   : > { %v10535_v41 = vcombine.low %v6159_v54, %v6169_v13  ;;  %v6188_v27 = vrot.slane %v6187_v44, 4  ;;  %v8791_v12 = vsel %vm12412_vm6, %v10845_v2, %v8790_v23  ;;  %v8792_v5 = vrot.slane %v8790_v23, 4  ;;  %v10831_v13 = vld [vmem:[%s12392_s10 + $0x6c] sm:$0xe] }
 0x27d   : > { %v10846_v43 = vrot.slane %v10829_v9, 9  ;;  %v8797_v45 = vrot.slane %v12265_v4, 5  ;;  %v6183_v15 = vsel %vm12451_vm7, %v6178_v30, %v6182_v48  ;;  %2307 = vst.msk [vmem:[%s14472_s18 + $0xe0] sm:$0xff] %vm652_vm1, %v2275_v22  ;;  %v8800_v19 = vrot.slane %v12266_v46, 5  ;;  %v12267_v9 = vld [vmem:[%s12392_s10 + $0x64] sm:$0xf] }
 0x27e   : > { %11579 = vmatprep.mubr.msk.bf16.mxu0 %vm652_vm1, %v10535_v41  ;;  %v6193_v26 = vsel %vm12451_vm7, %v6188_v27, %v6192_v29  ;;  %v2278_v21 = vadd.f32 %v14937_v31, %v14653_v39  ;;  %v8794_v56 = vsel %vm12412_vm6, %v8792_v5, %v8793_v37  ;;  %v2276_v0 = vadd.f32 %v14937_v31, %v14657_v11  ;;  %v12268_v37 = vld [vmem:[%s12392_s10 + $0x68] sm:$0x1]  ;;  %v10502_v5 = vld [vmem:[%s12392_s10 + $0x60] sm:$0xf] }
 0x27f   : > { %v10536_v38 = vcombine.low %v6183_v15, %v6193_v26  ;;  %v8798_v62 = vsel %vm12412_vm6, %v10846_v43, %v8797_v45  ;;  %v8799_v16 = vrot.slane %v8797_v45, 4  ;;  %v10861_v61 = vcombine.low %v8791_v12, %v8794_v56  ;;  %v10503_v26 = vld [vmem:[%s12392_s10 + $0x64] sm:$0xf] }
 0x280   : > { %2310 = vst.msk [vmem:[%s14472_s18 + $0xf8] sm:$0xff] %vm652_vm1, %v2278_v21  ;;  %v6195_v39 = vshrl.u32 %v10496_v28, 16  ;;  %v6198_v1 = vshll.u32 %v10496_v28, 16  ;;  %v6204_v40 = vshll.u32 %v10497_v50, 16  ;;  %v6208_v42 = vshrl.u32 %v10497_v50, 16  ;;  %2308 = vst.msk [vmem:[%s14472_s18 + $0xe8] sm:$0xff] %vm652_vm1, %v2276_v0 }
 0x281   : > { %11580 = vmatmul.mubr.msk.bf16.gmra.mrb[36].mxu0 %vm652_vm1, %v10536_v38  ;;  %v8801_v59 = vsel %vm12412_vm6, %v8799_v16, %v8800_v19  ;;  %v6214_v8 = vshll.u32 %v10498_v60, 16  ;;  %11719 = vmatprep.mubr.msk.bf16.mxu1 %vm652_vm1, %v10861_v61  ;;  %v6219_v49 = vshrl.u32 %v10499_v51, 16  ;;  %v6222_v24 = vshll.u32 %v10499_v51, 16  ;;  %v12269_v28 = vld [vmem:[%s12392_s10 + $0x70] sm:$0xf] }
 0x282   : > { %v10862_v25 = vcombine.low %v8798_v62, %v8801_v59  ;;  %v6197_v34 = vrot.slane %v6195_v39, 4  ;;  %v6200_v11 = vrot.slane %v6198_v1, 5  ;;  %v6206_v63 = vrot.slane %v6204_v40, 5  ;;  %v12270_v50 = vld [vmem:[%s12392_s10 + $0x74] sm:$0x1] }
 0x283   : > { %v6210_v36 = vrot.slane %v6208_v42, 4  ;;  %v6216_v57 = vrot.slane %v6214_v8, 5  ;;  %v6221_v35 = vrot.slane %v6219_v49, 4  ;;  %v6228_v6 = vshll.u32 %v10500_v32, 16  ;;  %v10504_v38 = vld [vmem:[%s12392_s10 + $0x68] sm:$0x1] }
 0x284   : > { %11720 = vmatmul.mubr.msk.bf16.gmra.mrb[40].mxu1 %vm652_vm1, %v10862_v25  ;;  %v6201_v48 = vor.u32 %v6200_v11, %v6197_v34  ;;  %v6232_v33 = vshrl.u32 %v10500_v32, 16  ;;  %v6224_v29 = vrot.slane %v6222_v24, 5  ;;  %v6238_v7 = vshll.u32 %v10501_v52, 16  ;;  %v10505_v32 = vld [vmem:[%s12392_s10 + $0x6c] sm:$0xf] }
 0x285   : > { %v6211_v58 = vor.u32 %v6210_v36, %v6206_v63  ;;  %v10847_v53 = vrot.slane %v10830_v17, 9  ;;  %v6230_v20 = vrot.slane %v6228_v6, 5  ;;  %v8804_v54 = vrot.slane %v12267_v9, 5  ;;  %v10506_v52 = vld [vmem:[%s12392_s10 + $0x70] sm:$0xf] }
 0x286   : > { %v6202_v44 = vrot.slane %v6201_v48, 4  ;;  %v6234_v2 = vrot.slane %v6232_v33, 4  ;;  %v6225_v23 = vor.u32 %v6224_v29, %v6221_v35  ;;  %v6240_v14 = vrot.slane %v6238_v7, 5  ;;  %v10507_v25 = vld [vmem:[%s12392_s10 + $0x74] sm:$0x1] }
 0x287   : > { %v6212_v55 = vrot.slane %v6211_v58, 4  ;;  %v8807_v41 = vrot.slane %v12268_v37, 5  ;;  %v8805_v22 = vsel %vm12412_vm6, %v10847_v53, %v8804_v54  ;;  %v8806_v12 = vrot.slane %v8804_v54, 4 }
 0x288   : > { %v6207_v30 = vsel %vm12451_vm7, %v6202_v44, %v6206_v63  ;;  %v6235_v27 = vor.u32 %v6234_v2, %v6230_v20  ;;  %v6226_v4 = vrot.slane %v6225_v23, 4  ;;  %v10848_v45 = vrot.slane %v10831_v13, 9  ;;  %v10832_v63 = vld [vmem:[%s12392_s10 + $0x78] sm:$0xe] }
 0x289   : > { %v6217_v43 = vsel %vm12451_vm7, %v6212_v55, %v6216_v57  ;;  %v8811_v15 = vrot.slane %v12269_v28, 5  ;;  %v8808_v21 = vsel %vm12412_vm6, %v8806_v12, %v8807_v41  ;;  %v8814_v60 = vrot.slane %v12270_v50, 5  ;;  %v12272_v41 = vld [vmem:[%s12392_s10 + $0x80] sm:$0x1] }
 0x28a   : > { %v10537_v46 = vcombine.low %v6207_v30, %v6217_v43  ;;  %v6236_v19 = vrot.slane %v6235_v27, 4  ;;  %v6231_v56 = vsel %vm12451_vm7, %v6226_v4, %v6230_v20  ;;  %v10863_v62 = vcombine.low %v8805_v22, %v8808_v21  ;;  %v10833_v20 = vld [vmem:[%s12392_s10 + $0x84] sm:$0xe]  ;;  %v10508_v4 = vld [vmem:[%s12392_s10 + $0x78] sm:$0xf] }
 0x28b   : > { %v8812_v16 = vsel %vm12412_vm6, %v10848_v45, %v8811_v15  ;;  %v8813_v51 = vrot.slane %v8811_v15, 4  ;;  %v6243_v0 = vshrl.u32 %v10502_v5, 16  ;;  %v6246_v39 = vshll.u32 %v10502_v5, 16  ;;  %v12273_v5 = vld [vmem:[%s12392_s10 + $0x88] sm:$0xf] }
 0x28c   : > { %11583 = vmatprep.mubr.msk.bf16.mxu0 %vm652_vm1, %v10537_v46  ;;  %v6241_v61 = vsel %vm12451_vm7, %v6236_v19, %v6240_v14  ;;  %v6252_v1 = vshll.u32 %v10503_v26, 16  ;;  %11723 = vmatprep.mubr.msk.bf16.mxu1 %vm652_vm1, %v10863_v62  ;;  %v6256_v42 = vshrl.u32 %v10503_v26, 16  ;;  %v6262_v8 = vshll.u32 %v10504_v38, 16  ;;  %v12271_v14 = vld [vmem:[%s12392_s10 + $0x7c] sm:$0xf] }
 0x28d   : > { %v10538_v59 = vcombine.low %v6231_v56, %v6241_v61  ;;  %v8815_v40 = vsel %vm12412_vm6, %v8813_v51, %v8814_v60  ;;  %v6245_v11 = vrot.slane %v6243_v0, 4  ;;  %v6248_v49 = vrot.slane %v6246_v39, 5  ;;  %v10509_v46 = vld [vmem:[%s12392_s10 + $0x7c] sm:$0xf]  ;;  %v12274_v62 = vld [vmem:[%s12392_s10 + $0x8c] sm:$0x1] }
 0x28e   : > { %v10864_v34 = vcombine.low %v8812_v16, %v8815_v40  ;;  %v6254_v17 = vrot.slane %v6252_v1, 5  ;;  %v6258_v36 = vrot.slane %v6256_v42, 4  ;;  %v6264_v57 = vrot.slane %v6262_v8, 5  ;;  %v10510_v51 = vld [vmem:[%s12392_s10 + $0x80] sm:$0x1] }
 0x28f   : > { %11584 = vmatmul.mubr.msk.bf16.gmra.mrb[40].mxu0 %vm652_vm1, %v10538_v59  ;;  %v6267_v24 = vshrl.u32 %v10505_v32, 16  ;;  %v6270_v48 = vshll.u32 %v10505_v32, 16  ;;  %v6249_v35 = vor.u32 %v6248_v49, %v6245_v11  ;;  %v6276_v6 = vshll.u32 %v10506_v52, 16  ;;  %v10511_v59 = vld [vmem:[%s12392_s10 + $0x84] sm:$0xf] }
 0x290   : > { %11724 = vmatmul.mubr.msk.bf16.gmra.mrb[44].mxu1 %vm652_vm1, %v10864_v34  ;;  %v6280_v33 = vshrl.u32 %v10506_v52, 16  ;;  %v6286_v58 = vshll.u32 %v10507_v25, 16  ;;  %v6259_v29 = vor.u32 %v6258_v36, %v6254_v17  ;;  %v10849_v44 = vrot.slane %v10832_v63, 9  ;;  %v10512_v40 = vld [vmem:[%s12392_s10 + $0x88] sm:$0xf] }
 0x291   : > { %v6269_v7 = vrot.slane %v6267_v24, 4  ;;  %v6272_v53 = vrot.slane %v6270_v48, 5  ;;  %v6250_v2 = vrot.slane %v6249_v35, 4  ;;  %v6278_v9 = vrot.slane %v6276_v6, 5  ;;  %v10513_v34 = vld [vmem:[%s12392_s10 + $0x8c] sm:$0x1] }
 0x292   : > { %v6282_v54 = vrot.slane %v6280_v33, 4  ;;  %v6288_v13 = vrot.slane %v6286_v58, 5  ;;  %v6260_v55 = vrot.slane %v6259_v29, 4  ;;  %v8818_v37 = vrot.slane %v12271_v14, 5  ;;  %v10834_v35 = vld [vmem:[%s12392_s10 + $0x90] sm:$0xe] }
 0x293   : > { %v6273_v23 = vor.u32 %v6272_v53, %v6269_v7  ;;  %v8821_v30 = vrot.slane %v12272_v41, 5  ;;  %v6255_v27 = vsel %vm12451_vm7, %v6250_v2, %v6254_v17  ;;  %v10850_v12 = vrot.slane %v10833_v20, 9  ;;  %v10835_v2 = vld [vmem:[%s12392_s10 + $0x9c] sm:$0xe] }
 0x294   : > { %v6283_v22 = vor.u32 %v6282_v54, %v6278_v9  ;;  %v8825_v43 = vrot.slane %v12273_v5, 5  ;;  %v6265_v45 = vsel %vm12451_vm7, %v6260_v55, %v6264_v57  ;;  %v8819_v15 = vsel %vm12412_vm6, %v10849_v44, %v8818_v37 }
 0x295   : > { %v6274_v28 = vrot.slane %v6273_v23, 4  ;;  %v8820_v26 = vrot.slane %v8818_v37, 4  ;;  %v10539_v19 = vcombine.low %v6255_v27, %v6265_v45  ;;  %v8828_v16 = vrot.slane %v12274_v62, 5  ;;  %v12275_v37 = vld [vmem:[%s12392_s10 + $0x94] sm:$0xf] }
 0x296   : > { %v6284_v21 = vrot.slane %v6283_v22, 4  ;;  %v8826_v50 = vsel %vm12412_vm6, %v10850_v12, %v8825_v43  ;;  %v8827_v60 = vrot.slane %v8825_v43, 4  ;;  %v6291_v61 = vshrl.u32 %v10508_v4, 16  ;;  %v12277_v43 = vld [vmem:[%s12392_s10 + $0xa0] sm:$0xf] }
 0x297   : > { %v6279_v38 = vsel %vm12451_vm7, %v6274_v28, %v6278_v9  ;;  %v8822_v56 = vsel %vm12412_vm6, %v8820_v26, %v8821_v30  ;;  %11587 = vmatprep.mubr.msk.bf16.mxu0 %vm652_vm1, %v10539_v19  ;;  %v6294_v1 = vshll.u32 %v10508_v4, 16  ;;  %v6300_v32 = vshll.u32 %v10509_v46, 16  ;;  %v12276_v30 = vld [vmem:[%s12392_s10 + $0x98] sm:$0x1]  ;;  %v10514_v45 = vld [vmem:[%s12392_s10 + $0x90] sm:$0xf] }
 0x298   : > { %v6289_v0 = vsel %vm12451_vm7, %v6284_v21, %v6288_v13  ;;  %v10865_v39 = vcombine.low %v8819_v15, %v8822_v56  ;;  %v8829_v8 = vsel %vm12412_vm6, %v8827_v60, %v8828_v16  ;;  %v6293_v52 = vrot.slane %v6291_v61, 4  ;;  %v10515_v19 = vld [vmem:[%s12392_s10 + $0x94] sm:$0xf]  ;;  %v12278_v16 = vld [vmem:[%s12392_s10 + $0xa4] sm:$0x1] }
 0x299   : > { %v10540_v42 = vcombine.low %v6279_v38, %v6289_v0  ;;  %v6304_v25 = vshrl.u32 %v10509_v46, 16  ;;  %v10866_v11 = vcombine.low %v8826_v50, %v8829_v8  ;;  %v6296_v49 = vrot.slane %v6294_v1, 5  ;;  %v10516_v61 = vld [vmem:[%s12392_s10 + $0x98] sm:$0x1] }
 0x29a   : > { %11727 = vmatprep.mubr.msk.bf16.mxu1 %vm652_vm1, %v10865_v39  ;;  %v6302_v17 = vrot.slane %v6300_v32, 5  ;;  %v6310_v63 = vshll.u32 %v10510_v51, 16  ;;  %v6315_v57 = vshrl.u32 %v10511_v59, 16  ;;  %v6318_v24 = vshll.u32 %v10511_v59, 16 }
 0x29b   : > { %11588 = vmatmul.mubr.msk.bf16.gmra.mrb[44].mxu0 %vm652_vm1, %v10540_v42  ;;  %v6306_v36 = vrot.slane %v6304_v25, 4  ;;  %v6324_v48 = vshll.u32 %v10512_v40, 16  ;;  %11728 = vmatmul.mubr.msk.bf16.gmra.mrb[48].mxu1 %vm652_vm1, %v10866_v11  ;;  %v6297_v6 = vor.u32 %v6296_v49, %v6293_v52  ;;  %v6328_v58 = vshrl.u32 %v10512_v40, 16  ;;  %v10517_v40 = vld [vmem:[%s12392_s10 + $0x9c] sm:$0xf] }
 0x29c   : > { %v6312_v33 = vrot.slane %v6310_v63, 5  ;;  %v6334_v29 = vshll.u32 %v10513_v34, 16  ;;  %v6317_v53 = vrot.slane %v6315_v57, 4  ;;  %v6320_v44 = vrot.slane %v6318_v24, 5  ;;  %v10518_v42 = vld [vmem:[%s12392_s10 + $0xa0] sm:$0xf] }
 0x29d   : > { %v6307_v7 = vor.u32 %v6306_v36, %v6302_v17  ;;  %v6326_v20 = vrot.slane %v6324_v48, 5  ;;  %v6298_v9 = vrot.slane %v6297_v6, 4  ;;  %v6330_v54 = vrot.slane %v6328_v58, 4  ;;  %v10519_v11 = vld [vmem:[%s12392_s10 + $0xa4] sm:$0x1] }
 0x29e   : > { %v6336_v13 = vrot.slane %v6334_v29, 5  ;;  %v10851_v55 = vrot.slane %v10834_v35, 9  ;;  %v6321_v14 = vor.u32 %v6320_v44, %v6317_v53  ;;  %v8832_v41 = vrot.slane %v12275_v37, 5  ;;  %v10836_v6 = vld [vmem:[%s12392_s10 + $0xa8] sm:$0xe] }
 0x29f   : > { %v6308_v23 = vrot.slane %v6307_v7, 4  ;;  %v8835_v27 = vrot.slane %v12276_v30, 5  ;;  %v6303_v22 = vsel %vm12451_vm7, %v6298_v9, %v6302_v17  ;;  %v6331_v12 = vor.u32 %v6330_v54, %v6326_v20  ;;  %v10837_v9 = vld [vmem:[%s12392_s10 + $0xb4] sm:$0xe] }
 0x2a0   : > { %v10852_v5 = vrot.slane %v10835_v2, 9  ;;  %v8839_v4 = vrot.slane %v12277_v43, 5  ;;  %v6322_v15 = vrot.slane %v6321_v14, 4  ;;  %v8833_v26 = vsel %vm12412_vm6, %v10851_v55, %v8832_v41 }
 0x2a1   : > { %v6313_v28 = vsel %vm12451_vm7, %v6308_v23, %v6312_v33  ;;  %v8834_v46 = vrot.slane %v8832_v41, 4  ;;  %v6332_v50 = vrot.slane %v6331_v12, 4  ;;  %v8842_v51 = vrot.slane %v12278_v16, 5  ;;  %v12279_v41 = vld [vmem:[%s12392_s10 + $0xac] sm:$0xf] }
 0x2a2   : > { %v10541_v21 = vcombine.low %v6303_v22, %v6313_v28  ;;  %v8840_v60 = vsel %vm12412_vm6, %v10852_v5, %v8839_v4  ;;  %v8841_v38 = vrot.slane %v8839_v4, 4  ;;  %v6327_v56 = vsel %vm12451_vm7, %v6322_v15, %v6326_v20 }
 0x2a3   : > { %v8836_v62 = vsel %vm12412_vm6, %v8834_v46, %v8835_v27  ;;  %v6339_v0 = vshrl.u32 %v10514_v45, 16  ;;  %v6337_v39 = vsel %vm12451_vm7, %v6332_v50, %v6336_v13  ;;  %v6342_v32 = vshll.u32 %v10514_v45, 16  ;;  %v12280_v27 = vld [vmem:[%s12392_s10 + $0xb0] sm:$0x1]  ;;  %v10520_v45 = vld [vmem:[%s12392_s10 + $0xa8] sm:$0xf] }
 0x2a4   : > { %11591 = vmatprep.mubr.msk.bf16.mxu0 %vm652_vm1, %v10541_v21  ;;  %v10867_v1 = vcombine.low %v8833_v26, %v8836_v62  ;;  %v6348_v59 = vshll.u32 %v10515_v19, 16  ;;  %v10542_v8 = vcombine.low %v6327_v56, %v6337_v39  ;;  %v8843_v52 = vsel %vm12412_vm6, %v8841_v38, %v8842_v51  ;;  %v12281_v62 = vld [vmem:[%s12392_s10 + $0xbc] sm:$0x1]  ;;  %v10522_v51 = vld [vmem:[%s12392_s10 + $0xb0] sm:$0x1] }
 0x2a5   : > { %v6341_v25 = vrot.slane %v6339_v0, 4  ;;  %v6352_v34 = vshrl.u32 %v10515_v19, 16  ;;  %v10868_v49 = vcombine.low %v8840_v60, %v8843_v52  ;;  %v6344_v17 = vrot.slane %v6342_v32, 5  ;;  %v10521_v19 = vld [vmem:[%s12392_s10 + $0xac] sm:$0xf] }
 0x2a6   : > { %11731 = vmatprep.mubr.msk.bf16.mxu1 %vm652_vm1, %v10867_v1  ;;  %v6350_v63 = vrot.slane %v6348_v59, 5  ;;  %v6358_v36 = vshll.u32 %v10516_v61, 16  ;;  %11592 = vmatmul.mubr.msk.bf16.gmra.mrb[48].mxu0 %vm652_vm1, %v10542_v8  ;;  %v6363_v24 = vshrl.u32 %v10517_v40, 16  ;;  %v6366_v48 = vshll.u32 %v10517_v40, 16  ;;  %v10523_v59 = vld [vmem:[%s12392_s10 + $0xb4] sm:$0xf] }
 0x2a7   : > { %v6354_v57 = vrot.slane %v6352_v34, 4  ;;  %v6372_v35 = vshll.u32 %v10518_v42, 16  ;;  %11732 = vmatmul.mubr.msk.bf16.gmra.mrb[52].mxu1 %vm652_vm1, %v10868_v49  ;;  %v6345_v33 = vor.u32 %v6344_v17, %v6341_v25  ;;  %v6376_v29 = vshrl.u32 %v10518_v42, 16  ;;  %v10524_v40 = vld [vmem:[%s12392_s10 + $0xb8] sm:$0xf] }
 0x2a8   : > { %v6360_v58 = vrot.slane %v6358_v36, 5  ;;  %v6382_v7 = vshll.u32 %v10519_v11, 16  ;;  %v6365_v44 = vrot.slane %v6363_v24, 4  ;;  %v6368_v20 = vrot.slane %v6366_v48, 5  ;;  %v10525_v34 = vld [vmem:[%s12392_s10 + $0xbc] sm:$0x1] }
 0x2a9   : > { %v6355_v53 = vor.u32 %v6354_v57, %v6350_v63  ;;  %v6374_v2 = vrot.slane %v6372_v35, 5  ;;  %v6346_v54 = vrot.slane %v6345_v33, 4  ;;  %v6378_v13 = vrot.slane %v6376_v29, 4  ;;  %v10838_v35 = vld [vmem:[%s12392_s10 + $0xc0] sm:$0xe] }
 0x2aa   : > { %v6384_v55 = vrot.slane %v6382_v7, 5  ;;  %v10853_v23 = vrot.slane %v10836_v6, 9  ;;  %v6369_v37 = vor.u32 %v6368_v20, %v6365_v44  ;;  %v8846_v30 = vrot.slane %v12279_v41, 5 }
 0x2ab   : > { %v6356_v14 = vrot.slane %v6355_v53, 4  ;;  %v8849_v22 = vrot.slane %v12280_v27, 5  ;;  %v6351_v12 = vsel %vm12451_vm7, %v6346_v54, %v6350_v63  ;;  %v6379_v5 = vor.u32 %v6378_v13, %v6374_v2 }
 0x2ac   : > { %v10854_v43 = vrot.slane %v10837_v9, 9  ;;  %v8853_v4 = vrot.slane %v14706_v47, 5  ;;  %v6370_v15 = vrot.slane %v6369_v37, 4  ;;  %v8847_v26 = vsel %vm12412_vm6, %v10853_v23, %v8846_v30  ;;  %v12282_v37 = vld [vmem:[%s12392_s10 + $0xc4] sm:$0xf] }
 0x2ad   : > { %v6361_v28 = vsel %vm12451_vm7, %v6356_v14, %v6360_v58  ;;  %v8848_v46 = vrot.slane %v8846_v30, 4  ;;  %v6380_v50 = vrot.slane %v6379_v5, 4  ;;  %v8856_v16 = vrot.slane %v12281_v62, 5  ;;  %v12283_v30 = vld [vmem:[%s12392_s10 + $0xc8] sm:$0x1] }
 0x2ae   : > { %v10543_v21 = vcombine.low %v6351_v12, %v6361_v28  ;;  %v8854_v60 = vsel %vm12412_vm6, %v10854_v43, %v8853_v4  ;;  %v8855_v38 = vrot.slane %v8853_v4, 4  ;;  %v6375_v47 = vsel %vm12451_vm7, %v6370_v15, %v6374_v2  ;;  %v10839_v2 = vld [vmem:[%s12392_s10 + $0xcc] sm:$0xe]  ;;  %v10526_v4 = vld [vmem:[%s12392_s10 + $0xc0] sm:$0xf] }
 0x2af   : > { %v8850_v56 = vsel %vm12412_vm6, %v8848_v46, %v8849_v22  ;;  %v6387_v61 = vshrl.u32 %v10520_v45, 16  ;;  %v6385_v0 = vsel %vm12451_vm7, %v6380_v50, %v6384_v55  ;;  %v6390_v1 = vshll.u32 %v10520_v45, 16  ;;  %v10527_v46 = vld [vmem:[%s12392_s10 + $0xc4] sm:$0xf]  ;;  %v10528_v62 = vld [vmem:[%s12392_s10 + $0xc8] sm:$0x1] }
 0x2b0   : > { %11595 = vmatprep.mubr.msk.bf16.mxu0 %vm652_vm1, %v10543_v21  ;;  %v10869_v39 = vcombine.low %v8847_v26, %v8850_v56  ;;  %v6396_v32 = vshll.u32 %v10521_v19, 16  ;;  %v10544_v42 = vcombine.low %v6375_v47, %v6385_v0  ;;  %v8857_v8 = vsel %vm12412_vm6, %v8855_v38, %v8856_v16  ;;  %v12284_v47 = vld [vmem:[%s12392_s10 + $0xd4] sm:$0x1] }
 0x2b1   : > { %v6389_v52 = vrot.slane %v6387_v61, 4  ;;  %v6400_v25 = vshrl.u32 %v10521_v19, 16  ;;  %v10870_v11 = vcombine.low %v8854_v60, %v8857_v8  ;;  %v6392_v49 = vrot.slane %v6390_v1, 5  ;;  %v10529_v1 = vld [vmem:[%s12392_s10 + $0xcc] sm:$0xf] }
 0x2b2   : > { %11735 = vmatprep.mubr.msk.bf16.mxu1 %vm652_vm1, %v10869_v39  ;;  %v6398_v17 = vrot.slane %v6396_v32, 5  ;;  %v6406_v63 = vshll.u32 %v10522_v51, 16  ;;  %11596 = vmatmul.mubr.msk.bf16.gmra.mrb[52].mxu0 %vm652_vm1, %v10544_v42  ;;  %v6411_v57 = vshrl.u32 %v10523_v59, 16  ;;  %v6414_v24 = vshll.u32 %v10523_v59, 16  ;;  %v10530_v32 = vld [vmem:[%s12392_s10 + $0xd0] sm:$0xf] }
 0x2b3   : > { %v6402_v36 = vrot.slane %v6400_v25, 4  ;;  %v6420_v48 = vshll.u32 %v10524_v40, 16  ;;  %11736 = vmatmul.mubr.msk.bf16.gmra.mrb[56].mxu1 %vm652_vm1, %v10870_v11  ;;  %v6393_v6 = vor.u32 %v6392_v49, %v6389_v52  ;;  %v6424_v58 = vshrl.u32 %v10524_v40, 16  ;;  %v10531_v52 = vld [vmem:[%s12392_s10 + $0xd4] sm:$0x1] }
 0x2b4   : > { %v6408_v33 = vrot.slane %v6406_v63, 5  ;;  %v6430_v29 = vshll.u32 %v10525_v34, 16  ;;  %v6413_v53 = vrot.slane %v6411_v57, 4  ;;  %v6416_v44 = vrot.slane %v6414_v24, 5 }
 0x2b5   : > { %v6403_v7 = vor.u32 %v6402_v36, %v6398_v17  ;;  %v6422_v20 = vrot.slane %v6420_v48, 5  ;;  %v6394_v9 = vrot.slane %v6393_v6, 4  ;;  %v6426_v54 = vrot.slane %v6424_v58, 4 }
 0x2b6   : > { %v6432_v13 = vrot.slane %v6430_v29, 5  ;;  %v10855_v55 = vrot.slane %v10838_v35, 9  ;;  %v6417_v14 = vor.u32 %v6416_v44, %v6413_v53  ;;  %v8860_v41 = vrot.slane %v12282_v37, 5 }
 0x2b7   : > { %v6404_v23 = vrot.slane %v6403_v7, 4  ;;  %v8863_v27 = vrot.slane %v12283_v30, 5  ;;  %v6399_v22 = vsel %vm12451_vm7, %v6394_v9, %v6398_v17  ;;  %v6427_v12 = vor.u32 %v6426_v54, %v6422_v20 }
 0x2b8   : > { %v10856_v5 = vrot.slane %v10839_v2, 9  ;;  %v8867_v43 = vrot.slane %v14756_v10, 5  ;;  %v6418_v28 = vrot.slane %v6417_v14, 4  ;;  %v8861_v15 = vsel %vm12412_vm6, %v10855_v55, %v8860_v41 }
 0x2b9   : > { %v6409_v45 = vsel %vm12451_vm7, %v6404_v23, %v6408_v33  ;;  %v8862_v26 = vrot.slane %v8860_v41, 4  ;;  %v6428_v21 = vrot.slane %v6427_v12, 4  ;;  %v8870_v56 = vrot.slane %v12284_v47, 5 }
 0x2ba   : > { %v10545_v19 = vcombine.low %v6399_v22, %v6409_v45  ;;  %v8868_v50 = vsel %vm12412_vm6, %v10856_v5, %v8867_v43  ;;  %v8869_v60 = vrot.slane %v8867_v43, 4  ;;  %v6423_v10 = vsel %vm12451_vm7, %v6418_v28, %v6422_v20 }
 0x2bb   : > { %v8864_v38 = vsel %vm12412_vm6, %v8862_v26, %v8863_v27  ;;  %v6435_v16 = vshrl.u32 %v10526_v4, 16  ;;  %v6433_v51 = vsel %vm12451_vm7, %v6428_v21, %v6432_v13  ;;  %v6438_v0 = vshll.u32 %v10526_v4, 16 }
 0x2bc   : > { %11599 = vmatprep.mubr.msk.bf16.mxu0 %vm652_vm1, %v10545_v19  ;;  %v10871_v61 = vcombine.low %v8861_v15, %v8864_v38  ;;  %v6444_v39 = vshll.u32 %v10527_v46, 16  ;;  %v10546_v59 = vcombine.low %v6423_v10, %v6433_v51  ;;  %v8871_v40 = vsel %vm12412_vm6, %v8869_v60, %v8870_v56 }
 0x2bd   : > { %v6437_v42 = vrot.slane %v6435_v16, 4  ;;  %v6448_v8 = vshrl.u32 %v10527_v46, 16  ;;  %v10872_v25 = vcombine.low %v8868_v50, %v8871_v40  ;;  %v6440_v34 = vrot.slane %v6438_v0, 5 }
 0x2be   : > { %11739 = vmatprep.mubr.msk.bf16.mxu1 %vm652_vm1, %v10871_v61  ;;  %v6446_v11 = vrot.slane %v6444_v39, 5  ;;  %v6454_v49 = vshll.u32 %v10528_v62, 16  ;;  %11600 = vmatmul.mubr.msk.bf16.gmra.mrb[56].mxu0 %vm652_vm1, %v10546_v59  ;;  %v6459_v63 = vshrl.u32 %v10529_v1, 16  ;;  %v6462_v36 = vshll.u32 %v10529_v1, 16 }
 0x2bf   : > { %v6450_v17 = vrot.slane %v6448_v8, 4  ;;  %v6468_v57 = vshll.u32 %v10530_v32, 16  ;;  %11740 = vmatmul.mubr.msk.bf16.gmra.mrb[60].mxu1 %vm652_vm1, %v10872_v25  ;;  %v6441_v24 = vor.u32 %v6440_v34, %v6437_v42  ;;  %v6472_v48 = vshrl.u32 %v10530_v32, 16 }
 0x2c0   : > { %v6456_v18 = vrot.slane %v6454_v49, 5  ;;  %v6478_v35 = vshll.u32 %v10531_v52, 16  ;;  %v6461_v33 = vrot.slane %v6459_v63, 4  ;;  %v6464_v58 = vrot.slane %v6462_v36, 5 }
 0x2c1   : > { %v6451_v6 = vor.u32 %v6450_v17, %v6446_v11  ;;  %v6470_v29 = vrot.slane %v6468_v57, 5  ;;  %v6442_v7 = vrot.slane %v6441_v24, 4  ;;  %v6474_v53 = vrot.slane %v6472_v48, 4 }
 0x2c2   : > { %v6465_v20 = vor.u32 %v6464_v58, %v6461_v33  ;;  %v6480_v54 = vrot.slane %v6478_v35, 5 }
 0x2c3   : > { %v6452_v44 = vrot.slane %v6451_v6, 4  ;;  %v6447_v2 = vsel %vm12451_vm7, %v6442_v7, %v6446_v11  ;;  %v6475_v9 = vor.u32 %v6474_v53, %v6470_v29 }
 0x2c4   : > { %v6466_v55 = vrot.slane %v6465_v20, 4 }
 0x2c5   : > { %v6457_v13 = vsel %vm12451_vm7, %v6452_v44, %v6456_v18  ;;  %v6476_v14 = vrot.slane %v6475_v9, 4 }
 0x2c6   : > { %v10547_v23 = vcombine.low %v6447_v2, %v6457_v13  ;;  %v6471_v37 = vsel %vm12451_vm7, %v6466_v55, %v6470_v29 }
 0x2c7   : > { %v6481_v41 = vsel %vm12451_vm7, %v6476_v14, %v6480_v54 }
 0x2c8   : > { %11603 = vmatprep.mubr.msk.bf16.mxu0 %vm652_vm1, %v10547_v23  ;;  %v10548_v30 = vcombine.low %v6471_v37, %v6481_v41 }
 0x2ca   : > { %11604 = vmatmul.mubr.msk.bf16.gmra.mrb[60].mxu0 %vm652_vm1, %v10548_v30 }
 0x33f   : > { %v11713_v27 = vpop.f32.mrb[32].mxu1 }
 0x340   : > { %v9166_v22 = vadd.f32 %v14937_v31, %v11713_v27  ;;  %v9005_v12 = vpop.f32.mrb[33].mxu1 }
 0x341   : > { %v9164_v5 = vadd.f32 %v14937_v31, %v9005_v12  ;;  %v11714_v43 = vpop.f32.mrb[34].mxu1 }
 0x342   : > { %10891 = vst.msk [vmem:[%s14472_s18 + $0x310] sm:$0xff] %vm652_vm1, %v9166_v22  ;;  %v9167_v4 = vadd.f32 %v14937_v31, %v11714_v43  ;;  %v9008_v45 = vpop.f32.mrb[35].mxu1 }
 0x343   : > { %10889 = vst.msk [vmem:[%s14472_s18 + $0x300] sm:$0xff] %vm652_vm1, %v9164_v5  ;;  %v9165_v3 = vadd.f32 %v14937_v31, %v9008_v45 }
 0x344   : > { %10892 = vst.msk [vmem:[%s14472_s18 + $0x318] sm:$0xff] %vm652_vm1, %v9167_v4 }
 0x345   : > { %10890 = vst.msk [vmem:[%s14472_s18 + $0x308] sm:$0xff] %vm652_vm1, %v9165_v3 }
 0x346   : > { %v11577_v28 = vpop.f32.mrb[32].mxu0 }
 0x347   : > { %v6776_v15 = vadd.f32 %v14937_v31, %v11577_v28  ;;  %v6615_v26 = vpop.f32.mrb[33].mxu0 }
 0x348   : > { %v6774_v46 = vadd.f32 %v14937_v31, %v6615_v26  ;;  %v11578_v19 = vpop.f32.mrb[34].mxu0 }
 0x349   : > { %v11717_v21 = vpop.f32.mrb[36].mxu1  ;;  %10567 = vst.msk [vmem:[%s14472_s18 + $0x210] sm:$0xff] %vm652_vm1, %v6776_v15  ;;  %v6777_v50 = vadd.f32 %v14937_v31, %v11578_v19  ;;  %v6618_v60 = vpop.f32.mrb[35].mxu0 }
 0x34a   : > { %v9170_v10 = vadd.f32 %v14937_v31, %v11717_v21  ;;  %v9021_v38 = vpop.f32.mrb[37].mxu1  ;;  %10565 = vst.msk [vmem:[%s14472_s18 + $0x200] sm:$0xff] %vm652_vm1, %v6774_v46  ;;  %v6775_v47 = vadd.f32 %v14937_v31, %v6618_v60 }
 0x34b   : > { %v9168_v56 = vadd.f32 %v14937_v31, %v9021_v38  ;;  %v11718_v62 = vpop.f32.mrb[38].mxu1  ;;  %10568 = vst.msk [vmem:[%s14472_s18 + $0x218] sm:$0xff] %vm652_vm1, %v6777_v50 }
 0x34c   : > { %10895 = vst.msk [vmem:[%s14472_s18 + $0x330] sm:$0xff] %vm652_vm1, %v9170_v10  ;;  %v9171_v16 = vadd.f32 %v14937_v31, %v11718_v62  ;;  %v9024_v51 = vpop.f32.mrb[39].mxu1  ;;  %10566 = vst.msk [vmem:[%s14472_s18 + $0x208] sm:$0xff] %vm652_vm1, %v6775_v47 }
 0x34d   : > { %10893 = vst.msk [vmem:[%s14472_s18 + $0x320] sm:$0xff] %vm652_vm1, %v9168_v56  ;;  %v9169_v61 = vadd.f32 %v14937_v31, %v9024_v51 }
 0x34e   : > { %10896 = vst.msk [vmem:[%s14472_s18 + $0x338] sm:$0xff] %vm652_vm1, %v9171_v16 }
 0x34f   : > { %10894 = vst.msk [vmem:[%s14472_s18 + $0x328] sm:$0xff] %vm652_vm1, %v9169_v61 }
 0x354   : > { %v11581_v0 = vpop.f32.mrb[36].mxu0 }
 0x355   : > { %v6780_v39 = vadd.f32 %v14937_v31, %v11581_v0  ;;  %v6631_v1 = vpop.f32.mrb[37].mxu0 }
 0x356   : > { %v6778_v32 = vadd.f32 %v14937_v31, %v6631_v1  ;;  %v11582_v59 = vpop.f32.mrb[38].mxu0 }
 0x357   : > { %10571 = vst.msk [vmem:[%s14472_s18 + $0x230] sm:$0xff] %vm652_vm1, %v6780_v39  ;;  %v6781_v40 = vadd.f32 %v14937_v31, %v11582_v59  ;;  %v6634_v42 = vpop.f32.mrb[39].mxu0  ;;  %v11721_v8 = vpop.f32.mrb[40].mxu1 }
 0x358   : > { %10569 = vst.msk [vmem:[%s14472_s18 + $0x220] sm:$0xff] %vm652_vm1, %v6778_v32  ;;  %v6779_v52 = vadd.f32 %v14937_v31, %v6634_v42  ;;  %v9174_v25 = vadd.f32 %v14937_v31, %v11721_v8  ;;  %v9037_v34 = vpop.f32.mrb[41].mxu1 }
 0x359   : > { %10572 = vst.msk [vmem:[%s14472_s18 + $0x238] sm:$0xff] %vm652_vm1, %v6781_v40  ;;  %v9172_v11 = vadd.f32 %v14937_v31, %v9037_v34  ;;  %v11722_v49 = vpop.f32.mrb[42].mxu1 }
 0x35a   : > { %10570 = vst.msk [vmem:[%s14472_s18 + $0x228] sm:$0xff] %vm652_vm1, %v6779_v52  ;;  %10899 = vst.msk [vmem:[%s14472_s18 + $0x350] sm:$0xff] %vm652_vm1, %v9174_v25  ;;  %v9175_v17 = vadd.f32 %v14937_v31, %v11722_v49  ;;  %v9040_v63 = vpop.f32.mrb[43].mxu1 }
 0x35b   : > { %10897 = vst.msk [vmem:[%s14472_s18 + $0x340] sm:$0xff] %vm652_vm1, %v9172_v11  ;;  %v9173_v36 = vadd.f32 %v14937_v31, %v9040_v63 }
 0x35c   : > { %10900 = vst.msk [vmem:[%s14472_s18 + $0x358] sm:$0xff] %vm652_vm1, %v9175_v17  ;;  %v12285_v17 = vld [vmem:[%s15601_s2] ss:$0 sm:$0xff] }
 0x35d   : > { %10898 = vst.msk [vmem:[%s14472_s18 + $0x348] sm:$0xff] %vm652_vm1, %v9173_v36 }
 0x362   : > { %v11585_v57 = vpop.f32.mrb[40].mxu0 }
 0x363   : > { %v6784_v24 = vadd.f32 %v14937_v31, %v11585_v57  ;;  %v6647_v18 = vpop.f32.mrb[41].mxu0  ;;  %v11725_v48 = vpop.f32.mrb[44].mxu1 }
 0x364   : > { %v6782_v35 = vadd.f32 %v14937_v31, %v6647_v18  ;;  %v11586_v6 = vpop.f32.mrb[42].mxu0  ;;  %v9178_v33 = vadd.f32 %v14937_v31, %v11725_v48  ;;  %v9053_v58 = vpop.f32.mrb[45].mxu1 }
 0x365   : > { %10575 = vst.msk [vmem:[%s14472_s18 + $0x250] sm:$0xff] %vm652_vm1, %v6784_v24  ;;  %v6785_v29 = vadd.f32 %v14937_v31, %v11586_v6  ;;  %v6650_v7 = vpop.f32.mrb[43].mxu0  ;;  %v9176_v53 = vadd.f32 %v14937_v31, %v9053_v58  ;;  %v11726_v44 = vpop.f32.mrb[46].mxu1 }
 0x366   : > { %10573 = vst.msk [vmem:[%s14472_s18 + $0x240] sm:$0xff] %vm652_vm1, %v6782_v35  ;;  %v6783_v20 = vadd.f32 %v14937_v31, %v6650_v7  ;;  %10903 = vst.msk [vmem:[%s14472_s18 + $0x370] sm:$0xff] %vm652_vm1, %v9178_v33  ;;  %v9179_v2 = vadd.f32 %v14937_v31, %v11726_v44  ;;  %v9056_v9 = vpop.f32.mrb[47].mxu1 }
 0x367   : > { %10576 = vst.msk [vmem:[%s14472_s18 + $0x258] sm:$0xff] %vm652_vm1, %v6785_v29  ;;  %10901 = vst.msk [vmem:[%s14472_s18 + $0x360] sm:$0xff] %vm652_vm1, %v9176_v53  ;;  %v9177_v54 = vadd.f32 %v14937_v31, %v9056_v9 }
 0x368   : > { %10574 = vst.msk [vmem:[%s14472_s18 + $0x248] sm:$0xff] %vm652_vm1, %v6783_v20  ;;  %10904 = vst.msk [vmem:[%s14472_s18 + $0x378] sm:$0xff] %vm652_vm1, %v9179_v2 }
 0x369   : > { %10902 = vst.msk [vmem:[%s14472_s18 + $0x368] sm:$0xff] %vm652_vm1, %v9177_v54 }
 0x36e   : > { %v11589_v13 = vpop.f32.mrb[44].mxu0  ;;  %v11729_v14 = vpop.f32.mrb[48].mxu1 }
 0x36f   : > { %v6788_v55 = vadd.f32 %v14937_v31, %v11589_v13  ;;  %v6663_v23 = vpop.f32.mrb[45].mxu0  ;;  %v9182_v30 = vadd.f32 %v14937_v31, %v11729_v14  ;;  %v9069_v27 = vpop.f32.mrb[49].mxu1 }
 0x370   : > { %v6786_v37 = vadd.f32 %v14937_v31, %v6663_v23  ;;  %v11590_v41 = vpop.f32.mrb[46].mxu0  ;;  %v9180_v5 = vadd.f32 %v14937_v31, %v9069_v27  ;;  %v11730_v43 = vpop.f32.mrb[50].mxu1 }
 0x371   : > { %10579 = vst.msk [vmem:[%s14472_s18 + $0x270] sm:$0xff] %vm652_vm1, %v6788_v55  ;;  %v6789_v22 = vadd.f32 %v14937_v31, %v11590_v41  ;;  %v6666_v12 = vpop.f32.mrb[47].mxu0  ;;  %10907 = vst.msk [vmem:[%s14472_s18 + $0x390] sm:$0xff] %vm652_vm1, %v9182_v30  ;;  %v9183_v45 = vadd.f32 %v14937_v31, %v11730_v43  ;;  %v9072_v3 = vpop.f32.mrb[51].mxu1  ;;  %v9524_v43 = vld [vmem:[%s14472_s18 + $0x10] sm:$0xff] (%p12355_p4) }
 0x372   : > { %10577 = vst.msk [vmem:[%s14472_s18 + $0x260] sm:$0xff] %vm652_vm1, %v6786_v37  ;;  %v6787_v4 = vadd.f32 %v14937_v31, %v6666_v12  ;;  %10905 = vst.msk [vmem:[%s14472_s18 + $0x380] sm:$0xff] %vm652_vm1, %v9180_v5  ;;  %v9181_v28 = vadd.f32 %v14937_v31, %v9072_v3  ;;  %v9520_v12 = vld [vmem:[%s14472_s18] sm:$0xff] (%p12355_p4)  ;;  %v9522_v5 = vld [vmem:[%s14472_s18 + $0x8] sm:$0xff] (%p12355_p4) }
 0x373   : > { %10580 = vst.msk [vmem:[%s14472_s18 + $0x278] sm:$0xff] %vm652_vm1, %v6789_v22  ;;  %10908 = vst.msk [vmem:[%s14472_s18 + $0x398] sm:$0xff] %vm652_vm1, %v9183_v45  ;;  %v9528_v45 = vld [vmem:[%s14472_s18 + $0x20] sm:$0xff] (%p12355_p4)  ;;  %v9530_v3 = vld [vmem:[%s14472_s18 + $0x28] sm:$0xff] (%p12355_p4) }
 0x374   : > { %10578 = vst.msk [vmem:[%s14472_s18 + $0x268] sm:$0xff] %vm652_vm1, %v6787_v4  ;;  %10906 = vst.msk [vmem:[%s14472_s18 + $0x388] sm:$0xff] %vm652_vm1, %v9181_v28  ;;  %v9526_v4 = vld [vmem:[%s14472_s18 + $0x18] sm:$0xff] (%p12355_p4)  ;;  %v9532_v28 = vld [vmem:[%s14472_s18 + $0x30] sm:$0xff] (%p12355_p4) }
 0x375   : > { %9521 = vst [vmem:[%s15334_s27] sm:$0xff] (%p12355_p4), %v9520_v12  ;;  %9523 = vst [vmem:[%s15334_s27 + $0x8] sm:$0xff] (%p12355_p4), %v9522_v5  ;;  %v9648_v12 = vld [vmem:[%s14472_s18 + $0x200] sm:$0xff] (%p12355_p4)  ;;  %v9650_v5 = vld [vmem:[%s14472_s18 + $0x208] sm:$0xff] (%p12355_p4) }
 0x376   : > { %9525 = vst [vmem:[%s15334_s27 + $0x10] sm:$0xff] (%p12355_p4), %v9524_v43  ;;  %9527 = vst [vmem:[%s15334_s27 + $0x18] sm:$0xff] (%p12355_p4), %v9526_v4  ;;  %v9652_v43 = vld [vmem:[%s14472_s18 + $0x210] sm:$0xff] (%p12355_p4)  ;;  %v9654_v4 = vld [vmem:[%s14472_s18 + $0x218] sm:$0xff] (%p12355_p4) }
 0x377   : > { %9529 = vst [vmem:[%s15334_s27 + $0x20] sm:$0xff] (%p12355_p4), %v9528_v45  ;;  %9531 = vst [vmem:[%s15334_s27 + $0x28] sm:$0xff] (%p12355_p4), %v9530_v3  ;;  %v9656_v45 = vld [vmem:[%s14472_s18 + $0x220] sm:$0xff] (%p12355_p4)  ;;  %v9658_v3 = vld [vmem:[%s14472_s18 + $0x228] sm:$0xff] (%p12355_p4) }
 0x378   : > { %9533 = vst [vmem:[%s15334_s27 + $0x30] sm:$0xff] (%p12355_p4), %v9532_v28  ;;  %9649 = vst [vmem:[%s15334_s27 + $0x400] sm:$0xff] (%p12355_p4), %v9648_v12  ;;  %v9660_v28 = vld [vmem:[%s14472_s18 + $0x230] sm:$0xff] (%p12355_p4) }
 0x379   : > { %v11593_v15 = vpop.f32.mrb[48].mxu0  ;;  %9651 = vst [vmem:[%s15334_s27 + $0x408] sm:$0xff] (%p12355_p4), %v9650_v5  ;;  %9653 = vst [vmem:[%s15334_s27 + $0x410] sm:$0xff] (%p12355_p4), %v9652_v43 }
 0x37a   : > { %v6792_v26 = vadd.f32 %v14937_v31, %v11593_v15  ;;  %v6679_v46 = vpop.f32.mrb[49].mxu0  ;;  %v11733_v19 = vpop.f32.mrb[52].mxu1  ;;  %v9534_v15 = vld [vmem:[%s14472_s18 + $0x38] sm:$0xff] (%p12355_p4)  ;;  %9655 = vst [vmem:[%s15334_s27 + $0x418] sm:$0xff] (%p12355_p4), %v9654_v4  ;;  %9657 = vst [vmem:[%s15334_s27 + $0x420] sm:$0xff] (%p12355_p4), %v9656_v45 }
 0x37b   : > { %v6790_v21 = vadd.f32 %v14937_v31, %v6679_v46  ;;  %v11594_v50 = vpop.f32.mrb[50].mxu0  ;;  %v9186_v60 = vadd.f32 %v14937_v31, %v11733_v19  ;;  %v9085_v10 = vpop.f32.mrb[53].mxu1  ;;  %9535 = vst [vmem:[%s15334_s27 + $0x38] sm:$0xff] (%p12355_p4), %v9534_v15  ;;  %v9538_v46 = vld [vmem:[%s14472_s18 + $0x48] sm:$0xff] (%p12355_p4)  ;;  %v9540_v19 = vld [vmem:[%s14472_s18 + $0x50] sm:$0xff] (%p12355_p4)  ;;  %v9662_v15 = vld [vmem:[%s14472_s18 + $0x238] sm:$0xff] (%p12355_p4) }
 0x37c   : > { %10583 = vst.msk [vmem:[%s14472_s18 + $0x290] sm:$0xff] %vm652_vm1, %v6792_v26  ;;  %v6793_v38 = vadd.f32 %v14937_v31, %v11594_v50  ;;  %v6682_v47 = vpop.f32.mrb[51].mxu0  ;;  %v9184_v56 = vadd.f32 %v14937_v31, %v9085_v10  ;;  %v11734_v62 = vpop.f32.mrb[54].mxu1  ;;  %v9536_v26 = vld [vmem:[%s14472_s18 + $0x40] sm:$0xff] (%p12355_p4)  ;;  %9539 = vst [vmem:[%s15334_s27 + $0x48] sm:$0xff] (%p12355_p4), %v9538_v46  ;;  %v9548_v10 = vld [vmem:[%s14472_s18 + $0x70] sm:$0xff] (%p12355_p4) }
 0x37d   : > { %10581 = vst.msk [vmem:[%s14472_s18 + $0x280] sm:$0xff] %vm652_vm1, %v6790_v21  ;;  %v6791_v16 = vadd.f32 %v14937_v31, %v6682_v47  ;;  %10911 = vst.msk [vmem:[%s14472_s18 + $0x3b0] sm:$0xff] %vm652_vm1, %v9186_v60  ;;  %v9187_v51 = vadd.f32 %v14937_v31, %v11734_v62  ;;  %v9088_v61 = vpop.f32.mrb[55].mxu1  ;;  %v9542_v21 = vld [vmem:[%s14472_s18 + $0x58] sm:$0xff] (%p12355_p4)  ;;  %v9544_v50 = vld [vmem:[%s14472_s18 + $0x60] sm:$0xff] (%p12355_p4) }
 0x37e   : > { %10584 = vst.msk [vmem:[%s14472_s18 + $0x298] sm:$0xff] %vm652_vm1, %v6793_v38  ;;  %10909 = vst.msk [vmem:[%s14472_s18 + $0x3a0] sm:$0xff] %vm652_vm1, %v9184_v56  ;;  %v9185_v0 = vadd.f32 %v14937_v31, %v9088_v61  ;;  %v9546_v60 = vld [vmem:[%s14472_s18 + $0x68] sm:$0xff] (%p12355_p4)  ;;  %v9550_v38 = vld [vmem:[%s14472_s18 + $0x78] sm:$0xff] (%p12355_p4) }
 0x37f   : > { %10582 = vst.msk [vmem:[%s14472_s18 + $0x288] sm:$0xff] %vm652_vm1, %v6791_v16  ;;  %10912 = vst.msk [vmem:[%s14472_s18 + $0x3b8] sm:$0xff] %vm652_vm1, %v9187_v51  ;;  %v9552_v47 = vld [vmem:[%s14472_s18 + $0x80] sm:$0xff] (%p12355_p4)  ;;  %v9554_v56 = vld [vmem:[%s14472_s18 + $0x88] sm:$0xff] (%p12355_p4) }
 0x380   : > { %10910 = vst.msk [vmem:[%s14472_s18 + $0x3a8] sm:$0xff] %vm652_vm1, %v9185_v0  ;;  %9537 = vst [vmem:[%s15334_s27 + $0x40] sm:$0xff] (%p12355_p4), %v9536_v26  ;;  %v9556_v62 = vld [vmem:[%s14472_s18 + $0x90] sm:$0xff] (%p12355_p4)  ;;  %v9558_v16 = vld [vmem:[%s14472_s18 + $0x98] sm:$0xff] (%p12355_p4) }
 0x381   : > { %9541 = vst [vmem:[%s15334_s27 + $0x50] sm:$0xff] (%p12355_p4), %v9540_v19  ;;  %9543 = vst [vmem:[%s15334_s27 + $0x58] sm:$0xff] (%p12355_p4), %v9542_v21  ;;  %v9560_v51 = vld [vmem:[%s14472_s18 + $0xa0] sm:$0xff] (%p12355_p4)  ;;  %v9562_v61 = vld [vmem:[%s14472_s18 + $0xa8] sm:$0xff] (%p12355_p4) }
 0x382   : > { %9545 = vst [vmem:[%s15334_s27 + $0x60] sm:$0xff] (%p12355_p4), %v9544_v50  ;;  %9547 = vst [vmem:[%s15334_s27 + $0x68] sm:$0xff] (%p12355_p4), %v9546_v60  ;;  %v9564_v0 = vld [vmem:[%s14472_s18 + $0xb0] sm:$0xff] (%p12355_p4)  ;;  %v9664_v26 = vld [vmem:[%s14472_s18 + $0x240] sm:$0xff] (%p12355_p4) }
 0x383   : > { %9549 = vst [vmem:[%s15334_s27 + $0x70] sm:$0xff] (%p12355_p4), %v9548_v10  ;;  %9551 = vst [vmem:[%s15334_s27 + $0x78] sm:$0xff] (%p12355_p4), %v9550_v38  ;;  %v9666_v46 = vld [vmem:[%s14472_s18 + $0x248] sm:$0xff] (%p12355_p4)  ;;  %v9668_v19 = vld [vmem:[%s14472_s18 + $0x250] sm:$0xff] (%p12355_p4) }
 0x384   : > { %9553 = vst [vmem:[%s15334_s27 + $0x80] sm:$0xff] (%p12355_p4), %v9552_v47  ;;  %9555 = vst [vmem:[%s15334_s27 + $0x88] sm:$0xff] (%p12355_p4), %v9554_v56  ;;  %v9670_v21 = vld [vmem:[%s14472_s18 + $0x258] sm:$0xff] (%p12355_p4)  ;;  %v9672_v50 = vld [vmem:[%s14472_s18 + $0x260] sm:$0xff] (%p12355_p4) }
 0x385   : > { %v11597_v39 = vpop.f32.mrb[52].mxu0  ;;  %9557 = vst [vmem:[%s15334_s27 + $0x90] sm:$0xff] (%p12355_p4), %v9556_v62  ;;  %9559 = vst [vmem:[%s15334_s27 + $0x98] sm:$0xff] (%p12355_p4), %v9558_v16  ;;  %v9674_v60 = vld [vmem:[%s14472_s18 + $0x268] sm:$0xff] (%p12355_p4)  ;;  %v9676_v10 = vld [vmem:[%s14472_s18 + $0x270] sm:$0xff] (%p12355_p4) }
 0x386   : > { %v6796_v1 = vadd.f32 %v14937_v31, %v11597_v39  ;;  %v6695_v32 = vpop.f32.mrb[53].mxu0  ;;  %v11737_v59 = vpop.f32.mrb[56].mxu1  ;;  %9561 = vst [vmem:[%s15334_s27 + $0xa0] sm:$0xff] (%p12355_p4), %v9560_v51  ;;  %v9566_v39 = vld [vmem:[%s14472_s18 + $0xb8] sm:$0xff] (%p12355_p4)  ;;  %9563 = vst [vmem:[%s15334_s27 + $0xa8] sm:$0xff] (%p12355_p4), %v9562_v61  ;;  %v9680_v47 = vld [vmem:[%s14472_s18 + $0x280] sm:$0xff] (%p12355_p4) }
 0x387   : > { %v6794_v40 = vadd.f32 %v14937_v31, %v6695_v32  ;;  %v11598_v42 = vpop.f32.mrb[54].mxu0  ;;  %v9190_v8 = vadd.f32 %v14937_v31, %v11737_v59  ;;  %v9101_v52 = vpop.f32.mrb[57].mxu1  ;;  %9565 = vst [vmem:[%s15334_s27 + $0xb0] sm:$0xff] (%p12355_p4), %v9564_v0  ;;  %9567 = vst [vmem:[%s15334_s27 + $0xb8] sm:$0xff] (%p12355_p4), %v9566_v39  ;;  %v9570_v32 = vld [vmem:[%s14472_s18 + $0xc8] sm:$0xff] (%p12355_p4)  ;;  %v9572_v59 = vld [vmem:[%s14472_s18 + $0xd0] sm:$0xff] (%p12355_p4) }
 0x388   : > { %10587 = vst.msk [vmem:[%s14472_s18 + $0x2b0] sm:$0xff] %vm652_vm1, %v6796_v1  ;;  %v6797_v25 = vadd.f32 %v14937_v31, %v11598_v42  ;;  %v6698_v34 = vpop.f32.mrb[55].mxu0  ;;  %v9188_v11 = vadd.f32 %v14937_v31, %v9101_v52  ;;  %v11738_v49 = vpop.f32.mrb[58].mxu1  ;;  %v9568_v1 = vld [vmem:[%s14472_s18 + $0xc0] sm:$0xff] (%p12355_p4)  ;;  %9571 = vst [vmem:[%s15334_s27 + $0xc8] sm:$0xff] (%p12355_p4), %v9570_v32  ;;  %v9580_v52 = vld [vmem:[%s14472_s18 + $0xf0] sm:$0xff] (%p12355_p4) }
 0x389   : > { %10585 = vst.msk [vmem:[%s14472_s18 + $0x2a0] sm:$0xff] %vm652_vm1, %v6794_v40  ;;  %v6795_v63 = vadd.f32 %v12285_v17, %v6698_v34  ;;  %10915 = vst.msk [vmem:[%s14472_s18 + $0x3d0] sm:$0xff] %vm652_vm1, %v9190_v8  ;;  %v9191_v36 = vadd.f32 %v12285_v17, %v11738_v49  ;;  %v9104_v57 = vpop.f32.mrb[59].mxu1  ;;  %v9574_v40 = vld [vmem:[%s14472_s18 + $0xd8] sm:$0xff] (%p12355_p4)  ;;  %v9576_v42 = vld [vmem:[%s14472_s18 + $0xe0] sm:$0xff] (%p12355_p4) }
 0x38a   : > { %10588 = vst.msk [vmem:[%s14472_s18 + $0x2b8] sm:$0xff] %vm652_vm1, %v6797_v25  ;;  %10913 = vst.msk [vmem:[%s14472_s18 + $0x3c0] sm:$0xff] %vm652_vm1, %v9188_v11  ;;  %v9189_v24 = vadd.f32 %v12285_v17, %v9104_v57  ;;  %v9578_v8 = vld [vmem:[%s14472_s18 + $0xe8] sm:$0xff] (%p12355_p4)  ;;  %v9582_v25 = vld [vmem:[%s14472_s18 + $0xf8] sm:$0xff] (%p12355_p4) }
 0x38b   : > { %10586 = vst.msk [vmem:[%s14472_s18 + $0x2a8] sm:$0xff] %vm652_vm1, %v6795_v63  ;;  %10916 = vst.msk [vmem:[%s14472_s18 + $0x3d8] sm:$0xff] %vm652_vm1, %v9191_v36  ;;  %v9584_v34 = vld [vmem:[%s14472_s18 + $0x100] sm:$0xff] (%p12355_p4)  ;;  %v9586_v11 = vld [vmem:[%s14472_s18 + $0x108] sm:$0xff] (%p12355_p4) }
 0x38c   : > { %10914 = vst.msk [vmem:[%s14472_s18 + $0x3c8] sm:$0xff] %vm652_vm1, %v9189_v24  ;;  %9569 = vst [vmem:[%s15334_s27 + $0xc0] sm:$0xff] (%p12355_p4), %v9568_v1  ;;  %v9588_v49 = vld [vmem:[%s14472_s18 + $0x110] sm:$0xff] (%p12355_p4)  ;;  %v9592_v63 = vld [vmem:[%s14472_s18 + $0x120] sm:$0xff] (%p12355_p4) }
 0x38d   : > { %9573 = vst [vmem:[%s15334_s27 + $0xd0] sm:$0xff] (%p12355_p4), %v9572_v59  ;;  %9575 = vst [vmem:[%s15334_s27 + $0xd8] sm:$0xff] (%p12355_p4), %v9574_v40  ;;  %v9594_v36 = vld [vmem:[%s14472_s18 + $0x128] sm:$0xff] (%p12355_p4)  ;;  %v9596_v57 = vld [vmem:[%s14472_s18 + $0x130] sm:$0xff] (%p12355_p4) }
 0x38e   : > { %9577 = vst [vmem:[%s15334_s27 + $0xe0] sm:$0xff] (%p12355_p4), %v9576_v42  ;;  %9579 = vst [vmem:[%s15334_s27 + $0xe8] sm:$0xff] (%p12355_p4), %v9578_v8  ;;  %v9598_v24 = vld [vmem:[%s14472_s18 + $0x138] sm:$0xff] (%p12355_p4)  ;;  %v9682_v56 = vld [vmem:[%s14472_s18 + $0x288] sm:$0xff] (%p12355_p4) }
 0x38f   : > { %9581 = vst [vmem:[%s15334_s27 + $0xf0] sm:$0xff] (%p12355_p4), %v9580_v52  ;;  %9583 = vst [vmem:[%s15334_s27 + $0xf8] sm:$0xff] (%p12355_p4), %v9582_v25  ;;  %v9678_v38 = vld [vmem:[%s14472_s18 + $0x278] sm:$0xff] (%p12355_p4)  ;;  %v9684_v62 = vld [vmem:[%s14472_s18 + $0x290] sm:$0xff] (%p12355_p4) }
 0x390   : > { %9585 = vst [vmem:[%s15334_s27 + $0x200] sm:$0xff] (%p12355_p4), %v9584_v34  ;;  %9587 = vst [vmem:[%s15334_s27 + $0x208] sm:$0xff] (%p12355_p4), %v9586_v11  ;;  %v9686_v16 = vld [vmem:[%s14472_s18 + $0x298] sm:$0xff] (%p12355_p4)  ;;  %v9688_v51 = vld [vmem:[%s14472_s18 + $0x2a0] sm:$0xff] (%p12355_p4) }
 0x391   : > { %v11601_v31 = vpop.f32.mrb[56].mxu0  ;;  %9589 = vst [vmem:[%s15334_s27 + $0x210] sm:$0xff] (%p12355_p4), %v9588_v49  ;;  %9593 = vst [vmem:[%s15334_s27 + $0x220] sm:$0xff] (%p12355_p4), %v9592_v63  ;;  %v9692_v0 = vld [vmem:[%s14472_s18 + $0x2b0] sm:$0xff] (%p12355_p4)  ;;  %v9694_v39 = vld [vmem:[%s14472_s18 + $0x2b8] sm:$0xff] (%p12355_p4) }
 0x392   : > { %v6800_v18 = vadd.f32 %v12285_v17, %v11601_v31  ;;  %v6711_v48 = vpop.f32.mrb[57].mxu0  ;;  %v11741_v35 = vpop.f32.mrb[60].mxu1  ;;  %9595 = vst [vmem:[%s15334_s27 + $0x228] sm:$0xff] (%p12355_p4), %v9594_v36  ;;  %9597 = vst [vmem:[%s15334_s27 + $0x230] sm:$0xff] (%p12355_p4), %v9596_v57  ;;  %v9600_v31 = vld [vmem:[%s14472_s18 + $0x140] sm:$0xff] (%p12355_p4)  ;;  %v9690_v61 = vld [vmem:[%s14472_s18 + $0x2a8] sm:$0xff] (%p12355_p4) }
 0x393   : > { %v6798_v6 = vadd.f32 %v12285_v17, %v6711_v48  ;;  %v11602_v33 = vpop.f32.mrb[58].mxu0  ;;  %v9194_v58 = vadd.f32 %v12285_v17, %v11741_v35  ;;  %v9117_v29 = vpop.f32.mrb[61].mxu1  ;;  %9599 = vst [vmem:[%s15334_s27 + $0x238] sm:$0xff] (%p12355_p4), %v9598_v24  ;;  %9601 = vst [vmem:[%s15334_s27 + $0x240] sm:$0xff] (%p12355_p4), %v9600_v31  ;;  %v9604_v48 = vld [vmem:[%s14472_s18 + $0x150] sm:$0xff] (%p12355_p4)  ;;  %v9606_v35 = vld [vmem:[%s14472_s18 + $0x158] sm:$0xff] (%p12355_p4) }
 0x394   : > { %10591 = vst.msk [vmem:[%s14472_s18 + $0x2d0] sm:$0xff] %vm652_vm1, %v6800_v18  ;;  %v6801_v7 = vadd.f32 %v12285_v17, %v11602_v33  ;;  %v6714_v53 = vpop.f32.mrb[59].mxu0  ;;  %v9192_v44 = vadd.f32 %v12285_v17, %v9117_v29  ;;  %v11742_v20 = vpop.f32.mrb[62].mxu1  ;;  %v9602_v18 = vld [vmem:[%s14472_s18 + $0x148] sm:$0xff] (%p12355_p4)  ;;  %9605 = vst [vmem:[%s15334_s27 + $0x250] sm:$0xff] (%p12355_p4), %v9604_v48  ;;  %v9614_v29 = vld [vmem:[%s14472_s18 + $0x178] sm:$0xff] (%p12355_p4) }
 0x395   : > { %10589 = vst.msk [vmem:[%s14472_s18 + $0x2c0] sm:$0xff] %vm652_vm1, %v6798_v6  ;;  %v6799_v2 = vadd.f32 %v12285_v17, %v6714_v53  ;;  %10919 = vst.msk [vmem:[%s14472_s18 + $0x3f0] sm:$0xff] %vm652_vm1, %v9194_v58  ;;  %v9195_v9 = vadd.f32 %v12285_v17, %v11742_v20  ;;  %v9120_v54 = vpop.f32.mrb[63].mxu1  ;;  %v9608_v6 = vld [vmem:[%s14472_s18 + $0x160] sm:$0xff] (%p12355_p4)  ;;  %v9610_v33 = vld [vmem:[%s14472_s18 + $0x168] sm:$0xff] (%p12355_p4) }
 0x396   : > { %10592 = vst.msk [vmem:[%s14472_s18 + $0x2d8] sm:$0xff] %vm652_vm1, %v6801_v7  ;;  %10917 = vst.msk [vmem:[%s14472_s18 + $0x3e0] sm:$0xff] %vm652_vm1, %v9192_v44  ;;  %v9193_v13 = vadd.f32 %v12285_v17, %v9120_v54  ;;  %v9612_v58 = vld [vmem:[%s14472_s18 + $0x170] sm:$0xff] (%p12355_p4)  ;;  %v9616_v7 = vld [vmem:[%s14472_s18 + $0x180] sm:$0xff] (%p12355_p4) }
 0x397   : > { %10590 = vst.msk [vmem:[%s14472_s18 + $0x2c8] sm:$0xff] %vm652_vm1, %v6799_v2  ;;  %10920 = vst.msk [vmem:[%s14472_s18 + $0x3f8] sm:$0xff] %vm652_vm1, %v9195_v9  ;;  %v9618_v53 = vld [vmem:[%s14472_s18 + $0x188] sm:$0xff] (%p12355_p4)  ;;  %v9620_v44 = vld [vmem:[%s14472_s18 + $0x190] sm:$0xff] (%p12355_p4) }
 0x398   : > { %10918 = vst.msk [vmem:[%s14472_s18 + $0x3e8] sm:$0xff] %vm652_vm1, %v9193_v13  ;;  %9603 = vst [vmem:[%s15334_s27 + $0x248] sm:$0xff] (%p12355_p4), %v9602_v18  ;;  %v9622_v20 = vld [vmem:[%s14472_s18 + $0x198] sm:$0xff] (%p12355_p4)  ;;  %v9624_v2 = vld [vmem:[%s14472_s18 + $0x1a0] sm:$0xff] (%p12355_p4) }
 0x399   : > { %9607 = vst [vmem:[%s15334_s27 + $0x258] sm:$0xff] (%p12355_p4), %v9606_v35  ;;  %9609 = vst [vmem:[%s15334_s27 + $0x260] sm:$0xff] (%p12355_p4), %v9608_v6  ;;  %v9626_v9 = vld [vmem:[%s14472_s18 + $0x1a8] sm:$0xff] (%p12355_p4)  ;;  %v9628_v54 = vld [vmem:[%s14472_s18 + $0x1b0] sm:$0xff] (%p12355_p4) }
 0x39a   : > { %9611 = vst [vmem:[%s15334_s27 + $0x268] sm:$0xff] (%p12355_p4), %v9610_v33  ;;  %9613 = vst [vmem:[%s15334_s27 + $0x270] sm:$0xff] (%p12355_p4), %v9612_v58  ;;  %v9630_v13 = vld [vmem:[%s14472_s18 + $0x1b8] sm:$0xff] (%p12355_p4)  ;;  %v9712_v34 = vld [vmem:[%s14472_s18 + $0x300] sm:$0xff] (%p12355_p4) }
 0x39b   : > { %9615 = vst [vmem:[%s15334_s27 + $0x278] sm:$0xff] (%p12355_p4), %v9614_v29  ;;  %9617 = vst [vmem:[%s15334_s27 + $0x280] sm:$0xff] (%p12355_p4), %v9616_v7  ;;  %v9700_v59 = vld [vmem:[%s14472_s18 + $0x2d0] sm:$0xff] (%p12355_p4)  ;;  %v9714_v11 = vld [vmem:[%s14472_s18 + $0x308] sm:$0xff] (%p12355_p4) }
 0x39c   : > { %9619 = vst [vmem:[%s15334_s27 + $0x288] sm:$0xff] (%p12355_p4), %v9618_v53  ;;  %9621 = vst [vmem:[%s15334_s27 + $0x290] sm:$0xff] (%p12355_p4), %v9620_v44  ;;  %v9696_v1 = vld [vmem:[%s14472_s18 + $0x2c0] sm:$0xff] (%p12355_p4)  ;;  %v9716_v49 = vld [vmem:[%s14472_s18 + $0x310] sm:$0xff] (%p12355_p4) }
 0x39d   : > { %v11605_v55 = vpop.f32.mrb[60].mxu0  ;;  %9235 = sbr.rel (!%p12355_p4) target bundleno = 964 (0x3c4), region = 36  ;;  %9623 = vst [vmem:[%s15334_s27 + $0x298] sm:$0xff] (%p12355_p4), %v9622_v20  ;;  %9625 = vst [vmem:[%s15334_s27 + $0x2a0] sm:$0xff] (%p12355_p4), %v9624_v2  ;;  %v9702_v40 = vld [vmem:[%s14472_s18 + $0x2d8] sm:$0xff] (%p12355_p4)  ;;  %v9720_v63 = vld [vmem:[%s14472_s18 + $0x320] sm:$0xff] (%p12355_p4) }
 0x39e   : > { %v6804_v23 = vadd.f32 %v12285_v17, %v11605_v55  ;;  %v6727_v14 = vpop.f32.mrb[61].mxu0  ;;  %9627 = vst [vmem:[%s15334_s27 + $0x2a8] sm:$0xff] (%p12355_p4), %v9626_v9  ;;  %v9632_v55 = vld [vmem:[%s14472_s18 + $0x1c0] sm:$0xff] (%p12355_p4)  ;;  %9629 = vst [vmem:[%s15334_s27 + $0x2b0] sm:$0xff] (%p12355_p4), %v9628_v54  ;;  %v9698_v32 = vld [vmem:[%s14472_s18 + $0x2c8] sm:$0xff] (%p12355_p4) }
 0x39f   : > { %v6802_v37 = vadd.f32 %v12285_v17, %v6727_v14  ;;  %v11606_v41 = vpop.f32.mrb[62].mxu0  ;;  %9631 = vst [vmem:[%s15334_s27 + $0x2b8] sm:$0xff] (%p12355_p4), %v9630_v13  ;;  %9633 = vst [vmem:[%s15334_s27 + $0x2c0] sm:$0xff] (%p12355_p4), %v9632_v55  ;;  %v9636_v14 = vld [vmem:[%s14472_s18 + $0x1d0] sm:$0xff] (%p12355_p4)  ;;  %v9722_v36 = vld [vmem:[%s14472_s18 + $0x328] sm:$0xff] (%p12355_p4) }
 0x3a0   : > { %10595 = vst.msk [vmem:[%s14472_s18 + $0x2f0] sm:$0xff] %vm652_vm1, %v6804_v23  ;;  %v6805_v30 = vadd.f32 %v12285_v17, %v11606_v41  ;;  %v6730_v27 = vpop.f32.mrb[63].mxu0  ;;  %v9634_v23 = vld [vmem:[%s14472_s18 + $0x1c8] sm:$0xff] (%p12355_p4)  ;;  %9637 = vst [vmem:[%s15334_s27 + $0x2d0] sm:$0xff] (%p12355_p4), %v9636_v14  ;;  %v9640_v41 = vld [vmem:[%s14472_s18 + $0x1e0] sm:$0xff] (%p12355_p4) }
 0x3a1   : > { %10593 = vst.msk [vmem:[%s14472_s18 + $0x2e0] sm:$0xff] %vm652_vm1, %v6802_v37  ;;  %v6803_v22 = vadd.f32 %v12285_v17, %v6730_v27  ;;  %v9590_v17 = vld [vmem:[%s14472_s18 + $0x118] sm:$0xff] (%p12355_p4)  ;;  %9635 = vst [vmem:[%s15334_s27 + $0x2c8] sm:$0xff] (%p12355_p4), %v9634_v23  ;;  %v9644_v27 = vld [vmem:[%s14472_s18 + $0x1f0] sm:$0xff] (%p12355_p4) }
 0x3a2   : > { %10596 = vst.msk [vmem:[%s14472_s18 + $0x2f8] sm:$0xff] %vm652_vm1, %v6805_v30  ;;  %9591 = vst [vmem:[%s15334_s27 + $0x218] sm:$0xff] (%p12355_p4), %v9590_v17  ;;  %v9638_v37 = vld [vmem:[%s14472_s18 + $0x1d8] sm:$0xff] (%p12355_p4)  ;;  %v9642_v30 = vld [vmem:[%s14472_s18 + $0x1e8] sm:$0xff] (%p12355_p4) }
 0x3a3   : > { %10594 = vst.msk [vmem:[%s14472_s18 + $0x2e8] sm:$0xff] %vm652_vm1, %v6803_v22  ;;  %9639 = vst [vmem:[%s15334_s27 + $0x2d8] sm:$0xff] (%p12355_p4), %v9638_v37  ;;  %v9646_v22 = vld [vmem:[%s14472_s18 + $0x1f8] sm:$0xff] (%p12355_p4)  ;;  %v9724_v57 = vld [vmem:[%s14472_s18 + $0x330] sm:$0xff] (%p12355_p4) }
 0x3a4   : > { %9641 = vst [vmem:[%s15334_s27 + $0x2e0] sm:$0xff] %v9640_v41  ;;  %9643 = vst [vmem:[%s15334_s27 + $0x2e8] sm:$0xff] %v9642_v30  ;;  %v9718_v17 = vld [vmem:[%s14472_s18 + $0x318] sm:$0xff]  ;;  %v9728_v31 = vld [vmem:[%s14472_s18 + $0x340] sm:$0xff] }
 0x3a5   : > { %9645 = vst [vmem:[%s15334_s27 + $0x2f0] sm:$0xff] %v9644_v27  ;;  %9647 = vst [vmem:[%s15334_s27 + $0x2f8] sm:$0xff] %v9646_v22  ;;  %v9726_v24 = vld [vmem:[%s14472_s18 + $0x338] sm:$0xff]  ;;  %v9730_v18 = vld [vmem:[%s14472_s18 + $0x348] sm:$0xff] }
 0x3a6   : > { %9659 = vst [vmem:[%s15334_s27 + $0x428] sm:$0xff] %v9658_v3  ;;  %9661 = vst [vmem:[%s15334_s27 + $0x430] sm:$0xff] %v9660_v28  ;;  %v9732_v48 = vld [vmem:[%s14472_s18 + $0x350] sm:$0xff]  ;;  %v9734_v35 = vld [vmem:[%s14472_s18 + $0x358] sm:$0xff] }
 0x3a7   : > { %9663 = vst [vmem:[%s15334_s27 + $0x438] sm:$0xff] %v9662_v15  ;;  %9665 = vst [vmem:[%s15334_s27 + $0x440] sm:$0xff] %v9664_v26  ;;  %v9708_v52 = vld [vmem:[%s14472_s18 + $0x2f0] sm:$0xff]  ;;  %v9736_v6 = vld [vmem:[%s14472_s18 + $0x360] sm:$0xff] }
 0x3a8   : > { %9667 = vst [vmem:[%s15334_s27 + $0x448] sm:$0xff] %v9666_v46  ;;  %9669 = vst [vmem:[%s15334_s27 + $0x450] sm:$0xff] %v9668_v19  ;;  %v9704_v42 = vld [vmem:[%s14472_s18 + $0x2e0] sm:$0xff]  ;;  %v9738_v33 = vld [vmem:[%s14472_s18 + $0x368] sm:$0xff] }
 0x3a9   : > { %9671 = vst [vmem:[%s15334_s27 + $0x458] sm:$0xff] %v9670_v21  ;;  %9673 = vst [vmem:[%s15334_s27 + $0x460] sm:$0xff] %v9672_v50  ;;  %v9710_v25 = vld [vmem:[%s14472_s18 + $0x2f8] sm:$0xff]  ;;  %v9740_v58 = vld [vmem:[%s14472_s18 + $0x370] sm:$0xff] }
 0x3aa   : > { %9675 = vst [vmem:[%s15334_s27 + $0x468] sm:$0xff] %v9674_v60  ;;  %9677 = vst [vmem:[%s15334_s27 + $0x470] sm:$0xff] %v9676_v10  ;;  %v9706_v8 = vld [vmem:[%s14472_s18 + $0x2e8] sm:$0xff]  ;;  %v9742_v29 = vld [vmem:[%s14472_s18 + $0x378] sm:$0xff] }
 0x3ab   : > { %9679 = vst [vmem:[%s15334_s27 + $0x478] sm:$0xff] %v9678_v38  ;;  %9681 = vst [vmem:[%s15334_s27 + $0x480] sm:$0xff] %v9680_v47  ;;  %v9744_v7 = vld [vmem:[%s14472_s18 + $0x380] sm:$0xff]  ;;  %v9746_v53 = vld [vmem:[%s14472_s18 + $0x388] sm:$0xff] }
 0x3ac   : > { %9683 = vst [vmem:[%s15334_s27 + $0x488] sm:$0xff] %v9682_v56  ;;  %9685 = vst [vmem:[%s15334_s27 + $0x490] sm:$0xff] %v9684_v62  ;;  %v9748_v44 = vld [vmem:[%s14472_s18 + $0x390] sm:$0xff]  ;;  %v9750_v20 = vld [vmem:[%s14472_s18 + $0x398] sm:$0xff] }
 0x3ad   : > { %9687 = vst [vmem:[%s15334_s27 + $0x498] sm:$0xff] %v9686_v16  ;;  %9689 = vst [vmem:[%s15334_s27 + $0x4a0] sm:$0xff] %v9688_v51  ;;  %v9752_v2 = vld [vmem:[%s14472_s18 + $0x3a0] sm:$0xff]  ;;  %v9754_v9 = vld [vmem:[%s14472_s18 + $0x3a8] sm:$0xff] }
 0x3ae   : > { %9691 = vst [vmem:[%s15334_s27 + $0x4a8] sm:$0xff] %v9690_v61  ;;  %9693 = vst [vmem:[%s15334_s27 + $0x4b0] sm:$0xff] %v9692_v0  ;;  %v9756_v54 = vld [vmem:[%s14472_s18 + $0x3b0] sm:$0xff]  ;;  %v9758_v13 = vld [vmem:[%s14472_s18 + $0x3b8] sm:$0xff] }
 0x3af   : > { %9695 = vst [vmem:[%s15334_s27 + $0x4b8] sm:$0xff] %v9694_v39  ;;  %9697 = vst [vmem:[%s15334_s27 + $0x4c0] sm:$0xff] %v9696_v1  ;;  %v9760_v55 = vld [vmem:[%s14472_s18 + $0x3c0] sm:$0xff]  ;;  %v9762_v23 = vld [vmem:[%s14472_s18 + $0x3c8] sm:$0xff] }
 0x3b0   : > { %9699 = vst [vmem:[%s15334_s27 + $0x4c8] sm:$0xff] %v9698_v32  ;;  %9701 = vst [vmem:[%s15334_s27 + $0x4d0] sm:$0xff] %v9700_v59  ;;  %v9764_v14 = vld [vmem:[%s14472_s18 + $0x3d0] sm:$0xff]  ;;  %v9766_v37 = vld [vmem:[%s14472_s18 + $0x3d8] sm:$0xff] }
 0x3b1   : > { %9703 = vst [vmem:[%s15334_s27 + $0x4d8] sm:$0xff] %v9702_v40  ;;  %9705 = vst [vmem:[%s15334_s27 + $0x4e0] sm:$0xff] %v9704_v42  ;;  %v9768_v41 = vld [vmem:[%s14472_s18 + $0x3e0] sm:$0xff]  ;;  %v9770_v30 = vld [vmem:[%s14472_s18 + $0x3e8] sm:$0xff] }
 0x3b2   : > { %9707 = vst [vmem:[%s15334_s27 + $0x4e8] sm:$0xff] %v9706_v8  ;;  %9709 = vst [vmem:[%s15334_s27 + $0x4f0] sm:$0xff] %v9708_v52  ;;  %v9772_v27 = vld [vmem:[%s14472_s18 + $0x3f0] sm:$0xff]  ;;  %v9774_v22 = vld [vmem:[%s14472_s18 + $0x3f8] sm:$0xff] }
 0x3b3   : > { %9711 = vst [vmem:[%s15334_s27 + $0x4f8] sm:$0xff] %v9710_v25  ;;  %9713 = vst [vmem:[%s15334_s27 + $0x600] sm:$0xff] %v9712_v34 }
 0x3b4   : > { %9715 = vst [vmem:[%s15334_s27 + $0x608] sm:$0xff] %v9714_v11  ;;  %9717 = vst [vmem:[%s15334_s27 + $0x610] sm:$0xff] %v9716_v49 }
 0x3b5   : > { %9719 = vst [vmem:[%s15334_s27 + $0x618] sm:$0xff] %v9718_v17  ;;  %9721 = vst [vmem:[%s15334_s27 + $0x620] sm:$0xff] %v9720_v63 }
 0x3b6   : > { %9723 = vst [vmem:[%s15334_s27 + $0x628] sm:$0xff] %v9722_v36  ;;  %9725 = vst [vmem:[%s15334_s27 + $0x630] sm:$0xff] %v9724_v57 }
 0x3b7   : > { %9727 = vst [vmem:[%s15334_s27 + $0x638] sm:$0xff] %v9726_v24  ;;  %9729 = vst [vmem:[%s15334_s27 + $0x640] sm:$0xff] %v9728_v31 }
 0x3b8   : > { %9731 = vst [vmem:[%s15334_s27 + $0x648] sm:$0xff] %v9730_v18  ;;  %9733 = vst [vmem:[%s15334_s27 + $0x650] sm:$0xff] %v9732_v48 }
 0x3b9   : > { %9735 = vst [vmem:[%s15334_s27 + $0x658] sm:$0xff] %v9734_v35  ;;  %9737 = vst [vmem:[%s15334_s27 + $0x660] sm:$0xff] %v9736_v6 }
 0x3ba   : > { %9739 = vst [vmem:[%s15334_s27 + $0x668] sm:$0xff] %v9738_v33  ;;  %9741 = vst [vmem:[%s15334_s27 + $0x670] sm:$0xff] %v9740_v58 }
 0x3bb   : > { %9743 = vst [vmem:[%s15334_s27 + $0x678] sm:$0xff] %v9742_v29  ;;  %9745 = vst [vmem:[%s15334_s27 + $0x680] sm:$0xff] %v9744_v7 }
 0x3bc   : > { %9747 = vst [vmem:[%s15334_s27 + $0x688] sm:$0xff] %v9746_v53  ;;  %9749 = vst [vmem:[%s15334_s27 + $0x690] sm:$0xff] %v9748_v44 }
 0x3bd   : > { %9751 = vst [vmem:[%s15334_s27 + $0x698] sm:$0xff] %v9750_v20  ;;  %9753 = vst [vmem:[%s15334_s27 + $0x6a0] sm:$0xff] %v9752_v2 }
 0x3be   : > { %9755 = vst [vmem:[%s15334_s27 + $0x6a8] sm:$0xff] %v9754_v9  ;;  %9757 = vst [vmem:[%s15334_s27 + $0x6b0] sm:$0xff] %v9756_v54 }
 0x3bf   : > { %9759 = vst [vmem:[%s15334_s27 + $0x6b8] sm:$0xff] %v9758_v13  ;;  %9761 = vst [vmem:[%s15334_s27 + $0x6c0] sm:$0xff] %v9760_v55 }
 0x3c0   : > { %9763 = vst [vmem:[%s15334_s27 + $0x6c8] sm:$0xff] %v9762_v23  ;;  %9765 = vst [vmem:[%s15334_s27 + $0x6d0] sm:$0xff] %v9764_v14 }
 0x3c1   : > { %9767 = vst [vmem:[%s15334_s27 + $0x6d8] sm:$0xff] %v9766_v37  ;;  %9769 = vst [vmem:[%s15334_s27 + $0x6e0] sm:$0xff] %v9768_v41 }
 0x3c2   : > { %9771 = vst [vmem:[%s15334_s27 + $0x6e8] sm:$0xff] %v9770_v30  ;;  %9773 = vst [vmem:[%s15334_s27 + $0x6f0] sm:$0xff] %v9772_v27 }
 0x3c3   : > { %9775 = vst [vmem:[%s15334_s27 + $0x6f8] sm:$0xff] %v9774_v22 }
 0x3c4 PF: > { %p10_p8 = scmp.ge.s32.totalorder %s12345_s16, 4   ;;  %s15766_s12 = smov %s12304_s13 }
 0x3c5   : > { %s15767_s13 = smov %s12353_s19  ;;  %s15768_s14 = smov %s12345_s16 }
 0x3c6   :  { %12 = sbr.rel (!%p10_p8) target bundleno = 2 (0x2), region = 108 }

</bundles_post_ra>
